<compile_context>
chip_gen: v5e
topology: v5e:2x2
jax: 0.10.0
libtpu: 0.0.40
codegen_flags: <defaults>
</compile_context>

<pallas_src>
import jax
import jax.numpy as jnp
from jax.experimental import pallas as pl
from jax.experimental.pallas import tpu as pltpu


# ----------------------------------------------------------------------------
# Shared per-edge-tile message construction
# ----------------------------------------------------------------------------
def _edge_tile_messages(x, src_ref, tgt_ref, ea_ref, w1_ref, b1_ref,
                        w2_ref, b2_ref):
    """Build scatter one-hot and per-edge messages for one tile of edges.

    x        : (N, Din)      f32  node features (VMEM-resident, constant block)
    src_ref  : (tE, 1)       i32  message-source node per edge
    tgt_ref  : (1, tE)       i32  aggregation-target node per edge
    ea_ref   : (tE, De)      f32  edge attributes
    w1/b1    : edge-MLP layer 1,  (De, H) / (1, H)
    w2_ref   : edge-MLP layer 2 weight pre-reshaped to (Din, H, H)
               (w2_3d[k, m, o] == W2[m, k*H + o])
    b2_ref   : edge-MLP layer 2 bias pre-reshaped to (Din, H)

    Returns (scat, msg):
      scat : (N, tE) bf16 one-hot scatter matrix (exact 0/1)
      msg  : (tE, H) f32  per-edge messages x_j @ W_e
    """
    N, Din = x.shape
    tE = ea_ref.shape[0]

    # edge MLP hidden layer: Linear -> ReLU
    h = jnp.maximum(
        jnp.dot(ea_ref[...], w1_ref[...], preferred_element_type=jnp.float32)
        + b1_ref[...], 0.0)                                       # (tE, H)

    # gather x_j = x[src] via one-hot matmul on the bf16 MXU path.
    src = src_ref[...]                                            # (tE, 1) i32
    col = jax.lax.broadcasted_iota(jnp.int32, (tE, N), 1)
    gath = (col == src).astype(jnp.bfloat16)                      # exact 0/1
    x_j = jnp.dot(gath, x.astype(jnp.bfloat16),
                  preferred_element_type=jnp.float32)             # (tE, Din)

    # per-edge message  msg_e = x_j @ (h_e @ W2 + b2).reshape(Din, H)
    # restructured as Din MXU matmuls (no (tE, Din, H) temp, no VPU reduce):
    #   msg = x_j @ B2  +  sum_k (h * x_j[:, k]) @ W2_k
    msg = jnp.dot(x_j, b2_ref[...], preferred_element_type=jnp.float32)
    for k in range(Din):                                          # static unroll
        msg = msg + jnp.dot(h * x_j[:, k:k + 1], w2_ref[k],
                            preferred_element_type=jnp.float32)   # (tE, H)

    # one-hot scatter onto target nodes; padded edges carry tgt == N (out of
    # range), so their column is all-zero and they contribute nothing.
    tgt = tgt_ref[...]                                            # (1, tE) i32
    row = jax.lax.broadcasted_iota(jnp.int32, (N, tE), 0)
    scat = (row == tgt).astype(jnp.bfloat16)                      # (N, tE)
    return scat, msg


# ----------------------------------------------------------------------------
# Kernels
# ----------------------------------------------------------------------------
def _nnconv1_kernel(x_ref, src_ref, tgt_ref, ea_ref,
                    w1_ref, b1_ref, w2_ref, b2_ref, wroot_ref, bias_ref,
                    h_out_ref, invdeg_ref, acc_ref, deg_ref):
    """NNConv(aggr='mean') + ReLU over edge tiles; also emits 1/max(deg,1)."""
    t = pl.program_id(0)

    @pl.when(t == 0)
    def _init():
        acc_ref[...] = jnp.zeros_like(acc_ref)
        deg_ref[...] = jnp.zeros_like(deg_ref)

    x = x_ref[...]                                               # (N, Din)
    scat, msg = _edge_tile_messages(x, src_ref, tgt_ref, ea_ref,
                                    w1_ref, b1_ref, w2_ref, b2_ref)
    tE = msg.shape[0]
    # scatter-add messages and degree counts on the MXU (bf16 masks, f32 acc)
    acc_ref[...] += jnp.dot(scat, msg.astype(jnp.bfloat16),
                            preferred_element_type=jnp.float32)   # (N, H)
    deg_ref[...] += jnp.dot(scat, jnp.ones((tE, 1), jnp.bfloat16),
                            preferred_element_type=jnp.float32)   # (N, 1)

    @pl.when(t == pl.num_programs(0) - 1)
    def _finalize():
        inv_deg = pl.reciprocal(jnp.maximum(deg_ref[...], 1.0), approx=True)
        agg = acc_ref[...] * inv_deg                  # mean; 0 where deg == 0
        root = jnp.dot(x, wroot_ref[...], preferred_element_type=jnp.float32)
        h_out_ref[...] = jnp.maximum(agg + root + bias_ref[...], 0.0)
        invdeg_ref[...] = inv_deg


def _nnconv2_qhead_kernel(x_ref, src_ref, tgt_ref, ea_ref, invdeg_ref,
                          w1_ref, b1_ref, w2_ref, b2_ref, wroot_ref, bias_ref,
                          qw_ref, qb_ref, q_ref, acc_ref):
    """Second NNConv(aggr='mean') + ReLU, with the q_head fused in the tail."""
    t = pl.program_id(0)

    @pl.when(t == 0)
    def _init():
        acc_ref[...] = jnp.zeros_like(acc_ref)

    x = x_ref[...]                                   # (N, H): relu(conv1) out
    scat, msg = _edge_tile_messages(x, src_ref, tgt_ref, ea_ref,
                                    w1_ref, b1_ref, w2_ref, b2_ref)
    acc_ref[...] += jnp.dot(scat, msg.astype(jnp.bfloat16),
                            preferred_element_type=jnp.float32)   # (N, H)

    @pl.when(t == pl.num_programs(0) - 1)
    def _finalize():
        agg = acc_ref[...] * invdeg_ref[...]          # reuse degree from conv1
        root = jnp.dot(x, wroot_ref[...], preferred_element_type=jnp.float32)
        h2 = jnp.maximum(agg + root + bias_ref[...], 0.0)          # (N, H)
        # fused q_head: no extra launch, no HBM roundtrip of h2
        q_ref[...] = (jnp.dot(h2, qw_ref[...],
                              preferred_element_type=jnp.float32) + qb_ref[...])


# ----------------------------------------------------------------------------
# Wrappers
# ----------------------------------------------------------------------------
def _full_spec(shape):
    nd = len(shape)
    return pl.BlockSpec(shape, lambda t, _nd=nd: (0,) * _nd)


_COMPILER_PARAMS = pltpu.CompilerParams(
    dimension_semantics=("arbitrary",),      # edge axis is a reduction
    vmem_limit_bytes=32 * 1024 * 1024,       # explicit; safe on v5e/v6e/v7x
)


def _nnconv1(x, src, tgt, ea, p, edge_tile):
    N, Din = x.shape
    E_pad, De = ea.shape
    H = p["w1"].shape[1]
    # pre-reshape edge-MLP layer-2 params so the kernel never reshapes lanes
    w2_3d = p["w2"].reshape(H, Din, H).transpose(1, 0, 2)          # (Din, H, H)
    b2_mat = p["b2"].reshape(Din, H)                               # (Din, H)
    return pl.pallas_call(
        _nnconv1_kernel,
        out_shape=(jax.ShapeDtypeStruct((N, H), jnp.float32),      # relu(conv1)
                   jax.ShapeDtypeStruct((N, 1), jnp.float32)),     # 1/max(deg,1)
        grid_spec=pltpu.PrefetchScalarGridSpec(
            num_scalar_prefetch=0,
            grid=(E_pad // edge_tile,),
            in_specs=[
                _full_spec((N, Din)),                              # x
                pl.BlockSpec((edge_tile, 1), lambda t: (t, 0)),    # src
                pl.BlockSpec((1, edge_tile), lambda t: (0, t)),    # tgt
                pl.BlockSpec((edge_tile, De), lambda t: (t, 0)),   # edge_attr
                _full_spec(p["w1"].shape), _full_spec(p["b1"].shape),
                _full_spec(w2_3d.shape), _full_spec(b2_mat.shape),
                _full_spec(p["wroot"].shape), _full_spec(p["bias"].shape),
            ],
            out_specs=[_full_spec((N, H)), _full_spec((N, 1))],
            scratch_shapes=[pltpu.VMEM((N, H), jnp.float32),       # segsum acc
                            pltpu.VMEM((N, 1), jnp.float32)],      # degree acc
        ),
        compiler_params=_COMPILER_PARAMS,
    )(x, src, tgt, ea, p["w1"], p["b1"], w2_3d, b2_mat, p["wroot"], p["bias"])


def _nnconv2_qhead(x, src, tgt, ea, inv_deg, p, q_w, q_b, edge_tile):
    N, Din = x.shape                                               # Din == H
    E_pad, De = ea.shape
    H = p["w1"].shape[1]
    w2_3d = p["w2"].reshape(H, Din, H).transpose(1, 0, 2)          # (Din, H, H)
    b2_mat = p["b2"].reshape(Din, H)
    return pl.pallas_call(
        _nnconv2_qhead_kernel,
        out_shape=jax.ShapeDtypeStruct((N, 1), jnp.float32),
        grid_spec=pltpu.PrefetchScalarGridSpec(
            num_scalar_prefetch=0,
            grid=(E_pad // edge_tile,),
            in_specs=[
                _full_spec((N, Din)),                              # h1
                pl.BlockSpec((edge_tile, 1), lambda t: (t, 0)),    # src
                pl.BlockSpec((1, edge_tile), lambda t: (0, t)),    # tgt
                pl.BlockSpec((edge_tile, De), lambda t: (t, 0)),   # edge_attr
                _full_spec((N, 1)),                                # inv_deg
                _full_spec(p["w1"].shape), _full_spec(p["b1"].shape),
                _full_spec(w2_3d.shape), _full_spec(b2_mat.shape),
                _full_spec(p["wroot"].shape), _full_spec(p["bias"].shape),
                _full_spec(q_w.shape), _full_spec(q_b.shape),
            ],
            out_specs=_full_spec((N, 1)),
            scratch_shapes=[pltpu.VMEM((N, H), jnp.float32)],
        ),
        compiler_params=_COMPILER_PARAMS,
    )(x, src, tgt, ea, inv_deg, p["w1"], p["b1"], w2_3d, b2_mat,
      p["wroot"], p["bias"], q_w, q_b)


def edge_feature_gnn_forward(params, x, edge_index, edge_attr, *, edge_tile=128):
    N = x.shape[0]
    E, _ = edge_attr.shape

    # Pad edges up to a multiple of the edge tile; padded edges point at the
    # out-of-range target N, so they never contribute to aggregation or degree.
    n_tiles = pl.cdiv(E, edge_tile)
    E_pad = n_tiles * edge_tile
    pad = E_pad - E
    src = edge_index[0].astype(jnp.int32)
    tgt = edge_index[1].astype(jnp.int32)
    if pad:
        src = jnp.pad(src, (0, pad))
        tgt = jnp.pad(tgt, (0, pad), constant_values=N)
        edge_attr = jnp.pad(edge_attr, ((0, pad), (0, 0)))
    src = src.reshape(E_pad, 1)    # sublane-major: broadcasts against (tE, N) iota
    tgt = tgt.reshape(1, E_pad)    # lane-major:    broadcasts against (N, tE) iota

    h1, inv_deg = _nnconv1(x, src, tgt, edge_attr, params["conv1"], edge_tile)
    q = _nnconv2_qhead(h1, src, tgt, edge_attr, inv_deg, params["conv2"],
                       params["q_w"], params["q_b"], edge_tile)
    return q[:, 0]                                                 # (N,)


# ----------------------------------------------------------------------------
# Deterministic parameter init (PyTorch-Linear-like uniform(-1/sqrt(fan_in), .))
# ----------------------------------------------------------------------------
def _linear(key, fan_in, fan_out):
    kw, kb = jax.random.split(key)
    bound = 1.0 / jnp.sqrt(float(fan_in))
    w = jax.random.uniform(kw, (fan_in, fan_out), jnp.float32, -bound, bound)
    b = jax.random.uniform(kb, (1, fan_out), jnp.float32, -bound, bound)
    return w, b


def init_params(key, node_in_dim, edge_in_dim, hidden_dim):
    keys = jax.random.split(key, 8)

    def conv_params(k1, k2, k3, in_dim):
        w1, b1 = _linear(k1, edge_in_dim, hidden_dim)
        w2, b2 = _linear(k2, hidden_dim, in_dim * hidden_dim)
        bound = 1.0 / jnp.sqrt(float(in_dim))
        wroot = jax.random.uniform(k3, (in_dim, hidden_dim), jnp.float32,
                                   -bound, bound)
        bias = jnp.zeros((1, hidden_dim), jnp.float32)  # PyG zero-inits NNConv bias
        return dict(w1=w1, b1=b1, w2=w2, b2=b2, wroot=wroot, bias=bias)

    q_w, q_b = _linear(keys[6], hidden_dim, 1)
    return dict(
        conv1=conv_params(keys[0], keys[1], keys[2], node_in_dim),
        conv2=conv_params(keys[3], keys[4], keys[5], hidden_dim),
        q_w=q_w, q_b=q_b,
    )


# ----------------------------------------------------------------------------
if __name__ == "__main__":
    NODE_IN_DIM = 4
    EDGE_IN_DIM = 6
    HIDDEN_DIM = 32
    N_NODES = 8
    N_EDGES = 16

    root = jax.random.PRNGKey(0)
    k_param, k_x, k_ei, k_ea = jax.random.split(root, 4)

    params = init_params(k_param, NODE_IN_DIM, EDGE_IN_DIM, HIDDEN_DIM)

    x = jax.random.normal(k_x, (N_NODES, NODE_IN_DIM), jnp.float32)
    edge_index = jax.random.randint(k_ei, (2, N_EDGES), 0, N_NODES, jnp.int32)
    edge_attr = jax.random.normal(k_ea, (N_EDGES, EDGE_IN_DIM), jnp.float32)

    fwd = jax.jit(edge_feature_gnn_forward)
    q_values = jax.block_until_ready(fwd(params, x, edge_index, edge_attr))

    assert q_values.shape == (N_NODES,)
    assert q_values.dtype == jnp.float32
    assert bool(jnp.all(jnp.isfinite(q_values)))
    print("KERNEL_OK")
</pallas_src>

<mosaic_0001>
module attributes {stable_mosaic.version = 11 : i64} {
  func.func @_nnconv1_kernel(%arg0: i32, %arg1: memref<8x4xf32, #tpu.memory_space<vmem>>, %arg2: memref<128x1xi32, #tpu.memory_space<vmem>>, %arg3: memref<1x128xi32, #tpu.memory_space<vmem>>, %arg4: memref<128x6xf32, #tpu.memory_space<vmem>>, %arg5: memref<6x32xf32, #tpu.memory_space<vmem>>, %arg6: memref<1x32xf32, #tpu.memory_space<vmem>>, %arg7: memref<4x32x32xf32, #tpu.memory_space<vmem>>, %arg8: memref<4x32xf32, #tpu.memory_space<vmem>>, %arg9: memref<4x32xf32, #tpu.memory_space<vmem>>, %arg10: memref<1x32xf32, #tpu.memory_space<vmem>>, %arg11: memref<8x32xf32, #tpu.memory_space<vmem>>, %arg12: memref<8x1xf32, #tpu.memory_space<vmem>>, %arg13: memref<8x32xf32, #tpu.memory_space<vmem>>, %arg14: memref<8x1xf32, #tpu.memory_space<vmem>>) attributes {dimension_semantics = [#tpu.dimension_semantics<arbitrary>], iteration_bounds = array<i64: 1>, scalar_prefetch = 0 : i64, scratch_operands = 2 : i64, tpu.core_type = #tpu.core_type<tc>, window_params = [{pipeline_mode = #tpu.pipeline_mode<synchronous>, transform_indices = @transform_0, window_bounds = array<i64: 8, 4>}, {transform_indices = @transform_1, window_bounds = array<i64: 128, 1>}, {transform_indices = @transform_2, window_bounds = array<i64: 1, 128>}, {transform_indices = @transform_3, window_bounds = array<i64: 128, 6>}, {pipeline_mode = #tpu.pipeline_mode<synchronous>, transform_indices = @transform_4, window_bounds = array<i64: 6, 32>}, {pipeline_mode = #tpu.pipeline_mode<synchronous>, transform_indices = @transform_5, window_bounds = array<i64: 1, 32>}, {pipeline_mode = #tpu.pipeline_mode<synchronous>, transform_indices = @transform_6, window_bounds = array<i64: 4, 32, 32>}, {pipeline_mode = #tpu.pipeline_mode<synchronous>, transform_indices = @transform_7, window_bounds = array<i64: 4, 32>}, {pipeline_mode = #tpu.pipeline_mode<synchronous>, transform_indices = @transform_8, window_bounds = array<i64: 4, 32>}, {pipeline_mode = #tpu.pipeline_mode<synchronous>, transform_indices = @transform_9, window_bounds = array<i64: 1, 32>}, {pipeline_mode = #tpu.pipeline_mode<synchronous>, transform_indices = @transform_10, window_bounds = array<i64: 8, 32>}, {pipeline_mode = #tpu.pipeline_mode<synchronous>, transform_indices = @transform_11, window_bounds = array<i64: 8, 1>}]} {
    %c0_i32 = arith.constant 0 : i32
    %0 = arith.cmpi eq, %arg0, %c0_i32 : i32
    %1 = arith.extui %0 : i1 to i32
    %c0_i32_0 = arith.constant 0 : i32
    %2 = arith.cmpi ne, %1, %c0_i32_0 : i32
    scf.if %2 {
      %cst_43 = arith.constant 0.000000e+00 : f32
      %71 = vector.broadcast %cst_43 : f32 to vector<8x32xf32>
      %c0_44 = arith.constant 0 : index
      %c0_45 = arith.constant 0 : index
      %72 = vector.load %arg13[%c0_44, %c0_45] : memref<8x32xf32, #tpu.memory_space<vmem>>, vector<8x32xf32>
      tpu.vector_store %arg13[%c0_44, %c0_45], %71 {strides = array<i32>} : memref<8x32xf32, #tpu.memory_space<vmem>>, vector<8x32xf32>,
      %cst_46 = arith.constant 0.000000e+00 : f32
      %73 = vector.broadcast %cst_46 : f32 to vector<8x1xf32>
      %c0_47 = arith.constant 0 : index
      %c0_48 = arith.constant 0 : index
      %74 = vector.load %arg14[%c0_47, %c0_48] : memref<8x1xf32, #tpu.memory_space<vmem>>, vector<8x1xf32>
      tpu.vector_store %arg14[%c0_47, %c0_48], %73 {strides = array<i32>} : memref<8x1xf32, #tpu.memory_space<vmem>>, vector<8x1xf32>,
    } else {
    }
    %c0 = arith.constant 0 : index
    %c0_1 = arith.constant 0 : index
    %3 = vector.load %arg1[%c0, %c0_1] : memref<8x4xf32, #tpu.memory_space<vmem>>, vector<8x4xf32>
    %c0_2 = arith.constant 0 : index
    %c0_3 = arith.constant 0 : index
    %4 = vector.load %arg4[%c0_2, %c0_3] : memref<128x6xf32, #tpu.memory_space<vmem>>, vector<128x6xf32>
    %c0_4 = arith.constant 0 : index
    %c0_5 = arith.constant 0 : index
    %5 = vector.load %arg5[%c0_4, %c0_5] : memref<6x32xf32, #tpu.memory_space<vmem>>, vector<6x32xf32>
    %cst = arith.constant dense<0.000000e+00> : vector<128x32xf32>
    %6 = tpu.matmul %4, %5, %cst {dimension_numbers = #tpu.dot_dimension_numbers<[1], [0], [0], [1], [0, 0, 1, 1], [], []>} : vector<128x6xf32>, vector<6x32xf32>, vector<128x32xf32> -> vector<128x32xf32>
    %c0_6 = arith.constant 0 : index
    %c0_7 = arith.constant 0 : index
    %7 = vector.load %arg6[%c0_6, %c0_7] : memref<1x32xf32, #tpu.memory_space<vmem>>, vector<1x32xf32>
    %8 = vector.broadcast %7 : vector<1x32xf32> to vector<128x32xf32>
    %9 = arith.addf %6, %8 : vector<128x32xf32>
    %cst_8 = arith.constant 0.000000e+00 : f32
    %10 = vector.broadcast %cst_8 : f32 to vector<128x32xf32>
    %11 = arith.maximumf %9, %10 : vector<128x32xf32>
    %c0_9 = arith.constant 0 : index
    %c0_10 = arith.constant 0 : index
    %12 = vector.load %arg2[%c0_9, %c0_10] : memref<128x1xi32, #tpu.memory_space<vmem>>, vector<128x1xi32>
    %13 = tpu.iota {dimensions = array<i32: 1>} : vector<128x8xi32>
    %14 = vector.broadcast %12 : vector<128x1xi32> to vector<128x8xi32>
    %15 = arith.cmpi eq, %13, %14 : vector<128x8xi32>
    %16 = arith.extui %15 : vector<128x8xi1> to vector<128x8xi32>
    %17 = arith.sitofp %16 : vector<128x8xi32> to vector<128x8xf32>
    %18 = arith.truncf %17 : vector<128x8xf32> to vector<128x8xbf16>
    %19 = arith.truncf %3 : vector<8x4xf32> to vector<8x4xbf16>
    %cst_11 = arith.constant dense<0.000000e+00> : vector<128x4xf32>
    %20 = tpu.matmul %18, %19, %cst_11 {dimension_numbers = #tpu.dot_dimension_numbers<[1], [0], [0], [1], [0, 0, 1, 1], [], []>} : vector<128x8xbf16>, vector<8x4xbf16>, vector<128x4xf32> -> vector<128x4xf32>
    %c0_12 = arith.constant 0 : index
    %c0_13 = arith.constant 0 : index
    %21 = vector.load %arg8[%c0_12, %c0_13] : memref<4x32xf32, #tpu.memory_space<vmem>>, vector<4x32xf32>
    %cst_14 = arith.constant dense<0.000000e+00> : vector<128x32xf32>
    %22 = tpu.matmul %20, %21, %cst_14 {dimension_numbers = #tpu.dot_dimension_numbers<[1], [0], [0], [1], [0, 0, 1, 1], [], []>} : vector<128x4xf32>, vector<4x32xf32>, vector<128x32xf32> -> vector<128x32xf32>
    %23 = vector.extract_strided_slice %20 {offsets = [0, 0], sizes = [128, 1], strides = [1, 1]} : vector<128x4xf32> to vector<128x1xf32>
    %24 = vector.broadcast %23 : vector<128x1xf32> to vector<128x32xf32>
    %25 = arith.mulf %11, %24 : vector<128x32xf32>
    %c0_15 = arith.constant 0 : index
    %c0_16 = arith.constant 0 : index
    %c0_17 = arith.constant 0 : index
    %26 = vector.load %arg7[%c0_15, %c0_16, %c0_17] : memref<4x32x32xf32, #tpu.memory_space<vmem>>, vector<1x32x32xf32>
    %27 = vector.shape_cast %26 : vector<1x32x32xf32> to vector<32x32xf32>
    %cst_18 = arith.constant dense<0.000000e+00> : vector<128x32xf32>
    %28 = tpu.matmul %25, %27, %cst_18 {dimension_numbers = #tpu.dot_dimension_numbers<[1], [0], [0], [1], [0, 0, 1, 1], [], []>} : vector<128x32xf32>, vector<32x32xf32>, vector<128x32xf32> -> vector<128x32xf32>
    %29 = arith.addf %22, %28 : vector<128x32xf32>
    %30 = vector.extract_strided_slice %20 {offsets = [0, 1], sizes = [128, 1], strides = [1, 1]} : vector<128x4xf32> to vector<128x1xf32>
    %31 = vector.broadcast %30 : vector<128x1xf32> to vector<128x32xf32>
    %32 = arith.mulf %11, %31 : vector<128x32xf32>
    %c1 = arith.constant 1 : index
    %c0_19 = arith.constant 0 : index
    %c0_20 = arith.constant 0 : index
    %33 = vector.load %arg7[%c1, %c0_19, %c0_20] : memref<4x32x32xf32, #tpu.memory_space<vmem>>, vector<1x32x32xf32>
    %34 = vector.shape_cast %33 : vector<1x32x32xf32> to vector<32x32xf32>
    %cst_21 = arith.constant dense<0.000000e+00> : vector<128x32xf32>
    %35 = tpu.matmul %32, %34, %cst_21 {dimension_numbers = #tpu.dot_dimension_numbers<[1], [0], [0], [1], [0, 0, 1, 1], [], []>} : vector<128x32xf32>, vector<32x32xf32>, vector<128x32xf32> -> vector<128x32xf32>
    %36 = arith.addf %29, %35 : vector<128x32xf32>
    %37 = vector.extract_strided_slice %20 {offsets = [0, 2], sizes = [128, 1], strides = [1, 1]} : vector<128x4xf32> to vector<128x1xf32>
    %38 = vector.broadcast %37 : vector<128x1xf32> to vector<128x32xf32>
    %39 = arith.mulf %11, %38 : vector<128x32xf32>
    %c2 = arith.constant 2 : index
    %c0_22 = arith.constant 0 : index
    %c0_23 = arith.constant 0 : index
    %40 = vector.load %arg7[%c2, %c0_22, %c0_23] : memref<4x32x32xf32, #tpu.memory_space<vmem>>, vector<1x32x32xf32>
    %41 = vector.shape_cast %40 : vector<1x32x32xf32> to vector<32x32xf32>
    %cst_24 = arith.constant dense<0.000000e+00> : vector<128x32xf32>
    %42 = tpu.matmul %39, %41, %cst_24 {dimension_numbers = #tpu.dot_dimension_numbers<[1], [0], [0], [1], [0, 0, 1, 1], [], []>} : vector<128x32xf32>, vector<32x32xf32>, vector<128x32xf32> -> vector<128x32xf32>
    %43 = arith.addf %36, %42 : vector<128x32xf32>
    %44 = vector.extract_strided_slice %20 {offsets = [0, 3], sizes = [128, 1], strides = [1, 1]} : vector<128x4xf32> to vector<128x1xf32>
    %45 = vector.broadcast %44 : vector<128x1xf32> to vector<128x32xf32>
    %46 = arith.mulf %11, %45 : vector<128x32xf32>
    %c3 = arith.constant 3 : index
    %c0_25 = arith.constant 0 : index
    %c0_26 = arith.constant 0 : index
    %47 = vector.load %arg7[%c3, %c0_25, %c0_26] : memref<4x32x32xf32, #tpu.memory_space<vmem>>, vector<1x32x32xf32>
    %48 = vector.shape_cast %47 : vector<1x32x32xf32> to vector<32x32xf32>
    %cst_27 = arith.constant dense<0.000000e+00> : vector<128x32xf32>
    %49 = tpu.matmul %46, %48, %cst_27 {dimension_numbers = #tpu.dot_dimension_numbers<[1], [0], [0], [1], [0, 0, 1, 1], [], []>} : vector<128x32xf32>, vector<32x32xf32>, vector<128x32xf32> -> vector<128x32xf32>
    %50 = arith.addf %43, %49 : vector<128x32xf32>
    %c0_28 = arith.constant 0 : index
    %c0_29 = arith.constant 0 : index
    %51 = vector.load %arg3[%c0_28, %c0_29] : memref<1x128xi32, #tpu.memory_space<vmem>>, vector<1x128xi32>
    %52 = tpu.iota {dimensions = array<i32: 0>} : vector<8x128xi32>
    %53 = vector.broadcast %51 : vector<1x128xi32> to vector<8x128xi32>
    %54 = arith.cmpi eq, %52, %53 : vector<8x128xi32>
    %55 = arith.extui %54 : vector<8x128xi1> to vector<8x128xi32>
    %56 = arith.sitofp %55 : vector<8x128xi32> to vector<8x128xf32>
    %57 = arith.truncf %56 : vector<8x128xf32> to vector<8x128xbf16>
    %c0_30 = arith.constant 0 : index
    %c0_31 = arith.constant 0 : index
    %58 = vector.load %arg13[%c0_30, %c0_31] : memref<8x32xf32, #tpu.memory_space<vmem>>, vector<8x32xf32>
    %59 = arith.truncf %50 : vector<128x32xf32> to vector<128x32xbf16>
    %cst_32 = arith.constant dense<0.000000e+00> : vector<8x32xf32>
    %60 = tpu.matmul %57, %59, %cst_32 {dimension_numbers = #tpu.dot_dimension_numbers<[1], [0], [0], [1], [0, 0, 1, 1], [], []>} : vector<8x128xbf16>, vector<128x32xbf16>, vector<8x32xf32> -> vector<8x32xf32>
    %61 = arith.addf %58, %60 : vector<8x32xf32>
    %c0_33 = arith.constant 0 : index
    %c0_34 = arith.constant 0 : index
    %62 = vector.load %arg13[%c0_33, %c0_34] : memref<8x32xf32, #tpu.memory_space<vmem>>, vector<8x32xf32>
    tpu.vector_store %arg13[%c0_33, %c0_34], %61 {strides = array<i32>} : memref<8x32xf32, #tpu.memory_space<vmem>>, vector<8x32xf32>,
    %c0_35 = arith.constant 0 : index
    %c0_36 = arith.constant 0 : index
    %63 = vector.load %arg14[%c0_35, %c0_36] : memref<8x1xf32, #tpu.memory_space<vmem>>, vector<8x1xf32>
    %cst_37 = arith.constant 1.000000e+00 : bf16
    %64 = vector.broadcast %cst_37 : bf16 to vector<128x1xbf16>
    %cst_38 = arith.constant dense<0.000000e+00> : vector<8x1xf32>
    %65 = tpu.matmul %57, %64, %cst_38 {dimension_numbers = #tpu.dot_dimension_numbers<[1], [0], [0], [1], [0, 0, 1, 1], [], []>} : vector<8x128xbf16>, vector<128x1xbf16>, vector<8x1xf32> -> vector<8x1xf32>
    %66 = arith.addf %63, %65 : vector<8x1xf32>
    %c0_39 = arith.constant 0 : index
    %c0_40 = arith.constant 0 : index
    %67 = vector.load %arg14[%c0_39, %c0_40] : memref<8x1xf32, #tpu.memory_space<vmem>>, vector<8x1xf32>
    tpu.vector_store %arg14[%c0_39, %c0_40], %66 {strides = array<i32>} : memref<8x1xf32, #tpu.memory_space<vmem>>, vector<8x1xf32>,
    %c0_i32_41 = arith.constant 0 : i32
    %68 = arith.cmpi eq, %arg0, %c0_i32_41 : i32
    %69 = arith.extui %68 : i1 to i32
    %c0_i32_42 = arith.constant 0 : i32
    %70 = arith.cmpi ne, %69, %c0_i32_42 : i32
    scf.if %70 {
      %c0_43 = arith.constant 0 : index
      %c0_44 = arith.constant 0 : index
      %71 = vector.load %arg14[%c0_43, %c0_44] : memref<8x1xf32, #tpu.memory_space<vmem>>, vector<8x1xf32>
      %cst_45 = arith.constant 1.000000e+00 : f32
      %72 = vector.broadcast %cst_45 : f32 to vector<8x1xf32>
      %73 = arith.maximumf %71, %72 : vector<8x1xf32>
      %74 = tpu.reciprocal %73 {approx = true} : vector<8x1xf32> -> vector<8x1xf32>
      %c0_46 = arith.constant 0 : index
      %c0_47 = arith.constant 0 : index
      %75 = vector.load %arg13[%c0_46, %c0_47] : memref<8x32xf32, #tpu.memory_space<vmem>>, vector<8x32xf32>
      %76 = vector.broadcast %74 : vector<8x1xf32> to vector<8x32xf32>
      %77 = arith.mulf %75, %76 : vector<8x32xf32>
      %c0_48 = arith.constant 0 : index
      %c0_49 = arith.constant 0 : index
      %78 = vector.load %arg9[%c0_48, %c0_49] : memref<4x32xf32, #tpu.memory_space<vmem>>, vector<4x32xf32>
      %cst_50 = arith.constant dense<0.000000e+00> : vector<8x32xf32>
      %79 = tpu.matmul %3, %78, %cst_50 {dimension_numbers = #tpu.dot_dimension_numbers<[1], [0], [0], [1], [0, 0, 1, 1], [], []>} : vector<8x4xf32>, vector<4x32xf32>, vector<8x32xf32> -> vector<8x32xf32>
      %80 = arith.addf %77, %79 : vector<8x32xf32>
      %c0_51 = arith.constant 0 : index
      %c0_52 = arith.constant 0 : index
      %81 = vector.load %arg10[%c0_51, %c0_52] : memref<1x32xf32, #tpu.memory_space<vmem>>, vector<1x32xf32>
      %82 = vector.broadcast %81 : vector<1x32xf32> to vector<8x32xf32>
      %83 = arith.addf %80, %82 : vector<8x32xf32>
      %cst_53 = arith.constant 0.000000e+00 : f32
      %84 = vector.broadcast %cst_53 : f32 to vector<8x32xf32>
      %85 = arith.maximumf %83, %84 : vector<8x32xf32>
      %c0_54 = arith.constant 0 : index
      %c0_55 = arith.constant 0 : index
      %86 = vector.load %arg11[%c0_54, %c0_55] : memref<8x32xf32, #tpu.memory_space<vmem>>, vector<8x32xf32>
      tpu.vector_store %arg11[%c0_54, %c0_55], %85 {strides = array<i32>} : memref<8x32xf32, #tpu.memory_space<vmem>>, vector<8x32xf32>,
      %c0_56 = arith.constant 0 : index
      %c0_57 = arith.constant 0 : index
      %87 = vector.load %arg12[%c0_56, %c0_57] : memref<8x1xf32, #tpu.memory_space<vmem>>, vector<8x1xf32>
      tpu.vector_store %arg12[%c0_56, %c0_57], %74 {strides = array<i32>} : memref<8x1xf32, #tpu.memory_space<vmem>>, vector<8x1xf32>,
    } else {
    }
    return
  }
  func.func @transform_0(%arg0: i32) -> (i32, i32) {
    %c0_i32 = arith.constant 0 : i32
    %c0_i32_0 = arith.constant 0 : i32
    %c0_i32_1 = arith.constant 0 : i32
    return %c0_i32, %c0_i32_0 : i32, i32
  }
  func.func @transform_1(%arg0: i32) -> (i32, i32) {
    %c0_i32 = arith.constant 0 : i32
    %c0_i32_0 = arith.constant 0 : i32
    return %arg0, %c0_i32 : i32, i32
  }
  func.func @transform_2(%arg0: i32) -> (i32, i32) {
    %c0_i32 = arith.constant 0 : i32
    %c0_i32_0 = arith.constant 0 : i32
    return %c0_i32, %arg0 : i32, i32
  }
  func.func @transform_3(%arg0: i32) -> (i32, i32) {
    %c0_i32 = arith.constant 0 : i32
    %c0_i32_0 = arith.constant 0 : i32
    return %arg0, %c0_i32 : i32, i32
  }
  func.func @transform_4(%arg0: i32) -> (i32, i32) {
    %c0_i32 = arith.constant 0 : i32
    %c0_i32_0 = arith.constant 0 : i32
    %c0_i32_1 = arith.constant 0 : i32
    return %c0_i32, %c0_i32_0 : i32, i32
  }
  func.func @transform_5(%arg0: i32) -> (i32, i32) {
    %c0_i32 = arith.constant 0 : i32
    %c0_i32_0 = arith.constant 0 : i32
    %c0_i32_1 = arith.constant 0 : i32
    return %c0_i32, %c0_i32_0 : i32, i32
  }
  func.func @transform_6(%arg0: i32) -> (i32, i32, i32) {
    %c0_i32 = arith.constant 0 : i32
    %c0_i32_0 = arith.constant 0 : i32
    %c0_i32_1 = arith.constant 0 : i32
    %c0_i32_2 = arith.constant 0 : i32
    return %c0_i32, %c0_i32_0, %c0_i32_1 : i32, i32, i32
  }
  func.func @transform_7(%arg0: i32) -> (i32, i32) {
    %c0_i32 = arith.constant 0 : i32
    %c0_i32_0 = arith.constant 0 : i32
    %c0_i32_1 = arith.constant 0 : i32
    return %c0_i32, %c0_i32_0 : i32, i32
  }
  func.func @transform_8(%arg0: i32) -> (i32, i32) {
    %c0_i32 = arith.constant 0 : i32
    %c0_i32_0 = arith.constant 0 : i32
    %c0_i32_1 = arith.constant 0 : i32
    return %c0_i32, %c0_i32_0 : i32, i32
  }
  func.func @transform_9(%arg0: i32) -> (i32, i32) {
    %c0_i32 = arith.constant 0 : i32
    %c0_i32_0 = arith.constant 0 : i32
    %c0_i32_1 = arith.constant 0 : i32
    return %c0_i32, %c0_i32_0 : i32, i32
  }
  func.func @transform_10(%arg0: i32) -> (i32, i32) {
    %c0_i32 = arith.constant 0 : i32
    %c0_i32_0 = arith.constant 0 : i32
    %c0_i32_1 = arith.constant 0 : i32
    return %c0_i32, %c0_i32_0 : i32, i32
  }
  func.func @transform_11(%arg0: i32) -> (i32, i32) {
    %c0_i32 = arith.constant 0 : i32
    %c0_i32_0 = arith.constant 0 : i32
    %c0_i32_1 = arith.constant 0 : i32
    return %c0_i32, %c0_i32_0 : i32, i32
  }
}

module attributes {stable_mosaic.version = 11 : i64} {
  func.func @_nnconv2_qhead_kernel(%arg0: i32, %arg1: memref<8x32xf32, #tpu.memory_space<vmem>>, %arg2: memref<128x1xi32, #tpu.memory_space<vmem>>, %arg3: memref<1x128xi32, #tpu.memory_space<vmem>>, %arg4: memref<128x6xf32, #tpu.memory_space<vmem>>, %arg5: memref<8x1xf32, #tpu.memory_space<vmem>>, %arg6: memref<6x32xf32, #tpu.memory_space<vmem>>, %arg7: memref<1x32xf32, #tpu.memory_space<vmem>>, %arg8: memref<32x32x32xf32, #tpu.memory_space<vmem>>, %arg9: memref<32x32xf32, #tpu.memory_space<vmem>>, %arg10: memref<32x32xf32, #tpu.memory_space<vmem>>, %arg11: memref<1x32xf32, #tpu.memory_space<vmem>>, %arg12: memref<32x1xf32, #tpu.memory_space<vmem>>, %arg13: memref<1x1xf32, #tpu.memory_space<vmem>>, %arg14: memref<8x1xf32, #tpu.memory_space<vmem>>, %arg15: memref<8x32xf32, #tpu.memory_space<vmem>>) attributes {dimension_semantics = [#tpu.dimension_semantics<arbitrary>], iteration_bounds = array<i64: 1>, scalar_prefetch = 0 : i64, scratch_operands = 1 : i64, tpu.core_type = #tpu.core_type<tc>, window_params = [{pipeline_mode = #tpu.pipeline_mode<synchronous>, transform_indices = @transform_0, window_bounds = array<i64: 8, 32>}, {transform_indices = @transform_1, window_bounds = array<i64: 128, 1>}, {transform_indices = @transform_2, window_bounds = array<i64: 1, 128>}, {transform_indices = @transform_3, window_bounds = array<i64: 128, 6>}, {pipeline_mode = #tpu.pipeline_mode<synchronous>, transform_indices = @transform_4, window_bounds = array<i64: 8, 1>}, {pipeline_mode = #tpu.pipeline_mode<synchronous>, transform_indices = @transform_5, window_bounds = array<i64: 6, 32>}, {pipeline_mode = #tpu.pipeline_mode<synchronous>, transform_indices = @transform_6, window_bounds = array<i64: 1, 32>}, {pipeline_mode = #tpu.pipeline_mode<synchronous>, transform_indices = @transform_7, window_bounds = array<i64: 32, 32, 32>}, {pipeline_mode = #tpu.pipeline_mode<synchronous>, transform_indices = @transform_8, window_bounds = array<i64: 32, 32>}, {pipeline_mode = #tpu.pipeline_mode<synchronous>, transform_indices = @transform_9, window_bounds = array<i64: 32, 32>}, {pipeline_mode = #tpu.pipeline_mode<synchronous>, transform_indices = @transform_10, window_bounds = array<i64: 1, 32>}, {pipeline_mode = #tpu.pipeline_mode<synchronous>, transform_indices = @transform_11, window_bounds = array<i64: 32, 1>}, {pipeline_mode = #tpu.pipeline_mode<synchronous>, transform_indices = @transform_12, window_bounds = array<i64: 1, 1>}, {pipeline_mode = #tpu.pipeline_mode<synchronous>, transform_indices = @transform_13, window_bounds = array<i64: 8, 1>}]} {
    %c0_i32 = arith.constant 0 : i32
    %0 = arith.cmpi eq, %arg0, %c0_i32 : i32
    %1 = arith.extui %0 : i1 to i32
    %c0_i32_0 = arith.constant 0 : i32
    %2 = arith.cmpi ne, %1, %c0_i32_0 : i32
    scf.if %2 {
      %cst_121 = arith.constant 0.000000e+00 : f32
      %262 = vector.broadcast %cst_121 : f32 to vector<8x32xf32>
      %c0_122 = arith.constant 0 : index
      %c0_123 = arith.constant 0 : index
      %263 = vector.load %arg15[%c0_122, %c0_123] : memref<8x32xf32, #tpu.memory_space<vmem>>, vector<8x32xf32>
      tpu.vector_store %arg15[%c0_122, %c0_123], %262 {strides = array<i32>} : memref<8x32xf32, #tpu.memory_space<vmem>>, vector<8x32xf32>,
    } else {
    }
    %c0 = arith.constant 0 : index
    %c0_1 = arith.constant 0 : index
    %3 = vector.load %arg1[%c0, %c0_1] : memref<8x32xf32, #tpu.memory_space<vmem>>, vector<8x32xf32>
    %c0_2 = arith.constant 0 : index
    %c0_3 = arith.constant 0 : index
    %4 = vector.load %arg4[%c0_2, %c0_3] : memref<128x6xf32, #tpu.memory_space<vmem>>, vector<128x6xf32>
    %c0_4 = arith.constant 0 : index
    %c0_5 = arith.constant 0 : index
    %5 = vector.load %arg6[%c0_4, %c0_5] : memref<6x32xf32, #tpu.memory_space<vmem>>, vector<6x32xf32>
    %cst = arith.constant dense<0.000000e+00> : vector<128x32xf32>
    %6 = tpu.matmul %4, %5, %cst {dimension_numbers = #tpu.dot_dimension_numbers<[1], [0], [0], [1], [0, 0, 1, 1], [], []>} : vector<128x6xf32>, vector<6x32xf32>, vector<128x32xf32> -> vector<128x32xf32>
    %c0_6 = arith.constant 0 : index
    %c0_7 = arith.constant 0 : index
    %7 = vector.load %arg7[%c0_6, %c0_7] : memref<1x32xf32, #tpu.memory_space<vmem>>, vector<1x32xf32>
    %8 = vector.broadcast %7 : vector<1x32xf32> to vector<128x32xf32>
    %9 = arith.addf %6, %8 : vector<128x32xf32>
    %cst_8 = arith.constant 0.000000e+00 : f32
    %10 = vector.broadcast %cst_8 : f32 to vector<128x32xf32>
    %11 = arith.maximumf %9, %10 : vector<128x32xf32>
    %c0_9 = arith.constant 0 : index
    %c0_10 = arith.constant 0 : index
    %12 = vector.load %arg2[%c0_9, %c0_10] : memref<128x1xi32, #tpu.memory_space<vmem>>, vector<128x1xi32>
    %13 = tpu.iota {dimensions = array<i32: 1>} : vector<128x8xi32>
    %14 = vector.broadcast %12 : vector<128x1xi32> to vector<128x8xi32>
    %15 = arith.cmpi eq, %13, %14 : vector<128x8xi32>
    %16 = arith.extui %15 : vector<128x8xi1> to vector<128x8xi32>
    %17 = arith.sitofp %16 : vector<128x8xi32> to vector<128x8xf32>
    %18 = arith.truncf %17 : vector<128x8xf32> to vector<128x8xbf16>
    %19 = arith.truncf %3 : vector<8x32xf32> to vector<8x32xbf16>
    %cst_11 = arith.constant dense<0.000000e+00> : vector<128x32xf32>
    %20 = tpu.matmul %18, %19, %cst_11 {dimension_numbers = #tpu.dot_dimension_numbers<[1], [0], [0], [1], [0, 0, 1, 1], [], []>} : vector<128x8xbf16>, vector<8x32xbf16>, vector<128x32xf32> -> vector<128x32xf32>
    %c0_12 = arith.constant 0 : index
    %c0_13 = arith.constant 0 : index
    %21 = vector.load %arg9[%c0_12, %c0_13] : memref<32x32xf32, #tpu.memory_space<vmem>>, vector<32x32xf32>
    %cst_14 = arith.constant dense<0.000000e+00> : vector<128x32xf32>
    %22 = tpu.matmul %20, %21, %cst_14 {dimension_numbers = #tpu.dot_dimension_numbers<[1], [0], [0], [1], [0, 0, 1, 1], [], []>} : vector<128x32xf32>, vector<32x32xf32>, vector<128x32xf32> -> vector<128x32xf32>
    %23 = vector.extract_strided_slice %20 {offsets = [0, 0], sizes = [128, 1], strides = [1, 1]} : vector<128x32xf32> to vector<128x1xf32>
    %24 = vector.broadcast %23 : vector<128x1xf32> to vector<128x32xf32>
    %25 = arith.mulf %11, %24 : vector<128x32xf32>
    %c0_15 = arith.constant 0 : index
    %c0_16 = arith.constant 0 : index
    %c0_17 = arith.constant 0 : index
    %26 = vector.load %arg8[%c0_15, %c0_16, %c0_17] : memref<32x32x32xf32, #tpu.memory_space<vmem>>, vector<1x32x32xf32>
    %27 = vector.shape_cast %26 : vector<1x32x32xf32> to vector<32x32xf32>
    %cst_18 = arith.constant dense<0.000000e+00> : vector<128x32xf32>
    %28 = tpu.matmul %25, %27, %cst_18 {dimension_numbers = #tpu.dot_dimension_numbers<[1], [0], [0], [1], [0, 0, 1, 1], [], []>} : vector<128x32xf32>, vector<32x32xf32>, vector<128x32xf32> -> vector<128x32xf32>
    %29 = arith.addf %22, %28 : vector<128x32xf32>
    %30 = vector.extract_strided_slice %20 {offsets = [0, 1], sizes = [128, 1], strides = [1, 1]} : vector<128x32xf32> to vector<128x1xf32>
    %31 = vector.broadcast %30 : vector<128x1xf32> to vector<128x32xf32>
    %32 = arith.mulf %11, %31 : vector<128x32xf32>
    %c1 = arith.constant 1 : index
    %c0_19 = arith.constant 0 : index
    %c0_20 = arith.constant 0 : index
    %33 = vector.load %arg8[%c1, %c0_19, %c0_20] : memref<32x32x32xf32, #tpu.memory_space<vmem>>, vector<1x32x32xf32>
    %34 = vector.shape_cast %33 : vector<1x32x32xf32> to vector<32x32xf32>
    %cst_21 = arith.constant dense<0.000000e+00> : vector<128x32xf32>
    %35 = tpu.matmul %32, %34, %cst_21 {dimension_numbers = #tpu.dot_dimension_numbers<[1], [0], [0], [1], [0, 0, 1, 1], [], []>} : vector<128x32xf32>, vector<32x32xf32>, vector<128x32xf32> -> vector<128x32xf32>
    %36 = arith.addf %29, %35 : vector<128x32xf32>
    %37 = vector.extract_strided_slice %20 {offsets = [0, 2], sizes = [128, 1], strides = [1, 1]} : vector<128x32xf32> to vector<128x1xf32>
    %38 = vector.broadcast %37 : vector<128x1xf32> to vector<128x32xf32>
    %39 = arith.mulf %11, %38 : vector<128x32xf32>
    %c2 = arith.constant 2 : index
    %c0_22 = arith.constant 0 : index
    %c0_23 = arith.constant 0 : index
    %40 = vector.load %arg8[%c2, %c0_22, %c0_23] : memref<32x32x32xf32, #tpu.memory_space<vmem>>, vector<1x32x32xf32>
    %41 = vector.shape_cast %40 : vector<1x32x32xf32> to vector<32x32xf32>
    %cst_24 = arith.constant dense<0.000000e+00> : vector<128x32xf32>
    %42 = tpu.matmul %39, %41, %cst_24 {dimension_numbers = #tpu.dot_dimension_numbers<[1], [0], [0], [1], [0, 0, 1, 1], [], []>} : vector<128x32xf32>, vector<32x32xf32>, vector<128x32xf32> -> vector<128x32xf32>
    %43 = arith.addf %36, %42 : vector<128x32xf32>
    %44 = vector.extract_strided_slice %20 {offsets = [0, 3], sizes = [128, 1], strides = [1, 1]} : vector<128x32xf32> to vector<128x1xf32>
    %45 = vector.broadcast %44 : vector<128x1xf32> to vector<128x32xf32>
    %46 = arith.mulf %11, %45 : vector<128x32xf32>
    %c3 = arith.constant 3 : index
    %c0_25 = arith.constant 0 : index
    %c0_26 = arith.constant 0 : index
    %47 = vector.load %arg8[%c3, %c0_25, %c0_26] : memref<32x32x32xf32, #tpu.memory_space<vmem>>, vector<1x32x32xf32>
    %48 = vector.shape_cast %47 : vector<1x32x32xf32> to vector<32x32xf32>
    %cst_27 = arith.constant dense<0.000000e+00> : vector<128x32xf32>
    %49 = tpu.matmul %46, %48, %cst_27 {dimension_numbers = #tpu.dot_dimension_numbers<[1], [0], [0], [1], [0, 0, 1, 1], [], []>} : vector<128x32xf32>, vector<32x32xf32>, vector<128x32xf32> -> vector<128x32xf32>
    %50 = arith.addf %43, %49 : vector<128x32xf32>
    %51 = vector.extract_strided_slice %20 {offsets = [0, 4], sizes = [128, 1], strides = [1, 1]} : vector<128x32xf32> to vector<128x1xf32>
    %52 = vector.broadcast %51 : vector<128x1xf32> to vector<128x32xf32>
    %53 = arith.mulf %11, %52 : vector<128x32xf32>
    %c4 = arith.constant 4 : index
    %c0_28 = arith.constant 0 : index
    %c0_29 = arith.constant 0 : index
    %54 = vector.load %arg8[%c4, %c0_28, %c0_29] : memref<32x32x32xf32, #tpu.memory_space<vmem>>, vector<1x32x32xf32>
    %55 = vector.shape_cast %54 : vector<1x32x32xf32> to vector<32x32xf32>
    %cst_30 = arith.constant dense<0.000000e+00> : vector<128x32xf32>
    %56 = tpu.matmul %53, %55, %cst_30 {dimension_numbers = #tpu.dot_dimension_numbers<[1], [0], [0], [1], [0, 0, 1, 1], [], []>} : vector<128x32xf32>, vector<32x32xf32>, vector<128x32xf32> -> vector<128x32xf32>
    %57 = arith.addf %50, %56 : vector<128x32xf32>
    %58 = vector.extract_strided_slice %20 {offsets = [0, 5], sizes = [128, 1], strides = [1, 1]} : vector<128x32xf32> to vector<128x1xf32>
    %59 = vector.broadcast %58 : vector<128x1xf32> to vector<128x32xf32>
    %60 = arith.mulf %11, %59 : vector<128x32xf32>
    %c5 = arith.constant 5 : index
    %c0_31 = arith.constant 0 : index
    %c0_32 = arith.constant 0 : index
    %61 = vector.load %arg8[%c5, %c0_31, %c0_32] : memref<32x32x32xf32, #tpu.memory_space<vmem>>, vector<1x32x32xf32>
    %62 = vector.shape_cast %61 : vector<1x32x32xf32> to vector<32x32xf32>
    %cst_33 = arith.constant dense<0.000000e+00> : vector<128x32xf32>
    %63 = tpu.matmul %60, %62, %cst_33 {dimension_numbers = #tpu.dot_dimension_numbers<[1], [0], [0], [1], [0, 0, 1, 1], [], []>} : vector<128x32xf32>, vector<32x32xf32>, vector<128x32xf32> -> vector<128x32xf32>
    %64 = arith.addf %57, %63 : vector<128x32xf32>
    %65 = vector.extract_strided_slice %20 {offsets = [0, 6], sizes = [128, 1], strides = [1, 1]} : vector<128x32xf32> to vector<128x1xf32>
    %66 = vector.broadcast %65 : vector<128x1xf32> to vector<128x32xf32>
    %67 = arith.mulf %11, %66 : vector<128x32xf32>
    %c6 = arith.constant 6 : index
    %c0_34 = arith.constant 0 : index
    %c0_35 = arith.constant 0 : index
    %68 = vector.load %arg8[%c6, %c0_34, %c0_35] : memref<32x32x32xf32, #tpu.memory_space<vmem>>, vector<1x32x32xf32>
    %69 = vector.shape_cast %68 : vector<1x32x32xf32> to vector<32x32xf32>
    %cst_36 = arith.constant dense<0.000000e+00> : vector<128x32xf32>
    %70 = tpu.matmul %67, %69, %cst_36 {dimension_numbers = #tpu.dot_dimension_numbers<[1], [0], [0], [1], [0, 0, 1, 1], [], []>} : vector<128x32xf32>, vector<32x32xf32>, vector<128x32xf32> -> vector<128x32xf32>
    %71 = arith.addf %64, %70 : vector<128x32xf32>
    %72 = vector.extract_strided_slice %20 {offsets = [0, 7], sizes = [128, 1], strides = [1, 1]} : vector<128x32xf32> to vector<128x1xf32>
    %73 = vector.broadcast %72 : vector<128x1xf32> to vector<128x32xf32>
    %74 = arith.mulf %11, %73 : vector<128x32xf32>
    %c7 = arith.constant 7 : index
    %c0_37 = arith.constant 0 : index
    %c0_38 = arith.constant 0 : index
    %75 = vector.load %arg8[%c7, %c0_37, %c0_38] : memref<32x32x32xf32, #tpu.memory_space<vmem>>, vector<1x32x32xf32>
    %76 = vector.shape_cast %75 : vector<1x32x32xf32> to vector<32x32xf32>
    %cst_39 = arith.constant dense<0.000000e+00> : vector<128x32xf32>
    %77 = tpu.matmul %74, %76, %cst_39 {dimension_numbers = #tpu.dot_dimension_numbers<[1], [0], [0], [1], [0, 0, 1, 1], [], []>} : vector<128x32xf32>, vector<32x32xf32>, vector<128x32xf32> -> vector<128x32xf32>
    %78 = arith.addf %71, %77 : vector<128x32xf32>
    %79 = vector.extract_strided_slice %20 {offsets = [0, 8], sizes = [128, 1], strides = [1, 1]} : vector<128x32xf32> to vector<128x1xf32>
    %80 = vector.broadcast %79 : vector<128x1xf32> to vector<128x32xf32>
    %81 = arith.mulf %11, %80 : vector<128x32xf32>
    %c8 = arith.constant 8 : index
    %c0_40 = arith.constant 0 : index
    %c0_41 = arith.constant 0 : index
    %82 = vector.load %arg8[%c8, %c0_40, %c0_41] : memref<32x32x32xf32, #tpu.memory_space<vmem>>, vector<1x32x32xf32>
    %83 = vector.shape_cast %82 : vector<1x32x32xf32> to vector<32x32xf32>
    %cst_42 = arith.constant dense<0.000000e+00> : vector<128x32xf32>
    %84 = tpu.matmul %81, %83, %cst_42 {dimension_numbers = #tpu.dot_dimension_numbers<[1], [0], [0], [1], [0, 0, 1, 1], [], []>} : vector<128x32xf32>, vector<32x32xf32>, vector<128x32xf32> -> vector<128x32xf32>
    %85 = arith.addf %78, %84 : vector<128x32xf32>
    %86 = vector.extract_strided_slice %20 {offsets = [0, 9], sizes = [128, 1], strides = [1, 1]} : vector<128x32xf32> to vector<128x1xf32>
    %87 = vector.broadcast %86 : vector<128x1xf32> to vector<128x32xf32>
    %88 = arith.mulf %11, %87 : vector<128x32xf32>
    %c9 = arith.constant 9 : index
    %c0_43 = arith.constant 0 : index
    %c0_44 = arith.constant 0 : index
    %89 = vector.load %arg8[%c9, %c0_43, %c0_44] : memref<32x32x32xf32, #tpu.memory_space<vmem>>, vector<1x32x32xf32>
    %90 = vector.shape_cast %89 : vector<1x32x32xf32> to vector<32x32xf32>
    %cst_45 = arith.constant dense<0.000000e+00> : vector<128x32xf32>
    %91 = tpu.matmul %88, %90, %cst_45 {dimension_numbers = #tpu.dot_dimension_numbers<[1], [0], [0], [1], [0, 0, 1, 1], [], []>} : vector<128x32xf32>, vector<32x32xf32>, vector<128x32xf32> -> vector<128x32xf32>
    %92 = arith.addf %85, %91 : vector<128x32xf32>
    %93 = vector.extract_strided_slice %20 {offsets = [0, 10], sizes = [128, 1], strides = [1, 1]} : vector<128x32xf32> to vector<128x1xf32>
    %94 = vector.broadcast %93 : vector<128x1xf32> to vector<128x32xf32>
    %95 = arith.mulf %11, %94 : vector<128x32xf32>
    %c10 = arith.constant 10 : index
    %c0_46 = arith.constant 0 : index
    %c0_47 = arith.constant 0 : index
    %96 = vector.load %arg8[%c10, %c0_46, %c0_47] : memref<32x32x32xf32, #tpu.memory_space<vmem>>, vector<1x32x32xf32>
    %97 = vector.shape_cast %96 : vector<1x32x32xf32> to vector<32x32xf32>
    %cst_48 = arith.constant dense<0.000000e+00> : vector<128x32xf32>
    %98 = tpu.matmul %95, %97, %cst_48 {dimension_numbers = #tpu.dot_dimension_numbers<[1], [0], [0], [1], [0, 0, 1, 1], [], []>} : vector<128x32xf32>, vector<32x32xf32>, vector<128x32xf32> -> vector<128x32xf32>
    %99 = arith.addf %92, %98 : vector<128x32xf32>
    %100 = vector.extract_strided_slice %20 {offsets = [0, 11], sizes = [128, 1], strides = [1, 1]} : vector<128x32xf32> to vector<128x1xf32>
    %101 = vector.broadcast %100 : vector<128x1xf32> to vector<128x32xf32>
    %102 = arith.mulf %11, %101 : vector<128x32xf32>
    %c11 = arith.constant 11 : index
    %c0_49 = arith.constant 0 : index
    %c0_50 = arith.constant 0 : index
    %103 = vector.load %arg8[%c11, %c0_49, %c0_50] : memref<32x32x32xf32, #tpu.memory_space<vmem>>, vector<1x32x32xf32>
    %104 = vector.shape_cast %103 : vector<1x32x32xf32> to vector<32x32xf32>
    %cst_51 = arith.constant dense<0.000000e+00> : vector<128x32xf32>
    %105 = tpu.matmul %102, %104, %cst_51 {dimension_numbers = #tpu.dot_dimension_numbers<[1], [0], [0], [1], [0, 0, 1, 1], [], []>} : vector<128x32xf32>, vector<32x32xf32>, vector<128x32xf32> -> vector<128x32xf32>
    %106 = arith.addf %99, %105 : vector<128x32xf32>
    %107 = vector.extract_strided_slice %20 {offsets = [0, 12], sizes = [128, 1], strides = [1, 1]} : vector<128x32xf32> to vector<128x1xf32>
    %108 = vector.broadcast %107 : vector<128x1xf32> to vector<128x32xf32>
    %109 = arith.mulf %11, %108 : vector<128x32xf32>
    %c12 = arith.constant 12 : index
    %c0_52 = arith.constant 0 : index
    %c0_53 = arith.constant 0 : index
    %110 = vector.load %arg8[%c12, %c0_52, %c0_53] : memref<32x32x32xf32, #tpu.memory_space<vmem>>, vector<1x32x32xf32>
    %111 = vector.shape_cast %110 : vector<1x32x32xf32> to vector<32x32xf32>
    %cst_54 = arith.constant dense<0.000000e+00> : vector<128x32xf32>
    %112 = tpu.matmul %109, %111, %cst_54 {dimension_numbers = #tpu.dot_dimension_numbers<[1], [0], [0], [1], [0, 0, 1, 1], [], []>} : vector<128x32xf32>, vector<32x32xf32>, vector<128x32xf32> -> vector<128x32xf32>
    %113 = arith.addf %106, %112 : vector<128x32xf32>
    %114 = vector.extract_strided_slice %20 {offsets = [0, 13], sizes = [128, 1], strides = [1, 1]} : vector<128x32xf32> to vector<128x1xf32>
    %115 = vector.broadcast %114 : vector<128x1xf32> to vector<128x32xf32>
    %116 = arith.mulf %11, %115 : vector<128x32xf32>
    %c13 = arith.constant 13 : index
    %c0_55 = arith.constant 0 : index
    %c0_56 = arith.constant 0 : index
    %117 = vector.load %arg8[%c13, %c0_55, %c0_56] : memref<32x32x32xf32, #tpu.memory_space<vmem>>, vector<1x32x32xf32>
    %118 = vector.shape_cast %117 : vector<1x32x32xf32> to vector<32x32xf32>
    %cst_57 = arith.constant dense<0.000000e+00> : vector<128x32xf32>
    %119 = tpu.matmul %116, %118, %cst_57 {dimension_numbers = #tpu.dot_dimension_numbers<[1], [0], [0], [1], [0, 0, 1, 1], [], []>} : vector<128x32xf32>, vector<32x32xf32>, vector<128x32xf32> -> vector<128x32xf32>
    %120 = arith.addf %113, %119 : vector<128x32xf32>
    %121 = vector.extract_strided_slice %20 {offsets = [0, 14], sizes = [128, 1], strides = [1, 1]} : vector<128x32xf32> to vector<128x1xf32>
    %122 = vector.broadcast %121 : vector<128x1xf32> to vector<128x32xf32>
    %123 = arith.mulf %11, %122 : vector<128x32xf32>
    %c14 = arith.constant 14 : index
    %c0_58 = arith.constant 0 : index
    %c0_59 = arith.constant 0 : index
    %124 = vector.load %arg8[%c14, %c0_58, %c0_59] : memref<32x32x32xf32, #tpu.memory_space<vmem>>, vector<1x32x32xf32>
    %125 = vector.shape_cast %124 : vector<1x32x32xf32> to vector<32x32xf32>
    %cst_60 = arith.constant dense<0.000000e+00> : vector<128x32xf32>
    %126 = tpu.matmul %123, %125, %cst_60 {dimension_numbers = #tpu.dot_dimension_numbers<[1], [0], [0], [1], [0, 0, 1, 1], [], []>} : vector<128x32xf32>, vector<32x32xf32>, vector<128x32xf32> -> vector<128x32xf32>
    %127 = arith.addf %120, %126 : vector<128x32xf32>
    %128 = vector.extract_strided_slice %20 {offsets = [0, 15], sizes = [128, 1], strides = [1, 1]} : vector<128x32xf32> to vector<128x1xf32>
    %129 = vector.broadcast %128 : vector<128x1xf32> to vector<128x32xf32>
    %130 = arith.mulf %11, %129 : vector<128x32xf32>
    %c15 = arith.constant 15 : index
    %c0_61 = arith.constant 0 : index
    %c0_62 = arith.constant 0 : index
    %131 = vector.load %arg8[%c15, %c0_61, %c0_62] : memref<32x32x32xf32, #tpu.memory_space<vmem>>, vector<1x32x32xf32>
    %132 = vector.shape_cast %131 : vector<1x32x32xf32> to vector<32x32xf32>
    %cst_63 = arith.constant dense<0.000000e+00> : vector<128x32xf32>
    %133 = tpu.matmul %130, %132, %cst_63 {dimension_numbers = #tpu.dot_dimension_numbers<[1], [0], [0], [1], [0, 0, 1, 1], [], []>} : vector<128x32xf32>, vector<32x32xf32>, vector<128x32xf32> -> vector<128x32xf32>
    %134 = arith.addf %127, %133 : vector<128x32xf32>
    %135 = vector.extract_strided_slice %20 {offsets = [0, 16], sizes = [128, 1], strides = [1, 1]} : vector<128x32xf32> to vector<128x1xf32>
    %136 = vector.broadcast %135 : vector<128x1xf32> to vector<128x32xf32>
    %137 = arith.mulf %11, %136 : vector<128x32xf32>
    %c16 = arith.constant 16 : index
    %c0_64 = arith.constant 0 : index
    %c0_65 = arith.constant 0 : index
    %138 = vector.load %arg8[%c16, %c0_64, %c0_65] : memref<32x32x32xf32, #tpu.memory_space<vmem>>, vector<1x32x32xf32>
    %139 = vector.shape_cast %138 : vector<1x32x32xf32> to vector<32x32xf32>
    %cst_66 = arith.constant dense<0.000000e+00> : vector<128x32xf32>
    %140 = tpu.matmul %137, %139, %cst_66 {dimension_numbers = #tpu.dot_dimension_numbers<[1], [0], [0], [1], [0, 0, 1, 1], [], []>} : vector<128x32xf32>, vector<32x32xf32>, vector<128x32xf32> -> vector<128x32xf32>
    %141 = arith.addf %134, %140 : vector<128x32xf32>
    %142 = vector.extract_strided_slice %20 {offsets = [0, 17], sizes = [128, 1], strides = [1, 1]} : vector<128x32xf32> to vector<128x1xf32>
    %143 = vector.broadcast %142 : vector<128x1xf32> to vector<128x32xf32>
    %144 = arith.mulf %11, %143 : vector<128x32xf32>
    %c17 = arith.constant 17 : index
    %c0_67 = arith.constant 0 : index
    %c0_68 = arith.constant 0 : index
    %145 = vector.load %arg8[%c17, %c0_67, %c0_68] : memref<32x32x32xf32, #tpu.memory_space<vmem>>, vector<1x32x32xf32>
    %146 = vector.shape_cast %145 : vector<1x32x32xf32> to vector<32x32xf32>
    %cst_69 = arith.constant dense<0.000000e+00> : vector<128x32xf32>
    %147 = tpu.matmul %144, %146, %cst_69 {dimension_numbers = #tpu.dot_dimension_numbers<[1], [0], [0], [1], [0, 0, 1, 1], [], []>} : vector<128x32xf32>, vector<32x32xf32>, vector<128x32xf32> -> vector<128x32xf32>
    %148 = arith.addf %141, %147 : vector<128x32xf32>
    %149 = vector.extract_strided_slice %20 {offsets = [0, 18], sizes = [128, 1], strides = [1, 1]} : vector<128x32xf32> to vector<128x1xf32>
    %150 = vector.broadcast %149 : vector<128x1xf32> to vector<128x32xf32>
    %151 = arith.mulf %11, %150 : vector<128x32xf32>
    %c18 = arith.constant 18 : index
    %c0_70 = arith.constant 0 : index
    %c0_71 = arith.constant 0 : index
    %152 = vector.load %arg8[%c18, %c0_70, %c0_71] : memref<32x32x32xf32, #tpu.memory_space<vmem>>, vector<1x32x32xf32>
    %153 = vector.shape_cast %152 : vector<1x32x32xf32> to vector<32x32xf32>
    %cst_72 = arith.constant dense<0.000000e+00> : vector<128x32xf32>
    %154 = tpu.matmul %151, %153, %cst_72 {dimension_numbers = #tpu.dot_dimension_numbers<[1], [0], [0], [1], [0, 0, 1, 1], [], []>} : vector<128x32xf32>, vector<32x32xf32>, vector<128x32xf32> -> vector<128x32xf32>
    %155 = arith.addf %148, %154 : vector<128x32xf32>
    %156 = vector.extract_strided_slice %20 {offsets = [0, 19], sizes = [128, 1], strides = [1, 1]} : vector<128x32xf32> to vector<128x1xf32>
    %157 = vector.broadcast %156 : vector<128x1xf32> to vector<128x32xf32>
    %158 = arith.mulf %11, %157 : vector<128x32xf32>
    %c19 = arith.constant 19 : index
    %c0_73 = arith.constant 0 : index
    %c0_74 = arith.constant 0 : index
    %159 = vector.load %arg8[%c19, %c0_73, %c0_74] : memref<32x32x32xf32, #tpu.memory_space<vmem>>, vector<1x32x32xf32>
    %160 = vector.shape_cast %159 : vector<1x32x32xf32> to vector<32x32xf32>
    %cst_75 = arith.constant dense<0.000000e+00> : vector<128x32xf32>
    %161 = tpu.matmul %158, %160, %cst_75 {dimension_numbers = #tpu.dot_dimension_numbers<[1], [0], [0], [1], [0, 0, 1, 1], [], []>} : vector<128x32xf32>, vector<32x32xf32>, vector<128x32xf32> -> vector<128x32xf32>
    %162 = arith.addf %155, %161 : vector<128x32xf32>
    %163 = vector.extract_strided_slice %20 {offsets = [0, 20], sizes = [128, 1], strides = [1, 1]} : vector<128x32xf32> to vector<128x1xf32>
    %164 = vector.broadcast %163 : vector<128x1xf32> to vector<128x32xf32>
    %165 = arith.mulf %11, %164 : vector<128x32xf32>
    %c20 = arith.constant 20 : index
    %c0_76 = arith.constant 0 : index
    %c0_77 = arith.constant 0 : index
    %166 = vector.load %arg8[%c20, %c0_76, %c0_77] : memref<32x32x32xf32, #tpu.memory_space<vmem>>, vector<1x32x32xf32>
    %167 = vector.shape_cast %166 : vector<1x32x32xf32> to vector<32x32xf32>
    %cst_78 = arith.constant dense<0.000000e+00> : vector<128x32xf32>
    %168 = tpu.matmul %165, %167, %cst_78 {dimension_numbers = #tpu.dot_dimension_numbers<[1], [0], [0], [1], [0, 0, 1, 1], [], []>} : vector<128x32xf32>, vector<32x32xf32>, vector<128x32xf32> -> vector<128x32xf32>
    %169 = arith.addf %162, %168 : vector<128x32xf32>
    %170 = vector.extract_strided_slice %20 {offsets = [0, 21], sizes = [128, 1], strides = [1, 1]} : vector<128x32xf32> to vector<128x1xf32>
    %171 = vector.broadcast %170 : vector<128x1xf32> to vector<128x32xf32>
    %172 = arith.mulf %11, %171 : vector<128x32xf32>
    %c21 = arith.constant 21 : index
    %c0_79 = arith.constant 0 : index
    %c0_80 = arith.constant 0 : index
    %173 = vector.load %arg8[%c21, %c0_79, %c0_80] : memref<32x32x32xf32, #tpu.memory_space<vmem>>, vector<1x32x32xf32>
    %174 = vector.shape_cast %173 : vector<1x32x32xf32> to vector<32x32xf32>
    %cst_81 = arith.constant dense<0.000000e+00> : vector<128x32xf32>
    %175 = tpu.matmul %172, %174, %cst_81 {dimension_numbers = #tpu.dot_dimension_numbers<[1], [0], [0], [1], [0, 0, 1, 1], [], []>} : vector<128x32xf32>, vector<32x32xf32>, vector<128x32xf32> -> vector<128x32xf32>
    %176 = arith.addf %169, %175 : vector<128x32xf32>
    %177 = vector.extract_strided_slice %20 {offsets = [0, 22], sizes = [128, 1], strides = [1, 1]} : vector<128x32xf32> to vector<128x1xf32>
    %178 = vector.broadcast %177 : vector<128x1xf32> to vector<128x32xf32>
    %179 = arith.mulf %11, %178 : vector<128x32xf32>
    %c22 = arith.constant 22 : index
    %c0_82 = arith.constant 0 : index
    %c0_83 = arith.constant 0 : index
    %180 = vector.load %arg8[%c22, %c0_82, %c0_83] : memref<32x32x32xf32, #tpu.memory_space<vmem>>, vector<1x32x32xf32>
    %181 = vector.shape_cast %180 : vector<1x32x32xf32> to vector<32x32xf32>
    %cst_84 = arith.constant dense<0.000000e+00> : vector<128x32xf32>
    %182 = tpu.matmul %179, %181, %cst_84 {dimension_numbers = #tpu.dot_dimension_numbers<[1], [0], [0], [1], [0, 0, 1, 1], [], []>} : vector<128x32xf32>, vector<32x32xf32>, vector<128x32xf32> -> vector<128x32xf32>
    %183 = arith.addf %176, %182 : vector<128x32xf32>
    %184 = vector.extract_strided_slice %20 {offsets = [0, 23], sizes = [128, 1], strides = [1, 1]} : vector<128x32xf32> to vector<128x1xf32>
    %185 = vector.broadcast %184 : vector<128x1xf32> to vector<128x32xf32>
    %186 = arith.mulf %11, %185 : vector<128x32xf32>
    %c23 = arith.constant 23 : index
    %c0_85 = arith.constant 0 : index
    %c0_86 = arith.constant 0 : index
    %187 = vector.load %arg8[%c23, %c0_85, %c0_86] : memref<32x32x32xf32, #tpu.memory_space<vmem>>, vector<1x32x32xf32>
    %188 = vector.shape_cast %187 : vector<1x32x32xf32> to vector<32x32xf32>
    %cst_87 = arith.constant dense<0.000000e+00> : vector<128x32xf32>
    %189 = tpu.matmul %186, %188, %cst_87 {dimension_numbers = #tpu.dot_dimension_numbers<[1], [0], [0], [1], [0, 0, 1, 1], [], []>} : vector<128x32xf32>, vector<32x32xf32>, vector<128x32xf32> -> vector<128x32xf32>
    %190 = arith.addf %183, %189 : vector<128x32xf32>
    %191 = vector.extract_strided_slice %20 {offsets = [0, 24], sizes = [128, 1], strides = [1, 1]} : vector<128x32xf32> to vector<128x1xf32>
    %192 = vector.broadcast %191 : vector<128x1xf32> to vector<128x32xf32>
    %193 = arith.mulf %11, %192 : vector<128x32xf32>
    %c24 = arith.constant 24 : index
    %c0_88 = arith.constant 0 : index
    %c0_89 = arith.constant 0 : index
    %194 = vector.load %arg8[%c24, %c0_88, %c0_89] : memref<32x32x32xf32, #tpu.memory_space<vmem>>, vector<1x32x32xf32>
    %195 = vector.shape_cast %194 : vector<1x32x32xf32> to vector<32x32xf32>
    %cst_90 = arith.constant dense<0.000000e+00> : vector<128x32xf32>
    %196 = tpu.matmul %193, %195, %cst_90 {dimension_numbers = #tpu.dot_dimension_numbers<[1], [0], [0], [1], [0, 0, 1, 1], [], []>} : vector<128x32xf32>, vector<32x32xf32>, vector<128x32xf32> -> vector<128x32xf32>
    %197 = arith.addf %190, %196 : vector<128x32xf32>
    %198 = vector.extract_strided_slice %20 {offsets = [0, 25], sizes = [128, 1], strides = [1, 1]} : vector<128x32xf32> to vector<128x1xf32>
    %199 = vector.broadcast %198 : vector<128x1xf32> to vector<128x32xf32>
    %200 = arith.mulf %11, %199 : vector<128x32xf32>
    %c25 = arith.constant 25 : index
    %c0_91 = arith.constant 0 : index
    %c0_92 = arith.constant 0 : index
    %201 = vector.load %arg8[%c25, %c0_91, %c0_92] : memref<32x32x32xf32, #tpu.memory_space<vmem>>, vector<1x32x32xf32>
    %202 = vector.shape_cast %201 : vector<1x32x32xf32> to vector<32x32xf32>
    %cst_93 = arith.constant dense<0.000000e+00> : vector<128x32xf32>
    %203 = tpu.matmul %200, %202, %cst_93 {dimension_numbers = #tpu.dot_dimension_numbers<[1], [0], [0], [1], [0, 0, 1, 1], [], []>} : vector<128x32xf32>, vector<32x32xf32>, vector<128x32xf32> -> vector<128x32xf32>
    %204 = arith.addf %197, %203 : vector<128x32xf32>
    %205 = vector.extract_strided_slice %20 {offsets = [0, 26], sizes = [128, 1], strides = [1, 1]} : vector<128x32xf32> to vector<128x1xf32>
    %206 = vector.broadcast %205 : vector<128x1xf32> to vector<128x32xf32>
    %207 = arith.mulf %11, %206 : vector<128x32xf32>
    %c26 = arith.constant 26 : index
    %c0_94 = arith.constant 0 : index
    %c0_95 = arith.constant 0 : index
    %208 = vector.load %arg8[%c26, %c0_94, %c0_95] : memref<32x32x32xf32, #tpu.memory_space<vmem>>, vector<1x32x32xf32>
    %209 = vector.shape_cast %208 : vector<1x32x32xf32> to vector<32x32xf32>
    %cst_96 = arith.constant dense<0.000000e+00> : vector<128x32xf32>
    %210 = tpu.matmul %207, %209, %cst_96 {dimension_numbers = #tpu.dot_dimension_numbers<[1], [0], [0], [1], [0, 0, 1, 1], [], []>} : vector<128x32xf32>, vector<32x32xf32>, vector<128x32xf32> -> vector<128x32xf32>
    %211 = arith.addf %204, %210 : vector<128x32xf32>
    %212 = vector.extract_strided_slice %20 {offsets = [0, 27], sizes = [128, 1], strides = [1, 1]} : vector<128x32xf32> to vector<128x1xf32>
    %213 = vector.broadcast %212 : vector<128x1xf32> to vector<128x32xf32>
    %214 = arith.mulf %11, %213 : vector<128x32xf32>
    %c27 = arith.constant 27 : index
    %c0_97 = arith.constant 0 : index
    %c0_98 = arith.constant 0 : index
    %215 = vector.load %arg8[%c27, %c0_97, %c0_98] : memref<32x32x32xf32, #tpu.memory_space<vmem>>, vector<1x32x32xf32>
    %216 = vector.shape_cast %215 : vector<1x32x32xf32> to vector<32x32xf32>
    %cst_99 = arith.constant dense<0.000000e+00> : vector<128x32xf32>
    %217 = tpu.matmul %214, %216, %cst_99 {dimension_numbers = #tpu.dot_dimension_numbers<[1], [0], [0], [1], [0, 0, 1, 1], [], []>} : vector<128x32xf32>, vector<32x32xf32>, vector<128x32xf32> -> vector<128x32xf32>
    %218 = arith.addf %211, %217 : vector<128x32xf32>
    %219 = vector.extract_strided_slice %20 {offsets = [0, 28], sizes = [128, 1], strides = [1, 1]} : vector<128x32xf32> to vector<128x1xf32>
    %220 = vector.broadcast %219 : vector<128x1xf32> to vector<128x32xf32>
    %221 = arith.mulf %11, %220 : vector<128x32xf32>
    %c28 = arith.constant 28 : index
    %c0_100 = arith.constant 0 : index
    %c0_101 = arith.constant 0 : index
    %222 = vector.load %arg8[%c28, %c0_100, %c0_101] : memref<32x32x32xf32, #tpu.memory_space<vmem>>, vector<1x32x32xf32>
    %223 = vector.shape_cast %222 : vector<1x32x32xf32> to vector<32x32xf32>
    %cst_102 = arith.constant dense<0.000000e+00> : vector<128x32xf32>
    %224 = tpu.matmul %221, %223, %cst_102 {dimension_numbers = #tpu.dot_dimension_numbers<[1], [0], [0], [1], [0, 0, 1, 1], [], []>} : vector<128x32xf32>, vector<32x32xf32>, vector<128x32xf32> -> vector<128x32xf32>
    %225 = arith.addf %218, %224 : vector<128x32xf32>
    %226 = vector.extract_strided_slice %20 {offsets = [0, 29], sizes = [128, 1], strides = [1, 1]} : vector<128x32xf32> to vector<128x1xf32>
    %227 = vector.broadcast %226 : vector<128x1xf32> to vector<128x32xf32>
    %228 = arith.mulf %11, %227 : vector<128x32xf32>
    %c29 = arith.constant 29 : index
    %c0_103 = arith.constant 0 : index
    %c0_104 = arith.constant 0 : index
    %229 = vector.load %arg8[%c29, %c0_103, %c0_104] : memref<32x32x32xf32, #tpu.memory_space<vmem>>, vector<1x32x32xf32>
    %230 = vector.shape_cast %229 : vector<1x32x32xf32> to vector<32x32xf32>
    %cst_105 = arith.constant dense<0.000000e+00> : vector<128x32xf32>
    %231 = tpu.matmul %228, %230, %cst_105 {dimension_numbers = #tpu.dot_dimension_numbers<[1], [0], [0], [1], [0, 0, 1, 1], [], []>} : vector<128x32xf32>, vector<32x32xf32>, vector<128x32xf32> -> vector<128x32xf32>
    %232 = arith.addf %225, %231 : vector<128x32xf32>
    %233 = vector.extract_strided_slice %20 {offsets = [0, 30], sizes = [128, 1], strides = [1, 1]} : vector<128x32xf32> to vector<128x1xf32>
    %234 = vector.broadcast %233 : vector<128x1xf32> to vector<128x32xf32>
    %235 = arith.mulf %11, %234 : vector<128x32xf32>
    %c30 = arith.constant 30 : index
    %c0_106 = arith.constant 0 : index
    %c0_107 = arith.constant 0 : index
    %236 = vector.load %arg8[%c30, %c0_106, %c0_107] : memref<32x32x32xf32, #tpu.memory_space<vmem>>, vector<1x32x32xf32>
    %237 = vector.shape_cast %236 : vector<1x32x32xf32> to vector<32x32xf32>
    %cst_108 = arith.constant dense<0.000000e+00> : vector<128x32xf32>
    %238 = tpu.matmul %235, %237, %cst_108 {dimension_numbers = #tpu.dot_dimension_numbers<[1], [0], [0], [1], [0, 0, 1, 1], [], []>} : vector<128x32xf32>, vector<32x32xf32>, vector<128x32xf32> -> vector<128x32xf32>
    %239 = arith.addf %232, %238 : vector<128x32xf32>
    %240 = vector.extract_strided_slice %20 {offsets = [0, 31], sizes = [128, 1], strides = [1, 1]} : vector<128x32xf32> to vector<128x1xf32>
    %241 = vector.broadcast %240 : vector<128x1xf32> to vector<128x32xf32>
    %242 = arith.mulf %11, %241 : vector<128x32xf32>
    %c31 = arith.constant 31 : index
    %c0_109 = arith.constant 0 : index
    %c0_110 = arith.constant 0 : index
    %243 = vector.load %arg8[%c31, %c0_109, %c0_110] : memref<32x32x32xf32, #tpu.memory_space<vmem>>, vector<1x32x32xf32>
    %244 = vector.shape_cast %243 : vector<1x32x32xf32> to vector<32x32xf32>
    %cst_111 = arith.constant dense<0.000000e+00> : vector<128x32xf32>
    %245 = tpu.matmul %242, %244, %cst_111 {dimension_numbers = #tpu.dot_dimension_numbers<[1], [0], [0], [1], [0, 0, 1, 1], [], []>} : vector<128x32xf32>, vector<32x32xf32>, vector<128x32xf32> -> vector<128x32xf32>
    %246 = arith.addf %239, %245 : vector<128x32xf32>
    %c0_112 = arith.constant 0 : index
    %c0_113 = arith.constant 0 : index
    %247 = vector.load %arg3[%c0_112, %c0_113] : memref<1x128xi32, #tpu.memory_space<vmem>>, vector<1x128xi32>
    %248 = tpu.iota {dimensions = array<i32: 0>} : vector<8x128xi32>
    %249 = vector.broadcast %247 : vector<1x128xi32> to vector<8x128xi32>
    %250 = arith.cmpi eq, %248, %249 : vector<8x128xi32>
    %251 = arith.extui %250 : vector<8x128xi1> to vector<8x128xi32>
    %252 = arith.sitofp %251 : vector<8x128xi32> to vector<8x128xf32>
    %253 = arith.truncf %252 : vector<8x128xf32> to vector<8x128xbf16>
    %c0_114 = arith.constant 0 : index
    %c0_115 = arith.constant 0 : index
    %254 = vector.load %arg15[%c0_114, %c0_115] : memref<8x32xf32, #tpu.memory_space<vmem>>, vector<8x32xf32>
    %255 = arith.truncf %246 : vector<128x32xf32> to vector<128x32xbf16>
    %cst_116 = arith.constant dense<0.000000e+00> : vector<8x32xf32>
    %256 = tpu.matmul %253, %255, %cst_116 {dimension_numbers = #tpu.dot_dimension_numbers<[1], [0], [0], [1], [0, 0, 1, 1], [], []>} : vector<8x128xbf16>, vector<128x32xbf16>, vector<8x32xf32> -> vector<8x32xf32>
    %257 = arith.addf %254, %256 : vector<8x32xf32>
    %c0_117 = arith.constant 0 : index
    %c0_118 = arith.constant 0 : index
    %258 = vector.load %arg15[%c0_117, %c0_118] : memref<8x32xf32, #tpu.memory_space<vmem>>, vector<8x32xf32>
    tpu.vector_store %arg15[%c0_117, %c0_118], %257 {strides = array<i32>} : memref<8x32xf32, #tpu.memory_space<vmem>>, vector<8x32xf32>,
    %c0_i32_119 = arith.constant 0 : i32
    %259 = arith.cmpi eq, %arg0, %c0_i32_119 : i32
    %260 = arith.extui %259 : i1 to i32
    %c0_i32_120 = arith.constant 0 : i32
    %261 = arith.cmpi ne, %260, %c0_i32_120 : i32
    scf.if %261 {
      %c0_121 = arith.constant 0 : index
      %c0_122 = arith.constant 0 : index
      %262 = vector.load %arg15[%c0_121, %c0_122] : memref<8x32xf32, #tpu.memory_space<vmem>>, vector<8x32xf32>
      %c0_123 = arith.constant 0 : index
      %c0_124 = arith.constant 0 : index
      %263 = vector.load %arg5[%c0_123, %c0_124] : memref<8x1xf32, #tpu.memory_space<vmem>>, vector<8x1xf32>
      %264 = vector.broadcast %263 : vector<8x1xf32> to vector<8x32xf32>
      %265 = arith.mulf %262, %264 : vector<8x32xf32>
      %c0_125 = arith.constant 0 : index
      %c0_126 = arith.constant 0 : index
      %266 = vector.load %arg10[%c0_125, %c0_126] : memref<32x32xf32, #tpu.memory_space<vmem>>, vector<32x32xf32>
      %cst_127 = arith.constant dense<0.000000e+00> : vector<8x32xf32>
      %267 = tpu.matmul %3, %266, %cst_127 {dimension_numbers = #tpu.dot_dimension_numbers<[1], [0], [0], [1], [0, 0, 1, 1], [], []>} : vector<8x32xf32>, vector<32x32xf32>, vector<8x32xf32> -> vector<8x32xf32>
      %268 = arith.addf %265, %267 : vector<8x32xf32>
      %c0_128 = arith.constant 0 : index
      %c0_129 = arith.constant 0 : index
      %269 = vector.load %arg11[%c0_128, %c0_129] : memref<1x32xf32, #tpu.memory_space<vmem>>, vector<1x32xf32>
      %270 = vector.broadcast %269 : vector<1x32xf32> to vector<8x32xf32>
      %271 = arith.addf %268, %270 : vector<8x32xf32>
      %cst_130 = arith.constant 0.000000e+00 : f32
      %272 = vector.broadcast %cst_130 : f32 to vector<8x32xf32>
      %273 = arith.maximumf %271, %272 : vector<8x32xf32>
      %c0_131 = arith.constant 0 : index
      %c0_132 = arith.constant 0 : index
      %274 = vector.load %arg12[%c0_131, %c0_132] : memref<32x1xf32, #tpu.memory_space<vmem>>, vector<32x1xf32>
      %cst_133 = arith.constant dense<0.000000e+00> : vector<8x1xf32>
      %275 = tpu.matmul %273, %274, %cst_133 {dimension_numbers = #tpu.dot_dimension_numbers<[1], [0], [0], [1], [0, 0, 1, 1], [], []>} : vector<8x32xf32>, vector<32x1xf32>, vector<8x1xf32> -> vector<8x1xf32>
      %c0_134 = arith.constant 0 : index
      %c0_135 = arith.constant 0 : index
      %276 = vector.load %arg13[%c0_134, %c0_135] : memref<1x1xf32, #tpu.memory_space<vmem>>, vector<1x1xf32>
      %277 = vector.broadcast %276 : vector<1x1xf32> to vector<8x1xf32>
      %278 = arith.addf %275, %277 : vector<8x1xf32>
      %c0_136 = arith.constant 0 : index
      %c0_137 = arith.constant 0 : index
      %279 = vector.load %arg14[%c0_136, %c0_137] : memref<8x1xf32, #tpu.memory_space<vmem>>, vector<8x1xf32>
      tpu.vector_store %arg14[%c0_136, %c0_137], %278 {strides = array<i32>} : memref<8x1xf32, #tpu.memory_space<vmem>>, vector<8x1xf32>,
    } else {
    }
    return
  }
  func.func @transform_0(%arg0: i32) -> (i32, i32) {
    %c0_i32 = arith.constant 0 : i32
    %c0_i32_0 = arith.constant 0 : i32
    %c0_i32_1 = arith.constant 0 : i32
    return %c0_i32, %c0_i32_0 : i32, i32
  }
  func.func @transform_1(%arg0: i32) -> (i32, i32) {
    %c0_i32 = arith.constant 0 : i32
    %c0_i32_0 = arith.constant 0 : i32
    return %arg0, %c0_i32 : i32, i32
  }
  func.func @transform_2(%arg0: i32) -> (i32, i32) {
    %c0_i32 = arith.constant 0 : i32
    %c0_i32_0 = arith.constant 0 : i32
    return %c0_i32, %arg0 : i32, i32
  }
  func.func @transform_3(%arg0: i32) -> (i32, i32) {
    %c0_i32 = arith.constant 0 : i32
    %c0_i32_0 = arith.constant 0 : i32
    return %arg0, %c0_i32 : i32, i32
  }
  func.func @transform_4(%arg0: i32) -> (i32, i32) {
    %c0_i32 = arith.constant 0 : i32
    %c0_i32_0 = arith.constant 0 : i32
    %c0_i32_1 = arith.constant 0 : i32
    return %c0_i32, %c0_i32_0 : i32, i32
  }
  func.func @transform_5(%arg0: i32) -> (i32, i32) {
    %c0_i32 = arith.constant 0 : i32
    %c0_i32_0 = arith.constant 0 : i32
    %c0_i32_1 = arith.constant 0 : i32
    return %c0_i32, %c0_i32_0 : i32, i32
  }
  func.func @transform_6(%arg0: i32) -> (i32, i32) {
    %c0_i32 = arith.constant 0 : i32
    %c0_i32_0 = arith.constant 0 : i32
    %c0_i32_1 = arith.constant 0 : i32
    return %c0_i32, %c0_i32_0 : i32, i32
  }
  func.func @transform_7(%arg0: i32) -> (i32, i32, i32) {
    %c0_i32 = arith.constant 0 : i32
    %c0_i32_0 = arith.constant 0 : i32
    %c0_i32_1 = arith.constant 0 : i32
    %c0_i32_2 = arith.constant 0 : i32
    return %c0_i32, %c0_i32_0, %c0_i32_1 : i32, i32, i32
  }
  func.func @transform_8(%arg0: i32) -> (i32, i32) {
    %c0_i32 = arith.constant 0 : i32
    %c0_i32_0 = arith.constant 0 : i32
    %c0_i32_1 = arith.constant 0 : i32
    return %c0_i32, %c0_i32_0 : i32, i32
  }
  func.func @transform_9(%arg0: i32) -> (i32, i32) {
    %c0_i32 = arith.constant 0 : i32
    %c0_i32_0 = arith.constant 0 : i32
    %c0_i32_1 = arith.constant 0 : i32
    return %c0_i32, %c0_i32_0 : i32, i32
  }
  func.func @transform_10(%arg0: i32) -> (i32, i32) {
    %c0_i32 = arith.constant 0 : i32
    %c0_i32_0 = arith.constant 0 : i32
    %c0_i32_1 = arith.constant 0 : i32
    return %c0_i32, %c0_i32_0 : i32, i32
  }
  func.func @transform_11(%arg0: i32) -> (i32, i32) {
    %c0_i32 = arith.constant 0 : i32
    %c0_i32_0 = arith.constant 0 : i32
    %c0_i32_1 = arith.constant 0 : i32
    return %c0_i32, %c0_i32_0 : i32, i32
  }
  func.func @transform_12(%arg0: i32) -> (i32, i32) {
    %c0_i32 = arith.constant 0 : i32
    %c0_i32_0 = arith.constant 0 : i32
    %c0_i32_1 = arith.constant 0 : i32
    return %c0_i32, %c0_i32_0 : i32, i32
  }
  func.func @transform_13(%arg0: i32) -> (i32, i32) {
    %c0_i32 = arith.constant 0 : i32
    %c0_i32_0 = arith.constant 0 : i32
    %c0_i32_1 = arith.constant 0 : i32
    return %c0_i32, %c0_i32_0 : i32, i32
  }
}

</mosaic_0001>

<bundles_post_ra>
// kernel: edge_feature_gnn_forward.2
= control target key start
LH: loop header
LB: loop body
LE: loop exit
PB: predicated region body
PF: predicated region fallthrough
CT: control target
= control target key end

     0   :  { %v1689_v0 = vmov 0   ;;  %vm351_vm0 = vcmask 1043456   ;;  %vm118_vm1 = vcmask 1045504   ;;  %vm69_vm2 = vcmask 48128   ;;  %s2376_s1 = inlined_call_operand.vmem [shape: s32[128,1], index: 1, kind: input, shape index: {}]   ;;  %s2377_s0 = inlined_call_operand.vmem [shape: f32[8,4], index: 0, kind: input, shape index: {}]   ;;  %s2378_s4 = inlined_call_operand.vmem [shape: f32[6,32], index: 4, kind: input, shape index: {}]   ;;  %s2379_s3 = inlined_call_operand.vmem [shape: f32[128,6], index: 3, kind: input, shape index: {}]   ;;  %s2380_s5 = inlined_call_operand.vmem [shape: f32[1,32], index: 5, kind: input, shape index: {}]   ;;  %s2381_s7 = inlined_call_operand.vmem [shape: f32[4,32], index: 7, kind: input, shape index: {}]   ;;  %s2382_s6 = inlined_call_operand.vmem [shape: f32[4,32,32], index: 6, kind: input, shape index: {}]   ;;  %s2383_s2 = inlined_call_operand.vmem [shape: s32[1,128], index: 2, kind: input, shape index: {}]   ;;  %s2384_s8 = inlined_call_operand.vmem [shape: f32[4,32], index: 8, kind: input, shape index: {}]   ;;  %s2385_s9 = inlined_call_operand.vmem [shape: f32[1,32], index: 9, kind: input, shape index: {}]   ;;  %s2386_s11 = inlined_call_operand.vmem [shape: f32[8,1], index: 11, kind: output, shape index: {1}]   ;;  %s2387_s10 = inlined_call_operand.vmem [shape: f32[8,32], index: 10, kind: output, shape index: {0}]  }
   0x1   :  { %1620 = vset.pattern.permute.xlu2 %v1689_v0  ;;  %1619 = vset.pattern.permute.xlu1 %v1689_v0  ;;  %v207_v1 = vld [vmem:[%s2376_s1 + $0x20] sm:$0xff]  ;;  %v205_v2 = vld [vmem:[%s2376_s1 + $0x10] sm:$0xff]  ;;  %v208_v4 = vld [vmem:[%s2376_s1 + $0x28] sm:$0xff]  ;;  %v219_v23 = vlaneseq  ;;  %v1690_v30 = vmov 0.0   ;;  %vm326_vm5 = vcmask 64512   ;;  %v1691_v61 = vmov 2  }
   0x2   :  { %v203_v3 = vld [vmem:[%s2376_s1] sm:$0xff]  ;;  %1618 = vset.pattern.permute.xlu0 %v1689_v0  ;;  %234 = vperm.xlu2 %1620, %v207_v1   ;;  %v206_v5 = vld [vmem:[%s2376_s1 + $0x18] sm:$0xff]  ;;  %v204_v6 = vld [vmem:[%s2376_s1 + $0x8] sm:$0xff]  ;;  %v1692_v62 = vmov 3  }
   0x3   :  { %228 = vperm.xlu1 %1619, %v205_v2   ;;  %222 = vperm.xlu0 %1618, %v203_v3   ;;  %v211_v7 = vld [vmem:[%s2376_s1 + $0x40] sm:$0xff]  ;;  %v210_v8 = vld [vmem:[%s2376_s1 + $0x38] sm:$0xff]  ;;  %v209_v9 = vld [vmem:[%s2376_s1 + $0x30] sm:$0xff]  ;;  %v1819_v25 = vand.u32 127, %v219_v23 }
   0x4   :  { %v214_v10 = vld [vmem:[%s2376_s1 + $0x58] sm:$0xff]  ;;  %v213_v11 = vld [vmem:[%s2376_s1 + $0x50] sm:$0xff]  ;;  %v212_v12 = vld [vmem:[%s2376_s1 + $0x48] sm:$0xff] }
   0x5   :  { %v217_v13 = vld [vmem:[%s2376_s1 + $0x70] sm:$0xff]  ;;  %v216_v14 = vld [vmem:[%s2376_s1 + $0x68] sm:$0xff]  ;;  %v215_v15 = vld [vmem:[%s2376_s1 + $0x60] sm:$0xff] }
   0x6   :  { %v218_v16 = vld [vmem:[%s2376_s1 + $0x78] sm:$0xff]  ;;  %v47_v17 = vld [vmem:[%s2377_s0] sm:$0xff]  ;;  %v62_v21 = vld [vmem:[%s2379_s3 + $0x70] sm:$0xff] }
   0x7   :  { %v325_v18 = vpack.c.bf16 %v47_v17, %v47_v17  ;;  %v64_v20 = vld [vmem:[%s2378_s4] sm:$0x3f]  ;;  %v63_v26 = vld [vmem:[%s2379_s3 + $0x78] sm:$0xff]  ;;  %v49_v59 = vld [vmem:[%s2379_s3 + $0x8] sm:$0xff] }
   0x8   :  { %1609 = vmatpush.msk.msra.mxu2 %vm118_vm1, %v64_v20  ;;  %1468 = vmatpush.msk.msra.mxu0 %vm118_vm1, %v64_v20  ;;  %v48_v55 = vld [vmem:[%s2379_s3] sm:$0xff] }
   0x9   :  { %v353_v19 = vsel %vm351_vm0, %v325_v18, 0  ;;  %1483 = vmatmul.msk.f32.vlgmr.msra.gmra.mxu2 %vm69_vm2, %v62_v21  ;;  %1469 = vmatmul.msk.f32.vlgmr.msra.gmra.mxu0 %vm69_vm2, %v48_v55  ;;  %v404_v60 = vld [vmem:[%s2381_s7] sm:$0xf]  ;;  %v57_v21 = vld [vmem:[%s2379_s3 + $0x48] sm:$0xff] }
   0xa   :  { %237 = vperm.xlu2 %1620, %v208_v4   ;;  %362 = vmatpush.bf16.msra.mxu1 %v353_v19 }
   0xb   :  { %231 = vperm.xlu1 %1619, %v206_v5   ;;  %225 = vperm.xlu0 %1618, %v204_v6  }
   0xc   :  { %1610 = vmatpush.bf16.msrb.mxu2 %v353_v19  ;;  %1525 = vmatpush.msk.msra.mxu3 %vm351_vm0, %v404_v60  ;;  %v56_v19 = vld [vmem:[%s2379_s3 + $0x40] sm:$0xff] }
  0x11   :  { %1484 = vmatmul.msk.f32.gmra.mxu2 %vm69_vm2, %v63_v26  ;;  %1470 = vmatmul.msk.f32.gmra.mxu0 %vm69_vm2, %v49_v59 }
  0x12   :  { %246 = vperm.xlu2 %1620, %v211_v7  }
  0x13   :  { %243 = vperm.xlu1 %1619, %v210_v8   ;;  %240 = vperm.xlu0 %1618, %v209_v9   ;;  %v50_v8 = vld [vmem:[%s2379_s3 + $0x10] sm:$0xff]  ;;  %v51_v9 = vld [vmem:[%s2379_s3 + $0x18] sm:$0xff] }
  0x19   :  { %1471 = vmatmul.msk.f32.gmra.mxu0 %vm69_vm2, %v50_v8 }
  0x1a   :  { %255 = vperm.xlu2 %1620, %v214_v10   ;;  %v52_v10 = vld [vmem:[%s2379_s3 + $0x20] sm:$0xff] }
  0x1b   :  { %252 = vperm.xlu1 %1619, %v213_v11   ;;  %249 = vperm.xlu0 %1618, %v212_v12   ;;  %v53_v11 = vld [vmem:[%s2379_s3 + $0x28] sm:$0xff] }
  0x21   :  { %1472 = vmatmul.msk.f32.gmra.mxu0 %vm69_vm2, %v51_v9 }
  0x22   :  { %264 = vperm.xlu2 %1620, %v217_v13   ;;  %v54_v13 = vld [vmem:[%s2379_s3 + $0x30] sm:$0xff] }
  0x23   :  { %261 = vperm.xlu1 %1619, %v216_v14   ;;  %258 = vperm.xlu0 %1618, %v215_v15   ;;  %v1693_v15 = vmov 1  }
  0x29   :  { %1473 = vmatmul.msk.f32.gmra.mxu0 %vm69_vm2, %v52_v10 }
  0x2a   :  { %1621 = vset.pattern.permute.xlu2 %v1691_v61 }
  0x2b   :  { %267 = vperm.xlu0 %1618, %v218_v16   ;;  %v55_v16 = vld [vmem:[%s2379_s3 + $0x38] sm:$0xff] }
  0x31   :  { %1474 = vmatmul.msk.f32.gmra.mxu0 %vm69_vm2, %v53_v11 }
  0x33   :  { %1623 = vset.pattern.permute.xlu0 %v1692_v62 }
  0x39   :  { %1475 = vmatmul.msk.f32.gmra.mxu0 %vm69_vm2, %v54_v13 }
  0x41   :  { %1476 = vmatmul.msk.f32.gmra.mxu0 %vm69_vm2, %v55_v16 }
  0x49   :  { %1477 = vmatmul.msk.f32.gmra.mxu0 %vm69_vm2, %v56_v19 }
  0x51   :  { %1478 = vmatmul.msk.f32.gmra.mxu0 %vm69_vm2, %v57_v21 }
  0x5c   :  { %v235_v22 = vpop.permute.xlu2 %234 }
  0x5d   :  { %vm273_vm8 = vcmp.eq.s32.totalorder %v1819_v25, %v235_v22 }
  0x5e   :  { %v1489_v44 = vsel %vm273_vm8, 1.0, %v1690_v30 }
  0x64   :  { %v238_v27 = vpop.permute.xlu2 %237 }
  0x65   :  { %vm274_vm9 = vcmp.eq.s32.totalorder %v1819_v25, %v238_v27 }
  0x66   :  { %v1490_v45 = vsel %vm274_vm9, 1.0, %v1690_v30  ;;  %vm45_vm9 = vcmask 7168  }
  0x67   :  { %v319_v49 = vpack.c.bf16 %v1490_v45, %v1489_v44  ;;  %v501_v44 = vld [vmem:[%s2382_s6] sm:$0xff]  ;;  %46 = vst.msk [vmem:[#allocation3] sm:$0xff] %vm45_vm9, %v1690_v30 }
  0x68   :  { %v1582_v45 = vld [vmem:[%s2382_s6 + $0x60] sm:$0xff] }
  0x6c   :  { %v247_v34 = vpop.permute.xlu2 %246 }
  0x6d   :  { %vm277_vm15 = vcmp.eq.s32.totalorder %v1819_v25, %v247_v34 }
  0x6e   :  { %v1493_v57 = vsel %vm277_vm15, 1.0, %v1690_v30 }
  0x74   :  { %v256_v41 = vpop.permute.xlu2 %255 }
  0x75   :  { %v223_v24 = vpop.permute.xlu0 %222  ;;  %v229_v28 = vpop.permute.xlu1 %228 }
  0x76   :  { %vm269_vm3 = vcmp.eq.s32.totalorder %v1819_v25, %v223_v24  ;;  %vm271_vm6 = vcmp.eq.s32.totalorder %v1819_v25, %v229_v28  ;;  %v59_v28 = vld [vmem:[%s2379_s3 + $0x58] sm:$0xff] }
  0x77   :  { %v1485_v31 = vsel %vm269_vm3, 1.0, %v1690_v30  ;;  %v1487_v37 = vsel %vm271_vm6, 1.0, %v1690_v30  ;;  %vm280_vm3 = vcmp.eq.s32.totalorder %v1819_v25, %v256_v41  ;;  %v502_v41 = vld [vmem:[%s2382_s6 + $0x8] sm:$0xff] }
  0x78   :  { %v1496_v2 = vsel %vm280_vm3, 1.0, %v1690_v30 }
  0x7c   :  { %v265_v43 = vpop.permute.xlu2 %264 }
  0x7d   :  { %v226_v29 = vpop.permute.xlu0 %225  ;;  %v232_v36 = vpop.permute.xlu1 %231  ;;  %vm283_vm10 = vcmp.eq.s32.totalorder %v1819_v25, %v265_v43 }
  0x7e   :  { %vm270_vm4 = vcmp.eq.s32.totalorder %v1819_v25, %v226_v29  ;;  %vm272_vm7 = vcmp.eq.s32.totalorder %v1819_v25, %v232_v36  ;;  %v1499_v47 = vsel %vm283_vm10, 1.0, %v1690_v30 }
  0x7f   :  { %v1486_v32 = vsel %vm270_vm4, 1.0, %v1690_v30  ;;  %v1488_v38 = vsel %vm272_vm7, 1.0, %v1690_v30 }
  0x80   :  { %v317_v33 = vpack.c.bf16 %v1486_v32, %v1485_v31  ;;  %v318_v40 = vpack.c.bf16 %v1488_v38, %v1487_v37  ;;  %v60_v31 = vld [vmem:[%s2379_s3 + $0x60] sm:$0xff]  ;;  %v504_v37 = vld [vmem:[%s2382_s6 + $0x18] sm:$0xff] }
  0x81   :  { %v1585_v38 = vld [vmem:[%s2382_s6 + $0x78] sm:$0xff]  ;;  %566 = vmatpush.msra.mxu2 %v504_v37 }
  0x82   :  { %1501 = vmatmul.msk.bf16.vlgmr.msra.gmra.mxu1 %vm326_vm5, %v317_v33  ;;  %v61_v33 = vld [vmem:[%s2379_s3 + $0x68] sm:$0xff] }
  0x83   :  { %1293 = vmatpush.msrb.mxu1 %v1585_v38 }
  0x85   :  { %v241_v35 = vpop.permute.xlu0 %240  ;;  %v244_v51 = vpop.permute.xlu1 %243 }
  0x86   :  { %vm276_vm12 = vcmp.eq.s32.totalorder %v1819_v25, %v244_v51  ;;  %vm275_vm13 = vcmp.eq.s32.totalorder %v1819_v25, %v241_v35 }
  0x87   :  { %v1492_v52 = vsel %vm276_vm12, 1.0, %v1690_v30  ;;  %v1491_v53 = vsel %vm275_vm13, 1.0, %v1690_v30 }
  0x88   :  { %v320_v54 = vpack.c.bf16 %v1492_v52, %v1491_v53  ;;  %v1563_v52 = vld [vmem:[%s2382_s6 + $0x48] sm:$0xff]  ;;  %v1542_v53 = vld [vmem:[%s2382_s6 + $0x20] sm:$0xff] }
  0x8c   :  { %v1909_v18 = vpop.f32.mrf.mxu2 }
  0x8d   :  { %v250_v39 = vpop.permute.xlu0 %249  ;;  %v253_v63 = vpop.permute.xlu1 %252 }
  0x8e   :  { %vm278_vm14 = vcmp.eq.s32.totalorder %v1819_v25, %v250_v39  ;;  %vm279_vm1 = vcmp.eq.s32.totalorder %v1819_v25, %v253_v63  ;;  %v503_v39 = vld [vmem:[%s2382_s6 + $0x10] sm:$0xff] }
  0x8f   :  { %v1494_v56 = vsel %vm278_vm14, 1.0, %v1690_v30  ;;  %v1495_v1 = vsel %vm279_vm1, 1.0, %v1690_v30  ;;  %567 = vmatpush.msra.mxu2 %v503_v39 }
  0x90   :  { %v321_v58 = vpack.c.bf16 %v1494_v56, %v1493_v57  ;;  %v322_v3 = vpack.c.bf16 %v1496_v2, %v1495_v1  ;;  %v139_v56 = vpop.f32.mrf.mxu0  ;;  %v2077_v57 = vld [vmem:[%s2380_s5] ss:$0 sm:$0xff] }
  0x91   :  { %568 = vmatpush.msra.mxu2 %v502_v41 }
  0x92   :  { %1502 = vmatmul.msk.bf16.gmra.mxu1 %vm326_vm5, %v318_v40  ;;  %v1584_v40 = vld [vmem:[%s2382_s6 + $0x70] sm:$0xff] }
  0x93   :  { %1294 = vmatpush.msrb.mxu1 %v1584_v40  ;;  %569 = vmatpush.msra.mxu2 %v501_v44 }
  0x94   :  { %v1924_v22 = vpop.f32.mrf.mxu2 }
  0x95   :  { %v259_v42 = vpop.permute.xlu0 %258  ;;  %v262_v4 = vpop.permute.xlu1 %261 }
  0x96   :  { %vm282_vm4 = vcmp.eq.s32.totalorder %v1819_v25, %v262_v4  ;;  %vm281_vm6 = vcmp.eq.s32.totalorder %v1819_v25, %v259_v42  ;;  %v1583_v42 = vld [vmem:[%s2382_s6 + $0x68] sm:$0xff] }
  0x97   :  { %v1498_v5 = vsel %vm282_vm4, 1.0, %v1690_v30  ;;  %v1497_v6 = vsel %vm281_vm6, 1.0, %v1690_v30  ;;  %1295 = vmatpush.msrb.mxu1 %v1583_v42 }
  0x98   :  { %v323_v7 = vpack.c.bf16 %v1498_v5, %v1497_v6  ;;  %v142_v63 = vpop.f32.mrf.mxu0 }
  0x99   :  { %1296 = vmatpush.msrb.mxu1 %v1582_v45  ;;  %v143_v4 = vadd.f32 %v2077_v57, %v142_v63 }
  0x9d   :  { %v268_v46 = vpop.permute.xlu0 %267 }
  0x9e   :  { %vm284_vm11 = vcmp.eq.s32.totalorder %v1819_v25, %v268_v46  ;;  %v58_v25 = vld [vmem:[%s2379_s3 + $0x50] sm:$0xff]  ;;  %v1545_v46 = vld [vmem:[%s2382_s6 + $0x38] sm:$0xff] }
  0x9f   :  { %v1500_v48 = vsel %vm284_vm11, 1.0, %v1690_v30  ;;  %1479 = vmatmul.msk.f32.gmra.mxu0 %vm69_vm2, %v58_v25 }
  0xa0   :  { %v324_v50 = vpack.c.bf16 %v1500_v48, %v1499_v47  ;;  %v1565_v47 = vld [vmem:[%s2382_s6 + $0x58] sm:$0xff]  ;;  %865 = vmatpush.msrb.mxu0 %v1545_v46  ;;  %v1544_v48 = vld [vmem:[%s2382_s6 + $0x30] sm:$0xff]  ;;  %v145_v16 = vpop.f32.mrf.mxu0 }
  0xa1   :  { %1079 = vmatpush.msrb.mxu3 %v1565_v47 }
  0xa2   :  { %1503 = vmatmul.msk.bf16.gmra.mxu1 %vm326_vm5, %v319_v49  ;;  %1508 = vmatmul.msk.bf16.vlgmr.msrb.gmra.mxu2 %vm326_vm5, %v324_v50  ;;  %v1564_v49 = vld [vmem:[%s2382_s6 + $0x50] sm:$0xff]  ;;  %v1543_v50 = vld [vmem:[%s2382_s6 + $0x28] sm:$0xff] }
  0xa3   :  { %866 = vmatpush.msrb.mxu0 %v1544_v48  ;;  %1080 = vmatpush.msrb.mxu3 %v1564_v49 }
  0xa5   :  { %867 = vmatpush.msrb.mxu0 %v1543_v50  ;;  %1081 = vmatpush.msrb.mxu3 %v1563_v52 }
  0xa7   :  { %1480 = vmatmul.msk.f32.gmra.mxu0 %vm69_vm2, %v59_v28 }
  0xa8   :  { %868 = vmatpush.msrb.mxu0 %v1542_v53  ;;  %v148_v21 = vpop.f32.mrf.mxu0 }
  0xa9   :  { %v149_v40 = vadd.f32 %v2077_v57, %v148_v21 }
  0xab   :  { %v190_v45 = vmax.f32 %v149_v40, 0.0 }
  0xaf   :  { %1481 = vmatmul.msk.f32.gmra.mxu0 %vm69_vm2, %v60_v31 }
  0xb0   :  { %v151_v31 = vpop.f32.mrf.mxu0 }
  0xb2   :  { %1504 = vmatmul.msk.bf16.gmra.mxu1 %vm326_vm5, %v320_v54  ;;  %v1562_v54 = vld [vmem:[%s2382_s6 + $0x40] sm:$0xff] }
  0xb3   :  { %1082 = vmatpush.msrb.mxu3 %v1562_v54  ;;  %v152_v54 = vadd.f32 %v2077_v57, %v151_v31 }
  0xb5   :  { %v191_v63 = vmax.f32 %v152_v54, 0.0 }
  0xb7   :  { %1482 = vmatmul.msk.f32.gmra.mxu0 %vm69_vm2, %v61_v33  ;;  %vm43_vm2 = vcmask 261120  }
  0xb8   :  { %44 = vst.msk [vmem:[#allocation2] sm:$0xff] %vm43_vm2, %v1690_v30  ;;  %v154_v42 = vpop.f32.mrf.mxu0 }
  0xc0   :  { %v157_v52 = vpop.f32.mrf.mxu0 }
  0xc2   :  { %1505 = vmatmul.msk.bf16.gmra.mxu1 %vm326_vm5, %v321_v58  ;;  %v140_v58 = vadd.f32 %v2077_v57, %v139_v56 }
  0xc4   :  { %v187_v59 = vmax.f32 %v140_v58, 0.0 }
  0xd2   :  { %1506 = vmatmul.msk.bf16.gmra.mxu1 %vm326_vm5, %v322_v3 }
  0xe2   :  { %1507 = vmatmul.msk.bf16.gmra.mxu1 %vm326_vm5, %v323_v7  ;;  %vm619_vm5 = vcmask 31744   ;;  %v188_v7 = vmax.f32 %v143_v4, 0.0 }
  0xff   :  { %v364_v12 = vpop.f32.mrf.mxu1 }
 0x100   :  { %1149 = vperm.xlu0 %1623, %v364_v12   ;;  %935 = vperm.xlu2 %1621, %v364_v12  }
 0x101   :  { %407 = vperm.xlu1 %1619, %v364_v12   ;;  %1526 = vmatmul.msk.f32.vlgmr.msra.gmra.mxu3 %vm619_vm5, %v364_v12 }
 0x107   :  { %v366_v14 = vpop.f32.mrf.mxu1 }
 0x108   :  { %1626 = vset.pattern.permute.xlu0 %v1689_v0  ;;  %1624 = vset.pattern.permute.xlu2 %v1689_v0 }
 0x109   :  { %1622 = vset.pattern.permute.xlu1 %v1693_v15  ;;  %1527 = vmatmul.msk.f32.gmra.mxu3 %vm619_vm5, %v366_v14 }
 0x10a   :  { %721 = vperm.xlu1 %1622, %v364_v12   ;;  %412 = vperm.xlu0 %1626, %v366_v14  }
 0x10f   :  { %v369_v17 = vpop.f32.mrf.mxu1 }
 0x111   :  { %1528 = vmatmul.msk.f32.gmra.mxu3 %vm619_vm5, %v369_v17 }
 0x112   :  { %1625 = vset.pattern.permute.xlu1 %v1691_v61 }
 0x117   :  { %v1916_v20 = vpop.f32.mrf.mxu1 }
 0x118   :  { %422 = vperm.xlu0 %1626, %v1916_v20  }
 0x119   :  { %1529 = vmatmul.msk.f32.gmra.mxu3 %vm619_vm5, %v1916_v20 }
 0x11f   :  { %v1927_v24 = vpop.f32.mrf.mxu1 }
 0x120   :  { %1635 = vset.pattern.permute.xlu0 %v1693_v15 }
 0x121   :  { %1530 = vmatmul.msk.f32.gmra.mxu3 %vm619_vm5, %v1927_v24  ;;  %733 = vperm.xlu0 %1635, %v1916_v20  }
 0x125   :  { %v1937_v26 = vpop.f32.mrf.mxu2 }
 0x126   :  { %477 = vperm.xlu2 %1624, %v1937_v26   ;;  %991 = vperm.xlu1 %1625, %v1937_v26  }
 0x127   :  { %v1941_v27 = vpop.f32.mrf.mxu1 }
 0x129   :  { %1531 = vmatmul.msk.f32.gmra.mxu3 %vm619_vm5, %v1941_v27  ;;  %1642 = vset.pattern.permute.xlu0 %v1691_v61 }
 0x12a   :  { %955 = vperm.xlu0 %1642, %v1941_v27  }
 0x12d   :  { %v2092_v6 = vpop.f32.mrf.mxu2 }
 0x12e   :  { %1627 = vset.pattern.permute.xlu2 %v1691_v61  ;;  %1630 = vset.pattern.permute.xlu1 %v1689_v0 }
 0x12f   :  { %939 = vperm.xlu2 %1627, %v366_v14   ;;  %417 = vperm.xlu1 %1630, %v369_v17   ;;  %v1953_v29 = vpop.f32.mrf.mxu1 }
 0x131   :  { %1532 = vmatmul.msk.f32.gmra.mxu3 %vm619_vm5, %v1953_v29 }
 0x132   :  { %1644 = vset.pattern.permute.xlu0 %v1692_v62 }
 0x133   :  { %1169 = vperm.xlu0 %1644, %v1941_v27  }
 0x137   :  { %1628 = vset.pattern.permute.xlu2 %v1693_v15  ;;  %1631 = vset.pattern.permute.xlu1 %v1691_v61  ;;  %v1965_v32 = vpop.f32.mrf.mxu1 }
 0x138   :  { %725 = vperm.xlu2 %1628, %v366_v14   ;;  %943 = vperm.xlu1 %1631, %v369_v17  }
 0x139   :  { %1533 = vmatmul.msk.f32.gmra.mxu3 %vm619_vm5, %v1965_v32 }
 0x13b   :  { %1653 = vset.pattern.permute.xlu0 %v1689_v0 }
 0x13f   :  { %v1974_v34 = vpop.f32.mrf.mxu1 }
 0x140   :  { %1629 = vset.pattern.permute.xlu2 %v1692_v62  ;;  %1632 = vset.pattern.permute.xlu1 %v1693_v15 }
 0x141   :  { %447 = vperm.xlu0 %1653, %v1974_v34   ;;  %1534 = vmatmul.msk.f32.gmra.mxu3 %vm619_vm5, %v1974_v34 }
 0x142   :  { %1153 = vperm.xlu2 %1629, %v366_v14   ;;  %729 = vperm.xlu1 %1632, %v369_v17  }
 0x147   :  { %v1981_v35 = vpop.f32.mrf.mxu1 }
 0x149   :  { %1655 = vset.pattern.permute.xlu0 %v1693_v15  ;;  %1535 = vmatmul.msk.f32.gmra.mxu3 %vm619_vm5, %v1981_v35 }
 0x14a   :  { %1634 = vset.pattern.permute.xlu2 %v1691_v61  ;;  %1633 = vset.pattern.permute.xlu1 %v1692_v62 }
 0x14b   :  { %753 = vperm.xlu0 %1655, %v1974_v34   ;;  %1157 = vperm.xlu1 %1633, %v369_v17  }
 0x14c   :  { %947 = vperm.xlu2 %1634, %v1916_v20  }
 0x14f   :  { %v1990_v36 = vpop.f32.mrf.mxu1 }
 0x151   :  { %1536 = vmatmul.msk.f32.gmra.mxu3 %vm619_vm5, %v1990_v36 }
 0x153   :  { %1662 = vset.pattern.permute.xlu0 %v1691_v61  ;;  %1638 = vset.pattern.permute.xlu1 %v1691_v61 }
 0x154   :  { %1636 = vset.pattern.permute.xlu2 %v1692_v62  ;;  %975 = vperm.xlu0 %1662, %v1990_v36  }
 0x155   :  { %1161 = vperm.xlu2 %1636, %v1916_v20   ;;  %951 = vperm.xlu1 %1638, %v1927_v24  }
 0x157   :  { %v2020_v43 = vpop.f32.mrf.mxu1 }
 0x159   :  { %1537 = vmatmul.msk.f32.gmra.mxu3 %vm619_vm5, %v2020_v43 }
 0x15a   :  { %v936_v5 = vpop.permute.xlu2 %935 }
 0x15b   :  { %v998_v13 = vmul.f32 %v936_v5, %v187_v59 }
 0x15c   :  { %1664 = vset.pattern.permute.xlu0 %v1692_v62 }
 0x15d   :  { %1637 = vset.pattern.permute.xlu2 %v1689_v0  ;;  %1640 = vset.pattern.permute.xlu1 %v1692_v62 }
 0x15e   :  { %1189 = vperm.xlu0 %1664, %v1990_v36   ;;  %1165 = vperm.xlu1 %1640, %v1927_v24  }
 0x15f   :  { %427 = vperm.xlu2 %1637, %v1927_v24   ;;  %v2051_v51 = vpop.f32.mrf.mxu1 }
 0x161   :  { %1538 = vmatmul.msk.f32.gmra.mxu3 %vm619_vm5, %v2051_v51 }
 0x166   :  { %1641 = vset.pattern.permute.xlu1 %v1689_v0  ;;  %1674 = vset.pattern.permute.xlu0 %v1689_v0 }
 0x167   :  { %1639 = vset.pattern.permute.xlu2 %v1693_v15  ;;  %432 = vperm.xlu1 %1641, %v1941_v27   ;;  %v2068_v55 = vpop.f32.mrf.mxu1 }
 0x168   :  { %737 = vperm.xlu2 %1639, %v1927_v24   ;;  %472 = vperm.xlu0 %1674, %v2068_v55  }
 0x169   :  { %1539 = vmatmul.msk.f32.gmra.mxu3 %vm619_vm5, %v2068_v55 }
 0x16f   :  { %1643 = vset.pattern.permute.xlu1 %v1693_v15 }
 0x170   :  { %1645 = vset.pattern.permute.xlu2 %v1689_v0  ;;  %741 = vperm.xlu1 %1643, %v1941_v27  }
 0x171   :  { %437 = vperm.xlu2 %1645, %v1953_v29   ;;  %1676 = vset.pattern.permute.xlu0 %v1693_v15 }
 0x172   :  { %1540 = vmatmul.msk.f32.gmra.mxu3 %vm619_vm5, %v1937_v26  ;;  %773 = vperm.xlu0 %1676, %v2068_v55   ;;  %v1150_v60 = vpop.permute.xlu0 %1149 }
 0x173   :  { %v1212_v1 = vmul.f32 %v1150_v60, %v187_v59  ;;  %v408_v2 = vpop.permute.xlu1 %407 }
 0x174   :  { %v485_v3 = vmul.f32 %v408_v2, %v187_v59 }
 0x175   :  { %1586 = vmatmul.msk.f32.vlgmr.msrb.gmra.mxu1 %vm43_vm2, %v1212_v1  ;;  %v2159_v1 = vpop.f32.mrf.mxu0 }
 0x176   :  { %1509 = vmatmul.msk.f32.vlgmr.msra.gmra.mxu2 %vm43_vm2, %v485_v3 }
 0x178   :  { %1649 = vset.pattern.permute.xlu1 %v1689_v0 }
 0x179   :  { %1646 = vset.pattern.permute.xlu2 %v1691_v61  ;;  %442 = vperm.xlu1 %1649, %v1965_v32  }
 0x17a   :  { %959 = vperm.xlu2 %1646, %v1953_v29   ;;  %1541 = vmatmul.msk.f32.gmra.mxu3 %vm619_vm5, %v2092_v6 }
 0x17b   :  { %1679 = vset.pattern.permute.xlu0 %v1691_v61 }
 0x17c   :  { %995 = vperm.xlu0 %1679, %v2092_v6   ;;  %v722_v8 = vpop.permute.xlu1 %721  ;;  %v413_v9 = vpop.permute.xlu0 %412 }
 0x17d   :  { %v784_v10 = vmul.f32 %v722_v8, %v187_v59  ;;  %v486_v11 = vmul.f32 %v413_v9, %v188_v7 }
 0x17f   :  { %1510 = vmatmul.msk.f32.gmra.mxu2 %vm43_vm2, %v486_v11  ;;  %1546 = vmatmul.msk.f32.vlgmr.msrb.gmra.mxu0 %vm43_vm2, %v784_v10 }
 0x180   :  { %v2103_v12 = vpop.permute.xlu2 %477 }
 0x181   :  { %1650 = vset.pattern.permute.xlu1 %v1691_v61 }
 0x182   :  { %1647 = vset.pattern.permute.xlu2 %v1693_v15  ;;  %963 = vperm.xlu1 %1650, %v1965_v32  }
 0x183   :  { %745 = vperm.xlu2 %1647, %v1953_v29   ;;  %1566 = vmatmul.msk.f32.vlgmr.msrb.gmra.mxu3 %vm43_vm2, %v998_v13 }
 0x184   :  { %v2110_v14 = vpop.f32.mrf.mxu3  ;;  %1682 = vset.pattern.permute.xlu0 %v1689_v0 }
 0x189   :  { %v940_v17 = vpop.permute.xlu2 %939 }
 0x18a   :  { %1651 = vset.pattern.permute.xlu1 %v1693_v15  ;;  %v999_v19 = vmul.f32 %v940_v17, %v188_v7 }
 0x18b   :  { %1648 = vset.pattern.permute.xlu2 %v1692_v62  ;;  %749 = vperm.xlu1 %1651, %v1965_v32  }
 0x18c   :  { %1173 = vperm.xlu2 %1648, %v1953_v29   ;;  %v2117_v20 = vpop.f32.mrf.mxu3  ;;  %1567 = vmatmul.msk.f32.gmra.mxu3 %vm43_vm2, %v999_v19  ;;  %v146_v29 = vadd.f32 %v2077_v57, %v145_v16  ;;  %v155_v19 = vadd.f32 %v2077_v57, %v154_v42 }
 0x192   :  { %v726_v24 = vpop.permute.xlu2 %725 }
 0x193   :  { %1652 = vset.pattern.permute.xlu1 %v1692_v62  ;;  %v785_v25 = vmul.f32 %v726_v24, %v188_v7 }
 0x194   :  { %1654 = vset.pattern.permute.xlu2 %v1691_v61  ;;  %1177 = vperm.xlu1 %1652, %v1965_v32   ;;  %v2123_v27 = vpop.f32.mrf.mxu3  ;;  %v189_v32 = vmax.f32 %v146_v29, 0.0  ;;  %v192_v29 = vmax.f32 %v155_v19, 0.0 }
 0x195   :  { %967 = vperm.xlu2 %1654, %v1974_v34   ;;  %1547 = vmatmul.msk.f32.gmra.mxu0 %vm43_vm2, %v785_v25 }
 0x198   :  { %v2127_v28 = vpop.permute.xlu1 %991 }
 0x19c   :  { %1658 = vset.pattern.permute.xlu1 %v1691_v61  ;;  %v1154_v33 = vpop.permute.xlu2 %1153  ;;  %v2131_v37 = vpop.f32.mrf.mxu3 }
 0x19d   :  { %1656 = vset.pattern.permute.xlu2 %v1692_v62  ;;  %v1213_v38 = vmul.f32 %v1154_v33, %v188_v7  ;;  %971 = vperm.xlu1 %1658, %v1981_v35  }
 0x19e   :  { %1181 = vperm.xlu2 %1656, %v1974_v34   ;;  %v423_v34 = vpop.permute.xlu0 %422 }
 0x19f   :  { %1587 = vmatmul.msk.f32.gmra.mxu1 %vm43_vm2, %v1213_v38  ;;  %v488_v47 = vmul.f32 %v423_v34, %v190_v45 }
 0x1a1   :  { %v418_v39 = vpop.permute.xlu1 %417 }
 0x1a2   :  { %v487_v41 = vmul.f32 %v418_v39, %v189_v32  ;;  %v158_v39 = vadd.f32 %v2077_v57, %v157_v52 }
 0x1a4   :  { %v2138_v44 = vpop.f32.mrf.mxu3  ;;  %1511 = vmatmul.msk.f32.gmra.mxu2 %vm43_vm2, %v487_v41 }
 0x1a5   :  { %1660 = vset.pattern.permute.xlu1 %v1692_v62 }
 0x1a6   :  { %1657 = vset.pattern.permute.xlu2 %v1689_v0  ;;  %v948_v46 = vpop.permute.xlu2 %947  ;;  %1185 = vperm.xlu1 %1660, %v1981_v35   ;;  %v734_v3 = vpop.permute.xlu0 %733 }
 0x1a7   :  { %452 = vperm.xlu2 %1657, %v1981_v35   ;;  %v1001_v56 = vmul.f32 %v948_v46, %v190_v45  ;;  %v787_v5 = vmul.f32 %v734_v3, %v190_v45 }
 0x1aa   :  { %v944_v48 = vpop.permute.xlu1 %943 }
 0x1ab   :  { %v1000_v49 = vmul.f32 %v944_v48, %v189_v32 }
 0x1ac   :  { %v2145_v50 = vpop.f32.mrf.mxu3  ;;  %1512 = vmatmul.msk.f32.gmra.mxu2 %vm43_vm2, %v488_v47 }
 0x1ad   :  { %1568 = vmatmul.msk.f32.gmra.mxu3 %vm43_vm2, %v1000_v49 }
 0x1ae   :  { %1661 = vset.pattern.permute.xlu1 %v1689_v0  ;;  %v956_v31 = vpop.permute.xlu0 %955 }
 0x1af   :  { %1659 = vset.pattern.permute.xlu2 %v1693_v15  ;;  %v1162_v53 = vpop.permute.xlu2 %1161  ;;  %457 = vperm.xlu1 %1661, %v1990_v36   ;;  %v1003_v38 = vmul.f32 %v956_v31, %v192_v29 }
 0x1b0   :  { %757 = vperm.xlu2 %1659, %v1981_v35   ;;  %v1215_v13 = vmul.f32 %v1162_v53, %v190_v45  ;;  %v193_v45 = vmax.f32 %v158_v39, 0.0 }
 0x1b4   :  { %v730_v58 = vpop.permute.xlu1 %729  ;;  %v2154_v59 = vpop.f32.mrf.mxu3 }
 0x1b5   :  { %v786_v60 = vmul.f32 %v730_v58, %v189_v32  ;;  %1569 = vmatmul.msk.f32.gmra.mxu3 %vm43_vm2, %v1001_v56 }
 0x1b6   :  { %v1170_v46 = vpop.permute.xlu0 %1169 }
 0x1b7   :  { %1663 = vset.pattern.permute.xlu1 %v1693_v15  ;;  %1548 = vmatmul.msk.f32.gmra.mxu0 %vm43_vm2, %v786_v60  ;;  %v1217_v48 = vmul.f32 %v1170_v46, %v192_v29  ;;  %v161_v60 = vadd.f32 %v2077_v57, %v2159_v1 }
 0x1b8   :  { %1665 = vset.pattern.permute.xlu2 %v1689_v0  ;;  %761 = vperm.xlu1 %1663, %v1990_v36   ;;  %v2172_v36 = vpop.f32.mrf.mxu0 }
 0x1b9   :  { %v428_v35 = vpop.permute.xlu2 %427  ;;  %462 = vperm.xlu2 %1665, %v2020_v43  }
 0x1ba   :  { %v489_v2 = vmul.f32 %v428_v35, %v191_v63  ;;  %v194_v35 = vmax.f32 %v161_v60, 0.0 }
 0x1bc   :  { %1513 = vmatmul.msk.f32.gmra.mxu2 %vm43_vm2, %v489_v2  ;;  %v2165_v4 = vpop.f32.mrf.mxu3 }
 0x1bd   :  { %v1158_v7 = vpop.permute.xlu1 %1157 }
 0x1be   :  { %v1214_v8 = vmul.f32 %v1158_v7, %v189_v32 }
 0x1bf   :  { %1549 = vmatmul.msk.f32.gmra.mxu0 %vm43_vm2, %v787_v5  ;;  %v164_v5 = vadd.f32 %v2077_v57, %v2172_v36 }
 0x1c0   :  { %1669 = vset.pattern.permute.xlu1 %v1689_v0  ;;  %1588 = vmatmul.msk.f32.gmra.mxu1 %vm43_vm2, %v1214_v8  ;;  %v2185_v24 = vpop.f32.mrf.mxu0 }
 0x1c1   :  { %1666 = vset.pattern.permute.xlu2 %v1691_v61  ;;  %467 = vperm.xlu1 %1669, %v2051_v51  }
 0x1c2   :  { %v738_v9 = vpop.permute.xlu2 %737  ;;  %979 = vperm.xlu2 %1666, %v2020_v43  }
 0x1c3   :  { %v788_v11 = vmul.f32 %v738_v9, %v191_v63  ;;  %v195_v9 = vmax.f32 %v164_v5, 0.0 }
 0x1c4   :  { %v2175_v10 = vpop.f32.mrf.mxu3 }
 0x1c7   :  { %v952_v16 = vpop.permute.xlu1 %951  ;;  %1550 = vmatmul.msk.f32.gmra.mxu0 %vm43_vm2, %v788_v11  ;;  %v448_v11 = vpop.permute.xlu0 %447 }
 0x1c8   :  { %v1002_v17 = vmul.f32 %v952_v16, %v191_v63  ;;  %1589 = vmatmul.msk.f32.gmra.mxu1 %vm43_vm2, %v1215_v13  ;;  %v2198_v42 = vpop.f32.mrf.mxu0  ;;  %v493_v13 = vmul.f32 %v448_v11, %v195_v9 }
 0x1c9   :  { %1670 = vset.pattern.permute.xlu1 %v1691_v61 }
 0x1ca   :  { %1667 = vset.pattern.permute.xlu2 %v1693_v15  ;;  %983 = vperm.xlu1 %1670, %v2051_v51  }
 0x1cb   :  { %v438_v21 = vpop.permute.xlu2 %437  ;;  %765 = vperm.xlu2 %1667, %v2020_v43   ;;  %1570 = vmatmul.msk.f32.gmra.mxu3 %vm43_vm2, %v1002_v17 }
 0x1cc   :  { %v2187_v25 = vpop.f32.mrf.mxu3  ;;  %v491_v56 = vmul.f32 %v438_v21, %v193_v45 }
 0x1cf   :  { %v754_v46 = vpop.permute.xlu0 %753 }
 0x1d0   :  { %v1166_v33 = vpop.permute.xlu1 %1165  ;;  %v2209_v53 = vpop.f32.mrf.mxu0 }
 0x1d1   :  { %v1216_v32 = vmul.f32 %v1166_v33, %v191_v63 }
 0x1d2   :  { %1671 = vset.pattern.permute.xlu1 %v1693_v15 }
 0x1d3   :  { %1668 = vset.pattern.permute.xlu2 %v1692_v62  ;;  %1571 = vmatmul.msk.f32.gmra.mxu3 %vm43_vm2, %v1003_v38 }
 0x1d4   :  { %1590 = vmatmul.msk.f32.gmra.mxu1 %vm43_vm2, %v1216_v32  ;;  %v960_v40 = vpop.permute.xlu2 %959  ;;  %1193 = vperm.xlu2 %1668, %v2020_v43   ;;  %v2195_v41 = vpop.f32.mrf.mxu3 }
 0x1d5   :  { %769 = vperm.xlu1 %1671, %v2051_v51   ;;  %v1004_v34 = vmul.f32 %v960_v40, %v193_v45 }
 0x1d8   :  { %v2222_v1 = vpop.f32.mrf.mxu0 }
 0x1d9   :  { %v433_v47 = vpop.permute.xlu1 %432 }
 0x1da   :  { %v490_v49 = vmul.f32 %v433_v47, %v192_v29 }
 0x1db   :  { %1572 = vmatmul.msk.f32.gmra.mxu3 %vm43_vm2, %v1004_v34 }
 0x1dc   :  { %1591 = vmatmul.msk.f32.gmra.mxu1 %vm43_vm2, %v1217_v48  ;;  %1675 = vset.pattern.permute.xlu2 %v1691_v61  ;;  %v2203_v52 = vpop.f32.mrf.mxu3 }
 0x1dd   :  { %1672 = vset.pattern.permute.xlu1 %v1692_v62  ;;  %1514 = vmatmul.msk.f32.gmra.mxu2 %vm43_vm2, %v490_v49  ;;  %v746_v43 = vpop.permute.xlu2 %745 }
 0x1de   :  { %1197 = vperm.xlu1 %1672, %v2051_v51   ;;  %987 = vperm.xlu2 %1675, %v2068_v55   ;;  %v790_v2 = vmul.f32 %v746_v43, %v193_v45 }
 0x1e0   :  { %v2234_v36 = vpop.f32.mrf.mxu0 }
 0x1e2   :  { %v742_v54 = vpop.permute.xlu1 %741 }
 0x1e3   :  { %v789_v58 = vmul.f32 %v742_v54, %v192_v29 }
 0x1e4   :  { %v2213_v61 = vpop.f32.mrf.mxu3 }
 0x1e5   :  { %1515 = vmatmul.msk.f32.gmra.mxu2 %vm43_vm2, %v491_v56  ;;  %1551 = vmatmul.msk.f32.gmra.mxu0 %vm43_vm2, %v789_v58 }
 0x1e6   :  { %1673 = vset.pattern.permute.xlu1 %v1689_v0  ;;  %1677 = vset.pattern.permute.xlu2 %v1692_v62  ;;  %v1174_v51 = vpop.permute.xlu2 %1173 }
 0x1e7   :  { %v1218_v63 = vmul.f32 %v1174_v51, %v193_v45  ;;  %482 = vperm.xlu1 %1673, %v2092_v6   ;;  %1201 = vperm.xlu2 %1677, %v2068_v55   ;;  %v170_v51 = vadd.f32 %v2077_v57, %v2198_v42  ;;  %v173_v42 = vadd.f32 %v2077_v57, %v2209_v53 }
 0x1e9   :  { %1592 = vmatmul.msk.f32.gmra.mxu1 %vm43_vm2, %v1218_v63 }
 0x1eb   :  { %v443_v3 = vpop.permute.xlu1 %442 }
 0x1ec   :  { %v492_v7 = vmul.f32 %v443_v3, %v194_v35  ;;  %v2226_v8 = vpop.f32.mrf.mxu3 }
 0x1ed   :  { %1552 = vmatmul.msk.f32.gmra.mxu0 %vm43_vm2, %v790_v2 }
 0x1ee   :  { %1516 = vmatmul.msk.f32.gmra.mxu2 %vm43_vm2, %v492_v7  ;;  %v197_v7 = vmax.f32 %v170_v51, 0.0 }
 0x1ef   :  { %1680 = vset.pattern.permute.xlu1 %v1692_v62  ;;  %1678 = vset.pattern.permute.xlu2 %v1693_v15  ;;  %v968_v55 = vpop.permute.xlu2 %967 }
 0x1f0   :  { %1205 = vperm.xlu1 %1680, %v1937_v26   ;;  %777 = vperm.xlu2 %1678, %v1937_v26   ;;  %v167_v26 = vadd.f32 %v2077_v57, %v2185_v24  ;;  %v1006_v31 = vmul.f32 %v968_v55, %v195_v9  ;;  %v976_v55 = vpop.permute.xlu0 %975 }
 0x1f2   :  { %v196_v39 = vmax.f32 %v167_v26, 0.0  ;;  %v1298_v49 = vpop.f32.mrf.mxu1  ;;  %v198_v26 = vmax.f32 %v173_v42, 0.0 }
 0x1f4   :  { %v964_v16 = vpop.permute.xlu1 %963 }
 0x1f5   :  { %v1005_v17 = vmul.f32 %v964_v16, %v194_v35  ;;  %v2236_v19 = vpop.f32.mrf.mxu3 }
 0x1f6   :  { %1517 = vmatmul.msk.f32.gmra.mxu2 %vm43_vm2, %v493_v13  ;;  %v1008_v13 = vmul.f32 %v976_v55, %v197_v7 }
 0x1f7   :  { %1573 = vmatmul.msk.f32.gmra.mxu3 %vm43_vm2, %v1005_v17 }
 0x1f8   :  { %1209 = vperm.xlu1 %1680, %v2092_v6   ;;  %781 = vperm.xlu2 %1678, %v2092_v6   ;;  %v1182_v62 = vpop.permute.xlu2 %1181 }
 0x1f9   :  { %v571_v15 = vpop.f32.mrf.mxu2  ;;  %v1220_v58 = vmul.f32 %v1182_v62, %v195_v9 }
 0x1fa   :  { %v673_v21 = vadd.f32 %v2110_v14, %v571_v15  ;;  %v792_v14 = vmul.f32 %v754_v46, %v195_v9  ;;  %v176_v46 = vadd.f32 %v2077_v57, %v2222_v1 }
 0x1fc   :  { %v870_v29 = vpop.f32.mrf.mxu0 }
 0x1fd   :  { %v918_v33 = vadd.f32 %v870_v29, %v673_v21  ;;  %v750_v38 = vpop.permute.xlu1 %749  ;;  %v2245_v32 = vpop.f32.mrf.mxu3 }
 0x1fe   :  { %v791_v40 = vmul.f32 %v750_v38, %v194_v35  ;;  %v1190_v21 = vpop.permute.xlu0 %1189 }
 0x1ff   :  { %1574 = vmatmul.msk.f32.gmra.mxu3 %vm43_vm2, %v1006_v31 }
 0x200   :  { %1553 = vmatmul.msk.f32.gmra.mxu0 %vm43_vm2, %v791_v40  ;;  %1681 = vset.pattern.permute.xlu2 %v1689_v0 }
 0x201   :  { %v453_v6 = vpop.permute.xlu2 %452 }
 0x202   :  { %v494_v45 = vmul.f32 %v453_v6, %v196_v39  ;;  %v574_v56 = vpop.f32.mrf.mxu2 }
 0x204   :  { %1518 = vmatmul.msk.f32.gmra.mxu2 %vm43_vm2, %v494_v45 }
 0x206   :  { %v1084_v24 = vpop.f32.mrf.mxu3  ;;  %v1178_v34 = vpop.permute.xlu1 %1177 }
 0x207   :  { %v1132_v47 = vadd.f32 %v1084_v24, %v918_v33  ;;  %v1219_v48 = vmul.f32 %v1178_v34, %v194_v35  ;;  %v676_v35 = vadd.f32 %v2117_v20, %v574_v56  ;;  %v1222_v33 = vmul.f32 %v1190_v21, %v197_v7 }
 0x208   :  { %1554 = vmatmul.msk.f32.gmra.mxu0 %vm43_vm2, %v792_v14  ;;  %v179_v56 = vadd.f32 %v2077_v57, %v2234_v36 }
 0x209   :  { %v2252_v43 = vadd.f32 %v1298_v49, %v1132_v47  ;;  %1593 = vmatmul.msk.f32.gmra.mxu1 %vm43_vm2, %v1219_v48  ;;  %v199_v47 = vmax.f32 %v176_v46, 0.0  ;;  %v185_v46 = vadd.f32 %v2077_v57, %v1924_v22 }
 0x20a   :  { %v758_v54 = vpop.permute.xlu2 %757 }
 0x20b   :  { %v793_v0 = vmul.f32 %v758_v54, %v196_v39 }
 0x20f   :  { %v972_v60 = vpop.permute.xlu1 %971  ;;  %v1087_v11 = vpop.f32.mrf.mxu3 }
 0x210   :  { %v1007_v63 = vmul.f32 %v972_v60, %v196_v39  ;;  %1555 = vmatmul.msk.f32.gmra.mxu0 %vm43_vm2, %v793_v0 }
 0x211   :  { %1594 = vmatmul.msk.f32.gmra.mxu1 %vm43_vm2, %v1220_v58 }
 0x212   :  { %1575 = vmatmul.msk.f32.gmra.mxu3 %vm43_vm2, %v1007_v63  ;;  %v873_v2 = vpop.f32.mrf.mxu0  ;;  %v200_v63 = vmax.f32 %v179_v56, 0.0 }
 0x213   :  { %v463_v3 = vpop.permute.xlu2 %462  ;;  %v919_v5 = vadd.f32 %v873_v2, %v676_v35  ;;  %v473_v2 = vpop.permute.xlu0 %472 }
 0x214   :  { %v496_v40 = vmul.f32 %v463_v3, %v198_v26 }
 0x215   :  { %v1133_v9 = vadd.f32 %v1087_v11, %v919_v5  ;;  %v498_v5 = vmul.f32 %v473_v2, %v200_v63 }
 0x218   :  { %v1186_v16 = vpop.permute.xlu1 %1185 }
 0x219   :  { %v1221_v17 = vmul.f32 %v1186_v16, %v196_v39 }
 0x21a   :  { %1576 = vmatmul.msk.f32.gmra.mxu3 %vm43_vm2, %v1008_v13 }
 0x21b   :  { %1595 = vmatmul.msk.f32.gmra.mxu1 %vm43_vm2, %v1221_v17 }
 0x21c   :  { %v980_v20 = vpop.permute.xlu2 %979  ;;  %v1301_v62 = vpop.f32.mrf.mxu1 }
 0x21d   :  { %v2265_v15 = vadd.f32 %v1301_v62, %v1133_v9  ;;  %v1009_v31 = vmul.f32 %v980_v20, %v198_v26  ;;  %v182_v9 = vadd.f32 %v2077_v57, %v1909_v18 }
 0x21f   :  { %v1371_v29 = vpack.c.bf16 %v2265_v15, %v2252_v43  ;;  %v1688_v43 = vld [vmem:[%s2377_s0] sm:$0xff] }
 0x220   :  { %v1370_v15 = vld [vmem:[#allocation2] sm:$0xff] }
 0x221   :  { %v458_v38 = vpop.permute.xlu1 %457 }
 0x222   :  { %v495_v39 = vmul.f32 %v458_v38, %v197_v7  ;;  %1577 = vmatmul.msk.f32.gmra.mxu3 %vm43_vm2, %v1009_v31 }
 0x223   :  { %1596 = vmatmul.msk.f32.gmra.mxu1 %vm43_vm2, %v1222_v33 }
 0x224   :  { %1519 = vmatmul.msk.f32.gmra.mxu2 %vm43_vm2, %v495_v39 }
 0x225   :  { %v766_v53 = vpop.permute.xlu2 %765 }
 0x226   :  { %v795_v48 = vmul.f32 %v766_v53, %v198_v26  ;;  %v774_v53 = vpop.permute.xlu0 %773 }
 0x227   :  { %v577_v14 = vpop.f32.mrf.mxu2 }
 0x228   :  { %v679_v49 = vadd.f32 %v2123_v27, %v577_v14 }
 0x22a   :  { %v762_v6 = vpop.permute.xlu1 %761 }
 0x22b   :  { %v794_v45 = vmul.f32 %v762_v6, %v197_v7 }
 0x22c   :  { %1520 = vmatmul.msk.f32.gmra.mxu2 %vm43_vm2, %v496_v40 }
 0x22d   :  { %1556 = vmatmul.msk.f32.gmra.mxu0 %vm43_vm2, %v794_v45 }
 0x22e   :  { %v1194_v24 = vpop.permute.xlu2 %1193 }
 0x22f   :  { %v1223_v34 = vmul.f32 %v1194_v24, %v198_v26  ;;  %v580_v35 = vpop.f32.mrf.mxu2  ;;  %v797_v24 = vmul.f32 %v774_v53, %v200_v63 }
 0x230   :  { %v1090_v0 = vpop.f32.mrf.mxu3  ;;  %v682_v3 = vadd.f32 %v2131_v37, %v580_v35  ;;  %v201_v37 = vmax.f32 %v182_v9, 0.0 }
 0x231   :  { %1597 = vmatmul.msk.f32.gmra.mxu1 %vm43_vm2, %v1223_v34 }
 0x232   :  { %v499_v26 = vmul.f32 %v2103_v12, %v201_v37  ;;  %v1012_v12 = vmul.f32 %v2127_v28, %v201_v37 }
 0x233   :  { %v468_v54 = vpop.permute.xlu1 %467 }
 0x234   :  { %v497_v58 = vmul.f32 %v468_v54, %v199_v47  ;;  %v876_v1 = vpop.f32.mrf.mxu0  ;;  %v996_v54 = vpop.permute.xlu0 %995 }
 0x235   :  { %v920_v60 = vadd.f32 %v876_v1, %v679_v49  ;;  %1557 = vmatmul.msk.f32.gmra.mxu0 %vm43_vm2, %v795_v48 }
 0x236   :  { %1521 = vmatmul.msk.f32.gmra.mxu2 %vm43_vm2, %v497_v58 }
 0x237   :  { %v1134_v51 = vadd.f32 %v1090_v0, %v920_v60  ;;  %v202_v0 = vmax.f32 %v185_v46, 0.0 }
 0x238   :  { %v1093_v13 = vpop.f32.mrf.mxu3  ;;  %v988_v17 = vpop.permute.xlu2 %987 }
 0x239   :  { %v1011_v31 = vmul.f32 %v988_v17, %v200_v63  ;;  %v1013_v28 = vmul.f32 %v996_v54, %v202_v0 }
 0x23c   :  { %v984_v27 = vpop.permute.xlu1 %983  ;;  %v879_v7 = vpop.f32.mrf.mxu0 }
 0x23d   :  { %v1010_v55 = vmul.f32 %v984_v27, %v199_v47  ;;  %v921_v11 = vadd.f32 %v879_v7, %v682_v3  ;;  %v1304_v36 = vpop.f32.mrf.mxu1 }
 0x23e   :  { %1522 = vmatmul.msk.f32.gmra.mxu2 %vm43_vm2, %v498_v5  ;;  %v2286_v16 = vadd.f32 %v1304_v36, %v1134_v51 }
 0x23f   :  { %1578 = vmatmul.msk.f32.gmra.mxu3 %vm43_vm2, %v1010_v55  ;;  %v1135_v42 = vadd.f32 %v1093_v13, %v921_v11  ;;  %v583_v20 = vpop.f32.mrf.mxu2 }
 0x240   :  { %v685_v62 = vadd.f32 %v2138_v44, %v583_v20 }
 0x241   :  { %v1202_v45 = vpop.permute.xlu2 %1201 }
 0x242   :  { %v1225_v57 = vmul.f32 %v1202_v45, %v200_v63 }
 0x244   :  { %v882_v21 = vpop.f32.mrf.mxu0 }
 0x245   :  { %v922_v33 = vadd.f32 %v882_v21, %v685_v62  ;;  %v1307_v38 = vpop.f32.mrf.mxu1 }
 0x246   :  { %1523 = vmatmul.msk.f32.gmra.mxu2 %vm43_vm2, %v499_v26  ;;  %v2292_v18 = vadd.f32 %v1307_v38, %v1135_v42 }
 0x247   :  { %v770_v39 = vpop.permute.xlu1 %769  ;;  %1579 = vmatmul.msk.f32.gmra.mxu3 %vm43_vm2, %v1011_v31 }
 0x248   :  { %v796_v40 = vmul.f32 %v770_v39, %v199_v47  ;;  %v1372_v6 = vpack.c.bf16 %v2292_v18, %v2286_v16 }
 0x24a   :  { %1558 = vmatmul.msk.f32.gmra.mxu0 %vm43_vm2, %v796_v40  ;;  %v778_v58 = vpop.permute.xlu2 %777 }
 0x24b   :  { %v798_v22 = vmul.f32 %v778_v58, %v201_v37 }
 0x24e   :  { %v1096_v44 = vpop.f32.mrf.mxu3 }
 0x24f   :  { %v1136_v14 = vadd.f32 %v1096_v44, %v922_v33  ;;  %1580 = vmatmul.msk.f32.gmra.mxu3 %vm43_vm2, %v1012_v12 }
 0x250   :  { %v1198_v34 = vpop.permute.xlu1 %1197 }
 0x251   :  { %v1224_v48 = vmul.f32 %v1198_v34, %v199_v47  ;;  %v1310_v49 = vpop.f32.mrf.mxu1 }
 0x252   :  { %1559 = vmatmul.msk.f32.gmra.mxu0 %vm43_vm2, %v797_v24  ;;  %v2303_v56 = vadd.f32 %v1310_v49, %v1136_v14  ;;  %v782_v47 = vpop.permute.xlu2 %781 }
 0x253   :  { %1598 = vmatmul.msk.f32.gmra.mxu1 %vm43_vm2, %v1224_v48  ;;  %v799_v51 = vmul.f32 %v782_v47, %v202_v0 }
 0x256   :  { %v1099_v2 = vpop.f32.mrf.mxu3 }
 0x257   :  { %1581 = vmatmul.msk.f32.gmra.mxu3 %vm43_vm2, %v1013_v28 }
 0x259   :  { %v483_v1 = vpop.permute.xlu1 %482  ;;  %v1313_v11 = vpop.f32.mrf.mxu1 }
 0x25a   :  { %v500_v60 = vmul.f32 %v483_v1, %v202_v0  ;;  %1560 = vmatmul.msk.f32.gmra.mxu0 %vm43_vm2, %v798_v22 }
 0x25b   :  { %1599 = vmatmul.msk.f32.gmra.mxu1 %vm43_vm2, %v1225_v57 }
 0x25c   :  { %1524 = vmatmul.msk.f32.gmra.mxu2 %vm43_vm2, %v500_v60 }
 0x25e   :  { %v1102_v26 = vpop.f32.mrf.mxu3 }
 0x260   :  { %v586_v35 = vpop.f32.mrf.mxu2 }
 0x261   :  { %v688_v3 = vadd.f32 %v2145_v50, %v586_v35 }
 0x262   :  { %v1206_v5 = vpop.permute.xlu1 %1205  ;;  %1561 = vmatmul.msk.f32.gmra.mxu0 %vm43_vm2, %v799_v51  ;;  %v885_v27 = vpop.f32.mrf.mxu0 }
 0x263   :  { %v1226_v7 = vmul.f32 %v1206_v5, %v201_v37  ;;  %v923_v63 = vadd.f32 %v885_v27, %v688_v3 }
 0x265   :  { %v1137_v55 = vadd.f32 %v1099_v2, %v923_v63  ;;  %1600 = vmatmul.msk.f32.gmra.mxu1 %vm43_vm2, %v1226_v7 }
 0x266   :  { %v1316_v37 = vpop.f32.mrf.mxu1 }
 0x267   :  { %v2313_v36 = vadd.f32 %v1313_v11, %v1137_v55 }
 0x268   :  { %v589_v9 = vpop.f32.mrf.mxu2 }
 0x269   :  { %v691_v13 = vadd.f32 %v2154_v59, %v589_v9  ;;  %v1373_v17 = vpack.c.bf16 %v2313_v36, %v2303_v56  ;;  %v1695_v56 = vmov 1.0|1.0  }
 0x26a   :  { %v1210_v42 = vpop.permute.xlu1 %1209  ;;  %v888_v50 = vpop.f32.mrf.mxu0 }
 0x26b   :  { %v1227_v20 = vmul.f32 %v1210_v42, %v202_v0  ;;  %v924_v62 = vadd.f32 %v888_v50, %v691_v13 }
 0x26d   :  { %v1138_v21 = vadd.f32 %v1102_v26, %v924_v62  ;;  %1601 = vmatmul.msk.f32.gmra.mxu1 %vm43_vm2, %v1227_v20 }
 0x26f   :  { %v2319_v31 = vadd.f32 %v1316_v37, %v1138_v21 }
 0x271   :  { %v592_v33 = vpop.f32.mrf.mxu2 }
 0x272   :  { %v694_v38 = vadd.f32 %v2165_v4, %v592_v33 }
 0x279   :  { %v595_v45 = vpop.f32.mrf.mxu2 }
 0x27a   :  { %v1105_v39 = vpop.f32.mrf.mxu3  ;;  %v697_v12 = vadd.f32 %v2175_v10, %v595_v45 }
 0x27d   :  { %v891_v53 = vpop.f32.mrf.mxu0 }
 0x27e   :  { %v925_v59 = vadd.f32 %v891_v53, %v694_v38 }
 0x280   :  { %v1139_v40 = vadd.f32 %v1105_v39, %v925_v59 }
 0x282   :  { %v1108_v24 = vpop.f32.mrf.mxu3 }
 0x285   :  { %v894_v44 = vpop.f32.mrf.mxu0 }
 0x286   :  { %v926_v46 = vadd.f32 %v894_v44, %v697_v12  ;;  %v1319_v14 = vpop.f32.mrf.mxu1 }
 0x287   :  { %v2323_v34 = vadd.f32 %v1319_v14, %v1139_v40  ;;  %v598_v4 = vpop.f32.mrf.mxu2 }
 0x288   :  { %v1140_v48 = vadd.f32 %v1108_v24, %v926_v46 }
 0x289   :  { %v1374_v49 = vpack.c.bf16 %v2323_v34, %v2319_v31  ;;  %v1694_v31 = vmov 1065369472  }
 0x28d   :  { %v897_v58 = vpop.f32.mrf.mxu0 }
 0x28e   :  { %v1322_v54 = vpop.f32.mrf.mxu1 }
 0x28f   :  { %v2327_v0 = vadd.f32 %v1322_v54, %v1140_v48 }
 0x295   :  { %v1111_v28 = vpop.f32.mrf.mxu3 }
 0x298   :  { %v1325_v1 = vpop.f32.mrf.mxu1 }
 0x29d   :  { %v1114_v10 = vpop.f32.mrf.mxu3 }
 0x2a0   :  { %v1328_v51 = vpop.f32.mrf.mxu1 }
 0x2a5   :  { %v1117_v35 = vpop.f32.mrf.mxu3 }
 0x2a7   :  { %v601_v22 = vpop.f32.mrf.mxu2 }
 0x2a8   :  { %v703_v59 = vadd.f32 %v2195_v41, %v601_v22 }
 0x2aa   :  { %v900_v57 = vpop.f32.mrf.mxu0 }
 0x2ab   :  { %v928_v48 = vadd.f32 %v900_v57, %v703_v59 }
 0x2ad   :  { %v1142_v22 = vadd.f32 %v1114_v10, %v928_v48 }
 0x2ae   :  { %v1331_v5 = vpop.f32.mrf.mxu1 }
 0x2af   :  { %v604_v60 = vpop.f32.mrf.mxu2 }
 0x2b0   :  { %v706_v33 = vadd.f32 %v2203_v52, %v604_v60  ;;  %v700_v52 = vadd.f32 %v2187_v25, %v598_v4  ;;  %v1364_v25 = vshrl.u32 %v219_v23, 7  ;;  %v1684_v4 = vld [vmem:[%s2383_s2] ss:$0 sm:$0xff] }
 0x2b1   :  { %v1424_v23 = vld [vmem:[%s2384_s8] sm:$0xf] }
 0x2b2   :  { %v903_v47 = vpop.f32.mrf.mxu0  ;;  %v927_v41 = vadd.f32 %v897_v58, %v700_v52  ;;  %vm1366_vm7 = vcmp.eq.s32.totalorder %v1364_v25, %v1684_v4 }
 0x2b3   :  { %v929_v44 = vadd.f32 %v903_v47, %v706_v33  ;;  %vm1603_vm8 = vmpackc.low %vm1366_vm7, %vm1366_vm7 }
 0x2b9   :  { %v607_v2 = vpop.f32.mrf.mxu2 }
 0x2ba   :  { %v709_v40 = vadd.f32 %v2213_v61, %v607_v2  ;;  %v1141_v2 = vadd.f32 %v1111_v28, %v927_v41 }
 0x2c1   :  { %v610_v7 = vpop.f32.mrf.mxu2 }
 0x2c2   :  { %v1120_v27 = vpop.f32.mrf.mxu3  ;;  %v712_v38 = vadd.f32 %v2226_v8, %v610_v7  ;;  %v1143_v8 = vadd.f32 %v1117_v35, %v929_v44 }
 0x2c4   :  { %v1357_v47 = vadd.f32 %v1331_v5, %v1143_v8 }
 0x2c7   :  { %v906_v3 = vpop.f32.mrf.mxu0 }
 0x2c8   :  { %v930_v46 = vadd.f32 %v906_v3, %v709_v40 }
 0x2c9   :  { %v613_v9 = vpop.f32.mrf.mxu2 }
 0x2ca   :  { %v1123_v11 = vpop.f32.mrf.mxu3  ;;  %v715_v21 = vadd.f32 %v2236_v19, %v613_v9  ;;  %v1144_v60 = vadd.f32 %v1120_v27, %v930_v46 }
 0x2cf   :  { %v909_v63 = vpop.f32.mrf.mxu0 }
 0x2d0   :  { %v1334_v55 = vpop.f32.mrf.mxu1  ;;  %v931_v45 = vadd.f32 %v909_v63, %v712_v38  ;;  %v1356_v63 = vadd.f32 %v1328_v51, %v1142_v22  ;;  %v1685_v51 = vld [vmem:[%s2385_s9] ss:$0 sm:$0xff] }
 0x2d1   :  { %v1358_v61 = vadd.f32 %v1334_v55, %v1144_v60 }
 0x2d2   :  { %v1126_v50 = vpop.f32.mrf.mxu3  ;;  %v1145_v19 = vadd.f32 %v1123_v11, %v931_v45  ;;  %v1376_v57 = vpack.c.bf16 %v1357_v47, %v1356_v63 }
 0x2d7   :  { %v912_v13 = vpop.f32.mrf.mxu0 }
 0x2d8   :  { %v1337_v42 = vpop.f32.mrf.mxu1  ;;  %v932_v39 = vadd.f32 %v912_v13, %v715_v21 }
 0x2d9   :  { %v1359_v7 = vadd.f32 %v1337_v42, %v1145_v19 }
 0x2da   :  { %v1129_v12 = vpop.f32.mrf.mxu3  ;;  %v1146_v14 = vadd.f32 %v1126_v50, %v932_v39  ;;  %v1355_v50 = vadd.f32 %v1325_v1, %v1141_v2 }
 0x2db   :  { %v1377_v3 = vpack.c.bf16 %v1359_v7, %v1358_v61 }
 0x2dc   :  { %v1375_v11 = vpack.c.bf16 %v1355_v50, %v2327_v0 }
 0x2df   :  { %v616_v20 = vpop.f32.mrf.mxu2  ;;  %v915_v37 = vpop.f32.mrf.mxu0 }
 0x2e0   :  { %v718_v62 = vadd.f32 %v2245_v32, %v616_v20 }
 0x2e2   :  { %v1340_v26 = vpop.f32.mrf.mxu1  ;;  %v933_v53 = vadd.f32 %v915_v37, %v718_v62 }
 0x2e3   :  { %v1360_v54 = vadd.f32 %v1340_v26, %v1146_v14 }
 0x2e4   :  { %v1147_v32 = vadd.f32 %v1129_v12, %v933_v53 }
 0x2ea   :  { %v1343_v24 = vpop.f32.mrf.mxu1 }
 0x2eb   :  { %v1361_v9 = vadd.f32 %v1343_v24, %v1147_v32 }
 0x2ed   :  { %v1378_v13 = vpack.c.bf16 %v1361_v9, %v1360_v54 }
 0x2ef   :  { %1379 = vmatpush.bf16.msrb.mxu2 %v1378_v13 }
 0x2f3   :  { %1380 = vmatpush.bf16.msrb.mxu2 %v1377_v3 }
 0x2f7   :  { %1381 = vmatpush.bf16.msrb.mxu2 %v1376_v57 }
 0x2fb   :  { %1382 = vmatpush.bf16.msrb.mxu2 %v1375_v11 }
 0x2ff   :  { %1383 = vmatpush.bf16.msrb.mxu2 %v1374_v49 }
 0x303   :  { %1384 = vmatpush.bf16.msrb.mxu2 %v1373_v17 }
 0x307   :  { %1385 = vmatpush.bf16.msrb.mxu2 %v1372_v6  ;;  %v1394_v6 = vld [vmem:[#allocation3] sm:$0xff] }
 0x30b   :  { %1386 = vmatpush.bf16.msrb.mxu2 %v1371_v29 }
 0x30e   :  { %1604 = vmatmul.msk.bf16.vlgmr.msrb.gmra.mxu2 %vm1603_vm8, %v1695_v56 }
 0x30f   :  { %1395 = vmatpush.bf16.msra.mxu2 %v1694_v31 }
 0x313   :  { %1396 = vmatpush.bf16.msra.mxu2 %v1694_v31 }
 0x317   :  { %1397 = vmatpush.bf16.msra.mxu2 %v1694_v31 }
 0x31b   :  { %1398 = vmatpush.bf16.msra.mxu2 %v1694_v31 }
 0x31f   :  { %1399 = vmatpush.bf16.msra.mxu2 %v1694_v31 }
 0x323   :  { %1400 = vmatpush.bf16.msra.mxu2 %v1694_v31 }
 0x327   :  { %1401 = vmatpush.bf16.msra.mxu2 %v1694_v31 }
 0x32b   :  { %1402 = vmatpush.bf16.msra.mxu2 %v1694_v31 }
 0x32e   :  { %1606 = vmatmul.msk.bf16.vlgmr.msra.gmra.mxu2 %vm1603_vm8, %v1695_v56 }
 0x32f   :  { %1607 = vmatpush.msk.msrb.mxu2 %vm351_vm0, %v1424_v23 }
 0x33e   :  { %1608 = vmatmul.msk.f32.vlgmr.msrb.gmra.mxu2 %vm619_vm5, %v1688_v43 }
 0x391   :  { %v1388_v29 = vpop.f32.mrf.mxu2 }
 0x392   :  { %v1392_v16 = vadd.f32 %v1388_v29, %v1370_v15 }
 0x394   :  { %1393 = vst.msk [vmem:[#allocation2] sm:$0xff] %vm43_vm2, %v1392_v16 }
 0x399   :  { %v1390_v18 = vpop.f32.mrf.mxu2 }
 0x39b   :  { %v1417_v30 = vld [vmem:[#allocation2] sm:$0xff] }
 0x3b1   :  { %v1404_v36 = vpop.f32.mrf.mxu2 }
 0x3b2   :  { %v1408_v17 = vadd.f32 %v1404_v36, %v1394_v6 }
 0x3b4   :  { %1410 = vst.msk [vmem:[#allocation3] sm:$0xff] %vm45_vm9, %v1408_v17 }
 0x3b9   :  { %v1406_v34 = vpop.f32.mrf.mxu2 }
 0x3bb   :  { %v1414_v49 = vld [vmem:[#allocation3] sm:$0xff] }
 0x3bc   :  { %v1415_v0 = vmax.f32 %v1414_v49, 1.0 }
 0x3be   :  { %1686 = vrcp.f32 %v1415_v0 }
 0x3c1   :  { %v1448_v1 = vpop.f32.mrf.mxu2 }
 0x3c4   :  { %v1687_v58 = vpop.eup %1686 }
 0x3c5   :  { %1459 = vst.msk [vmem:[%s2386_s11] sm:$0xff] %vm45_vm9, %v1687_v58  ;;  %1420 = vperm.xlu2 %1681, %v1687_v58  }
 0x41f   :  { %v1421_v28 = vpop.permute.xlu2 %1420 }
 0x420   :  { %v1423_v10 = vmul.f32 %v1421_v28, %v1417_v30 }
 0x422   :  { %v1451_v35 = vadd.f32 %v1448_v1, %v1423_v10 }
 0x424   :  { %v1456_v5 = vadd.f32 %v1685_v51, %v1451_v35 }
 0x426   :  { %v1457_v27 = vmax.f32 %v1456_v5, 0.0 }
 0x428   :  { %1458 = vst.msk [vmem:[%s2387_s10] sm:$0xff] %vm43_vm2, %v1457_v27 }

// kernel: edge_feature_gnn_forward.3
= control target key start
LH: loop header
LB: loop body
LE: loop exit
PB: predicated region body
PF: predicated region fallthrough
CT: control target
= control target key end

     0   :  { %v13489_v0 = vmov 0   ;;  %vm357_vm0 = vcmask 1043456   ;;  %vm124_vm1 = vcmask 1045504   ;;  %vm75_vm2 = vcmask 48128   ;;  %s13462_s1 = inlined_call_operand.vmem [shape: s32[128,1], index: 1, kind: input, shape index: {}]   ;;  %s13463_s0 = inlined_call_operand.vmem [shape: f32[8,32], index: 0, kind: input, shape index: {}]   ;;  %s13464_s5 = inlined_call_operand.vmem [shape: f32[6,32], index: 5, kind: input, shape index: {}]   ;;  %s13465_s3 = inlined_call_operand.vmem [shape: f32[128,6], index: 3, kind: input, shape index: {}]   ;;  %s13466_s6 = inlined_call_operand.vmem [shape: f32[1,32], index: 6, kind: input, shape index: {}]   ;;  %s13467_s7 = inlined_call_operand.vmem [shape: f32[32,32,32], index: 7, kind: input, shape index: {}]   ;;  %s13468_s8 = inlined_call_operand.vmem [shape: f32[32,32], index: 8, kind: input, shape index: {}]   ;;  %s13469_s2 = inlined_call_operand.vmem [shape: s32[1,128], index: 2, kind: input, shape index: {}]   ;;  %s13470_s4 = inlined_call_operand.vmem [shape: f32[8,1], index: 4, kind: input, shape index: {}]   ;;  %s13471_s9 = inlined_call_operand.vmem [shape: f32[32,32], index: 9, kind: input, shape index: {}]   ;;  %s13472_s10 = inlined_call_operand.vmem [shape: f32[1,32], index: 10, kind: input, shape index: {}]   ;;  %s13473_s11 = inlined_call_operand.vmem [shape: f32[32,1], index: 11, kind: input, shape index: {}]   ;;  %s13474_s12 = inlined_call_operand.<no memory space> [shape: f32[1,1], index: 12, kind: input, shape index: {}]   ;;  %s13475_s13 = inlined_call_operand.vmem [shape: f32[8,1], index: 13, kind: output, shape index: {}]  }
   0x1   :  { %8217 = vset.pattern.permute.xlu2 %v13489_v0  ;;  %8216 = vset.pattern.permute.xlu1 %v13489_v0  ;;  %v213_v1 = vld [vmem:[%s13462_s1 + $0x20] sm:$0xff]  ;;  %v211_v2 = vld [vmem:[%s13462_s1 + $0x10] sm:$0xff]  ;;  %v214_v4 = vld [vmem:[%s13462_s1 + $0x28] sm:$0xff]  ;;  %v13476_v23 = vlaneseq  ;;  %v8496_v30 = vmov 0.0   ;;  %vm332_vm5 = vcmask 64512   ;;  %v13481_v60 = vmov 1  }
   0x2   :  { %v209_v3 = vld [vmem:[%s13462_s1] sm:$0xff]  ;;  %8215 = vset.pattern.permute.xlu0 %v13489_v0  ;;  %240 = vperm.xlu2 %8217, %v213_v1   ;;  %v212_v5 = vld [vmem:[%s13462_s1 + $0x18] sm:$0xff]  ;;  %v210_v6 = vld [vmem:[%s13462_s1 + $0x8] sm:$0xff]  ;;  %v13477_v61 = vmov 3  }
   0x3   :  { %234 = vperm.xlu1 %8216, %v211_v2   ;;  %228 = vperm.xlu0 %8215, %v209_v3   ;;  %v217_v7 = vld [vmem:[%s13462_s1 + $0x40] sm:$0xff]  ;;  %v216_v8 = vld [vmem:[%s13462_s1 + $0x38] sm:$0xff]  ;;  %v215_v9 = vld [vmem:[%s13462_s1 + $0x30] sm:$0xff]  ;;  %v8661_v25 = vand.u32 127, %v13476_v23 }
   0x4   :  { %v220_v10 = vld [vmem:[%s13462_s1 + $0x58] sm:$0xff]  ;;  %v219_v11 = vld [vmem:[%s13462_s1 + $0x50] sm:$0xff]  ;;  %v218_v12 = vld [vmem:[%s13462_s1 + $0x48] sm:$0xff] }
   0x5   :  { %v223_v13 = vld [vmem:[%s13462_s1 + $0x70] sm:$0xff]  ;;  %v222_v14 = vld [vmem:[%s13462_s1 + $0x68] sm:$0xff]  ;;  %v221_v15 = vld [vmem:[%s13462_s1 + $0x60] sm:$0xff] }
   0x6   :  { %v224_v16 = vld [vmem:[%s13462_s1 + $0x78] sm:$0xff]  ;;  %v53_v17 = vld [vmem:[%s13463_s0] sm:$0xff]  ;;  %v68_v21 = vld [vmem:[%s13465_s3 + $0x70] sm:$0xff] }
   0x7   :  { %v331_v18 = vpack.c.bf16 %v53_v17, %v53_v17  ;;  %v70_v20 = vld [vmem:[%s13464_s5] sm:$0x3f]  ;;  %v69_v26 = vld [vmem:[%s13465_s3 + $0x78] sm:$0xff]  ;;  %v55_v59 = vld [vmem:[%s13465_s3 + $0x8] sm:$0xff] }
   0x8   :  { %8171 = vmatpush.msk.msra.mxu3 %vm124_vm1, %v70_v20  ;;  %7473 = vmatpush.msk.msra.mxu0 %vm124_vm1, %v70_v20  ;;  %v54_v55 = vld [vmem:[%s13465_s3] sm:$0xff]  ;;  %v56_v63 = vld [vmem:[%s13465_s3 + $0x10] sm:$0xff]  ;;  %v13483_v20 = vmov 5  }
   0x9   :  { %v359_v19 = vsel %vm357_vm0, %v331_v18, 0  ;;  %7488 = vmatmul.msk.f32.vlgmr.msra.gmra.mxu3 %vm75_vm2, %v68_v21  ;;  %7474 = vmatmul.msk.f32.vlgmr.msra.gmra.mxu0 %vm75_vm2, %v54_v55  ;;  %v62_v17 = vld [vmem:[%s13465_s3 + $0x40] sm:$0xff]  ;;  %v64_v21 = vld [vmem:[%s13465_s3 + $0x50] sm:$0xff] }
   0xa   :  { %243 = vperm.xlu2 %8217, %v214_v4   ;;  %368 = vmatpush.bf16.msra.mxu1 %v359_v19 }
   0xb   :  { %237 = vperm.xlu1 %8216, %v212_v5   ;;  %231 = vperm.xlu0 %8215, %v210_v6  }
   0xc   :  { %8172 = vmatpush.bf16.msrb.mxu3 %v359_v19  ;;  %v63_v19 = vld [vmem:[%s13465_s3 + $0x48] sm:$0xff] }
  0x11   :  { %7489 = vmatmul.msk.f32.gmra.mxu3 %vm75_vm2, %v69_v26  ;;  %7475 = vmatmul.msk.f32.gmra.mxu0 %vm75_vm2, %v55_v59  ;;  %v66_v26 = vld [vmem:[%s13465_s3 + $0x60] sm:$0xff] }
  0x12   :  { %252 = vperm.xlu2 %8217, %v217_v7  }
  0x13   :  { %249 = vperm.xlu1 %8216, %v216_v8   ;;  %246 = vperm.xlu0 %8215, %v215_v9   ;;  %v57_v8 = vld [vmem:[%s13465_s3 + $0x18] sm:$0xff]  ;;  %v58_v9 = vld [vmem:[%s13465_s3 + $0x20] sm:$0xff] }
  0x19   :  { %7476 = vmatmul.msk.f32.gmra.mxu0 %vm75_vm2, %v56_v63 }
  0x1a   :  { %261 = vperm.xlu2 %8217, %v220_v10   ;;  %v59_v10 = vld [vmem:[%s13465_s3 + $0x28] sm:$0xff] }
  0x1b   :  { %258 = vperm.xlu1 %8216, %v219_v11   ;;  %255 = vperm.xlu0 %8215, %v218_v12   ;;  %v60_v11 = vld [vmem:[%s13465_s3 + $0x30] sm:$0xff] }
  0x21   :  { %7477 = vmatmul.msk.f32.gmra.mxu0 %vm75_vm2, %v57_v8 }
  0x22   :  { %270 = vperm.xlu2 %8217, %v223_v13   ;;  %v61_v13 = vld [vmem:[%s13465_s3 + $0x38] sm:$0xff] }
  0x23   :  { %267 = vperm.xlu1 %8216, %v222_v14   ;;  %264 = vperm.xlu0 %8215, %v221_v15   ;;  %v13485_v14 = vmov 6   ;;  %v13479_v15 = vmov 4  }
  0x29   :  { %7478 = vmatmul.msk.f32.gmra.mxu0 %vm75_vm2, %v58_v9 }
  0x2a   :  { %8218 = vset.pattern.permute.xlu2 %v13481_v60 }
  0x2b   :  { %273 = vperm.xlu0 %8215, %v224_v16   ;;  %v13487_v16 = vmov 2  }
  0x31   :  { %7479 = vmatmul.msk.f32.gmra.mxu0 %vm75_vm2, %v59_v10 }
  0x33   :  { %8220 = vset.pattern.permute.xlu0 %v13477_v61 }
  0x39   :  { %7480 = vmatmul.msk.f32.gmra.mxu0 %vm75_vm2, %v60_v11 }
  0x41   :  { %7481 = vmatmul.msk.f32.gmra.mxu0 %vm75_vm2, %v61_v13 }
  0x49   :  { %7482 = vmatmul.msk.f32.gmra.mxu0 %vm75_vm2, %v62_v17 }
  0x51   :  { %7483 = vmatmul.msk.f32.gmra.mxu0 %vm75_vm2, %v63_v19 }
  0x59   :  { %7484 = vmatmul.msk.f32.gmra.mxu0 %vm75_vm2, %v64_v21 }
  0x5c   :  { %v241_v22 = vpop.permute.xlu2 %240 }
  0x5d   :  { %vm279_vm8 = vcmp.eq.s32.totalorder %v8661_v25, %v241_v22 }
  0x5e   :  { %v7494_v44 = vsel %vm279_vm8, 1.0, %v8496_v30 }
  0x64   :  { %v244_v27 = vpop.permute.xlu2 %243 }
  0x65   :  { %vm280_vm9 = vcmp.eq.s32.totalorder %v8661_v25, %v244_v27  ;;  %v7549_v27 = vld [vmem:[%s13467_s7 + $0x38] sm:$0xff] }
  0x66   :  { %v7495_v45 = vsel %vm280_vm9, 1.0, %v8496_v30  ;;  %870 = vmatpush.msrb.mxu0 %v7549_v27 }
  0x67   :  { %v325_v49 = vpack.c.bf16 %v7495_v45, %v7494_v44  ;;  %v8862_v44 = vld [vmem:[%s13467_s7 + $0x58] sm:$0xff] }
  0x68   :  { %1084 = vmatpush.msrb.mxu1 %v8862_v44 }
  0x6c   :  { %v253_v34 = vpop.permute.xlu2 %252 }
  0x6d   :  { %vm283_vm15 = vcmp.eq.s32.totalorder %v8661_v25, %v253_v34 }
  0x6e   :  { %v7498_v57 = vsel %vm283_vm15, 1.0, %v8496_v30 }
  0x74   :  { %v262_v41 = vpop.permute.xlu2 %261 }
  0x75   :  { %v229_v24 = vpop.permute.xlu0 %228  ;;  %v235_v28 = vpop.permute.xlu1 %234  ;;  %vm286_vm1 = vcmp.eq.s32.totalorder %v8661_v25, %v262_v41  ;;  %v510_v41 = vld [vmem:[%s13467_s7] sm:$0xff] }
  0x76   :  { %vm275_vm3 = vcmp.eq.s32.totalorder %v8661_v25, %v229_v24  ;;  %vm277_vm6 = vcmp.eq.s32.totalorder %v8661_v25, %v235_v28  ;;  %v7501_v2 = vsel %vm286_vm1, 1.0, %v8496_v30  ;;  %v65_v24 = vld [vmem:[%s13465_s3 + $0x58] sm:$0xff]  ;;  %v67_v28 = vld [vmem:[%s13465_s3 + $0x68] sm:$0xff] }
  0x77   :  { %v7490_v31 = vsel %vm275_vm3, 1.0, %v8496_v30  ;;  %v7492_v37 = vsel %vm277_vm6, 1.0, %v8496_v30  ;;  %7485 = vmatmul.msk.f32.gmra.mxu0 %vm75_vm2, %v65_v24 }
  0x7c   :  { %v271_v43 = vpop.permute.xlu2 %270 }
  0x7d   :  { %v232_v29 = vpop.permute.xlu0 %231  ;;  %v238_v36 = vpop.permute.xlu1 %237  ;;  %vm289_vm10 = vcmp.eq.s32.totalorder %v8661_v25, %v271_v43 }
  0x7e   :  { %vm276_vm4 = vcmp.eq.s32.totalorder %v8661_v25, %v232_v29  ;;  %vm278_vm7 = vcmp.eq.s32.totalorder %v8661_v25, %v238_v36  ;;  %v7504_v47 = vsel %vm289_vm10, 1.0, %v8496_v30  ;;  %v513_v36 = vld [vmem:[%s13467_s7 + $0x18] sm:$0xff] }
  0x7f   :  { %v7491_v32 = vsel %vm276_vm4, 1.0, %v8496_v30  ;;  %v7493_v38 = vsel %vm278_vm7, 1.0, %v8496_v30  ;;  %7486 = vmatmul.msk.f32.gmra.mxu0 %vm75_vm2, %v66_v26  ;;  %575 = vmatpush.msra.mxu2 %v513_v36  ;;  %vm7467_vm7 = vcmask 7168  }
  0x80   :  { %v323_v33 = vpack.c.bf16 %v7491_v32, %v7490_v31  ;;  %v324_v40 = vpack.c.bf16 %v7493_v38, %v7492_v37  ;;  %v7548_v31 = vld [vmem:[%s13467_s7 + $0x30] sm:$0xff]  ;;  %v7547_v32 = vld [vmem:[%s13467_s7 + $0x28] sm:$0xff]  ;;  %8173 = vmatpush.msra.mxu3 %v513_v36 }
  0x81   :  { %871 = vmatpush.msrb.mxu0 %v7548_v31  ;;  %v512_v38 = vld [vmem:[%s13467_s7 + $0x10] sm:$0xff] }
  0x82   :  { %7506 = vmatmul.msk.bf16.vlgmr.msra.gmra.mxu1 %vm332_vm5, %v323_v33  ;;  %v7546_v33 = vld [vmem:[%s13467_s7 + $0x20] sm:$0xff]  ;;  %576 = vmatpush.msra.mxu2 %v512_v38 }
  0x83   :  { %872 = vmatpush.msrb.mxu0 %v7547_v32  ;;  %8174 = vmatpush.msra.mxu3 %v512_v38 }
  0x85   :  { %v247_v35 = vpop.permute.xlu0 %246  ;;  %v250_v51 = vpop.permute.xlu1 %249  ;;  %873 = vmatpush.msrb.mxu0 %v7546_v33 }
  0x86   :  { %vm282_vm12 = vcmp.eq.s32.totalorder %v8661_v25, %v250_v51  ;;  %vm281_vm13 = vcmp.eq.s32.totalorder %v8661_v25, %v247_v35  ;;  %v8835_v35 = vld [vmem:[%s13466_s6] ss:$0 sm:$0xff] }
  0x87   :  { %v7497_v52 = vsel %vm282_vm12, 1.0, %v8496_v30  ;;  %v7496_v53 = vsel %vm281_vm13, 1.0, %v8496_v30  ;;  %7487 = vmatmul.msk.f32.gmra.mxu0 %vm75_vm2, %v67_v28 }
  0x88   :  { %v326_v54 = vpack.c.bf16 %v7497_v52, %v7496_v53 }
  0x8c   :  { %v8756_v18 = vpop.f32.mrf.mxu3 }
  0x8d   :  { %v256_v39 = vpop.permute.xlu0 %255  ;;  %v259_v62 = vpop.permute.xlu1 %258 }
  0x8e   :  { %vm284_vm14 = vcmp.eq.s32.totalorder %v8661_v25, %v256_v39  ;;  %vm285_vm0 = vcmp.eq.s32.totalorder %v8661_v25, %v259_v62  ;;  %v511_v39 = vld [vmem:[%s13467_s7 + $0x8] sm:$0xff] }
  0x8f   :  { %v7499_v56 = vsel %vm284_vm14, 1.0, %v8496_v30  ;;  %v7500_v1 = vsel %vm285_vm0, 1.0, %v8496_v30  ;;  %577 = vmatpush.msra.mxu2 %v511_v39  ;;  %8175 = vmatpush.msra.mxu3 %v511_v39 }
  0x90   :  { %v327_v58 = vpack.c.bf16 %v7499_v56, %v7498_v57  ;;  %v328_v3 = vpack.c.bf16 %v7501_v2, %v7500_v1 }
  0x91   :  { %578 = vmatpush.msra.mxu2 %v510_v41  ;;  %8176 = vmatpush.msra.mxu3 %v510_v41 }
  0x92   :  { %7507 = vmatmul.msk.bf16.gmra.mxu1 %vm332_vm5, %v324_v40 }
  0x94   :  { %v8769_v22 = vpop.f32.mrf.mxu3 }
  0x95   :  { %v265_v42 = vpop.permute.xlu0 %264  ;;  %v268_v4 = vpop.permute.xlu1 %267 }
  0x96   :  { %vm288_vm3 = vcmp.eq.s32.totalorder %v8661_v25, %v268_v4  ;;  %vm287_vm4 = vcmp.eq.s32.totalorder %v8661_v25, %v265_v42 }
  0x97   :  { %v7503_v5 = vsel %vm288_vm3, 1.0, %v8496_v30  ;;  %v7502_v6 = vsel %vm287_vm4, 1.0, %v8496_v30 }
  0x98   :  { %v329_v7 = vpack.c.bf16 %v7503_v5, %v7502_v6 }
  0x9d   :  { %v274_v46 = vpop.permute.xlu0 %273 }
  0x9e   :  { %vm290_vm11 = vcmp.eq.s32.totalorder %v8661_v25, %v274_v46  ;;  %v8872_v46 = vld [vmem:[%s13467_s7 + $0x50] sm:$0xff] }
  0x9f   :  { %v7505_v48 = vsel %vm290_vm11, 1.0, %v8496_v30  ;;  %1085 = vmatpush.msrb.mxu1 %v8872_v46 }
  0xa0   :  { %v330_v50 = vpack.c.bf16 %v7505_v48, %v7504_v47  ;;  %v8881_v47 = vld [vmem:[%s13467_s7 + $0x48] sm:$0xff]  ;;  %v8888_v48 = vld [vmem:[%s13467_s7 + $0x40] sm:$0xff] }
  0xa1   :  { %1086 = vmatpush.msrb.mxu1 %v8881_v47 }
  0xa2   :  { %7508 = vmatmul.msk.bf16.gmra.mxu1 %vm332_vm5, %v325_v49  ;;  %7513 = vmatmul.msk.bf16.vlgmr.msrb.gmra.mxu3 %vm332_vm5, %v330_v50 }
  0xa3   :  { %1087 = vmatpush.msrb.mxu1 %v8888_v48 }
  0xb2   :  { %7509 = vmatmul.msk.bf16.gmra.mxu1 %vm332_vm5, %v326_v54 }
  0xc2   :  { %7510 = vmatmul.msk.bf16.gmra.mxu1 %vm332_vm5, %v327_v58 }
  0xd2   :  { %7511 = vmatmul.msk.bf16.gmra.mxu1 %vm332_vm5, %v328_v3 }
  0xe2   :  { %7512 = vmatmul.msk.bf16.gmra.mxu1 %vm332_vm5, %v329_v7  ;;  %vm51_vm5 = vcmask 261120  }
  0xe3   :  { %52 = vst.msk [vmem:[#allocation2] sm:$0xff] %vm51_vm5, %v8496_v30  ;;  %v145_v30 = vpop.f32.mrf.mxu0 }
  0xe4   :  { %v146_v37 = vadd.f32 %v8835_v35, %v145_v30 }
  0xe6   :  { %v8853_v40 = vmax.f32 %v146_v37, 0.0 }
  0xeb   :  { %v148_v62 = vpop.f32.mrf.mxu0 }
  0xec   :  { %v149_v63 = vadd.f32 %v8835_v35, %v148_v62 }
  0xee   :  { %v8943_v2 = vmax.f32 %v149_v63, 0.0 }
  0xf3   :  { %v151_v38 = vpop.f32.mrf.mxu0 }
  0xff   :  { %v8737_v12 = vpop.f32.mrf.mxu1 }
 0x100   :  { %1154 = vperm.xlu0 %8220, %v8737_v12   ;;  %726 = vperm.xlu2 %8218, %v8737_v12  }
 0x101   :  { %416 = vperm.xlu1 %8216, %v8737_v12  }
 0x107   :  { %v8799_v29 = vpop.f32.mrf.mxu1 }
 0x108   :  { %8223 = vset.pattern.permute.xlu0 %v13485_v14  ;;  %8221 = vset.pattern.permute.xlu2 %v13479_v15 }
 0x109   :  { %8219 = vset.pattern.permute.xlu1 %v13487_v16  ;;  %1796 = vperm.xlu0 %8223, %v8737_v12  }
 0x10a   :  { %1368 = vperm.xlu2 %8221, %v8737_v12   ;;  %940 = vperm.xlu1 %8219, %v8737_v12  }
 0x10f   :  { %v8865_v45 = vpop.f32.mrf.mxu1 }
 0x110   :  { %13603 = vst [vmem:[#allocation6_spill] sm:$0xff] %v8865_v45 }
 0x111   :  { %8224 = vset.pattern.permute.xlu0 %v13489_v0 }
 0x112   :  { %8222 = vset.pattern.permute.xlu1 %v13483_v20  ;;  %8225 = vset.pattern.permute.xlu2 %v13481_v60 }
 0x113   :  { %1582 = vperm.xlu1 %8222, %v8737_v12  }
 0x117   :  { %v8892_v49 = vpop.f32.mrf.mxu1 }
 0x11b   :  { %8226 = vset.pattern.permute.xlu1 %v13487_v16 }
 0x11f   :  { %v8901_v50 = vpop.f32.mrf.mxu1 }
 0x125   :  { %v8777_v25 = vpop.f32.mrf.mxu3 }
 0x126   :  { %13601 = vst [vmem:[#allocation4_spill] sm:$0xff] %v8777_v25  ;;  %486 = vperm.xlu0 %8224, %v8777_v25   ;;  %782 = vperm.xlu2 %8225, %v8777_v25  }
 0x127   :  { %996 = vperm.xlu1 %8226, %v8777_v25   ;;  %v8914_v54 = vpop.f32.mrf.mxu1 }
 0x12d   :  { %v8825_v34 = vpop.f32.mrf.mxu3 }
 0x12e   :  { %8227 = vset.pattern.permute.xlu0 %v13477_v61  ;;  %8228 = vset.pattern.permute.xlu2 %v13479_v15  ;;  %13602 = vst [vmem:[#allocation5_spill] sm:$0xff] %v8825_v34 }
 0x12f   :  { %8229 = vset.pattern.permute.xlu1 %v13483_v20  ;;  %1210 = vperm.xlu0 %8227, %v8777_v25   ;;  %v8951_v6 = vpop.f32.mrf.mxu1 }
 0x130   :  { %1424 = vperm.xlu2 %8228, %v8777_v25   ;;  %1638 = vperm.xlu1 %8229, %v8777_v25   ;;  %13606 = vst [vmem:[#allocation9_spill] sm:$0xff] %v8951_v6 }
 0x137   :  { %8231 = vset.pattern.permute.xlu0 %v13481_v60  ;;  %v8976_v19 = vpop.f32.mrf.mxu1 }
 0x138   :  { %8230 = vset.pattern.permute.xlu2 %v13489_v0  ;;  %8233 = vset.pattern.permute.xlu1 %v13477_v61  ;;  %13610 = vst [vmem:[#allocation13_spill] sm:$0xff] %v8976_v19 }
 0x139   :  { %1158 = vperm.xlu1 %8233, %v8799_v29   ;;  %730 = vperm.xlu0 %8231, %v8799_v29  }
 0x13a   :  { %421 = vperm.xlu2 %8230, %v8799_v29  }
 0x13f   :  { %v9002_v33 = vpop.f32.mrf.mxu1 }
 0x141   :  { %8236 = vset.pattern.permute.xlu1 %v13485_v14  ;;  %8234 = vset.pattern.permute.xlu0 %v13479_v15 }
 0x142   :  { %8232 = vset.pattern.permute.xlu2 %v13487_v16  ;;  %1800 = vperm.xlu1 %8236, %v8799_v29  }
 0x143   :  { %1372 = vperm.xlu0 %8234, %v8799_v29   ;;  %944 = vperm.xlu2 %8232, %v8799_v29  }
 0x14a   :  { %8237 = vset.pattern.permute.xlu1 %v13489_v0 }
 0x14b   :  { %8238 = vset.pattern.permute.xlu0 %v13481_v60  ;;  %8235 = vset.pattern.permute.xlu2 %v13483_v20 }
 0x14c   :  { %491 = vperm.xlu1 %8237, %v8825_v34   ;;  %786 = vperm.xlu0 %8238, %v8825_v34  }
 0x14d   :  { %1586 = vperm.xlu2 %8235, %v8799_v29  }
 0x154   :  { %8240 = vset.pattern.permute.xlu1 %v13477_v61  ;;  %8241 = vset.pattern.permute.xlu0 %v13479_v15 }
 0x155   :  { %8239 = vset.pattern.permute.xlu2 %v13487_v16  ;;  %1214 = vperm.xlu1 %8240, %v8825_v34  }
 0x156   :  { %1428 = vperm.xlu0 %8241, %v8825_v34   ;;  %1000 = vperm.xlu2 %8239, %v8825_v34  }
 0x15a   :  { %v727_v42 = vpop.permute.xlu2 %726 }
 0x15b   :  { %v789_v43 = vmul.f32 %v727_v42, %v8853_v40  ;;  %v152_v42 = vadd.f32 %v8835_v35, %v151_v38 }
 0x15d   :  { %8244 = vset.pattern.permute.xlu1 %v13481_v60  ;;  %7550 = vmatmul.msk.f32.vlgmr.msrb.gmra.mxu0 %vm51_vm5, %v789_v43 }
 0x15e   :  { %8243 = vset.pattern.permute.xlu0 %v13489_v0  ;;  %8242 = vset.pattern.permute.xlu2 %v13483_v20 }
 0x15f   :  { %1642 = vperm.xlu2 %8242, %v8825_v34   ;;  %734 = vperm.xlu1 %8244, %v8865_v45  }
 0x160   :  { %426 = vperm.xlu0 %8243, %v8865_v45  }
 0x164   :  { %v8910_v53 = vpop.permute.xlu2 %1368 }
 0x165   :  { %13604 = vst [vmem:[#allocation7_spill] sm:$0xff] %v8910_v53  ;;  %v13633_v53 = vmov 1  }
 0x167   :  { %8246 = vset.pattern.permute.xlu2 %v13477_v61  ;;  %8247 = vset.pattern.permute.xlu1 %v13479_v15 }
 0x168   :  { %8245 = vset.pattern.permute.xlu0 %v13487_v16  ;;  %1162 = vperm.xlu2 %8246, %v8865_v45  }
 0x169   :  { %1376 = vperm.xlu1 %8247, %v8865_v45   ;;  %948 = vperm.xlu0 %8245, %v8865_v45  }
 0x170   :  { %8249 = vset.pattern.permute.xlu2 %v13485_v14 }
 0x171   :  { %8250 = vset.pattern.permute.xlu1 %v13489_v0  ;;  %8248 = vset.pattern.permute.xlu0 %v13483_v20 }
 0x172   :  { %1804 = vperm.xlu2 %8249, %v8865_v45   ;;  %1590 = vperm.xlu0 %8248, %v8865_v45   ;;  %v8929_v58 = vpop.permute.xlu0 %1154 }
 0x173   :  { %431 = vperm.xlu1 %8250, %v8892_v49   ;;  %v417_v51 = vpop.permute.xlu1 %416 }
 0x174   :  { %v494_v52 = vmul.f32 %v417_v51, %v8853_v40  ;;  %v9029_v51 = vmax.f32 %v152_v42, 0.0 }
 0x176   :  { %7514 = vmatmul.msk.f32.vlgmr.msra.gmra.mxu2 %vm51_vm5, %v494_v52  ;;  %v154_v52 = vpop.f32.mrf.mxu0 }
 0x17a   :  { %8251 = vset.pattern.permute.xlu2 %v13481_v60  ;;  %8264 = vset.pattern.permute.xlu0 %v13489_v0 }
 0x17b   :  { %8252 = vset.pattern.permute.xlu1 %v13487_v16  ;;  %738 = vperm.xlu2 %8251, %v8892_v49   ;;  %v8941_v1 = vpop.permute.xlu0 %1796 }
 0x17c   :  { %952 = vperm.xlu1 %8252, %v8892_v49   ;;  %441 = vperm.xlu0 %8264, %v8914_v54   ;;  %v941_v55 = vpop.permute.xlu1 %940 }
 0x17d   :  { %v1003_v56 = vmul.f32 %v941_v55, %v8853_v40 }
 0x17f   :  { %7570 = vmatmul.msk.f32.vlgmr.msrb.gmra.mxu1 %vm51_vm5, %v1003_v56  ;;  %v155_v56 = vadd.f32 %v8835_v35, %v154_v52 }
 0x180   :  { %v8922_v57 = vpop.permute.xlu2 %782 }
 0x183   :  { %8254 = vset.pattern.permute.xlu2 %v13479_v15 }
 0x184   :  { %8253 = vset.pattern.permute.xlu1 %v13477_v61  ;;  %8267 = vset.pattern.permute.xlu0 %v13477_v61 }
 0x185   :  { %1380 = vperm.xlu2 %8254, %v8892_v49   ;;  %1166 = vperm.xlu1 %8253, %v8892_v49   ;;  %v8945_v3 = vpop.permute.xlu1 %1582 }
 0x186   :  { %1174 = vperm.xlu0 %8267, %v8914_v54  }
 0x18a   :  { %v8932_v59 = vpop.permute.xlu2 %1424 }
 0x18b   :  { %13605 = vst [vmem:[#allocation8_spill] sm:$0xff] %v8932_v59 }
 0x18d   :  { %8257 = vset.pattern.permute.xlu2 %v13489_v0  ;;  %8255 = vset.pattern.permute.xlu1 %v13483_v20 }
 0x18e   :  { %8270 = vset.pattern.permute.xlu0 %v13485_v14  ;;  %1594 = vperm.xlu1 %8255, %v8892_v49  }
 0x18f   :  { %436 = vperm.xlu2 %8257, %v8901_v50   ;;  %1816 = vperm.xlu0 %8270, %v8914_v54  }
 0x194   :  { %v422_v4 = vpop.permute.xlu2 %421 }
 0x195   :  { %v495_v5 = vmul.f32 %v422_v4, %v8943_v2 }
 0x196   :  { %8256 = vset.pattern.permute.xlu1 %v13485_v14 }
 0x197   :  { %8259 = vset.pattern.permute.xlu2 %v13487_v16  ;;  %8272 = vset.pattern.permute.xlu0 %v13481_v60 }
 0x198   :  { %1808 = vperm.xlu1 %8256, %v8892_v49   ;;  %956 = vperm.xlu2 %8259, %v8901_v50   ;;  %v8955_v7 = vpop.permute.xlu0 %486 }
 0x199   :  { %750 = vperm.xlu0 %8272, %v8951_v6   ;;  %7515 = vmatmul.msk.f32.gmra.mxu2 %vm51_vm5, %v495_v5  ;;  %v8959_v8 = vpop.permute.xlu1 %996 }
 0x19d   :  { %v945_v9 = vpop.permute.xlu2 %944 }
 0x19e   :  { %v1004_v10 = vmul.f32 %v945_v9, %v8943_v2  ;;  %v9041_v9 = vmax.f32 %v155_v56, 0.0 }
 0x1a0   :  { %8258 = vset.pattern.permute.xlu1 %v13481_v60  ;;  %8260 = vset.pattern.permute.xlu2 %v13477_v61  ;;  %13616 = vst [vmem:[#allocation19_spill] sm:$0xff] %v9041_v9 }
 0x1a1   :  { %8275 = vset.pattern.permute.xlu0 %v13479_v15  ;;  %742 = vperm.xlu1 %8258, %v8901_v50   ;;  %v8966_v11 = vpop.permute.xlu0 %1210 }
 0x1a2   :  { %13607 = vst [vmem:[#allocation10_spill] sm:$0xff] %v8966_v11  ;;  %1170 = vperm.xlu2 %8260, %v8901_v50   ;;  %1392 = vperm.xlu0 %8275, %v8951_v6   ;;  %v8970_v13 = vpop.permute.xlu1 %1638 }
 0x1a3   :  { %13608 = vst [vmem:[#allocation11_spill] sm:$0xff] %v8970_v13  ;;  %7571 = vmatmul.msk.f32.gmra.mxu1 %vm51_vm5, %v1004_v10  ;;  %v9045_v10 = vpop.f32.mrf.mxu1 }
 0x1a7   :  { %v8973_v17 = vpop.permute.xlu2 %1586 }
 0x1a8   :  { %13609 = vst [vmem:[#allocation12_spill] sm:$0xff] %v8973_v17 }
 0x1a9   :  { %8261 = vset.pattern.permute.xlu1 %v13479_v15 }
 0x1aa   :  { %8262 = vset.pattern.permute.xlu2 %v13483_v20  ;;  %8280 = vset.pattern.permute.xlu0 %v13487_v16 }
 0x1ab   :  { %1384 = vperm.xlu1 %8261, %v8901_v50   ;;  %1598 = vperm.xlu2 %8262, %v8901_v50   ;;  %v8982_v21 = vpop.permute.xlu1 %1158  ;;  %v731_v24 = vpop.permute.xlu0 %730 }
 0x1ac   :  { %968 = vperm.xlu0 %8280, %v8976_v19   ;;  %v790_v26 = vmul.f32 %v731_v24, %v8943_v2 }
 0x1ae   :  { %7551 = vmatmul.msk.f32.gmra.mxu0 %vm51_vm5, %v790_v26 }
 0x1b0   :  { %v8987_v27 = vpop.permute.xlu2 %1000 }
 0x1b1   :  { %13611 = vst [vmem:[#allocation14_spill] sm:$0xff] %v8987_v27 }
 0x1b3   :  { %8266 = vset.pattern.permute.xlu1 %v13487_v16  ;;  %8263 = vset.pattern.permute.xlu2 %v13485_v14 }
 0x1b4   :  { %8283 = vset.pattern.permute.xlu0 %v13483_v20  ;;  %1812 = vperm.xlu2 %8263, %v8901_v50   ;;  %v8993_v28 = vpop.permute.xlu1 %1800 }
 0x1b5   :  { %960 = vperm.xlu1 %8266, %v8914_v54   ;;  %1610 = vperm.xlu0 %8283, %v8976_v19   ;;  %v8997_v31 = vpop.permute.xlu0 %1372 }
 0x1b6   :  { %13612 = vst [vmem:[#allocation15_spill] sm:$0xff] %v8997_v31  ;;  %v13631_v31 = vmov 5  }
 0x1b9   :  { %v8999_v32 = vpop.permute.xlu2 %1642 }
 0x1ba   :  { %13613 = vst [vmem:[#allocation16_spill] sm:$0xff] %v8999_v32 }
 0x1bc   :  { %8265 = vset.pattern.permute.xlu2 %v13481_v60 }
 0x1bd   :  { %8269 = vset.pattern.permute.xlu1 %v13483_v20  ;;  %8285 = vset.pattern.permute.xlu0 %v13489_v0 }
 0x1be   :  { %1602 = vperm.xlu1 %8269, %v8914_v54   ;;  %746 = vperm.xlu2 %8265, %v8914_v54   ;;  %v9008_v30 = vpop.permute.xlu1 %491  ;;  %v9010_v36 = vpop.permute.xlu0 %786 }
 0x1bf   :  { %456 = vperm.xlu0 %8285, %v9002_v33  }
 0x1c2   :  { %v9013_v37 = vpop.permute.xlu2 %1162 }
 0x1c6   :  { %8271 = vset.pattern.permute.xlu1 %v13489_v0  ;;  %8268 = vset.pattern.permute.xlu2 %v13479_v15 }
 0x1c7   :  { %8288 = vset.pattern.permute.xlu0 %v13477_v61  ;;  %1388 = vperm.xlu2 %8268, %v8914_v54   ;;  %v9019_v39 = vpop.permute.xlu1 %1214 }
 0x1c8   :  { %13614 = vst [vmem:[#allocation17_spill] sm:$0xff] %v9019_v39  ;;  %446 = vperm.xlu1 %8271, %v8951_v6   ;;  %1186 = vperm.xlu0 %8288, %v9002_v33   ;;  %v9023_v41 = vpop.permute.xlu0 %1428 }
 0x1c9   :  { %13615 = vst [vmem:[#allocation18_spill] sm:$0xff] %v9023_v41  ;;  %v13628_v41 = vmov 2  }
 0x1cc   :  { %v9026_v43 = vpop.permute.xlu2 %1804 }
 0x1cf   :  { %8273 = vset.pattern.permute.xlu2 %v13487_v16 }
 0x1d0   :  { %8274 = vset.pattern.permute.xlu1 %v13477_v61  ;;  %8291 = vset.pattern.permute.xlu0 %v13485_v14 }
 0x1d1   :  { %964 = vperm.xlu2 %8273, %v8951_v6   ;;  %1178 = vperm.xlu1 %8274, %v8951_v6   ;;  %v735_v55 = vpop.permute.xlu1 %734 }
 0x1d2   :  { %1828 = vperm.xlu0 %8291, %v9002_v33   ;;  %v791_v62 = vmul.f32 %v735_v55, %v9029_v51  ;;  %v427_v63 = vpop.permute.xlu0 %426  ;;  %v157_v55 = vpop.f32.mrf.mxu0 }
 0x1d3   :  { %v496_v4 = vmul.f32 %v427_v63, %v9029_v51  ;;  %v158_v63 = vadd.f32 %v8835_v35, %v157_v55 }
 0x1d4   :  { %7552 = vmatmul.msk.f32.gmra.mxu0 %vm51_vm5, %v791_v62 }
 0x1d5   :  { %7516 = vmatmul.msk.f32.gmra.mxu2 %vm51_vm5, %v496_v4  ;;  %v739_v5 = vpop.permute.xlu2 %738 }
 0x1d6   :  { %v792_v24 = vmul.f32 %v739_v5, %v9041_v9 }
 0x1d9   :  { %8276 = vset.pattern.permute.xlu2 %v13483_v20  ;;  %8277 = vset.pattern.permute.xlu1 %v13485_v14 }
 0x1da   :  { %8293 = vset.pattern.permute.xlu0 %v13481_v60  ;;  %1606 = vperm.xlu2 %8276, %v8951_v6  }
 0x1db   :  { %1820 = vperm.xlu1 %8277, %v8951_v6   ;;  %762 = vperm.xlu0 %8293, %v9045_v10   ;;  %v9052_v26 = vpop.permute.xlu1 %1376  ;;  %v949_v38 = vpop.permute.xlu0 %948 }
 0x1dc   :  { %13617 = vst [vmem:[#allocation20_spill] sm:$0xff] %v9052_v26  ;;  %v1005_v42 = vmul.f32 %v949_v38, %v9029_v51  ;;  %7553 = vmatmul.msk.f32.gmra.mxu0 %vm51_vm5, %v792_v24  ;;  %v9070_v24 = vmax.f32 %v158_v63, 0.0  ;;  %v9074_v38 = vpop.f32.mrf.mxu1 }
 0x1dd   :  { %13620 = vst [vmem:[#allocation23_spill] sm:$0xff] %v9074_v38 }
 0x1de   :  { %7572 = vmatmul.msk.f32.gmra.mxu1 %vm51_vm5, %v1005_v42  ;;  %v160_v42 = vpop.f32.mrf.mxu0 }
 0x1df   :  { %v9057_v52 = vpop.permute.xlu2 %1380  ;;  %v161_v55 = vadd.f32 %v8835_v35, %v160_v42 }
 0x1e0   :  { %13618 = vst [vmem:[#allocation21_spill] sm:$0xff] %v9057_v52 }
 0x1e2   :  { %8278 = vset.pattern.permute.xlu2 %v13489_v0 }
 0x1e3   :  { %8279 = vset.pattern.permute.xlu1 %v13481_v60  ;;  %8296 = vset.pattern.permute.xlu0 %v13479_v15 }
 0x1e4   :  { %754 = vperm.xlu1 %8279, %v8976_v19   ;;  %451 = vperm.xlu2 %8278, %v8976_v19   ;;  %v9064_v56 = vpop.permute.xlu0 %1590 }
 0x1e5   :  { %13619 = vst [vmem:[#allocation22_spill] sm:$0xff] %v9064_v56  ;;  %1404 = vperm.xlu0 %8296, %v9045_v10   ;;  %v432_v62 = vpop.permute.xlu1 %431 }
 0x1e6   :  { %v497_v4 = vmul.f32 %v432_v62, %v9041_v9  ;;  %v163_v39 = vpop.f32.mrf.mxu0 }
 0x1e8   :  { %7517 = vmatmul.msk.f32.gmra.mxu2 %vm51_vm5, %v497_v4 }
 0x1e9   :  { %v437_v5 = vpop.permute.xlu2 %436 }
 0x1ea   :  { %v498_v62 = vmul.f32 %v437_v5, %v9070_v24 }
 0x1ec   :  { %8282 = vset.pattern.permute.xlu1 %v13479_v15  ;;  %8281 = vset.pattern.permute.xlu2 %v13477_v61  ;;  %v9085_v61 = vmax.f32 %v161_v55, 0.0 }
 0x1ed   :  { %8301 = vset.pattern.permute.xlu0 %v13487_v16  ;;  %1396 = vperm.xlu1 %8282, %v8976_v19  }
 0x1ee   :  { %1182 = vperm.xlu2 %8281, %v8976_v19   ;;  %980 = vperm.xlu0 %8301, %v9074_v38   ;;  %v953_v63 = vpop.permute.xlu1 %952  ;;  %v442_v4 = vpop.permute.xlu0 %441  ;;  %13621 = vst [vmem:[#allocation24_spill] sm:$0xff] %v9085_v61 }
 0x1ef   :  { %v1006_v23 = vmul.f32 %v953_v63, %v9041_v9  ;;  %v499_v42 = vmul.f32 %v442_v4, %v9085_v61 }
 0x1f0   :  { %7518 = vmatmul.msk.f32.gmra.mxu2 %vm51_vm5, %v498_v62 }
 0x1f1   :  { %7573 = vmatmul.msk.f32.gmra.mxu1 %vm51_vm5, %v1006_v23 }
 0x1f2   :  { %v957_v15 = vpop.permute.xlu2 %956 }
 0x1f3   :  { %v1007_v5 = vmul.f32 %v957_v15, %v9070_v24  ;;  %v9105_v15 = vpop.f32.mrf.mxu1 }
 0x1f4   :  { %13622 = vst [vmem:[#allocation25_spill] sm:$0xff] %v9105_v15 }
 0x1f5   :  { %8287 = vset.pattern.permute.xlu1 %v13487_v16 }
 0x1f6   :  { %8284 = vset.pattern.permute.xlu2 %v13485_v14  ;;  %8304 = vset.pattern.permute.xlu0 %v13483_v20 }
 0x1f7   :  { %1824 = vperm.xlu2 %8284, %v8976_v19   ;;  %972 = vperm.xlu1 %8287, %v9002_v33   ;;  %v9094_v62 = vpop.permute.xlu1 %1166 }
 0x1f8   :  { %1622 = vperm.xlu0 %8304, %v9074_v38   ;;  %v9097_v23 = vpop.permute.xlu0 %1174  ;;  %7519 = vmatmul.msk.f32.gmra.mxu2 %vm51_vm5, %v499_v42 }
 0x1f9   :  { %7574 = vmatmul.msk.f32.gmra.mxu1 %vm51_vm5, %v1007_v5  ;;  %v13626_v5 = vmov 4  }
 0x1fb   :  { %v9138_v13 = vpop.f32.mrf.mxu1 }
 0x1fc   :  { %v9101_v55 = vpop.permute.xlu2 %1170  ;;  %13632 = vst [vmem:[#allocation30_spill] sm:$0xff] %v9138_v13 }
 0x1ff   :  { %8286 = vset.pattern.permute.xlu2 %v13481_v60  ;;  %8290 = vset.pattern.permute.xlu1 %v13483_v20  ;;  %v13627_v60 = vmov 3  }
 0x200   :  { %8306 = vset.pattern.permute.xlu0 %v13489_v0  ;;  %1614 = vperm.xlu1 %8290, %v9002_v33   ;;  %v9109_v63 = vpop.permute.xlu1 %1594 }
 0x201   :  { %13623 = vst [vmem:[#allocation26_spill] sm:$0xff] %v9109_v63  ;;  %758 = vperm.xlu2 %8286, %v9002_v33   ;;  %471 = vperm.xlu0 %8306, %v9105_v15   ;;  %v9113_v4 = vpop.permute.xlu0 %1816  ;;  %v13637_v63 = vmov 0  }
 0x202   :  { %13624 = vst [vmem:[#allocation27_spill] sm:$0xff] %v9113_v4  ;;  %v13493_v4 = vmov 7  }
 0x205   :  { %v9115_v42 = vpop.permute.xlu2 %1598 }
 0x206   :  { %13625 = vst [vmem:[#allocation28_spill] sm:$0xff] %v9115_v42 }
 0x208   :  { %8292 = vset.pattern.permute.xlu1 %v13489_v0  ;;  %v13629_v0 = vmov 6  }
 0x209   :  { %8289 = vset.pattern.permute.xlu2 %v13626_v5  ;;  %8309 = vset.pattern.permute.xlu0 %v13627_v60 }
 0x20a   :  { %1400 = vperm.xlu2 %8289, %v9002_v33   ;;  %461 = vperm.xlu1 %8292, %v9045_v10   ;;  %v9122_v20 = vpop.permute.xlu1 %1808 }
 0x20b   :  { %1198 = vperm.xlu0 %8309, %v9105_v15   ;;  %v751_v14 = vpop.permute.xlu0 %750 }
 0x20e   :  { %v9125_v16 = vpop.permute.xlu2 %1812 }
 0x212   :  { %8294 = vset.pattern.permute.xlu2 %v13628_v41  ;;  %8295 = vset.pattern.permute.xlu1 %v13627_v60 }
 0x213   :  { %8312 = vset.pattern.permute.xlu0 %v13629_v0  ;;  %976 = vperm.xlu2 %8294, %v9045_v10   ;;  %v743_v59 = vpop.permute.xlu1 %742 }
 0x214   :  { %1190 = vperm.xlu1 %8295, %v9045_v10   ;;  %1840 = vperm.xlu0 %8312, %v9105_v15   ;;  %v793_v52 = vmul.f32 %v743_v59, %v9070_v24  ;;  %v9134_v26 = vpop.permute.xlu0 %1392 }
 0x215   :  { %13630 = vst [vmem:[#allocation29_spill] sm:$0xff] %v9134_v26 }
 0x216   :  { %7554 = vmatmul.msk.f32.gmra.mxu0 %vm51_vm5, %v793_v52  ;;  %v164_v52 = vadd.f32 %v8835_v35, %v163_v39 }
 0x218   :  { %v747_v32 = vpop.permute.xlu2 %746  ;;  %v9152_v42 = vmax.f32 %v164_v52, 0.0 }
 0x219   :  { %v794_v27 = vmul.f32 %v747_v32, %v9085_v61 }
 0x21a   :  { %13636 = vst [vmem:[#allocation33_spill] sm:$0xff] %v9152_v42  ;;  %v795_v32 = vmul.f32 %v751_v14, %v9152_v42  ;;  %v9167_v14 = vpop.f32.mrf.mxu1 }
 0x21b   :  { %8297 = vset.pattern.permute.xlu2 %v13631_v31  ;;  %13639 = vst [vmem:[#allocation35_spill] sm:$0xff] %v9167_v14 }
 0x21c   :  { %8298 = vset.pattern.permute.xlu1 %v13629_v0  ;;  %8314 = vset.pattern.permute.xlu0 %v13633_v53 }
 0x21d   :  { %1618 = vperm.xlu2 %8297, %v9045_v10   ;;  %1832 = vperm.xlu1 %8298, %v9045_v10   ;;  %v9145_v59 = vpop.permute.xlu1 %1384 }
 0x21e   :  { %13634 = vst [vmem:[#allocation31_spill] sm:$0xff] %v9145_v59  ;;  %774 = vperm.xlu0 %8314, %v9138_v13   ;;  %v969_v26 = vpop.permute.xlu0 %968  ;;  %7555 = vmatmul.msk.f32.gmra.mxu0 %vm51_vm5, %v794_v27  ;;  %v166_v59 = vpop.f32.mrf.mxu0 }
 0x221   :  { %v9150_v11 = vpop.permute.xlu2 %1388 }
 0x222   :  { %13635 = vst [vmem:[#allocation32_spill] sm:$0xff] %v9150_v11 }
 0x225   :  { %8299 = vset.pattern.permute.xlu2 %v13637_v63  ;;  %8300 = vset.pattern.permute.xlu1 %v13633_v53 }
 0x226   :  { %8317 = vset.pattern.permute.xlu0 %v13626_v5  ;;  %766 = vperm.xlu1 %8300, %v9074_v38  }
 0x227   :  { %466 = vperm.xlu2 %8299, %v9074_v38   ;;  %1416 = vperm.xlu0 %8317, %v9138_v13   ;;  %v961_v39 = vpop.permute.xlu1 %960  ;;  %v9161_v27 = vpop.permute.xlu0 %1610 }
 0x228   :  { %13638 = vst [vmem:[#allocation34_spill] sm:$0xff] %v9161_v27  ;;  %v1008_v52 = vmul.f32 %v961_v39, %v9085_v61  ;;  %7556 = vmatmul.msk.f32.gmra.mxu0 %vm51_vm5, %v795_v32  ;;  %v167_v32 = vadd.f32 %v8835_v35, %v166_v59 }
 0x22a   :  { %7575 = vmatmul.msk.f32.gmra.mxu1 %vm51_vm5, %v1008_v52  ;;  %v9181_v17 = vmax.f32 %v167_v32, 0.0 }
 0x22b   :  { %v965_v11 = vpop.permute.xlu2 %964 }
 0x22c   :  { %v1009_v56 = vmul.f32 %v965_v11, %v9152_v42  ;;  %13642 = vst [vmem:[#allocation38_spill] sm:$0xff] %v9181_v17  ;;  %v1010_v11 = vmul.f32 %v969_v26, %v9181_v17  ;;  %v169_v26 = vpop.f32.mrf.mxu0 }
 0x22e   :  { %8303 = vset.pattern.permute.xlu1 %v13626_v5 }
 0x22f   :  { %8302 = vset.pattern.permute.xlu2 %v13627_v60  ;;  %8322 = vset.pattern.permute.xlu0 %v13628_v41 }
 0x230   :  { %1408 = vperm.xlu1 %8303, %v9074_v38   ;;  %1194 = vperm.xlu2 %8302, %v9074_v38   ;;  %v9174_v39 = vpop.permute.xlu1 %1602 }
 0x231   :  { %13640 = vst [vmem:[#allocation36_spill] sm:$0xff] %v9174_v39  ;;  %992 = vperm.xlu0 %8322, %v9167_v14   ;;  %v457_v52 = vpop.permute.xlu0 %456 }
 0x232   :  { %7576 = vmatmul.msk.f32.gmra.mxu1 %vm51_vm5, %v1009_v56 }
 0x234   :  { %v9179_v27 = vpop.permute.xlu2 %1606 }
 0x235   :  { %13641 = vst [vmem:[#allocation37_spill] sm:$0xff] %v9179_v27 }
 0x238   :  { %8308 = vset.pattern.permute.xlu1 %v13628_v41  ;;  %8305 = vset.pattern.permute.xlu2 %v13629_v0 }
 0x239   :  { %8325 = vset.pattern.permute.xlu0 %v13631_v31  ;;  %1836 = vperm.xlu2 %8305, %v9074_v38  }
 0x23a   :  { %984 = vperm.xlu1 %8308, %v9105_v15   ;;  %1634 = vperm.xlu0 %8325, %v9167_v14   ;;  %v447_v59 = vpop.permute.xlu1 %446  ;;  %v9190_v56 = vpop.permute.xlu0 %1186 }
 0x23b   :  { %13643 = vst [vmem:[#allocation39_spill] sm:$0xff] %v9190_v56  ;;  %v500_v32 = vmul.f32 %v447_v59, %v9152_v42  ;;  %7577 = vmatmul.msk.f32.gmra.mxu1 %vm51_vm5, %v1010_v11  ;;  %v170_v11 = vadd.f32 %v8835_v35, %v169_v26 }
 0x23d   :  { %7520 = vmatmul.msk.f32.gmra.mxu2 %vm51_vm5, %v500_v32  ;;  %v9208_v32 = vmax.f32 %v170_v11, 0.0 }
 0x23e   :  { %v452_v27 = vpop.permute.xlu2 %451 }
 0x23f   :  { %v501_v39 = vmul.f32 %v452_v27, %v9181_v17  ;;  %13645 = vst [vmem:[#allocation41_spill] sm:$0xff] %v9208_v32  ;;  %v502_v27 = vmul.f32 %v457_v52, %v9208_v32 }
 0x241   :  { %8307 = vset.pattern.permute.xlu2 %v13633_v53 }
 0x242   :  { %8311 = vset.pattern.permute.xlu1 %v13631_v31  ;;  %8326 = vset.pattern.permute.xlu0 %v13629_v0 }
 0x243   :  { %1626 = vperm.xlu1 %8311, %v9105_v15   ;;  %770 = vperm.xlu2 %8307, %v9105_v15   ;;  %v9201_v56 = vpop.permute.xlu1 %1178 }
 0x244   :  { %1852 = vperm.xlu0 %8326, %v8777_v25   ;;  %v9205_v59 = vpop.permute.xlu0 %1828 }
 0x245   :  { %13644 = vst [vmem:[#allocation40_spill] sm:$0xff] %v9205_v59  ;;  %7521 = vmatmul.msk.f32.gmra.mxu2 %vm51_vm5, %v501_v39 }
 0x248   :  { %v9210_v42 = vpop.permute.xlu2 %1182 }
 0x249   :  { %13646 = vst [vmem:[#allocation42_spill] sm:$0xff] %v9210_v42 }
 0x24b   :  { %8313 = vset.pattern.permute.xlu1 %v13637_v63  ;;  %8310 = vset.pattern.permute.xlu2 %v13626_v5 }
 0x24c   :  { %8330 = vset.pattern.permute.xlu0 %v13493_v4  ;;  %1412 = vperm.xlu2 %8310, %v9105_v15  }
 0x24d   :  { %476 = vperm.xlu1 %8313, %v9138_v13   ;;  %2014 = vperm.xlu0 %8330, %v8799_v29   ;;  %v9219_v39 = vpop.permute.xlu1 %1820  ;;  %v763_v26 = vpop.permute.xlu0 %762 }
 0x24e   :  { %7522 = vmatmul.msk.f32.gmra.mxu2 %vm51_vm5, %v502_v27 }
 0x251   :  { %v9222_v11 = vpop.permute.xlu2 %1824 }
 0x252   :  { %13647 = vst [vmem:[#allocation43_spill] sm:$0xff] %v9222_v11  ;;  %v172_v11 = vpop.f32.mrf.mxu0 }
 0x254   :  { %8315 = vset.pattern.permute.xlu2 %v13628_v41  ;;  %v173_v41 = vadd.f32 %v8835_v35, %v172_v11 }
 0x255   :  { %8316 = vset.pattern.permute.xlu1 %v13627_v60  ;;  %2034 = vperm.xlu0 %8330, %v8951_v6  }
 0x256   :  { %988 = vperm.xlu2 %8315, %v9138_v13   ;;  %1202 = vperm.xlu1 %8316, %v9138_v13   ;;  %v755_v52 = vpop.permute.xlu1 %754 }
 0x257   :  { %v796_v4 = vmul.f32 %v755_v52, %v9181_v17  ;;  %v9230_v59 = vpop.permute.xlu0 %1404 }
 0x258   :  { %13648 = vst [vmem:[#allocation44_spill] sm:$0xff] %v9230_v59 }
 0x259   :  { %7557 = vmatmul.msk.f32.gmra.mxu0 %vm51_vm5, %v796_v4  ;;  %v9243_v4 = vmax.f32 %v173_v41, 0.0 }
 0x25b   :  { %v759_v27 = vpop.permute.xlu2 %758  ;;  %13650 = vst [vmem:[#allocation46_spill] sm:$0xff] %v9243_v4 }
 0x25c   :  { %v797_v42 = vmul.f32 %v759_v27, %v9208_v32 }
 0x25d   :  { %2046 = vperm.xlu0 %8330, %v9045_v10  }
 0x25e   :  { %8318 = vset.pattern.permute.xlu2 %v13631_v31  ;;  %8319 = vset.pattern.permute.xlu1 %v13629_v0  ;;  %v798_v31 = vmul.f32 %v763_v26, %v9243_v4 }
 0x25f   :  { %1630 = vperm.xlu2 %8318, %v9138_v13   ;;  %1844 = vperm.xlu1 %8319, %v9138_v13   ;;  %v9240_v52 = vpop.permute.xlu1 %1396 }
 0x260   :  { %13649 = vst [vmem:[#allocation45_spill] sm:$0xff] %v9240_v52  ;;  %v981_v59 = vpop.permute.xlu0 %980 }
 0x261   :  { %7558 = vmatmul.msk.f32.gmra.mxu0 %vm51_vm5, %v797_v42 }
 0x264   :  { %v9245_v17 = vpop.permute.xlu2 %1400 }
 0x265   :  { %13651 = vst [vmem:[#allocation47_spill] sm:$0xff] %v9245_v17  ;;  %2058 = vperm.xlu0 %8330, %v9138_v13   ;;  %v13657_v17 = vmov 7  }
 0x267   :  { %8320 = vset.pattern.permute.xlu2 %v13637_v63  ;;  %8321 = vset.pattern.permute.xlu1 %v13633_v53  ;;  %v175_v53 = vpop.f32.mrf.mxu0 }
 0x268   :  { %778 = vperm.xlu1 %8321, %v9167_v14   ;;  %481 = vperm.xlu2 %8320, %v9167_v14   ;;  %v176_v41 = vadd.f32 %v8835_v35, %v175_v53 }
 0x269   :  { %v973_v11 = vpop.permute.xlu1 %972  ;;  %7559 = vmatmul.msk.f32.gmra.mxu0 %vm51_vm5, %v798_v31 }
 0x26a   :  { %v1011_v42 = vmul.f32 %v973_v11, %v9208_v32  ;;  %v9255_v27 = vpop.permute.xlu0 %1622 }
 0x26b   :  { %13652 = vst [vmem:[#allocation48_spill] sm:$0xff] %v9255_v27 }
 0x26c   :  { %7578 = vmatmul.msk.f32.gmra.mxu1 %vm51_vm5, %v1011_v42  ;;  %v13498_v42 = vmov 8  }
 0x26d   :  { %2070 = vperm.xlu0 %8330, %v8825_v34   ;;  %v977_v26 = vpop.permute.xlu2 %976 }
 0x26e   :  { %v1012_v31 = vmul.f32 %v977_v26, %v9243_v4 }
 0x270   :  { %8324 = vset.pattern.permute.xlu1 %v13626_v5  ;;  %8323 = vset.pattern.permute.xlu2 %v13627_v60  ;;  %v9269_v5 = vmax.f32 %v176_v41, 0.0 }
 0x271   :  { %1420 = vperm.xlu1 %8324, %v9167_v14   ;;  %1206 = vperm.xlu2 %8323, %v9167_v14  }
 0x272   :  { %v9265_v11 = vpop.permute.xlu1 %1614  ;;  %13654 = vst [vmem:[#allocation50_spill] sm:$0xff] %v9269_v5  ;;  %v1013_v26 = vmul.f32 %v981_v59, %v9269_v5 }
 0x273   :  { %13653 = vst [vmem:[#allocation49_spill] sm:$0xff] %v9265_v11  ;;  %v472_v63 = vpop.permute.xlu0 %471 }
 0x274   :  { %7579 = vmatmul.msk.f32.gmra.mxu1 %vm51_vm5, %v1012_v31 }
 0x275   :  { %8334 = vset.pattern.permute.xlu0 %v13498_v42 }
 0x276   :  { %2232 = vperm.xlu0 %8334, %v8865_v45  }
 0x277   :  { %v9272_v60 = vpop.permute.xlu2 %1618 }
 0x278   :  { %13655 = vst [vmem:[#allocation51_spill] sm:$0xff] %v9272_v60 }
 0x279   :  { %8327 = vset.pattern.permute.xlu1 %v13629_v0  ;;  %8328 = vset.pattern.permute.xlu2 %v13629_v0  ;;  %v178_v0 = vpop.f32.mrf.mxu0 }
 0x27a   :  { %1856 = vperm.xlu1 %8327, %v8825_v34   ;;  %1848 = vperm.xlu2 %8328, %v9167_v14   ;;  %v179_v59 = vadd.f32 %v8835_v35, %v178_v0 }
 0x27c   :  { %v462_v53 = vpop.permute.xlu1 %461  ;;  %7580 = vmatmul.msk.f32.gmra.mxu1 %vm51_vm5, %v1013_v26 }
 0x27d   :  { %v503_v41 = vmul.f32 %v462_v53, %v9243_v4  ;;  %v9281_v31 = vpop.permute.xlu0 %1198 }
 0x27e   :  { %13656 = vst [vmem:[#allocation52_spill] sm:$0xff] %v9281_v31  ;;  %2252 = vperm.xlu0 %8334, %v8976_v19  }
 0x27f   :  { %7523 = vmatmul.msk.f32.gmra.mxu2 %vm51_vm5, %v503_v41  ;;  %v9297_v41 = vmax.f32 %v179_v59, 0.0 }
 0x281   :  { %v467_v42 = vpop.permute.xlu2 %466  ;;  %13659 = vst [vmem:[#allocation54_spill] sm:$0xff] %v9297_v41  ;;  %v505_v0 = vmul.f32 %v472_v63, %v9297_v41 }
 0x282   :  { %8331 = vset.pattern.permute.xlu1 %v13657_v17  ;;  %8329 = vset.pattern.permute.xlu2 %v13657_v17  ;;  %v504_v26 = vmul.f32 %v467_v42, %v9269_v5 }
 0x283   :  { %2018 = vperm.xlu1 %8331, %v8865_v45   ;;  %2010 = vperm.xlu2 %8329, %v8737_v12  }
 0x286   :  { %2264 = vperm.xlu0 %8334, %v9074_v38   ;;  %v9292_v53 = vpop.permute.xlu1 %1190  ;;  %v9294_v52 = vpop.permute.xlu0 %1840 }
 0x287   :  { %13658 = vst [vmem:[#allocation53_spill] sm:$0xff] %v9294_v52  ;;  %7524 = vmatmul.msk.f32.gmra.mxu2 %vm51_vm5, %v504_v26  ;;  %v13500_v26 = vmov 9   ;;  %v181_v52 = vpop.f32.mrf.mxu0 }
 0x288   :  { %v182_v31 = vadd.f32 %v8835_v35, %v181_v52  ;;  %v7588_v52 = vld [vmem:[%s13467_s7 + $0x70] sm:$0xff] }
 0x28a   :  { %v9299_v17 = vpop.permute.xlu2 %1194 }
 0x28b   :  { %13660 = vst [vmem:[#allocation55_spill] sm:$0xff] %v9299_v17  ;;  %2026 = vperm.xlu1 %8331, %v8901_v50   ;;  %2022 = vperm.xlu2 %8329, %v8892_v49  }
 0x28e   :  { %2276 = vperm.xlu0 %8334, %v9167_v14  }
 0x28f   :  { %v9305_v42 = vpop.permute.xlu1 %1832  ;;  %7525 = vmatmul.msk.f32.gmra.mxu2 %vm51_vm5, %v505_v0 }
 0x290   :  { %v775_v27 = vpop.permute.xlu0 %774 }
 0x293   :  { %2038 = vperm.xlu1 %8331, %v8976_v19   ;;  %2030 = vperm.xlu2 %8329, %v8914_v54   ;;  %v9310_v59 = vpop.permute.xlu2 %1836 }
 0x294   :  { %13661 = vst [vmem:[#allocation56_spill] sm:$0xff] %v9310_v59 }
 0x296   :  { %8335 = vset.pattern.permute.xlu0 %v13500_v26 }
 0x297   :  { %2438 = vperm.xlu0 %8335, %v8737_v12  }
 0x298   :  { %v767_v60 = vpop.permute.xlu1 %766 }
 0x299   :  { %v799_v63 = vmul.f32 %v767_v60, %v9269_v5  ;;  %v9315_v11 = vpop.permute.xlu0 %1416  ;;  %v7589_v60 = vld [vmem:[%s13467_s7 + $0x78] sm:$0xff] }
 0x29a   :  { %13662 = vst [vmem:[#allocation57_spill] sm:$0xff] %v9315_v11  ;;  %1298 = vmatpush.msrb.mxu2 %v7589_v60  ;;  %v7649_v60 = vld [vmem:[%s13467_s7 + $0xd8] sm:$0xff] }
 0x29b   :  { %2050 = vperm.xlu1 %8331, %v9074_v38   ;;  %2042 = vperm.xlu2 %8329, %v9002_v33  }
 0x29c   :  { %7560 = vmatmul.msk.f32.gmra.mxu0 %vm51_vm5, %v799_v63  ;;  %v7587_v63 = vld [vmem:[%s13467_s7 + $0x68] sm:$0xff]  ;;  %1299 = vmatpush.msrb.mxu2 %v7588_v52  ;;  %v13666_v52 = vmov 8  }
 0x29d   :  { %v771_v0 = vpop.permute.xlu2 %770  ;;  %1940 = vmatpush.msra.mxu1 %v7649_v60 }
 0x29e   :  { %v800_v26 = vmul.f32 %v771_v0, %v9297_v41  ;;  %v9337_v0 = vmax.f32 %v182_v31, 0.0  ;;  %1300 = vmatpush.msrb.mxu2 %v7587_v63  ;;  %v7648_v31 = vld [vmem:[%s13467_s7 + $0xd0] sm:$0xff] }
 0x29f   :  { %2458 = vperm.xlu0 %8335, %v8914_v54   ;;  %1941 = vmatpush.msra.mxu1 %v7648_v31 }
 0x2a0   :  { %13664 = vst [vmem:[#allocation59_spill] sm:$0xff] %v9337_v0  ;;  %v801_v17 = vmul.f32 %v775_v27, %v9337_v0  ;;  %v7647_v27 = vld [vmem:[%s13467_s7 + $0xc8] sm:$0xff] }
 0x2a1   :  { %1942 = vmatpush.msra.mxu1 %v7647_v27 }
 0x2a2   :  { %v9323_v59 = vpop.permute.xlu1 %1408 }
 0x2a3   :  { %13663 = vst [vmem:[#allocation58_spill] sm:$0xff] %v9323_v59  ;;  %2062 = vperm.xlu1 %8331, %v9167_v14   ;;  %2054 = vperm.xlu2 %8329, %v9105_v15   ;;  %v993_v11 = vpop.permute.xlu0 %992 }
 0x2a4   :  { %7561 = vmatmul.msk.f32.gmra.mxu0 %vm51_vm5, %v800_v26  ;;  %v7586_v26 = vld [vmem:[%s13467_s7 + $0x60] sm:$0xff] }
 0x2a5   :  { %1301 = vmatpush.msrb.mxu2 %v7586_v26  ;;  %v7646_v26 = vld [vmem:[%s13467_s7 + $0xc0] sm:$0xff] }
 0x2a6   :  { %v9339_v59 = vpop.permute.xlu2 %1412  ;;  %1943 = vmatpush.msra.mxu1 %v7646_v26 }
 0x2a7   :  { %13665 = vst [vmem:[#allocation60_spill] sm:$0xff] %v9339_v59  ;;  %2470 = vperm.xlu0 %8335, %v9002_v33  }
 0x2ab   :  { %8332 = vset.pattern.permute.xlu1 %v13666_v52  ;;  %2066 = vperm.xlu2 %8329, %v8777_v25  }
 0x2ac   :  { %2224 = vperm.xlu1 %8332, %v8737_v12   ;;  %v985_v63 = vpop.permute.xlu1 %984  ;;  %v9355_v59 = vpop.permute.xlu0 %1634  ;;  %7562 = vmatmul.msk.f32.gmra.mxu0 %vm51_vm5, %v801_v17 }
 0x2ad   :  { %13667 = vst [vmem:[#allocation61_spill] sm:$0xff] %v9355_v59  ;;  %v1014_v60 = vmul.f32 %v985_v63, %v9297_v41  ;;  %v184_v17 = vpop.f32.mrf.mxu0 }
 0x2ae   :  { %v185_v31 = vadd.f32 %v8835_v35, %v184_v17  ;;  %v410_v17 = vld [vmem:[%s13468_s8] sm:$0xff] }
 0x2af   :  { %2482 = vperm.xlu0 %8335, %v9105_v15   ;;  %7581 = vmatmul.msk.f32.gmra.mxu1 %vm51_vm5, %v1014_v60  ;;  %v413_v60 = vld [vmem:[%s13468_s8 + $0x18] sm:$0xff] }
 0x2b0   :  { %v989_v5 = vpop.permute.xlu2 %988  ;;  %672 = vmatpush.msrb.mxu3 %v413_v60  ;;  %v9387_v27 = vmax.f32 %v185_v31, 0.0  ;;  %v188_v60 = vadd.f32 %v8835_v35, %v8756_v18  ;;  %v13508_v31 = vmov 10  }
 0x2b1   :  { %v1015_v63 = vmul.f32 %v989_v5, %v9337_v0  ;;  %v411_v5 = vld [vmem:[%s13468_s8 + $0x8] sm:$0xff] }
 0x2b2   :  { %13669 = vst [vmem:[#allocation63_spill] sm:$0xff] %v9387_v27 }
 0x2b3   :  { %8333 = vset.pattern.permute.xlu2 %v13666_v52  ;;  %v412_v52 = vld [vmem:[%s13468_s8 + $0x10] sm:$0xff] }
 0x2b4   :  { %2236 = vperm.xlu1 %8332, %v8892_v49   ;;  %2228 = vperm.xlu2 %8333, %v8799_v29  }
 0x2b5   :  { %v9372_v59 = vpop.permute.xlu1 %1626  ;;  %673 = vmatpush.msrb.mxu3 %v412_v52 }
 0x2b6   :  { %13668 = vst [vmem:[#allocation62_spill] sm:$0xff] %v9372_v59  ;;  %v9377_v41 = vpop.permute.xlu0 %1852 }
 0x2b7   :  { %2494 = vperm.xlu0 %8335, %v8777_v25   ;;  %7582 = vmatmul.msk.f32.gmra.mxu1 %vm51_vm5, %v1015_v63  ;;  %v1016_v63 = vmul.f32 %v993_v11, %v9387_v27  ;;  %v9406_v11 = vmax.f32 %v188_v60, 0.0 }
 0x2b8   :  { %674 = vmatpush.msrb.mxu3 %v411_v5 }
 0x2b9   :  { %v9389_v26 = vpop.permute.xlu2 %1630  ;;  %13671 = vst [vmem:[#allocation65_spill] sm:$0xff] %v9406_v11  ;;  %v1017_v18 = vmul.f32 %v8959_v8, %v9406_v11 }
 0x2ba   :  { %13670 = vst [vmem:[#allocation64_spill] sm:$0xff] %v9389_v26  ;;  %675 = vmatpush.msrb.mxu3 %v410_v17 }
 0x2bc   :  { %2244 = vperm.xlu1 %8332, %v8914_v54   ;;  %2240 = vperm.xlu2 %8333, %v8901_v50  }
 0x2bf   :  { %v477_v52 = vpop.permute.xlu1 %476  ;;  %8339 = vset.pattern.permute.xlu0 %v13508_v31  ;;  %v9400_v26 = vpop.permute.xlu0 %2014  ;;  %7583 = vmatmul.msk.f32.gmra.mxu1 %vm51_vm5, %v1016_v63  ;;  %v1217_v63 = vmul.f32 %v8929_v58, %v8853_v40  ;;  %v8493_v58 = vld [vmem:[%s13466_s6] ss:$0 sm:$0xff] }
 0x2c0   :  { %v506_v5 = vmul.f32 %v477_v52, %v9337_v0  ;;  %2656 = vperm.xlu0 %8339, %v8799_v29  }
 0x2c2   :  { %7526 = vmatmul.msk.f32.gmra.mxu2 %vm51_vm5, %v506_v5  ;;  %v482_v59 = vpop.permute.xlu2 %481 }
 0x2c3   :  { %v507_v17 = vmul.f32 %v482_v59, %v9387_v27  ;;  %v191_v59 = vadd.f32 %v8493_v58, %v8769_v22  ;;  %v1218_v22 = vmul.f32 %v8982_v21, %v8943_v2  ;;  %v9477_v58 = vpop.f32.mrf.mxu2 }
 0x2c4   :  { %2256 = vperm.xlu1 %8332, %v9002_v33   ;;  %2248 = vperm.xlu2 %8333, %v8951_v6  }
 0x2c5   :  { %7527 = vmatmul.msk.f32.vlgmr.msra.gmra.mxu3 %vm51_vm5, %v507_v17  ;;  %v7626_v17 = vld [vmem:[%s13467_s7 + $0xa0] sm:$0xff] }
 0x2c6   :  { %8177 = vmatpush.msra.mxu3 %v8862_v44  ;;  %v508_v44 = vmul.f32 %v8955_v7, %v9406_v11  ;;  %v7628_v7 = vld [vmem:[%s13467_s7 + $0xb0] sm:$0xff] }
 0x2c7   :  { %v9415_v35 = vpop.permute.xlu0 %2034  ;;  %7584 = vmatmul.msk.f32.gmra.mxu1 %vm51_vm5, %v1017_v18 }
 0x2c8   :  { %v9420_v60 = vpop.permute.xlu1 %1202  ;;  %2676 = vperm.xlu0 %8339, %v8951_v6   ;;  %8178 = vmatpush.msra.mxu3 %v8872_v46  ;;  %v1859_v46 = vmul.f32 %v8941_v1, %v8853_v40  ;;  %v9452_v1 = vmax.f32 %v191_v59, 0.0 }
 0x2ca   :  { %7590 = vmatmul.msk.f32.vlgmr.msrb.gmra.mxu2 %vm51_vm5, %v1217_v63  ;;  %8179 = vmatpush.msra.mxu3 %v8881_v47  ;;  %v7629_v47 = vld [vmem:[%s13467_s7 + $0xb8] sm:$0xff]  ;;  %13673 = vst [vmem:[#allocation67_spill] sm:$0xff] %v9452_v1  ;;  %v509_v21 = vmul.f32 %v9008_v30, %v9452_v1  ;;  %v1860_v63 = vmul.f32 %v8993_v28, %v8943_v2  ;;  %v13675_v28 = vmov 9  }
 0x2cb   :  { %v9428_v8 = vpop.permute.xlu2 %1206  ;;  %1726 = vmatpush.msra.mxu0 %v7629_v47  ;;  %v1219_v30 = vmul.f32 %v9013_v37, %v9029_v51  ;;  %v1861_v47 = vmul.f32 %v9026_v43, %v9029_v51 }
 0x2cc   :  { %2268 = vperm.xlu1 %8332, %v9105_v15   ;;  %2260 = vperm.xlu2 %8333, %v9045_v10  }
 0x2cd   :  { %7528 = vmatmul.msk.f32.gmra.mxu3 %vm51_vm5, %v508_v44  ;;  %1727 = vmatpush.msra.mxu0 %v7628_v7 }
 0x2ce   :  { %8180 = vmatpush.msra.mxu3 %v8888_v48  ;;  %v7627_v48 = vld [vmem:[%s13467_s7 + $0xa8] sm:$0xff] }
 0x2cf   :  { %v9446_v52 = vpop.permute.xlu0 %2046  ;;  %7650 = vmatmul.msk.f32.vlgmr.msra.gmra.mxu1 %vm51_vm5, %v1859_v46  ;;  %1728 = vmatpush.msra.mxu0 %v7627_v48  ;;  %v9497_v48 = vpop.f32.mrf.mxu2 }
 0x2d0   :  { %13672 = vst [vmem:[#allocation66_spill] sm:$0xff] %v9446_v52  ;;  %2688 = vperm.xlu0 %8339, %v9045_v10  }
 0x2d1   :  { %v9454_v5 = vpop.permute.xlu1 %1844  ;;  %1729 = vmatpush.msra.mxu0 %v7626_v17  ;;  %v803_v17 = vmul.f32 %v8922_v57, %v9406_v11  ;;  %v1221_v57 = vmul.f32 %v9101_v55, %v9070_v24 }
 0x2d2   :  { %7591 = vmatmul.msk.f32.gmra.mxu2 %vm51_vm5, %v1218_v22  ;;  %v1220_v22 = vmul.f32 %v9094_v62, %v9041_v9 }
 0x2d4   :  { %2280 = vperm.xlu1 %8332, %v8777_v25   ;;  %2272 = vperm.xlu2 %8333, %v9138_v13   ;;  %v9467_v18 = vpop.permute.xlu2 %1848 }
 0x2d5   :  { %7529 = vmatmul.msk.f32.gmra.mxu3 %vm51_vm5, %v509_v21  ;;  %v1862_v21 = vmul.f32 %v9122_v20, %v9041_v9 }
 0x2d7   :  { %v9472_v44 = vpop.permute.xlu0 %2058  ;;  %7651 = vmatmul.msk.f32.gmra.mxu1 %vm51_vm5, %v1860_v63  ;;  %v9518_v63 = vpop.f32.mrf.mxu2 }
 0x2d8   :  { %13674 = vst [vmem:[#allocation68_spill] sm:$0xff] %v9472_v44  ;;  %2700 = vperm.xlu0 %8339, %v9138_v13  }
 0x2da   :  { %7592 = vmatmul.msk.f32.gmra.mxu2 %vm51_vm5, %v1219_v30  ;;  %v779_v59 = vpop.permute.xlu1 %778  ;;  %v13506_v30 = vmov 11  }
 0x2db   :  { %v802_v46 = vmul.f32 %v779_v59, %v9387_v27  ;;  %v804_v59 = vmul.f32 %v9010_v36, %v9452_v1  ;;  %v1222_v36 = vmul.f32 %v9097_v23, %v9085_v61 }
 0x2dc   :  { %8336 = vset.pattern.permute.xlu1 %v13675_v28  ;;  %2284 = vperm.xlu2 %8333, %v8825_v34  }
 0x2dd   :  { %2442 = vperm.xlu1 %8336, %v8799_v29   ;;  %7530 = vmatmul.msk.f32.vlgmr.msrb.gmra.mxu3 %vm51_vm5, %v8737_v12  ;;  %v9489_v37 = vpop.permute.xlu2 %2010 }
 0x2de   :  { %7563 = vmatmul.msk.f32.gmra.mxu0 %vm51_vm5, %v802_v46 }
 0x2df   :  { %v9492_v7 = vpop.permute.xlu0 %2070  ;;  %7652 = vmatmul.msk.f32.gmra.mxu1 %vm51_vm5, %v1861_v47  ;;  %v9541_v47 = vpop.f32.mrf.mxu2 }
 0x2e0   :  { %13676 = vst [vmem:[#allocation69_spill] sm:$0xff] %v9492_v7  ;;  %2712 = vperm.xlu0 %8339, %v8825_v34   ;;  %v13692_v7 = vld [vmem:[#allocation43_spill] sm:$0xff] }
 0x2e2   :  { %7593 = vmatmul.msk.f32.gmra.mxu2 %vm51_vm5, %v1220_v22 }
 0x2e3   :  { %v9501_v43 = vpop.permute.xlu1 %1420 }
 0x2e4   :  { %13677 = vst [vmem:[#allocation70_spill] sm:$0xff] %v9501_v43  ;;  %8337 = vset.pattern.permute.xlu2 %v13675_v28  ;;  %v1863_v28 = vmul.f32 %v9125_v16, %v9070_v24  ;;  %v1645_v16 = vmul.f32 %v8945_v3, %v8853_v40 }
 0x2e5   :  { %2450 = vperm.xlu1 %8336, %v8892_v49   ;;  %2446 = vperm.xlu2 %8337, %v8865_v45   ;;  %v9510_v62 = vpop.permute.xlu2 %2022 }
 0x2e6   :  { %7564 = vmatmul.msk.f32.gmra.mxu0 %vm51_vm5, %v803_v17  ;;  %7531 = vmatmul.msk.f32.gmra.mxu3 %vm51_vm5, %v8799_v29  ;;  %v13680_v17 = vld [vmem:[#allocation27_spill] sm:$0xff] }
 0x2e7   :  { %7653 = vmatmul.msk.f32.gmra.mxu1 %vm51_vm5, %v1862_v21  ;;  %v1864_v21 = vmul.f32 %v13680_v17, %v9085_v61  ;;  %v9569_v17 = vpop.f32.mrf.mxu0 }
 0x2e8   :  { %8343 = vset.pattern.permute.xlu0 %v13506_v30  ;;  %v9521_v20 = vpop.permute.xlu0 %2232 }
 0x2e9   :  { %13678 = vst [vmem:[#allocation71_spill] sm:$0xff] %v9521_v20  ;;  %2874 = vperm.xlu0 %8343, %v8865_v45   ;;  %v13690_v20 = vld [vmem:[#allocation22_spill] sm:$0xff] }
 0x2ea   :  { %7594 = vmatmul.msk.f32.gmra.mxu2 %vm51_vm5, %v1221_v57  ;;  %v1647_v43 = vmul.f32 %v13690_v20, %v9029_v51  ;;  %v13695_v20 = vld [vmem:[#allocation39_spill] sm:$0xff] }
 0x2ec   :  { %v9527_v46 = vpop.permute.xlu1 %1856 }
 0x2ed   :  { %2462 = vperm.xlu1 %8336, %v8951_v6   ;;  %2454 = vperm.xlu2 %8337, %v8901_v50   ;;  %v9533_v55 = vpop.permute.xlu2 %2030 }
 0x2ee   :  { %7565 = vmatmul.msk.f32.gmra.mxu0 %vm51_vm5, %v804_v59  ;;  %7532 = vmatmul.msk.f32.gmra.mxu3 %vm51_vm5, %v8865_v45  ;;  %v13682_v59 = vld [vmem:[#allocation33_spill] sm:$0xff] }
 0x2ef   :  { %7654 = vmatmul.msk.f32.gmra.mxu1 %vm51_vm5, %v1863_v28  ;;  %v1223_v3 = vmul.f32 %v9201_v56, %v13682_v59  ;;  %v1865_v31 = vmul.f32 %v9219_v39, %v13682_v59  ;;  %v9591_v39 = vpop.f32.mrf.mxu0 }
 0x2f0   :  { %v9543_v22 = vpop.permute.xlu0 %2252 }
 0x2f1   :  { %13679 = vst [vmem:[#allocation72_spill] sm:$0xff] %v9543_v22  ;;  %2894 = vperm.xlu0 %8343, %v8976_v19  }
 0x2f2   :  { %7595 = vmatmul.msk.f32.gmra.mxu2 %vm51_vm5, %v1222_v36  ;;  %v9566_v36 = vpop.f32.mrf.mxu2 }
 0x2f3   :  { %13684 = vst [vmem:[#allocation74_spill] sm:$0xff] %v9566_v36  ;;  %v13713_v36 = vld [vmem:[#allocation56_spill] sm:$0xff] }
 0x2f5   :  { %2474 = vperm.xlu1 %8336, %v9045_v10   ;;  %v9552_v57 = vpop.permute.xlu1 %2018  ;;  %2466 = vperm.xlu2 %8337, %v8976_v19   ;;  %v9555_v23 = vpop.permute.xlu2 %2042 }
 0x2f6   :  { %13681 = vst [vmem:[#allocation27_spill] sm:$0xff] %v9555_v23  ;;  %7630 = vmatmul.msk.f32.vlgmr.msra.gmra.mxu0 %vm51_vm5, %v1645_v16  ;;  %7533 = vmatmul.msk.f32.gmra.mxu3 %vm51_vm5, %v8892_v49  ;;  %v13685_v16 = vld [vmem:[#allocation12_spill] sm:$0xff] }
 0x2f7   :  { %7655 = vmatmul.msk.f32.gmra.mxu1 %vm51_vm5, %v1864_v21  ;;  %v1646_v30 = vmul.f32 %v13685_v16, %v8943_v2  ;;  %v13688_v16 = vld [vmem:[#allocation42_spill] sm:$0xff] }
 0x2f8   :  { %v9563_v28 = vpop.permute.xlu0 %2264 }
 0x2f9   :  { %13683 = vst [vmem:[#allocation73_spill] sm:$0xff] %v9563_v28  ;;  %2906 = vperm.xlu0 %8343, %v9074_v38  }
 0x2fa   :  { %7596 = vmatmul.msk.f32.gmra.mxu2 %vm51_vm5, %v1223_v3  ;;  %v13687_v3 = vld [vmem:[#allocation38_spill] sm:$0xff] }
 0x2fb   :  { %v1224_v28 = vmul.f32 %v13688_v16, %v13687_v3  ;;  %v1866_v44 = vmul.f32 %v13692_v7, %v13687_v3 }
 0x2fd   :  { %2486 = vperm.xlu1 %8336, %v9138_v13   ;;  %v9576_v21 = vpop.permute.xlu1 %2026  ;;  %2478 = vperm.xlu2 %8337, %v9074_v38   ;;  %v9579_v56 = vpop.permute.xlu2 %2054 }
 0x2fe   :  { %13686 = vst [vmem:[#allocation12_spill] sm:$0xff] %v9579_v56  ;;  %7631 = vmatmul.msk.f32.gmra.mxu0 %vm51_vm5, %v1646_v30  ;;  %7534 = vmatmul.msk.f32.gmra.mxu3 %vm51_vm5, %v8901_v50  ;;  %v9595_v30 = vpop.f32.mrf.mxu2 }
 0x2ff   :  { %7656 = vmatmul.msk.f32.gmra.mxu1 %vm51_vm5, %v1865_v31  ;;  %13691 = vst [vmem:[#allocation22_spill] sm:$0xff] %v9595_v30 }
 0x300   :  { %v9587_v22 = vpop.permute.xlu0 %2276 }
 0x301   :  { %13689 = vst [vmem:[#allocation42_spill] sm:$0xff] %v9587_v22  ;;  %2918 = vperm.xlu0 %8343, %v9167_v14   ;;  %v13510_v22 = vmov 12  }
 0x302   :  { %7597 = vmatmul.msk.f32.gmra.mxu2 %vm51_vm5, %v1224_v28  ;;  %v1225_v28 = vmul.f32 %v13695_v20, %v9208_v32  ;;  %v13700_v20 = vld [vmem:[#allocation40_spill] sm:$0xff] }
 0x305   :  { %2498 = vperm.xlu1 %8336, %v8825_v34   ;;  %v9600_v31 = vpop.permute.xlu1 %2038  ;;  %2490 = vperm.xlu2 %8337, %v9167_v14   ;;  %v9603_v16 = vpop.permute.xlu2 %2066 }
 0x306   :  { %13693 = vst [vmem:[#allocation43_spill] sm:$0xff] %v9600_v31  ;;  %7632 = vmatmul.msk.f32.gmra.mxu0 %vm51_vm5, %v1647_v43  ;;  %7535 = vmatmul.msk.f32.gmra.mxu3 %vm51_vm5, %v8914_v54  ;;  %v13696_v43 = vld [vmem:[#allocation26_spill] sm:$0xff]  ;;  %v9620_v52 = vpop.f32.mrf.mxu2 }
 0x307   :  { %13694 = vst [vmem:[#allocation75_spill] sm:$0xff] %v9603_v16  ;;  %7657 = vmatmul.msk.f32.gmra.mxu1 %vm51_vm5, %v1866_v44  ;;  %v9616_v16 = vpop.f32.mrf.mxu0  ;;  %v1648_v56 = vmul.f32 %v13696_v43, %v9041_v9  ;;  %v13698_v44 = vmov 10   ;;  %v1226_v43 = vmul.f32 %v9292_v53, %v9243_v4  ;;  %v1868_v53 = vmul.f32 %v9305_v42, %v9243_v4  ;;  %v13711_v42 = vld [vmem:[#allocation36_spill] sm:$0xff] }
 0x308   :  { %13697 = vst [vmem:[#allocation39_spill] sm:$0xff] %v9620_v52 }
 0x309   :  { %8344 = vset.pattern.permute.xlu0 %v13510_v22  ;;  %v9612_v7 = vpop.permute.xlu0 %2438  ;;  %v1867_v22 = vmul.f32 %v13700_v20, %v9208_v32  ;;  %v13703_v20 = vld [vmem:[#allocation28_spill] sm:$0xff] }
 0x30a   :  { %7598 = vmatmul.msk.f32.gmra.mxu2 %vm51_vm5, %v1225_v28  ;;  %3080 = vperm.xlu0 %8344, %v8737_v12  }
 0x30d   :  { %8340 = vset.pattern.permute.xlu1 %v13698_v44  ;;  %v9623_v30 = vpop.permute.xlu1 %2050  ;;  %8338 = vset.pattern.permute.xlu2 %v13698_v44 }
 0x30e   :  { %13699 = vst [vmem:[#allocation26_spill] sm:$0xff] %v9623_v30  ;;  %7633 = vmatmul.msk.f32.gmra.mxu0 %vm51_vm5, %v1648_v56  ;;  %7536 = vmatmul.msk.f32.gmra.mxu3 %vm51_vm5, %v8951_v6  ;;  %v9631_v28 = vpop.permute.xlu2 %2228  ;;  %v9642_v56 = vpop.f32.mrf.mxu1 }
 0x30f   :  { %13701 = vst [vmem:[#allocation40_spill] sm:$0xff] %v9631_v28  ;;  %2660 = vperm.xlu1 %8340, %v8865_v45   ;;  %2652 = vperm.xlu2 %8338, %v8737_v12   ;;  %v1649_v28 = vmul.f32 %v13703_v20, %v9070_v24  ;;  %v9646_v30 = vpop.f32.mrf.mxu0  ;;  %v13708_v20 = vld [vmem:[#allocation50_spill] sm:$0xff] }
 0x310   :  { %7658 = vmatmul.msk.f32.gmra.mxu1 %vm51_vm5, %v1867_v22  ;;  %13704 = vst [vmem:[#allocation28_spill] sm:$0xff] %v9646_v30  ;;  %v1869_v31 = vmul.f32 %v13713_v36, %v13708_v20 }
 0x311   :  { %v9638_v44 = vpop.permute.xlu0 %2458 }
 0x312   :  { %13702 = vst [vmem:[#allocation76_spill] sm:$0xff] %v9638_v44  ;;  %7599 = vmatmul.msk.f32.gmra.mxu2 %vm51_vm5, %v1226_v43  ;;  %3100 = vperm.xlu0 %8344, %v8914_v54   ;;  %v9657_v43 = vpop.f32.mrf.mxu2  ;;  %v13709_v44 = vld [vmem:[#allocation55_spill] sm:$0xff] }
 0x313   :  { %13707 = vst [vmem:[#allocation79_spill] sm:$0xff] %v9657_v43  ;;  %v1227_v23 = vmul.f32 %v13709_v44, %v13708_v20 }
 0x315   :  { %v9648_v52 = vpop.permute.xlu1 %2062 }
 0x316   :  { %13705 = vst [vmem:[#allocation77_spill] sm:$0xff] %v9648_v52  ;;  %7634 = vmatmul.msk.f32.gmra.mxu0 %vm51_vm5, %v1649_v28  ;;  %7537 = vmatmul.msk.f32.gmra.mxu3 %vm51_vm5, %v8976_v19  ;;  %v9655_v22 = vpop.permute.xlu2 %2240  ;;  %v1650_v28 = vmul.f32 %v13711_v42, %v9085_v61  ;;  %v13717_v42 = vld [vmem:[#allocation52_spill] sm:$0xff] }
 0x317   :  { %13706 = vst [vmem:[#allocation78_spill] sm:$0xff] %v9655_v22  ;;  %2668 = vperm.xlu1 %8340, %v8901_v50   ;;  %2664 = vperm.xlu2 %8338, %v8892_v49   ;;  %v9670_v22 = vpop.f32.mrf.mxu1  ;;  %v9672_v43 = vpop.f32.mrf.mxu0 }
 0x318   :  { %7659 = vmatmul.msk.f32.gmra.mxu1 %vm51_vm5, %v1868_v53  ;;  %13712 = vst [vmem:[#allocation36_spill] sm:$0xff] %v9672_v43  ;;  %v13716_v53 = vld [vmem:[#allocation54_spill] sm:$0xff] }
 0x319   :  { %v9664_v52 = vpop.permute.xlu0 %2470 }
 0x31a   :  { %13710 = vst [vmem:[#allocation55_spill] sm:$0xff] %v9664_v52  ;;  %7600 = vmatmul.msk.f32.gmra.mxu2 %vm51_vm5, %v1227_v23  ;;  %3112 = vperm.xlu0 %8344, %v9002_v33   ;;  %v1228_v52 = vmul.f32 %v13717_v42, %v13716_v53  ;;  %v9688_v43 = vpop.f32.mrf.mxu2  ;;  %v13721_v42 = vld [vmem:[#allocation53_spill] sm:$0xff] }
 0x31b   :  { %13718 = vst [vmem:[#allocation52_spill] sm:$0xff] %v9688_v43 }
 0x31e   :  { %7538 = vmatmul.msk.f32.gmra.mxu3 %vm51_vm5, %v9002_v33  ;;  %7635 = vmatmul.msk.f32.gmra.mxu0 %vm51_vm5, %v1650_v28  ;;  %v9679_v44 = vpop.permute.xlu1 %2224  ;;  %v9681_v23 = vpop.permute.xlu2 %2248  ;;  %v7669_v28 = vld [vmem:[%s13467_s7 + $0xf8] sm:$0xff] }
 0x31f   :  { %13714 = vst [vmem:[#allocation56_spill] sm:$0xff] %v9679_v44  ;;  %2680 = vperm.xlu1 %8340, %v8976_v19   ;;  %2672 = vperm.xlu2 %8338, %v8914_v54   ;;  %v9699_v30 = vpop.f32.mrf.mxu1 }
 0x320   :  { %13715 = vst [vmem:[#allocation80_spill] sm:$0xff] %v9681_v23  ;;  %7660 = vmatmul.msk.f32.gmra.mxu1 %vm51_vm5, %v1869_v31  ;;  %v13720_v23 = vld [vmem:[#allocation37_spill] sm:$0xff]  ;;  %2154 = vmatpush.msra.mxu2 %v7669_v28  ;;  %v1229_v28 = vmul.f32 %v9420_v60, %v9337_v0  ;;  %v13727_v60 = vld [vmem:[#allocation34_spill] sm:$0xff] }
 0x321   :  { %v9690_v36 = vpop.permute.xlu0 %2482  ;;  %v1651_v44 = vmul.f32 %v13720_v23, %v13682_v59  ;;  %v7668_v31 = vld [vmem:[%s13467_s7 + $0xf0] sm:$0xff]  ;;  %v9715_v23 = vpop.f32.mrf.mxu0 }
 0x322   :  { %13719 = vst [vmem:[#allocation81_spill] sm:$0xff] %v9690_v36  ;;  %7601 = vmatmul.msk.f32.gmra.mxu2 %vm51_vm5, %v1228_v52  ;;  %3124 = vperm.xlu0 %8344, %v9105_v15   ;;  %v1870_v36 = vmul.f32 %v13721_v42, %v13716_v53  ;;  %v9723_v42 = vpop.f32.mrf.mxu2 }
 0x323   :  { %13724 = vst [vmem:[#allocation82_spill] sm:$0xff] %v9715_v23  ;;  %2155 = vmatpush.msra.mxu2 %v7668_v31 }
 0x324   :  { %13725 = vst [vmem:[#allocation83_spill] sm:$0xff] %v9723_v42  ;;  %v1871_v42 = vmul.f32 %v9454_v5, %v9337_v0  ;;  %v13512_v5 = vmov 13  }
 0x326   :  { %7539 = vmatmul.msk.f32.gmra.mxu3 %vm51_vm5, %v9045_v10  ;;  %7636 = vmatmul.msk.f32.gmra.mxu0 %vm51_vm5, %v1651_v44  ;;  %v9709_v52 = vpop.permute.xlu1 %2236  ;;  %v9711_v43 = vpop.permute.xlu2 %2260  ;;  %v7667_v44 = vld [vmem:[%s13467_s7 + $0xe8] sm:$0xff] }
 0x327   :  { %13722 = vst [vmem:[#allocation37_spill] sm:$0xff] %v9709_v52  ;;  %2692 = vperm.xlu1 %8340, %v9074_v38   ;;  %2684 = vperm.xlu2 %8338, %v9002_v33   ;;  %v9734_v31 = vpop.f32.mrf.mxu1 }
 0x328   :  { %13723 = vst [vmem:[#allocation53_spill] sm:$0xff] %v9711_v43  ;;  %7661 = vmatmul.msk.f32.gmra.mxu1 %vm51_vm5, %v1870_v36  ;;  %v7666_v43 = vld [vmem:[%s13467_s7 + $0xe0] sm:$0xff]  ;;  %2156 = vmatpush.msra.mxu2 %v7667_v44  ;;  %v1652_v36 = vmul.f32 %v13727_v60, %v13687_v3  ;;  %v1230_v44 = vmul.f32 %v9428_v8, %v9387_v27 }
 0x329   :  { %v9725_v52 = vpop.permute.xlu0 %2494  ;;  %v1872_v8 = vmul.f32 %v9467_v18, %v9387_v27 }
 0x32a   :  { %13726 = vst [vmem:[#allocation84_spill] sm:$0xff] %v9725_v52  ;;  %7602 = vmatmul.msk.f32.gmra.mxu2 %vm51_vm5, %v1229_v28  ;;  %3136 = vperm.xlu0 %8344, %v8777_v25  }
 0x32b   :  { %2157 = vmatpush.msra.mxu2 %v7666_v43  ;;  %v9750_v43 = vpop.f32.mrf.mxu0 }
 0x32c   :  { %13730 = vst [vmem:[#allocation86_spill] sm:$0xff] %v9750_v43 }
 0x32e   :  { %7540 = vmatmul.msk.f32.gmra.mxu3 %vm51_vm5, %v9074_v38  ;;  %7637 = vmatmul.msk.f32.gmra.mxu0 %vm51_vm5, %v1652_v36  ;;  %v9741_v28 = vpop.permute.xlu1 %2244  ;;  %v9743_v52 = vpop.permute.xlu2 %2272 }
 0x32f   :  { %13728 = vst [vmem:[#allocation34_spill] sm:$0xff] %v9741_v28  ;;  %2704 = vperm.xlu1 %8340, %v9167_v14   ;;  %2696 = vperm.xlu2 %8338, %v9105_v15   ;;  %v9756_v36 = vpop.f32.mrf.mxu2 }
 0x330   :  { %13729 = vst [vmem:[#allocation85_spill] sm:$0xff] %v9743_v52  ;;  %7662 = vmatmul.msk.f32.gmra.mxu1 %vm51_vm5, %v1871_v42  ;;  %v13732_v52 = vld [vmem:[#allocation49_spill] sm:$0xff] }
 0x331   :  { %13731 = vst [vmem:[#allocation87_spill] sm:$0xff] %v9756_v36  ;;  %v1653_v28 = vmul.f32 %v13732_v52, %v9208_v32  ;;  %v13735_v36 = vmov 11   ;;  %v13736_v52 = vld [vmem:[#allocation10_spill] sm:$0xff] }
 0x332   :  { %8348 = vset.pattern.permute.xlu0 %v13512_v5  ;;  %v9753_v60 = vpop.permute.xlu0 %2656  ;;  %7603 = vmatmul.msk.f32.gmra.mxu2 %vm51_vm5, %v1230_v44  ;;  %v9770_v44 = vpop.f32.mrf.mxu1  ;;  %v1231_v43 = vmul.f32 %v13736_v52, %v9406_v11 }
 0x333   :  { %3298 = vperm.xlu0 %8348, %v8799_v29   ;;  %v9778_v18 = vpop.f32.mrf.mxu0 }
 0x334   :  { %13737 = vst [vmem:[#allocation10_spill] sm:$0xff] %v9778_v18 }
 0x336   :  { %7541 = vmatmul.msk.f32.gmra.mxu3 %vm51_vm5, %v9105_v15  ;;  %7638 = vmatmul.msk.f32.gmra.mxu0 %vm51_vm5, %v1653_v28  ;;  %v9766_v42 = vpop.permute.xlu1 %2256  ;;  %v9768_v5 = vpop.permute.xlu2 %2284 }
 0x337   :  { %13733 = vst [vmem:[#allocation49_spill] sm:$0xff] %v9766_v42  ;;  %8341 = vset.pattern.permute.xlu1 %v13735_v36  ;;  %2708 = vperm.xlu2 %8338, %v8777_v25   ;;  %v9786_v23 = vpop.f32.mrf.mxu2 }
 0x338   :  { %13734 = vst [vmem:[#allocation88_spill] sm:$0xff] %v9768_v5  ;;  %2866 = vperm.xlu1 %8341, %v8737_v12   ;;  %7663 = vmatmul.msk.f32.gmra.mxu1 %vm51_vm5, %v1872_v8  ;;  %v13739_v5 = vld [vmem:[#allocation51_spill] sm:$0xff]  ;;  %v7609_v8 = vld [vmem:[%s13467_s7 + $0x98] sm:$0xff] }
 0x339   :  { %v1654_v42 = vmul.f32 %v13739_v5, %v9243_v4  ;;  %13740 = vst [vmem:[#allocation51_spill] sm:$0xff] %v9786_v23  ;;  %1512 = vmatpush.msrb.mxu3 %v7609_v8  ;;  %v13742_v23 = vld [vmem:[#allocation17_spill] sm:$0xff] }
 0x33a   :  { %v9780_v28 = vpop.permute.xlu0 %2676  ;;  %7604 = vmatmul.msk.f32.gmra.mxu2 %vm51_vm5, %v1231_v43  ;;  %v1873_v43 = vmul.f32 %v9377_v41, %v9406_v11  ;;  %v1232_v18 = vmul.f32 %v13742_v23, %v9452_v1  ;;  %v13744_v23 = vld [vmem:[#allocation48_spill] sm:$0xff] }
 0x33b   :  { %13738 = vst [vmem:[#allocation89_spill] sm:$0xff] %v9780_v28  ;;  %3318 = vperm.xlu0 %8348, %v8951_v6   ;;  %v9796_v28 = vpop.f32.mrf.mxu1  ;;  %v1655_v8 = vmul.f32 %v13744_v23, %v13708_v20  ;;  %v7728_v23 = vld [vmem:[%s13467_s7 + $0x150] sm:$0xff] }
 0x33e   :  { %7542 = vmatmul.msk.f32.gmra.mxu3 %vm51_vm5, %v9138_v13  ;;  %7639 = vmatmul.msk.f32.gmra.mxu0 %vm51_vm5, %v1654_v42  ;;  %v9791_v52 = vpop.permute.xlu1 %2268  ;;  %v7608_v42 = vld [vmem:[%s13467_s7 + $0x90] sm:$0xff] }
 0x33f   :  { %13741 = vst [vmem:[#allocation90_spill] sm:$0xff] %v9791_v52  ;;  %8342 = vset.pattern.permute.xlu2 %v13735_v36  ;;  %v9801_v5 = vpop.permute.xlu2 %2446  ;;  %1513 = vmatpush.msrb.mxu3 %v7608_v42  ;;  %v7607_v36 = vld [vmem:[%s13467_s7 + $0x88] sm:$0xff]  ;;  %v9820_v52 = vpop.f32.mrf.mxu0 }
 0x340   :  { %2878 = vperm.xlu1 %8341, %v8892_v49   ;;  %2870 = vperm.xlu2 %8342, %v8799_v29   ;;  %13745 = vst [vmem:[#allocation48_spill] sm:$0xff] %v9820_v52 }
 0x341   :  { %7664 = vmatmul.msk.f32.gmra.mxu1 %vm51_vm5, %v1873_v43  ;;  %1514 = vmatpush.msrb.mxu3 %v7607_v36  ;;  %v7729_v43 = vld [vmem:[%s13467_s7 + $0x158] sm:$0xff] }
 0x342   :  { %v9811_v41 = vpop.permute.xlu0 %2688  ;;  %7605 = vmatmul.msk.f32.gmra.mxu2 %vm51_vm5, %v1232_v18  ;;  %v7606_v18 = vld [vmem:[%s13467_s7 + $0x80] sm:$0xff]  ;;  %2796 = vmatpush.msrb.mxu1 %v7729_v43  ;;  %v2073_v43 = vmul.f32 %v9489_v37, %v8853_v40 }
 0x343   :  { %13743 = vst [vmem:[#allocation17_spill] sm:$0xff] %v9811_v41  ;;  %3330 = vperm.xlu0 %8348, %v9045_v10   ;;  %1515 = vmatpush.msrb.mxu3 %v7606_v18  ;;  %v1874_v41 = vmul.f32 %v9527_v46, %v9452_v1  ;;  %v7727_v18 = vld [vmem:[%s13467_s7 + $0x148] sm:$0xff]  ;;  %v7726_v37 = vld [vmem:[%s13467_s7 + $0x140] sm:$0xff] }
 0x344   :  { %2797 = vmatpush.msrb.mxu1 %v7728_v23  ;;  %v13751_v23 = vld [vmem:[#allocation62_spill] sm:$0xff] }
 0x345   :  { %v9828_v42 = vpop.f32.mrf.mxu2 }
 0x346   :  { %13746 = vst [vmem:[#allocation91_spill] sm:$0xff] %v9828_v42  ;;  %7543 = vmatmul.msk.f32.gmra.mxu3 %vm51_vm5, %v9167_v14  ;;  %7640 = vmatmul.msk.f32.gmra.mxu0 %vm51_vm5, %v1655_v8  ;;  %v9833_v36 = vpop.permute.xlu1 %2280 }
 0x347   :  { %13747 = vst [vmem:[#allocation92_spill] sm:$0xff] %v9833_v36  ;;  %v9840_v52 = vpop.permute.xlu2 %2454  ;;  %v9851_v36 = vpop.f32.mrf.mxu1  ;;  %2798 = vmatpush.msrb.mxu1 %v7727_v18 }
 0x348   :  { %2886 = vperm.xlu1 %8341, %v8914_v54   ;;  %2882 = vperm.xlu2 %8342, %v8901_v50   ;;  %v9846_v8 = vpop.f32.mrf.mxu3  ;;  %13749 = vst [vmem:[#allocation94_spill] sm:$0xff] %v9851_v36  ;;  %v9865_v20 = vpop.f32.mrf.mxu0 }
 0x349   :  { %13748 = vst [vmem:[#allocation93_spill] sm:$0xff] %v9846_v8  ;;  %7665 = vmatmul.msk.f32.gmra.mxu1 %vm51_vm5, %v1874_v41  ;;  %v1656_v8 = vmul.f32 %v13751_v23, %v13716_v53  ;;  %v7709_v41 = vld [vmem:[%s13467_s7 + $0x138] sm:$0xff] }
 0x34a   :  { %v9854_v46 = vpop.permute.xlu0 %2700  ;;  %7670 = vmatmul.msk.f32.vlgmr.msra.gmra.mxu2 %vm51_vm5, %v2073_v43  ;;  %2799 = vmatpush.msrb.mxu1 %v7726_v37  ;;  %13752 = vst [vmem:[#allocation62_spill] sm:$0xff] %v9865_v20  ;;  %v2074_v37 = vmul.f32 %v9400_v26, %v8943_v2  ;;  %v13756_v26 = vld [vmem:[#allocation64_spill] sm:$0xff] }
 0x34b   :  { %13750 = vst [vmem:[#allocation95_spill] sm:$0xff] %v9854_v46  ;;  %3342 = vperm.xlu0 %8348, %v9138_v13   ;;  %2582 = vmatpush.msrb.mxu0 %v7709_v41  ;;  %v7707_v41 = vld [vmem:[%s13467_s7 + $0x128] sm:$0xff]  ;;  %v1657_v20 = vmul.f32 %v13756_v26, %v9337_v0  ;;  %v2075_v26 = vmul.f32 %v9552_v57, %v9029_v51 }
 0x34d   :  { %v9863_v42 = vpop.f32.mrf.mxu2 }
 0x34e   :  { %7544 = vmatmul.msk.f32.gmra.mxu3 %vm51_vm5, %v8777_v25  ;;  %7641 = vmatmul.msk.f32.gmra.mxu0 %vm51_vm5, %v1656_v8  ;;  %v7708_v8 = vld [vmem:[%s13467_s7 + $0x130] sm:$0xff] }
 0x34f   :  { %v9873_v43 = vpop.permute.xlu1 %2442  ;;  %v9875_v18 = vpop.permute.xlu2 %2466  ;;  %2583 = vmatpush.msrb.mxu0 %v7708_v8 }
 0x350   :  { %13753 = vst [vmem:[#allocation96_spill] sm:$0xff] %v9875_v18  ;;  %2898 = vperm.xlu1 %8341, %v9002_v33   ;;  %2890 = vperm.xlu2 %8342, %v8951_v6   ;;  %v9881_v23 = vpop.f32.mrf.mxu3  ;;  %v9900_v8 = vpop.f32.mrf.mxu1 }
 0x351   :  { %13754 = vst [vmem:[#allocation97_spill] sm:$0xff] %v9881_v23  ;;  %2584 = vmatpush.msrb.mxu0 %v7707_v41  ;;  %v7706_v23 = vld [vmem:[%s13467_s7 + $0x120] sm:$0xff] }
 0x352   :  { %v9886_v46 = vpop.permute.xlu0 %2712  ;;  %7671 = vmatmul.msk.f32.gmra.mxu2 %vm51_vm5, %v2074_v37  ;;  %13757 = vst [vmem:[#allocation64_spill] sm:$0xff] %v9900_v8  ;;  %v9902_v37 = vpop.f32.mrf.mxu0 }
 0x353   :  { %13755 = vst [vmem:[#allocation98_spill] sm:$0xff] %v9886_v46  ;;  %3354 = vperm.xlu0 %8348, %v8825_v34   ;;  %2585 = vmatpush.msrb.mxu0 %v7706_v23 }
 0x354   :  { %13758 = vst [vmem:[#allocation99_spill] sm:$0xff] %v9902_v37  ;;  %v13518_v37 = vmov 14  }
 0x355   :  { %v9898_v18 = vpop.f32.mrf.mxu2 }
 0x356   :  { %7545 = vmatmul.msk.f32.gmra.mxu3 %vm51_vm5, %v8825_v34  ;;  %7642 = vmatmul.msk.f32.gmra.mxu0 %vm51_vm5, %v1657_v20  ;;  %v13762_v20 = vld [vmem:[#allocation14_spill] sm:$0xff] }
 0x357   :  { %v9907_v41 = vpop.permute.xlu1 %2450  ;;  %v9909_v46 = vpop.permute.xlu2 %2478  ;;  %v1018_v53 = vmul.f32 %v13762_v20, %v9452_v1  ;;  %v2076_v20 = vmul.f32 %v9510_v62, %v9041_v9  ;;  %v13770_v62 = vld [vmem:[#allocation11_spill] sm:$0xff] }
 0x358   :  { %13759 = vst [vmem:[#allocation100_spill] sm:$0xff] %v9909_v46  ;;  %2910 = vperm.xlu1 %8341, %v9105_v15   ;;  %2902 = vperm.xlu2 %8342, %v9045_v10   ;;  %v9915_v23 = vpop.f32.mrf.mxu3  ;;  %v13763_v46 = vld [vmem:[#allocation61_spill] sm:$0xff]  ;;  %v9928_v36 = vpop.f32.mrf.mxu1 }
 0x359   :  { %13760 = vst [vmem:[#allocation101_spill] sm:$0xff] %v9915_v23  ;;  %v1658_v8 = vmul.f32 %v13763_v46, %v9387_v27 }
 0x35a   :  { %7672 = vmatmul.msk.f32.gmra.mxu2 %vm51_vm5, %v2075_v26  ;;  %13764 = vst [vmem:[#allocation14_spill] sm:$0xff] %v9928_v36  ;;  %v9938_v23 = vpop.f32.mrf.mxu0  ;;  %v1659_v36 = vmul.f32 %v13770_v62, %v9406_v11  ;;  %v13776_v62 = vld [vmem:[#allocation16_spill] sm:$0xff] }
 0x35b   :  { %8352 = vset.pattern.permute.xlu0 %v13518_v37  ;;  %v9919_v0 = vpop.permute.xlu0 %2874  ;;  %13767 = vst [vmem:[#allocation104_spill] sm:$0xff] %v9938_v23 }
 0x35c   :  { %13761 = vst [vmem:[#allocation102_spill] sm:$0xff] %v9919_v0  ;;  %3516 = vperm.xlu0 %8352, %v8865_v45  }
 0x35d   :  { %v9926_v57 = vpop.f32.mrf.mxu2 }
 0x35e   :  { %7585 = vmatmul.msk.f32.vlgmr.msra.gmra.mxu3 %vm51_vm5, %v1018_v53  ;;  %7643 = vmatmul.msk.f32.gmra.mxu0 %vm51_vm5, %v1658_v8 }
 0x35f   :  { %v9932_v26 = vpop.permute.xlu1 %2462  ;;  %v9934_v37 = vpop.permute.xlu2 %2490 }
 0x360   :  { %13765 = vst [vmem:[#allocation61_spill] sm:$0xff] %v9932_v26  ;;  %2922 = vperm.xlu1 %8341, %v8777_v25   ;;  %2914 = vperm.xlu2 %8342, %v9138_v13   ;;  %v677_v46 = vpop.f32.mrf.mxu3 }
 0x361   :  { %13766 = vst [vmem:[#allocation103_spill] sm:$0xff] %v9934_v37  ;;  %v678_v0 = vadd.f32 %v677_v46, %v9477_v58  ;;  %v13769_v37 = vld [vmem:[#allocation7_spill] sm:$0xff] }
 0x362   :  { %7673 = vmatmul.msk.f32.gmra.mxu2 %vm51_vm5, %v2076_v20  ;;  %v1431_v27 = vmul.f32 %v13769_v37, %v8853_v40  ;;  %v2077_v37 = vmul.f32 %v9576_v21, %v9070_v24  ;;  %v13772_v20 = vmov 12   ;;  %v9969_v46 = vpop.f32.mrf.mxu0  ;;  %v13775_v21 = vld [vmem:[#allocation15_spill] sm:$0xff] }
 0x363   :  { %v923_v53 = vadd.f32 %v9569_v17, %v678_v0  ;;  %v9945_v8 = vpop.permute.xlu0 %2894  ;;  %v9962_v17 = vpop.f32.mrf.mxu1  ;;  %13773 = vst [vmem:[#allocation11_spill] sm:$0xff] %v9969_v46 }
 0x364   :  { %13768 = vst [vmem:[#allocation105_spill] sm:$0xff] %v9945_v8  ;;  %3536 = vperm.xlu0 %8352, %v8976_v19   ;;  %v1660_v8 = vmul.f32 %v13776_v62, %v9452_v1 }
 0x365   :  { %v9952_v23 = vpop.f32.mrf.mxu2  ;;  %v1137_v26 = vadd.f32 %v9642_v56, %v923_v53  ;;  %v1432_v53 = vmul.f32 %v13775_v21, %v8943_v2 }
 0x366   :  { %7610 = vmatmul.msk.f32.vlgmr.msrb.gmra.mxu3 %vm51_vm5, %v1431_v27  ;;  %7644 = vmatmul.msk.f32.gmra.mxu0 %vm51_vm5, %v1659_v36 }
 0x367   :  { %v9957_v58 = vpop.permute.xlu1 %2474  ;;  %v9960_v0 = vadd.f32 %v9863_v42, %v1137_v26 }
 0x368   :  { %8345 = vset.pattern.permute.xlu1 %v13772_v20  ;;  %2926 = vperm.xlu2 %8342, %v8825_v34  }
 0x369   :  { %13771 = vst [vmem:[#allocation7_spill] sm:$0xff] %v9960_v0  ;;  %3084 = vperm.xlu1 %8345, %v8799_v29   ;;  %v680_v56 = vpop.f32.mrf.mxu3  ;;  %v2653_v27 = vpop.permute.xlu2 %2652 }
 0x36a   :  { %v681_v36 = vadd.f32 %v680_v56, %v9497_v48  ;;  %v2715_v42 = vmul.f32 %v2653_v27, %v8853_v40  ;;  %7674 = vmatmul.msk.f32.gmra.mxu2 %vm51_vm5, %v2077_v37  ;;  %v2078_v56 = vmul.f32 %v9533_v55, %v9085_v61 }
 0x36b   :  { %v9974_v26 = vpop.permute.xlu0 %2906 }
 0x36c   :  { %13774 = vst [vmem:[#allocation106_spill] sm:$0xff] %v9974_v26  ;;  %v924_v0 = vadd.f32 %v9591_v39, %v681_v36  ;;  %7730 = vmatmul.msk.f32.vlgmr.msrb.gmra.mxu1 %vm51_vm5, %v2715_v42  ;;  %3548 = vperm.xlu0 %8352, %v9074_v38   ;;  %v2501_v42 = vmul.f32 %v9612_v7, %v8853_v40 }
 0x36d   :  { %v9983_v46 = vpop.f32.mrf.mxu2  ;;  %v2079_v7 = vmul.f32 %v9415_v35, %v13682_v59  ;;  %v2502_v35 = vmul.f32 %v9873_v43, %v8943_v2  ;;  %v13784_v43 = vld [vmem:[#allocation43_spill] sm:$0xff] }
 0x36e   :  { %7611 = vmatmul.msk.f32.gmra.mxu3 %vm51_vm5, %v1432_v53  ;;  %7645 = vmatmul.msk.f32.gmra.mxu0 %vm51_vm5, %v1660_v8  ;;  %v1138_v48 = vadd.f32 %v9670_v22, %v924_v0  ;;  %v10000_v8 = vpop.f32.mrf.mxu1  ;;  %v2716_v22 = vmul.f32 %v9753_v60, %v8943_v2  ;;  %v10004_v0 = vpop.f32.mrf.mxu0 }
 0x36f   :  { %v9988_v37 = vpop.permute.xlu1 %2486 }
 0x370   :  { %8346 = vset.pattern.permute.xlu2 %v13772_v20  ;;  %v9994_v39 = vadd.f32 %v9898_v18, %v1138_v48  ;;  %v13778_v18 = vld [vmem:[#allocation20_spill] sm:$0xff] }
 0x371   :  { %3092 = vperm.xlu1 %8345, %v8892_v49   ;;  %3088 = vperm.xlu2 %8346, %v8865_v45   ;;  %v683_v27 = vpop.f32.mrf.mxu3  ;;  %v9998_v36 = vpop.permute.xlu2 %2664  ;;  %v1433_v20 = vmul.f32 %v13778_v18, %v9029_v51  ;;  %v13782_v18 = vld [vmem:[#allocation28_spill] sm:$0xff] }
 0x372   :  { %13777 = vst [vmem:[#allocation15_spill] sm:$0xff] %v9994_v39  ;;  %v684_v55 = vadd.f32 %v683_v27, %v9518_v63  ;;  %7675 = vmatmul.msk.f32.gmra.mxu2 %vm51_vm5, %v2078_v56  ;;  %v13816_v39 = vld [vmem:[#allocation12_spill] sm:$0xff] }
 0x373   :  { %v10013_v53 = vpop.permute.xlu0 %2918 }
 0x374   :  { %v925_v21 = vadd.f32 %v9616_v16, %v684_v55  ;;  %13779 = vst [vmem:[#allocation16_spill] sm:$0xff] %v10013_v53  ;;  %7731 = vmatmul.msk.f32.gmra.mxu1 %vm51_vm5, %v2716_v22  ;;  %3560 = vperm.xlu0 %8352, %v9167_v14  }
 0x375   :  { %v10017_v60 = vpop.f32.mrf.mxu2 }
 0x376   :  { %7612 = vmatmul.msk.f32.gmra.mxu3 %vm51_vm5, %v1433_v20  ;;  %7710 = vmatmul.msk.f32.vlgmr.msrb.gmra.mxu0 %vm51_vm5, %v2501_v42  ;;  %v1139_v63 = vadd.f32 %v9699_v30, %v925_v21  ;;  %v10033_v27 = vpop.f32.mrf.mxu1  ;;  %v13781_v30 = vld [vmem:[#allocation21_spill] sm:$0xff]  ;;  %v13522_v42 = vmov 15  }
 0x377   :  { %v10022_v62 = vpop.permute.xlu1 %2498  ;;  %v1434_v55 = vmul.f32 %v13781_v30, %v9041_v9 }
 0x378   :  { %v10027_v16 = vadd.f32 %v9926_v57, %v1139_v63  ;;  %v10041_v57 = vpop.f32.mrf.mxu0 }
 0x379   :  { %3104 = vperm.xlu1 %8345, %v8951_v6   ;;  %3096 = vperm.xlu2 %8346, %v8901_v50   ;;  %v686_v48 = vpop.f32.mrf.mxu3  ;;  %v10031_v56 = vpop.permute.xlu2 %2672 }
 0x37a   :  { %13780 = vst [vmem:[#allocation20_spill] sm:$0xff] %v10027_v16  ;;  %v687_v22 = vadd.f32 %v686_v48, %v9541_v47  ;;  %7676 = vmatmul.msk.f32.gmra.mxu2 %vm51_vm5, %v2079_v7  ;;  %v2080_v7 = vmul.f32 %v13784_v43, %v13687_v3  ;;  %v13811_v16 = vld [vmem:[#allocation10_spill] sm:$0xff] }
 0x37c   :  { %v926_v20 = vadd.f32 %v13782_v18, %v687_v22  ;;  %8353 = vset.pattern.permute.xlu0 %v13522_v42  ;;  %v10048_v47 = vpop.permute.xlu0 %3080  ;;  %v13786_v42 = vld [vmem:[#allocation74_spill] sm:$0xff] }
 0x37d   :  { %v10045_v21 = vpop.f32.mrf.mxu2  ;;  %3722 = vperm.xlu0 %8353, %v8737_v12   ;;  %13783 = vst [vmem:[#allocation21_spill] sm:$0xff] %v10048_v47 }
 0x37e   :  { %7613 = vmatmul.msk.f32.gmra.mxu3 %vm51_vm5, %v1434_v55  ;;  %7711 = vmatmul.msk.f32.gmra.mxu0 %vm51_vm5, %v2502_v35  ;;  %v1140_v63 = vadd.f32 %v9734_v31, %v926_v20  ;;  %v13787_v31 = vld [vmem:[#allocation31_spill] sm:$0xff]  ;;  %v10067_v20 = vpop.f32.mrf.mxu1 }
 0x37f   :  { %v1435_v35 = vmul.f32 %v13787_v31, %v9070_v24 }
 0x380   :  { %v10056_v48 = vadd.f32 %v9952_v23, %v1140_v63  ;;  %v2503_v23 = vmul.f32 %v9801_v5, %v9029_v51  ;;  %v13788_v63 = vld [vmem:[#allocation36_spill] sm:$0xff] }
 0x381   :  { %3116 = vperm.xlu1 %8345, %v9045_v10   ;;  %v2661_v22 = vpop.permute.xlu1 %2660  ;;  %3108 = vperm.xlu2 %8346, %v8976_v19   ;;  %v689_v30 = vpop.f32.mrf.mxu3 }
 0x382   :  { %13785 = vst [vmem:[#allocation28_spill] sm:$0xff] %v10056_v48  ;;  %v2717_v18 = vmul.f32 %v2661_v22, %v9029_v51  ;;  %v690_v55 = vadd.f32 %v689_v30, %v13786_v42  ;;  %v10062_v47 = vpop.permute.xlu2 %2684  ;;  %7677 = vmatmul.msk.f32.gmra.mxu2 %vm51_vm5, %v2080_v7  ;;  %v10076_v42 = vpop.f32.mrf.mxu0  ;;  %v13789_v22 = vld [vmem:[#allocation27_spill] sm:$0xff] }
 0x383   :  { %v2081_v30 = vmul.f32 %v13789_v22, %v9208_v32 }
 0x384   :  { %v927_v43 = vadd.f32 %v13788_v63, %v690_v55  ;;  %7732 = vmatmul.msk.f32.gmra.mxu1 %vm51_vm5, %v2717_v18  ;;  %v10083_v5 = vpop.permute.xlu0 %3100 }
 0x385   :  { %v10073_v53 = vpop.f32.mrf.mxu2  ;;  %3742 = vperm.xlu0 %8353, %v8914_v54   ;;  %13790 = vst [vmem:[#allocation43_spill] sm:$0xff] %v10083_v5 }
 0x386   :  { %7614 = vmatmul.msk.f32.gmra.mxu3 %vm51_vm5, %v1435_v35  ;;  %7712 = vmatmul.msk.f32.gmra.mxu0 %vm51_vm5, %v2503_v23  ;;  %v1141_v7 = vadd.f32 %v9770_v44, %v927_v43  ;;  %v2718_v35 = vmul.f32 %v9998_v36, %v9041_v9  ;;  %v13792_v23 = vld [vmem:[#allocation22_spill] sm:$0xff]  ;;  %v13793_v43 = vld [vmem:[#allocation32_spill] sm:$0xff]  ;;  %v10103_v26 = vpop.f32.mrf.mxu1 }
 0x387   :  { %v1436_v22 = vmul.f32 %v13793_v43, %v9085_v61 }
 0x388   :  { %v10086_v55 = vadd.f32 %v9983_v46, %v1141_v7  ;;  %v2504_v46 = vmul.f32 %v9907_v41, %v9041_v9  ;;  %v13794_v7 = vld [vmem:[#allocation82_spill] sm:$0xff] }
 0x389   :  { %3128 = vperm.xlu1 %8345, %v9138_v13   ;;  %v2669_v18 = vpop.permute.xlu1 %2668  ;;  %3120 = vperm.xlu2 %8346, %v9074_v38   ;;  %v692_v31 = vpop.f32.mrf.mxu3 }
 0x38a   :  { %13791 = vst [vmem:[#allocation74_spill] sm:$0xff] %v10086_v55  ;;  %v693_v63 = vadd.f32 %v692_v31, %v13792_v23  ;;  %v10093_v44 = vpop.permute.xlu2 %2696  ;;  %7678 = vmatmul.msk.f32.gmra.mxu2 %vm51_vm5, %v2081_v30  ;;  %v13795_v31 = vld [vmem:[#allocation66_spill] sm:$0xff]  ;;  %v10112_v41 = vpop.f32.mrf.mxu0 }
 0x38b   :  { %v2082_v23 = vmul.f32 %v13795_v31, %v9243_v4  ;;  %13796 = vst [vmem:[#allocation31_spill] sm:$0xff] %v10112_v41  ;;  %v2505_v31 = vmul.f32 %v9840_v52, %v9070_v24  ;;  %v13804_v52 = vld [vmem:[#allocation50_spill] sm:$0xff]  ;;  %v13819_v41 = vld [vmem:[#allocation52_spill] sm:$0xff] }
 0x38c   :  { %v928_v5 = vadd.f32 %v13794_v7, %v693_v63  ;;  %7733 = vmatmul.msk.f32.gmra.mxu1 %vm51_vm5, %v2718_v35 }
 0x38d   :  { %3754 = vperm.xlu0 %8353, %v9002_v33   ;;  %v10105_v36 = vpop.f32.mrf.mxu2 }
 0x38e   :  { %7615 = vmatmul.msk.f32.gmra.mxu3 %vm51_vm5, %v1436_v22  ;;  %7713 = vmatmul.msk.f32.gmra.mxu0 %vm51_vm5, %v2504_v46  ;;  %v1142_v30 = vadd.f32 %v9796_v28, %v928_v5  ;;  %v2719_v22 = vmul.f32 %v2669_v18, %v9070_v24  ;;  %v13798_v46 = vld [vmem:[#allocation39_spill] sm:$0xff]  ;;  %v10126_v5 = vpop.permute.xlu0 %3112  ;;  %v13802_v18 = vld [vmem:[#allocation94_spill] sm:$0xff] }
 0x38f   :  { %13799 = vst [vmem:[#allocation27_spill] sm:$0xff] %v10126_v5  ;;  %v13805_v5 = vld [vmem:[#allocation26_spill] sm:$0xff] }
 0x390   :  { %v10115_v63 = vadd.f32 %v10017_v60, %v1142_v30  ;;  %v13800_v60 = vld [vmem:[#allocation29_spill] sm:$0xff] }
 0x391   :  { %3140 = vperm.xlu1 %8345, %v8825_v34   ;;  %v10118_v35 = vpop.permute.xlu1 %2680  ;;  %3132 = vperm.xlu2 %8346, %v9167_v14   ;;  %v695_v43 = vpop.f32.mrf.mxu3  ;;  %v1437_v30 = vmul.f32 %v13800_v60, %v13682_v59 }
 0x392   :  { %13797 = vst [vmem:[#allocation36_spill] sm:$0xff] %v10115_v63  ;;  %v696_v7 = vadd.f32 %v695_v43, %v13798_v46  ;;  %v10123_v28 = vpop.permute.xlu2 %2708  ;;  %7679 = vmatmul.msk.f32.gmra.mxu2 %vm51_vm5, %v2082_v23  ;;  %v13801_v63 = vld [vmem:[#allocation86_spill] sm:$0xff]  ;;  %v10138_v43 = vpop.f32.mrf.mxu1 }
 0x394   :  { %v929_v55 = vadd.f32 %v13801_v63, %v696_v7  ;;  %7734 = vmatmul.msk.f32.gmra.mxu1 %vm51_vm5, %v2719_v22  ;;  %v2083_v63 = vmul.f32 %v13805_v5, %v13804_v52  ;;  %v13806_v7 = vmov 13   ;;  %v13809_v5 = vld [vmem:[#allocation45_spill] sm:$0xff] }
 0x395   :  { %3766 = vperm.xlu0 %8353, %v9105_v15   ;;  %v10140_v46 = vpop.f32.mrf.mxu2 }
 0x396   :  { %7616 = vmatmul.msk.f32.gmra.mxu3 %vm51_vm5, %v1437_v30  ;;  %7714 = vmatmul.msk.f32.gmra.mxu0 %vm51_vm5, %v2505_v31  ;;  %v1143_v23 = vadd.f32 %v13802_v18, %v929_v55  ;;  %v2720_v55 = vmul.f32 %v10031_v56, %v9085_v61  ;;  %v13807_v31 = vld [vmem:[#allocation79_spill] sm:$0xff] }
 0x398   :  { %v10143_v60 = vadd.f32 %v10045_v21, %v1143_v23  ;;  %v10158_v23 = vpop.f32.mrf.mxu0 }
 0x399   :  { %8349 = vset.pattern.permute.xlu1 %v13806_v7  ;;  %v10148_v22 = vpop.permute.xlu1 %2692  ;;  %8347 = vset.pattern.permute.xlu2 %v13806_v7  ;;  %v698_v30 = vpop.f32.mrf.mxu3  ;;  %13808 = vst [vmem:[#allocation32_spill] sm:$0xff] %v10158_v23  ;;  %v13810_v7 = vld [vmem:[#allocation76_spill] sm:$0xff] }
 0x39a   :  { %13803 = vst [vmem:[#allocation22_spill] sm:$0xff] %v10143_v60  ;;  %v699_v18 = vadd.f32 %v698_v30, %v13807_v31  ;;  %3302 = vperm.xlu1 %8349, %v8865_v45   ;;  %3294 = vperm.xlu2 %8347, %v8737_v12   ;;  %v10156_v21 = vpop.permute.xlu2 %2870  ;;  %v1438_v60 = vmul.f32 %v13809_v5, %v13687_v3  ;;  %v10167_v30 = vpop.permute.xlu0 %3124  ;;  %v13813_v31 = vld [vmem:[#allocation64_spill] sm:$0xff]  ;;  %v13815_v5 = vld [vmem:[#allocation54_spill] sm:$0xff] }
 0x39b   :  { %7680 = vmatmul.msk.f32.gmra.mxu2 %vm51_vm5, %v2083_v63  ;;  %v2506_v48 = vmul.f32 %v13810_v7, %v9085_v61  ;;  %13812 = vst [vmem:[#allocation82_spill] sm:$0xff] %v10167_v30  ;;  %v2084_v7 = vmul.f32 %v13816_v39, %v13815_v5  ;;  %v10182_v30 = vpop.f32.mrf.mxu1  ;;  %v13820_v39 = vld [vmem:[#allocation47_spill] sm:$0xff] }
 0x39c   :  { %v930_v56 = vadd.f32 %v13811_v16, %v699_v18  ;;  %7735 = vmatmul.msk.f32.gmra.mxu1 %vm51_vm5, %v2720_v55  ;;  %v13817_v55 = vld [vmem:[#allocation89_spill] sm:$0xff]  ;;  %13818 = vst [vmem:[#allocation39_spill] sm:$0xff] %v10182_v30 }
 0x39d   :  { %3778 = vperm.xlu0 %8353, %v8777_v25   ;;  %v2721_v18 = vmul.f32 %v13817_v55, %v13682_v59  ;;  %v13822_v55 = vld [vmem:[#allocation48_spill] sm:$0xff] }
 0x39e   :  { %7617 = vmatmul.msk.f32.gmra.mxu3 %vm51_vm5, %v1438_v60  ;;  %7715 = vmatmul.msk.f32.gmra.mxu0 %vm51_vm5, %v2506_v48  ;;  %v1144_v63 = vadd.f32 %v13813_v31, %v930_v56  ;;  %v1439_v56 = vmul.f32 %v13820_v39, %v9208_v32  ;;  %v13821_v31 = vld [vmem:[#allocation61_spill] sm:$0xff] }
 0x3a0   :  { %v10174_v23 = vadd.f32 %v10073_v53, %v1144_v63  ;;  %v10189_v53 = vpop.f32.mrf.mxu2  ;;  %v2507_v63 = vmul.f32 %v13821_v31, %v13682_v59  ;;  %v10204_v30 = vpop.f32.mrf.mxu0  ;;  %v7747_v31 = vld [vmem:[%s13467_s7 + $0x168] sm:$0xff] }
 0x3a1   :  { %v10178_v61 = vpop.permute.xlu1 %2704  ;;  %v701_v16 = vpop.f32.mrf.mxu3  ;;  %13823 = vst [vmem:[#allocation29_spill] sm:$0xff] %v10204_v30 }
 0x3a2   :  { %13814 = vst [vmem:[#allocation66_spill] sm:$0xff] %v10174_v23  ;;  %v702_v60 = vadd.f32 %v701_v16, %v13819_v41  ;;  %3310 = vperm.xlu1 %8349, %v8901_v50   ;;  %3306 = vperm.xlu2 %8347, %v8892_v49   ;;  %v10187_v48 = vpop.permute.xlu2 %2882  ;;  %v7749_v41 = vld [vmem:[%s13467_s7 + $0x178] sm:$0xff]  ;;  %v7748_v16 = vld [vmem:[%s13467_s7 + $0x170] sm:$0xff]  ;;  %v10210_v39 = vpop.permute.xlu0 %3136 }
 0x3a3   :  { %7681 = vmatmul.msk.f32.gmra.mxu2 %vm51_vm5, %v2084_v7  ;;  %v13526_v7 = vmov 16   ;;  %13825 = vst [vmem:[#allocation86_spill] sm:$0xff] %v10210_v39 }
 0x3a4   :  { %v931_v23 = vadd.f32 %v13822_v55, %v702_v60  ;;  %7736 = vmatmul.msk.f32.gmra.mxu1 %vm51_vm5, %v2721_v18  ;;  %3010 = vmatpush.msrb.mxu2 %v7749_v41  ;;  %v13824_v60 = vld [vmem:[#allocation14_spill] sm:$0xff]  ;;  %v13828_v41 = vld [vmem:[#allocation68_spill] sm:$0xff] }
 0x3a5   :  { %8357 = vset.pattern.permute.xlu0 %v13526_v7  ;;  %v13827_v7 = vld [vmem:[#allocation59_spill] sm:$0xff] }
 0x3a6   :  { %7618 = vmatmul.msk.f32.gmra.mxu3 %vm51_vm5, %v1439_v56  ;;  %7716 = vmatmul.msk.f32.gmra.mxu0 %vm51_vm5, %v2507_v63  ;;  %v1145_v18 = vadd.f32 %v13824_v60, %v931_v23  ;;  %v2085_v30 = vmul.f32 %v13828_v41, %v13827_v7  ;;  %v2722_v23 = vmul.f32 %v10118_v35, %v13687_v3  ;;  %v13829_v63 = vld [vmem:[#allocation83_spill] sm:$0xff]  ;;  %v13832_v35 = vld [vmem:[#allocation96_spill] sm:$0xff] }
 0x3a7   :  { %3940 = vperm.xlu0 %8357, %v8799_v29   ;;  %3011 = vmatpush.msrb.mxu2 %v7748_v16  ;;  %v2508_v41 = vmul.f32 %v13832_v35, %v13687_v3  ;;  %v13836_v35 = vld [vmem:[#allocation63_spill] sm:$0xff]  ;;  %v13837_v3 = vld [vmem:[#allocation77_spill] sm:$0xff] }
 0x3a8   :  { %v10217_v55 = vadd.f32 %v10105_v36, %v1145_v18  ;;  %v7746_v36 = vld [vmem:[%s13467_s7 + $0x160] sm:$0xff]  ;;  %v13831_v18 = vld [vmem:[#allocation44_spill] sm:$0xff]  ;;  %v10245_v59 = vpop.f32.mrf.mxu0 }
 0x3a9   :  { %v704_v56 = vpop.f32.mrf.mxu3  ;;  %3012 = vmatpush.msrb.mxu2 %v7747_v31  ;;  %v1440_v31 = vmul.f32 %v13831_v18, %v9243_v4  ;;  %13834 = vst [vmem:[#allocation79_spill] sm:$0xff] %v10245_v59  ;;  %v13842_v59 = vld [vmem:[#allocation99_spill] sm:$0xff] }
 0x3aa   :  { %13826 = vst [vmem:[#allocation94_spill] sm:$0xff] %v10217_v55  ;;  %v705_v60 = vadd.f32 %v704_v56, %v13829_v63  ;;  %3322 = vperm.xlu1 %8349, %v8976_v19   ;;  %v10225_v16 = vpop.permute.xlu1 %2866  ;;  %3314 = vperm.xlu2 %8347, %v8914_v54   ;;  %v10228_v39 = vpop.permute.xlu2 %2890  ;;  %v13833_v63 = vld [vmem:[#allocation62_spill] sm:$0xff] }
 0x3ab   :  { %13830 = vst [vmem:[#allocation26_spill] sm:$0xff] %v10228_v39  ;;  %7682 = vmatmul.msk.f32.gmra.mxu2 %vm51_vm5, %v2085_v30  ;;  %v10238_v56 = vpop.f32.mrf.mxu1  ;;  %v1336_v39 = vpop.f32.mrf.mxu2 }
 0x3ac   :  { %v932_v55 = vadd.f32 %v13833_v63, %v705_v60  ;;  %7737 = vmatmul.msk.f32.gmra.mxu1 %vm51_vm5, %v2722_v23  ;;  %3013 = vmatpush.msrb.mxu2 %v7746_v36  ;;  %v2086_v60 = vmul.f32 %v13837_v3, %v13836_v35  ;;  %v10253_v63 = vpop.permute.xlu0 %3298  ;;  %v2723_v36 = vmul.f32 %v10062_v47, %v9208_v32  ;;  %v13840_v3 = vld [vmem:[#allocation58_spill] sm:$0xff] }
 0x3ae   :  { %7619 = vmatmul.msk.f32.gmra.mxu3 %vm51_vm5, %v1440_v31  ;;  %7717 = vmatmul.msk.f32.gmra.mxu0 %vm51_vm5, %v2508_v41  ;;  %v1146_v30 = vadd.f32 %v9962_v17, %v932_v55  ;;  %v13838_v31 = vld [vmem:[#allocation87_spill] sm:$0xff] }
 0x3af   :  { %3960 = vperm.xlu0 %8357, %v8951_v6  }
 0x3b0   :  { %v10249_v18 = vadd.f32 %v10140_v46, %v1146_v30  ;;  %v1441_v46 = vmul.f32 %v13840_v3, %v13804_v52  ;;  %v13841_v30 = vld [vmem:[#allocation55_spill] sm:$0xff] }
 0x3b1   :  { %v707_v23 = vpop.f32.mrf.mxu3  ;;  %v13845_v3 = vld [vmem:[#allocation75_spill] sm:$0xff] }
 0x3b2   :  { %13835 = vst [vmem:[#allocation45_spill] sm:$0xff] %v10249_v18  ;;  %v708_v41 = vadd.f32 %v707_v23, %v13838_v31  ;;  %3334 = vperm.xlu1 %8349, %v9074_v38   ;;  %v10259_v17 = vpop.permute.xlu1 %2878  ;;  %3326 = vperm.xlu2 %8347, %v9002_v33   ;;  %v10262_v55 = vpop.permute.xlu2 %2902  ;;  %v2509_v18 = vmul.f32 %v13841_v30, %v9208_v32 }
 0x3b3   :  { %13839 = vst [vmem:[#allocation76_spill] sm:$0xff] %v10262_v55  ;;  %7683 = vmatmul.msk.f32.gmra.mxu2 %vm51_vm5, %v2086_v60  ;;  %v10271_v23 = vpop.f32.mrf.mxu1  ;;  %v1339_v55 = vpop.f32.mrf.mxu2  ;;  %v2087_v30 = vmul.f32 %v13845_v3, %v9406_v11  ;;  %v2510_v3 = vmul.f32 %v9957_v58, %v9243_v4 }
 0x3b4   :  { %v933_v47 = vadd.f32 %v13842_v59, %v708_v41  ;;  %7738 = vmatmul.msk.f32.gmra.mxu1 %vm51_vm5, %v2723_v36  ;;  %13843 = vst [vmem:[#allocation10_spill] sm:$0xff] %v10271_v23  ;;  %v10282_v59 = vpop.f32.mrf.mxu0  ;;  %v13846_v41 = vld [vmem:[#allocation17_spill] sm:$0xff] }
 0x3b5   :  { %v2724_v32 = vmul.f32 %v13846_v41, %v9243_v4  ;;  %v13851_v41 = vld [vmem:[#allocation104_spill] sm:$0xff] }
 0x3b6   :  { %7620 = vmatmul.msk.f32.gmra.mxu3 %vm51_vm5, %v1441_v46  ;;  %7718 = vmatmul.msk.f32.gmra.mxu0 %vm51_vm5, %v2509_v18  ;;  %v1147_v31 = vadd.f32 %v10000_v8, %v933_v47  ;;  %v13847_v46 = vld [vmem:[#allocation51_spill] sm:$0xff]  ;;  %v13850_v47 = vld [vmem:[#allocation60_spill] sm:$0xff] }
 0x3b7   :  { %3972 = vperm.xlu0 %8357, %v9045_v10  }
 0x3b8   :  { %v10278_v60 = vadd.f32 %v10189_v53, %v1147_v31  ;;  %v10293_v53 = vpop.permute.xlu0 %3318  ;;  %v1442_v31 = vmul.f32 %v13850_v47, %v13815_v5 }
 0x3b9   :  { %v710_v36 = vpop.f32.mrf.mxu3  ;;  %13849 = vst [vmem:[#allocation89_spill] sm:$0xff] %v10293_v53  ;;  %v13855_v53 = vmov 14  }
 0x3ba   :  { %13844 = vst [vmem:[#allocation64_spill] sm:$0xff] %v10278_v60  ;;  %v711_v23 = vadd.f32 %v710_v36, %v13847_v46  ;;  %3346 = vperm.xlu1 %8349, %v9167_v14   ;;  %v10288_v8 = vpop.permute.xlu1 %2886  ;;  %3338 = vperm.xlu2 %8347, %v9105_v15   ;;  %v10291_v18 = vpop.permute.xlu2 %2914 }
 0x3bb   :  { %13848 = vst [vmem:[#allocation12_spill] sm:$0xff] %v10291_v18  ;;  %7684 = vmatmul.msk.f32.gmra.mxu2 %vm51_vm5, %v2087_v30  ;;  %v7689_v30 = vld [vmem:[%s13467_s7 + $0x118] sm:$0xff]  ;;  %v10309_v47 = vpop.f32.mrf.mxu1 }
 0x3bc   :  { %v934_v36 = vadd.f32 %v13851_v41, %v711_v23  ;;  %7739 = vmatmul.msk.f32.gmra.mxu1 %vm51_vm5, %v2724_v32  ;;  %2368 = vmatpush.msra.mxu3 %v7689_v30  ;;  %v13853_v23 = vld [vmem:[#allocation69_spill] sm:$0xff]  ;;  %v1342_v41 = vpop.f32.mrf.mxu2 }
 0x3bd   :  { %v2088_v32 = vmul.f32 %v13853_v23, %v9452_v1  ;;  %v13858_v30 = vld [vmem:[#allocation57_spill] sm:$0xff] }
 0x3be   :  { %7621 = vmatmul.msk.f32.gmra.mxu3 %vm51_vm5, %v1442_v31  ;;  %7719 = vmatmul.msk.f32.gmra.mxu0 %vm51_vm5, %v2510_v3  ;;  %v1148_v46 = vadd.f32 %v10033_v27, %v934_v36  ;;  %v7688_v27 = vld [vmem:[%s13467_s7 + $0x110] sm:$0xff]  ;;  %v2725_v3 = vmul.f32 %v10148_v22, %v13804_v52  ;;  %v13854_v36 = vld [vmem:[#allocation91_spill] sm:$0xff]  ;;  %v1443_v23 = vmul.f32 %v13858_v30, %v13827_v7 }
 0x3bf   :  { %3984 = vperm.xlu0 %8357, %v9138_v13   ;;  %v13859_v22 = vld [vmem:[#allocation100_spill] sm:$0xff]  ;;  %2369 = vmatpush.msra.mxu3 %v7688_v27 }
 0x3c0   :  { %v10311_v58 = vadd.f32 %v1336_v39, %v1148_v46  ;;  %v10327_v46 = vpop.f32.mrf.mxu0 }
 0x3c1   :  { %v713_v31 = vpop.f32.mrf.mxu3  ;;  %13857 = vst [vmem:[#allocation61_spill] sm:$0xff] %v10327_v46  ;;  %v10340_v46 = vpop.permute.xlu0 %3330 }
 0x3c2   :  { %13852 = vst [vmem:[#allocation52_spill] sm:$0xff] %v10311_v58  ;;  %v714_v60 = vadd.f32 %v713_v31, %v13854_v36  ;;  %8350 = vset.pattern.permute.xlu1 %v13855_v53  ;;  %v10322_v18 = vpop.permute.xlu1 %2898  ;;  %3350 = vperm.xlu2 %8347, %v8777_v25   ;;  %v10325_v39 = vpop.permute.xlu2 %2926  ;;  %v2511_v31 = vmul.f32 %v13859_v22, %v13804_v52  ;;  %v13860_v36 = vld [vmem:[#allocation11_spill] sm:$0xff]  ;;  %v13861_v22 = vld [vmem:[#allocation93_spill] sm:$0xff] }
 0x3c3   :  { %13856 = vst [vmem:[#allocation47_spill] sm:$0xff] %v10325_v39  ;;  %3508 = vperm.xlu1 %8350, %v8737_v12   ;;  %7685 = vmatmul.msk.f32.gmra.mxu2 %vm51_vm5, %v2088_v32  ;;  %v7687_v39 = vld [vmem:[%s13467_s7 + $0x108] sm:$0xff]  ;;  %v7686_v32 = vld [vmem:[%s13467_s7 + $0x100] sm:$0xff] }
 0x3c4   :  { %v935_v58 = vadd.f32 %v13860_v36, %v714_v60  ;;  %7740 = vmatmul.msk.f32.gmra.mxu1 %vm51_vm5, %v2725_v3  ;;  %2370 = vmatpush.msra.mxu3 %v7687_v39  ;;  %v2726_v3 = vmul.f32 %v10093_v44, %v13815_v5  ;;  %v13864_v44 = vld [vmem:[#allocation81_spill] sm:$0xff] }
 0x3c6   :  { %7622 = vmatmul.msk.f32.gmra.mxu3 %vm51_vm5, %v1443_v23  ;;  %7720 = vmatmul.msk.f32.gmra.mxu0 %vm51_vm5, %v2511_v31  ;;  %v1149_v30 = vadd.f32 %v10067_v20, %v935_v58  ;;  %v2929_v23 = vmul.f32 %v10225_v16, %v8853_v40  ;;  %v1345_v20 = vpop.f32.mrf.mxu2  ;;  %v13863_v58 = vld [vmem:[#allocation70_spill] sm:$0xff]  ;;  %v10367_v16 = vpop.f32.mrf.mxu1 }
 0x3c7   :  { %3996 = vperm.xlu0 %8357, %v8825_v34   ;;  %2371 = vmatpush.msra.mxu3 %v7686_v32  ;;  %v1444_v39 = vmul.f32 %v13863_v58, %v13836_v35  ;;  %v2512_v32 = vmul.f32 %v13864_v44, %v13815_v5  ;;  %v13532_v58 = vmov 17   ;;  %v13868_v44 = vld [vmem:[#allocation97_spill] sm:$0xff] }
 0x3c8   :  { %v10349_v60 = vadd.f32 %v1339_v55, %v1149_v30 }
 0x3c9   :  { %v716_v27 = vpop.f32.mrf.mxu3 }
 0x3ca   :  { %v717_v31 = vadd.f32 %v716_v27, %v13861_v22  ;;  %v10356_v36 = vpop.permute.xlu1 %2910  ;;  %8351 = vset.pattern.permute.xlu2 %v13855_v53  ;;  %v10372_v53 = vpop.f32.mrf.mxu0 }
 0x3cb   :  { %3520 = vperm.xlu1 %8350, %v8892_v49   ;;  %3512 = vperm.xlu2 %8351, %v8799_v29   ;;  %v10361_v55 = vpop.permute.xlu2 %3088  ;;  %v10377_v22 = vpop.permute.xlu0 %3342 }
 0x3cc   :  { %13862 = vst [vmem:[#allocation48_spill] sm:$0xff] %v10361_v55  ;;  %v936_v30 = vadd.f32 %v10004_v0, %v717_v31  ;;  %7750 = vmatmul.msk.f32.vlgmr.msrb.gmra.mxu2 %vm51_vm5, %v2929_v23  ;;  %7741 = vmatmul.msk.f32.gmra.mxu1 %vm51_vm5, %v2726_v3  ;;  %v7789_v0 = vld [vmem:[%s13467_s7 + $0x1b8] sm:$0xff]  ;;  %v13867_v31 = vld [vmem:[#allocation95_spill] sm:$0xff] }
 0x3cd   :  { %13865 = vst [vmem:[#allocation14_spill] sm:$0xff] %v10377_v22  ;;  %3438 = vmatpush.msra.mxu0 %v7789_v0 }
 0x3ce   :  { %7623 = vmatmul.msk.f32.gmra.mxu3 %vm51_vm5, %v1444_v39  ;;  %7721 = vmatmul.msk.f32.gmra.mxu0 %vm51_vm5, %v2512_v32  ;;  %v1150_v27 = vadd.f32 %v10103_v26, %v936_v30  ;;  %v2727_v39 = vmul.f32 %v13867_v31, %v13827_v7  ;;  %v2930_v26 = vmul.f32 %v10156_v21, %v8943_v2  ;;  %v7787_v31 = vld [vmem:[%s13467_s7 + $0x1a8] sm:$0xff]  ;;  %v10410_v55 = vpop.f32.mrf.mxu1 }
 0x3cf   :  { %8361 = vset.pattern.permute.xlu0 %v13532_v58  ;;  %v7788_v58 = vld [vmem:[%s13467_s7 + $0x1b0] sm:$0xff]  ;;  %v2513_v21 = vmul.f32 %v9988_v37, %v13827_v7  ;;  %v7786_v37 = vld [vmem:[%s13467_s7 + $0x1a0] sm:$0xff] }
 0x3d0   :  { %4158 = vperm.xlu0 %8361, %v8865_v45   ;;  %v10384_v3 = vadd.f32 %v1342_v41, %v1150_v27  ;;  %v13870_v27 = vld [vmem:[#allocation8_spill] sm:$0xff]  ;;  %3439 = vmatpush.msra.mxu0 %v7788_v58 }
 0x3d1   :  { %v719_v23 = vpop.f32.mrf.mxu3  ;;  %v1445_v0 = vmul.f32 %v13870_v27, %v9406_v11  ;;  %v13873_v27 = vld [vmem:[#allocation102_spill] sm:$0xff] }
 0x3d2   :  { %13866 = vst [vmem:[#allocation68_spill] sm:$0xff] %v10384_v3  ;;  %v720_v32 = vadd.f32 %v719_v23, %v13868_v44  ;;  %v10391_v30 = vpop.permute.xlu1 %2922  ;;  %v1348_v44 = vpop.f32.mrf.mxu2  ;;  %3440 = vmatpush.msra.mxu0 %v7787_v31  ;;  %v13876_v31 = vld [vmem:[#allocation103_spill] sm:$0xff] }
 0x3d3   :  { %3528 = vperm.xlu1 %8350, %v8914_v54   ;;  %3524 = vperm.xlu2 %8351, %v8901_v50   ;;  %v10398_v41 = vpop.permute.xlu2 %3096  ;;  %v10423_v58 = vpop.permute.xlu0 %3354 }
 0x3d4   :  { %13869 = vst [vmem:[#allocation83_spill] sm:$0xff] %v10398_v41  ;;  %v937_v23 = vadd.f32 %v10041_v57, %v720_v32  ;;  %7751 = vmatmul.msk.f32.gmra.mxu2 %vm51_vm5, %v2930_v26  ;;  %7742 = vmatmul.msk.f32.gmra.mxu1 %vm51_vm5, %v2727_v39  ;;  %v10418_v26 = vpop.f32.mrf.mxu0  ;;  %v13877_v41 = vld [vmem:[#allocation101_spill] sm:$0xff] }
 0x3d5   :  { %13872 = vst [vmem:[#allocation96_spill] sm:$0xff] %v10423_v58  ;;  %3441 = vmatpush.msra.mxu0 %v7786_v37 }
 0x3d6   :  { %7624 = vmatmul.msk.f32.gmra.mxu3 %vm51_vm5, %v1445_v0  ;;  %7722 = vmatmul.msk.f32.gmra.mxu0 %vm51_vm5, %v2513_v21  ;;  %v1151_v57 = vadd.f32 %v10138_v43, %v937_v23  ;;  %v2931_v0 = vmul.f32 %v13873_v27, %v9029_v51  ;;  %v2728_v21 = vmul.f32 %v10178_v61, %v13836_v35  ;;  %v13875_v23 = vld [vmem:[#allocation18_spill] sm:$0xff]  ;;  %v10444_v58 = vpop.f32.mrf.mxu1 }
 0x3d8   :  { %4178 = vperm.xlu0 %8361, %v8976_v19   ;;  %v10421_v39 = vadd.f32 %v1345_v20, %v1151_v57  ;;  %v1446_v20 = vmul.f32 %v13875_v23, %v9452_v1  ;;  %v2514_v57 = vmul.f32 %v13876_v31, %v13836_v35 }
 0x3d9   :  { %v722_v32 = vpop.f32.mrf.mxu3 }
 0x3da   :  { %13871 = vst [vmem:[#allocation44_spill] sm:$0xff] %v10421_v39  ;;  %v723_v37 = vadd.f32 %v722_v32, %v13877_v41  ;;  %v2159_v61 = vpop.f32.mrf.mxu2  ;;  %v2729_v32 = vmul.f32 %v10123_v28, %v9406_v11  ;;  %v13905_v39 = vld [vmem:[#allocation20_spill] sm:$0xff] }
 0x3db   :  { %3540 = vperm.xlu1 %8350, %v9002_v33   ;;  %v10430_v43 = vpop.permute.xlu1 %3084  ;;  %3532 = vperm.xlu2 %8351, %v8951_v6   ;;  %v10439_v27 = vpop.permute.xlu2 %3108 }
 0x3dc   :  { %13874 = vst [vmem:[#allocation62_spill] sm:$0xff] %v10430_v43  ;;  %7752 = vmatmul.msk.f32.gmra.mxu2 %vm51_vm5, %v2931_v0  ;;  %7743 = vmatmul.msk.f32.gmra.mxu1 %vm51_vm5, %v2728_v21  ;;  %v938_v23 = vadd.f32 %v10076_v42, %v723_v37  ;;  %v10448_v31 = vpop.f32.mrf.mxu0  ;;  %v2932_v0 = vmul.f32 %v10259_v17, %v9041_v9  ;;  %v13880_v42 = vld [vmem:[#allocation56_spill] sm:$0xff] }
 0x3dd   :  { %13878 = vst [vmem:[#allocation77_spill] sm:$0xff] %v10439_v27  ;;  %v2287_v37 = vmul.f32 %v13880_v42, %v8853_v40  ;;  %v13881_v27 = vld [vmem:[#allocation84_spill] sm:$0xff]  ;;  %v13884_v42 = vld [vmem:[#allocation98_spill] sm:$0xff] }
 0x3de   :  { %7625 = vmatmul.msk.f32.gmra.mxu3 %vm51_vm5, %v1446_v20  ;;  %7723 = vmatmul.msk.f32.gmra.mxu0 %vm51_vm5, %v2514_v57  ;;  %v10454_v20 = vpop.permute.xlu0 %3516  ;;  %v2515_v43 = vmul.f32 %v13881_v27, %v9406_v11  ;;  %v10475_v27 = vpop.f32.mrf.mxu1 }
 0x3e0   :  { %4190 = vperm.xlu0 %8361, %v9074_v38  }
 0x3e1   :  { %v1134_v41 = vpop.f32.mrf.mxu3 }
 0x3e2   :  { %v1152_v21 = vadd.f32 %v1134_v41, %v938_v23  ;;  %v2162_v23 = vpop.f32.mrf.mxu2 }
 0x3e3   :  { %3552 = vperm.xlu1 %8350, %v9105_v15   ;;  %v10457_v57 = vpop.permute.xlu1 %3092  ;;  %3544 = vperm.xlu2 %8351, %v9045_v10   ;;  %v10465_v28 = vpop.permute.xlu2 %3120 }
 0x3e4   :  { %13879 = vst [vmem:[#allocation87_spill] sm:$0xff] %v10457_v57  ;;  %7753 = vmatmul.msk.f32.gmra.mxu2 %vm51_vm5, %v2932_v0  ;;  %7744 = vmatmul.msk.f32.gmra.mxu1 %vm51_vm5, %v2729_v32  ;;  %v10468_v17 = vadd.f32 %v1348_v44, %v1152_v21  ;;  %v2730_v57 = vmul.f32 %v13884_v42, %v9452_v1  ;;  %v10480_v44 = vpop.f32.mrf.mxu0 }
 0x3e5   :  { %13882 = vst [vmem:[#allocation58_spill] sm:$0xff] %v10465_v28  ;;  %v2933_v0 = vmul.f32 %v10187_v48, %v9070_v24  ;;  %v13885_v28 = vld [vmem:[#allocation7_spill] sm:$0xff]  ;;  %v2516_v42 = vmul.f32 %v10022_v62, %v9452_v1 }
 0x3e6   :  { %13883 = vst [vmem:[#allocation55_spill] sm:$0xff] %v10468_v17  ;;  %7690 = vmatmul.msk.f32.vlgmr.msra.gmra.mxu3 %vm51_vm5, %v2287_v37  ;;  %7724 = vmatmul.msk.f32.gmra.mxu0 %vm51_vm5, %v2515_v43  ;;  %v13888_v43 = vld [vmem:[#allocation40_spill] sm:$0xff]  ;;  %v13889_v17 = vld [vmem:[#allocation31_spill] sm:$0xff] }
 0x3e7   :  { %13886 = vst [vmem:[#allocation99_spill] sm:$0xff] %v10480_v44  ;;  %v2288_v37 = vmul.f32 %v13888_v43, %v8943_v2  ;;  %v13534_v43 = vmov 18  }
 0x3e8   :  { %4202 = vperm.xlu0 %8361, %v9167_v14  }
 0x3e9   :  { %v1517_v41 = vpop.f32.mrf.mxu3 }
 0x3ea   :  { %v1565_v32 = vadd.f32 %v1517_v41, %v13885_v28  ;;  %v10495_v28 = vpop.permute.xlu0 %3536  ;;  %v13892_v41 = vld [vmem:[#allocation39_spill] sm:$0xff] }
 0x3eb   :  { %3564 = vperm.xlu1 %8350, %v8777_v25   ;;  %v10483_v21 = vpop.permute.xlu1 %3104  ;;  %3556 = vperm.xlu2 %8351, %v9138_v13   ;;  %v10492_v48 = vpop.permute.xlu2 %3132  ;;  %13891 = vst [vmem:[#allocation51_spill] sm:$0xff] %v10495_v28  ;;  %v13896_v28 = vmov 15  }
 0x3ec   :  { %13887 = vst [vmem:[#allocation75_spill] sm:$0xff] %v10483_v21  ;;  %v1779_v22 = vadd.f32 %v13889_v17, %v1565_v32  ;;  %7754 = vmatmul.msk.f32.gmra.mxu2 %vm51_vm5, %v2933_v0  ;;  %7745 = vmatmul.msk.f32.gmra.mxu1 %vm51_vm5, %v2730_v57  ;;  %v13894_v0 = vld [vmem:[#allocation24_spill] sm:$0xff]  ;;  %v13895_v57 = vld [vmem:[#allocation15_spill] sm:$0xff]  ;;  %v2165_v21 = vpop.f32.mrf.mxu2 }
 0x3ed   :  { %13890 = vst [vmem:[#allocation17_spill] sm:$0xff] %v10492_v48  ;;  %v2934_v32 = vmul.f32 %v10288_v8, %v13894_v0 }
 0x3ee   :  { %7691 = vmatmul.msk.f32.gmra.mxu3 %vm51_vm5, %v2288_v37  ;;  %7725 = vmatmul.msk.f32.gmra.mxu0 %vm51_vm5, %v2516_v42  ;;  %v1993_v44 = vadd.f32 %v13892_v41, %v1779_v22  ;;  %v13898_v22 = vld [vmem:[#allocation71_spill] sm:$0xff] }
 0x3ef   :  { %v2289_v42 = vmul.f32 %v13898_v22, %v9029_v51 }
 0x3f0   :  { %8362 = vset.pattern.permute.xlu0 %v13534_v43  ;;  %v10501_v62 = vadd.f32 %v2159_v61, %v1993_v44  ;;  %v10513_v61 = vpop.f32.mrf.mxu1  ;;  %v13899_v44 = vld [vmem:[#allocation32_spill] sm:$0xff] }
 0x3f1   :  { %4364 = vperm.xlu0 %8362, %v8737_v12   ;;  %v1520_v17 = vpop.f32.mrf.mxu3 }
 0x3f2   :  { %13893 = vst [vmem:[#allocation60_spill] sm:$0xff] %v10501_v62  ;;  %v1566_v48 = vadd.f32 %v1520_v17, %v13895_v57  ;;  %v10518_v17 = vpop.f32.mrf.mxu0 }
 0x3f3   :  { %8354 = vset.pattern.permute.xlu1 %v13896_v28  ;;  %v10508_v37 = vpop.permute.xlu1 %3116  ;;  %3568 = vperm.xlu2 %8351, %v8825_v34   ;;  %13900 = vst [vmem:[#allocation69_spill] sm:$0xff] %v10518_v17 }
 0x3f4   :  { %13897 = vst [vmem:[#allocation104_spill] sm:$0xff] %v10508_v37  ;;  %v1780_v41 = vadd.f32 %v13899_v44, %v1566_v48  ;;  %7755 = vmatmul.msk.f32.gmra.mxu2 %vm51_vm5, %v2934_v32  ;;  %3726 = vperm.xlu1 %8354, %v8799_v29   ;;  %v3295_v8 = vpop.permute.xlu2 %3294  ;;  %v10523_v37 = vpop.permute.xlu0 %3548  ;;  %v13903_v32 = vld [vmem:[#allocation33_spill] sm:$0xff]  ;;  %v13904_v44 = vld [vmem:[#allocation26_spill] sm:$0xff] }
 0x3f5   :  { %v3357_v57 = vmul.f32 %v3295_v8, %v8853_v40  ;;  %13901 = vst [vmem:[#allocation91_spill] sm:$0xff] %v10523_v37  ;;  %v2935_v62 = vmul.f32 %v13904_v44, %v13903_v32  ;;  %v13915_v37 = vld [vmem:[#allocation28_spill] sm:$0xff] }
 0x3f6   :  { %7692 = vmatmul.msk.f32.gmra.mxu3 %vm51_vm5, %v2289_v42  ;;  %v1994_v43 = vadd.f32 %v10238_v56, %v1780_v41  ;;  %v13907_v56 = vld [vmem:[#allocation37_spill] sm:$0xff] }
 0x3f7   :  { %7790 = vmatmul.msk.f32.vlgmr.msra.gmra.mxu0 %vm51_vm5, %v3357_v57  ;;  %v2290_v42 = vmul.f32 %v13907_v56, %v9041_v9  ;;  %v13908_v41 = vld [vmem:[#allocation29_spill] sm:$0xff]  ;;  %v2168_v57 = vpop.f32.mrf.mxu2  ;;  %v13913_v56 = vld [vmem:[#allocation38_spill] sm:$0xff] }
 0x3f8   :  { %v10526_v22 = vadd.f32 %v2162_v23, %v1994_v43  ;;  %v3358_v43 = vmul.f32 %v10253_v63, %v8943_v2 }
 0x3f9   :  { %4384 = vperm.xlu0 %8362, %v8914_v54   ;;  %v1523_v48 = vpop.f32.mrf.mxu3 }
 0x3fa   :  { %13902 = vst [vmem:[#allocation57_spill] sm:$0xff] %v10526_v22  ;;  %v1567_v17 = vadd.f32 %v1523_v48, %v13905_v39  ;;  %v10543_v39 = vpop.f32.mrf.mxu1  ;;  %v10547_v44 = vpop.f32.mrf.mxu0 }
 0x3fb   :  { %v10532_v3 = vpop.permute.xlu1 %3128  ;;  %8355 = vset.pattern.permute.xlu2 %v13896_v28  ;;  %13909 = vst [vmem:[#allocation11_spill] sm:$0xff] %v10543_v39  ;;  %v13910_v28 = vld [vmem:[#allocation10_spill] sm:$0xff] }
 0x3fc   :  { %13906 = vst [vmem:[#allocation100_spill] sm:$0xff] %v10532_v3  ;;  %v1781_v8 = vadd.f32 %v13908_v41, %v1567_v17  ;;  %7756 = vmatmul.msk.f32.gmra.mxu2 %vm51_vm5, %v2935_v62  ;;  %3734 = vperm.xlu1 %8354, %v8892_v49   ;;  %v3307_v23 = vpop.permute.xlu2 %3306  ;;  %v10552_v17 = vpop.permute.xlu0 %3560  ;;  %v13914_v41 = vld [vmem:[#allocation105_spill] sm:$0xff] }
 0x3fd   :  { %3730 = vperm.xlu2 %8355, %v8865_v45   ;;  %13911 = vst [vmem:[#allocation93_spill] sm:$0xff] %v10547_v44  ;;  %v2936_v3 = vmul.f32 %v13914_v41, %v13913_v56 }
 0x3fe   :  { %7693 = vmatmul.msk.f32.gmra.mxu3 %vm51_vm5, %v2290_v42  ;;  %v1995_v48 = vadd.f32 %v13910_v28, %v1781_v8  ;;  %13912 = vst [vmem:[#allocation70_spill] sm:$0xff] %v10552_v17  ;;  %v13917_v42 = vld [vmem:[#allocation78_spill] sm:$0xff]  ;;  %v13918_v28 = vld [vmem:[#allocation79_spill] sm:$0xff] }
 0x3ff   :  { %7791 = vmatmul.msk.f32.gmra.mxu0 %vm51_vm5, %v3358_v43  ;;  %v2291_v8 = vmul.f32 %v13917_v42, %v9070_v24 }
 0x400   :  { %v10550_v62 = vadd.f32 %v2165_v21, %v1995_v48 }
 0x401   :  { %4396 = vperm.xlu0 %8362, %v9002_v33   ;;  %v1526_v63 = vpop.f32.mrf.mxu3 }
 0x402   :  { %v1568_v39 = vadd.f32 %v1526_v63, %v13915_v37  ;;  %v2171_v37 = vpop.f32.mrf.mxu2  ;;  %v10570_v48 = vpop.f32.mrf.mxu1 }
 0x403   :  { %v10558_v22 = vpop.permute.xlu1 %3140  ;;  %13919 = vst [vmem:[#allocation95_spill] sm:$0xff] %v10570_v48  ;;  %v10574_v41 = vpop.f32.mrf.mxu0 }
 0x404   :  { %13916 = vst [vmem:[#allocation81_spill] sm:$0xff] %v10558_v22  ;;  %v1782_v44 = vadd.f32 %v13918_v28, %v1568_v39  ;;  %7757 = vmatmul.msk.f32.gmra.mxu2 %vm51_vm5, %v2936_v3  ;;  %3746 = vperm.xlu1 %8354, %v8951_v6   ;;  %v10565_v21 = vpop.permute.xlu2 %3314  ;;  %v13921_v39 = vld [vmem:[#allocation41_spill] sm:$0xff]  ;;  %v13922_v28 = vld [vmem:[#allocation74_spill] sm:$0xff]  ;;  %v10580_v17 = vpop.permute.xlu0 %3722 }
 0x405   :  { %3738 = vperm.xlu2 %8355, %v8901_v50   ;;  %13920 = vst [vmem:[#allocation97_spill] sm:$0xff] %v10574_v41  ;;  %v2937_v42 = vmul.f32 %v10322_v18, %v13921_v39 }
 0x406   :  { %7694 = vmatmul.msk.f32.gmra.mxu3 %vm51_vm5, %v2291_v8  ;;  %v1996_v43 = vadd.f32 %v10309_v47, %v1782_v44  ;;  %v13923_v8 = vld [vmem:[#allocation34_spill] sm:$0xff] }
 0x407   :  { %v2292_v47 = vmul.f32 %v13923_v8, %v13894_v0 }
 0x408   :  { %v10572_v63 = vadd.f32 %v2168_v57, %v1996_v43 }
 0x409   :  { %4408 = vperm.xlu0 %8362, %v9105_v15   ;;  %v1529_v3 = vpop.f32.mrf.mxu3 }
 0x40a   :  { %v1569_v22 = vadd.f32 %v1529_v3, %v13922_v28  ;;  %v2174_v3 = vpop.f32.mrf.mxu2  ;;  %v13925_v28 = vld [vmem:[#allocation76_spill] sm:$0xff]  ;;  %v10603_v48 = vpop.f32.mrf.mxu1 }
 0x40b   :  { %v2938_v8 = vmul.f32 %v13925_v28, %v9243_v4  ;;  %13927 = vst [vmem:[#allocation102_spill] sm:$0xff] %v10603_v48 }
 0x40c   :  { %v1783_v44 = vadd.f32 %v10282_v59, %v1569_v22  ;;  %7758 = vmatmul.msk.f32.gmra.mxu2 %vm51_vm5, %v2937_v42  ;;  %3758 = vperm.xlu1 %8354, %v9045_v10   ;;  %v3303_v57 = vpop.permute.xlu1 %3302  ;;  %v10587_v43 = vpop.permute.xlu2 %3326  ;;  %v7809_v59 = vld [vmem:[%s13467_s7 + $0x1d8] sm:$0xff] }
 0x40d   :  { %v3359_v41 = vmul.f32 %v3303_v57, %v9029_v51  ;;  %3750 = vperm.xlu2 %8355, %v8976_v19   ;;  %3652 = vmatpush.msra.mxu1 %v7809_v59  ;;  %v13926_v57 = vld [vmem:[#allocation36_spill] sm:$0xff] }
 0x40e   :  { %7695 = vmatmul.msk.f32.gmra.mxu3 %vm51_vm5, %v2292_v47  ;;  %v1997_v18 = vadd.f32 %v10367_v16, %v1783_v44  ;;  %v10605_v16 = vpop.f32.mrf.mxu0 }
 0x40f   :  { %7792 = vmatmul.msk.f32.gmra.mxu0 %vm51_vm5, %v3359_v41  ;;  %13928 = vst [vmem:[#allocation18_spill] sm:$0xff] %v10605_v16  ;;  %v7808_v41 = vld [vmem:[%s13467_s7 + $0x1d0] sm:$0xff]  ;;  %v10622_v16 = vpop.permute.xlu0 %3742 }
 0x410   :  { %v10597_v22 = vadd.f32 %v2171_v37, %v1997_v18  ;;  %v13929_v37 = vld [vmem:[#allocation80_spill] sm:$0xff]  ;;  %v13930_v18 = vld [vmem:[#allocation61_spill] sm:$0xff]  ;;  %3653 = vmatpush.msra.mxu1 %v7808_v41  ;;  %13931 = vst [vmem:[#allocation103_spill] sm:$0xff] %v10622_v16  ;;  %v13932_v41 = vld [vmem:[#allocation106_spill] sm:$0xff] }
 0x411   :  { %4420 = vperm.xlu0 %8362, %v8777_v25   ;;  %v1532_v42 = vpop.f32.mrf.mxu3  ;;  %v2293_v44 = vmul.f32 %v13929_v37, %v13903_v32  ;;  %v2939_v48 = vmul.f32 %v13932_v41, %v13804_v52 }
 0x412   :  { %13924 = vst [vmem:[#allocation8_spill] sm:$0xff] %v10597_v22  ;;  %v1570_v47 = vadd.f32 %v1532_v42, %v13926_v57  ;;  %v7807_v42 = vld [vmem:[%s13467_s7 + $0x1c8] sm:$0xff]  ;;  %v3360_v57 = vmul.f32 %v3307_v23, %v9041_v9 }
 0x413   :  { %3654 = vmatpush.msra.mxu1 %v7807_v42 }
 0x414   :  { %v1784_v59 = vadd.f32 %v13930_v18, %v1570_v47  ;;  %7759 = vmatmul.msk.f32.gmra.mxu2 %vm51_vm5, %v2938_v8  ;;  %3770 = vperm.xlu1 %8354, %v9138_v13   ;;  %v3311_v28 = vpop.permute.xlu1 %3310  ;;  %v10615_v22 = vpop.permute.xlu2 %3338  ;;  %v7806_v47 = vld [vmem:[%s13467_s7 + $0x1c0] sm:$0xff]  ;;  %v13536_v18 = vmov 19  }
 0x415   :  { %3762 = vperm.xlu2 %8355, %v9074_v38   ;;  %3655 = vmatpush.msra.mxu1 %v7806_v47  ;;  %v3361_v47 = vmul.f32 %v3311_v28, %v9070_v24  ;;  %v2940_v28 = vmul.f32 %v10356_v36, %v13815_v5  ;;  %v3362_v36 = vmul.f32 %v10565_v21, %v13894_v0 }
 0x416   :  { %7696 = vmatmul.msk.f32.gmra.mxu3 %vm51_vm5, %v2293_v44  ;;  %v1998_v8 = vadd.f32 %v10410_v55, %v1784_v59  ;;  %v13933_v44 = vld [vmem:[#allocation22_spill] sm:$0xff]  ;;  %v2177_v55 = vpop.f32.mrf.mxu2  ;;  %v13934_v59 = vld [vmem:[#allocation72_spill] sm:$0xff]  ;;  %v10650_v41 = vpop.f32.mrf.mxu0 }
 0x417   :  { %7793 = vmatmul.msk.f32.gmra.mxu0 %vm51_vm5, %v3360_v57  ;;  %v2294_v42 = vmul.f32 %v13934_v59, %v13913_v56  ;;  %13936 = vst [vmem:[#allocation56_spill] sm:$0xff] %v10650_v41  ;;  %v13938_v59 = vld [vmem:[#allocation66_spill] sm:$0xff]  ;;  %v13939_v41 = vld [vmem:[#allocation49_spill] sm:$0xff] }
 0x418   :  { %v10630_v37 = vadd.f32 %v2174_v3, %v1998_v8 }
 0x419   :  { %8366 = vset.pattern.permute.xlu0 %v13536_v18  ;;  %v1535_v23 = vpop.f32.mrf.mxu3 }
 0x41a   :  { %v1571_v16 = vadd.f32 %v1535_v23, %v13933_v44  ;;  %4582 = vperm.xlu0 %8366, %v8799_v29   ;;  %v10648_v23 = vpop.f32.mrf.mxu1 }
 0x41b   :  { %13935 = vst [vmem:[#allocation101_spill] sm:$0xff] %v10648_v23  ;;  %v2295_v23 = vmul.f32 %v13939_v41, %v13921_v39 }
 0x41c   :  { %v1785_v57 = vadd.f32 %v10372_v53, %v1571_v16  ;;  %7760 = vmatmul.msk.f32.gmra.mxu2 %vm51_vm5, %v2939_v48  ;;  %3782 = vperm.xlu1 %8354, %v8825_v34   ;;  %v10642_v3 = vpop.permute.xlu1 %3322  ;;  %v10644_v8 = vpop.permute.xlu2 %3350 }
 0x41d   :  { %3774 = vperm.xlu2 %8355, %v9167_v14   ;;  %v10655_v48 = vpop.permute.xlu0 %3754 }
 0x41e   :  { %7697 = vmatmul.msk.f32.gmra.mxu3 %vm51_vm5, %v2294_v42  ;;  %v1999_v53 = vadd.f32 %v10444_v58, %v1785_v57  ;;  %13937 = vst [vmem:[#allocation84_spill] sm:$0xff] %v10655_v48  ;;  %v13940_v58 = vmov 16  }
 0x41f   :  { %7794 = vmatmul.msk.f32.gmra.mxu0 %vm51_vm5, %v3361_v47  ;;  %v2180_v47 = vpop.f32.mrf.mxu2 }
 0x420   :  { %v10657_v16 = vadd.f32 %v2177_v55, %v1999_v53  ;;  %v7829_v55 = vld [vmem:[%s13467_s7 + $0x1f8] sm:$0xff]  ;;  %v10688_v53 = vpop.f32.mrf.mxu0 }
 0x421   :  { %v1538_v44 = vpop.f32.mrf.mxu3  ;;  %3866 = vmatpush.msra.mxu2 %v7829_v55  ;;  %13942 = vst [vmem:[#allocation7_spill] sm:$0xff] %v10688_v53  ;;  %v7826_v55 = vld [vmem:[%s13467_s7 + $0x1e0] sm:$0xff] }
 0x422   :  { %v1572_v18 = vadd.f32 %v1538_v44, %v13938_v59  ;;  %4602 = vperm.xlu0 %8366, %v8951_v6   ;;  %v10686_v21 = vpop.f32.mrf.mxu1  ;;  %v7827_v44 = vld [vmem:[%s13467_s7 + $0x1e8] sm:$0xff] }
 0x423   :  { %13941 = vst [vmem:[#allocation98_spill] sm:$0xff] %v10686_v21  ;;  %v13943_v59 = vld [vmem:[#allocation12_spill] sm:$0xff] }
 0x424   :  { %v1786_v42 = vadd.f32 %v10418_v26, %v1572_v18  ;;  %7761 = vmatmul.msk.f32.gmra.mxu2 %vm51_vm5, %v2940_v28  ;;  %8358 = vset.pattern.permute.xlu1 %v13940_v58  ;;  %v10668_v57 = vpop.permute.xlu1 %3334  ;;  %v7828_v26 = vld [vmem:[%s13467_s7 + $0x1f0] sm:$0xff] }
 0x425   :  { %8356 = vset.pattern.permute.xlu2 %v13940_v58  ;;  %3944 = vperm.xlu1 %8358, %v8865_v45   ;;  %v10677_v41 = vpop.permute.xlu2 %3512  ;;  %v2941_v58 = vmul.f32 %v13943_v59, %v13827_v7  ;;  %v10697_v48 = vpop.permute.xlu0 %3766  ;;  %v13947_v59 = vld [vmem:[#allocation89_spill] sm:$0xff] }
 0x426   :  { %3936 = vperm.xlu2 %8356, %v8737_v12   ;;  %7698 = vmatmul.msk.f32.gmra.mxu3 %vm51_vm5, %v2295_v23  ;;  %v2000_v18 = vadd.f32 %v10475_v27, %v1786_v42  ;;  %13944 = vst [vmem:[#allocation40_spill] sm:$0xff] %v10697_v48  ;;  %v13945_v27 = vld [vmem:[#allocation94_spill] sm:$0xff]  ;;  %v3363_v53 = vmul.f32 %v13947_v59, %v13903_v32 }
 0x427   :  { %7795 = vmatmul.msk.f32.gmra.mxu0 %vm51_vm5, %v3362_v36  ;;  %3867 = vmatpush.msra.mxu2 %v7828_v26  ;;  %v13946_v36 = vld [vmem:[#allocation53_spill] sm:$0xff] }
 0x428   :  { %v10693_v28 = vadd.f32 %v2180_v47, %v2000_v18  ;;  %v2296_v47 = vmul.f32 %v13946_v36, %v9243_v4  ;;  %v10725_v21 = vpop.f32.mrf.mxu0 }
 0x429   :  { %v1541_v23 = vpop.f32.mrf.mxu3  ;;  %3868 = vmatpush.msra.mxu2 %v7827_v44  ;;  %13950 = vst [vmem:[#allocation39_spill] sm:$0xff] %v10725_v21 }
 0x42a   :  { %v1573_v42 = vadd.f32 %v1541_v23, %v13945_v27  ;;  %4614 = vperm.xlu0 %8366, %v9045_v10   ;;  %v2183_v27 = vpop.f32.mrf.mxu2  ;;  %v10723_v59 = vpop.f32.mrf.mxu1 }
 0x42b   :  { %3869 = vmatpush.msra.mxu2 %v7826_v55  ;;  %13949 = vst [vmem:[#allocation31_spill] sm:$0xff] %v10723_v59  ;;  %v13951_v55 = vld [vmem:[#allocation45_spill] sm:$0xff] }
 0x42c   :  { %v1787_v18 = vadd.f32 %v10448_v31, %v1573_v42  ;;  %7762 = vmatmul.msk.f32.gmra.mxu2 %vm51_vm5, %v2941_v58  ;;  %v10708_v26 = vpop.permute.xlu1 %3346  ;;  %v13948_v42 = vld [vmem:[#allocation16_spill] sm:$0xff] }
 0x42d   :  { %3952 = vperm.xlu1 %8358, %v8901_v50   ;;  %v10713_v23 = vpop.permute.xlu2 %3524  ;;  %v2942_v36 = vmul.f32 %v13948_v42, %v13836_v35 }
 0x42e   :  { %3948 = vperm.xlu2 %8356, %v8892_v49   ;;  %7699 = vmatmul.msk.f32.gmra.mxu3 %vm51_vm5, %v2296_v47  ;;  %v2001_v44 = vadd.f32 %v10513_v61, %v1787_v18  ;;  %v13952_v61 = vld [vmem:[#allocation73_spill] sm:$0xff]  ;;  %v10733_v18 = vpop.permute.xlu0 %3778 }
 0x42f   :  { %7796 = vmatmul.msk.f32.gmra.mxu0 %vm51_vm5, %v3363_v53  ;;  %v2297_v47 = vmul.f32 %v13952_v61, %v13804_v52  ;;  %13953 = vst [vmem:[#allocation24_spill] sm:$0xff] %v10733_v18  ;;  %v3364_v53 = vmul.f32 %v10642_v3, %v13913_v56 }
 0x430   :  { %v10719_v31 = vadd.f32 %v2183_v27, %v2001_v44 }
 0x431   :  { %v1544_v58 = vpop.f32.mrf.mxu3 }
 0x432   :  { %v10728_v48 = vadd.f32 %v1544_v58, %v13951_v55  ;;  %4626 = vperm.xlu0 %8366, %v9138_v13   ;;  %v10748_v3 = vpop.f32.mrf.mxu2  ;;  %v13954_v55 = vld [vmem:[#allocation64_spill] sm:$0xff]  ;;  %v10756_v59 = vpop.f32.mrf.mxu1 }
 0x433   :  { %13957 = vst [vmem:[#allocation71_spill] sm:$0xff] %v10756_v59 }
 0x434   :  { %7763 = vmatmul.msk.f32.gmra.mxu2 %vm51_vm5, %v2942_v36  ;;  %v2943_v36 = vmul.f32 %v10391_v30, %v9406_v11 }
 0x435   :  { %3964 = vperm.xlu1 %8358, %v8976_v19   ;;  %v3509_v44 = vpop.permute.xlu1 %3508  ;;  %v10739_v27 = vpop.permute.xlu2 %3532 }
 0x436   :  { %v3571_v58 = vmul.f32 %v3509_v44, %v8853_v40  ;;  %3956 = vperm.xlu2 %8356, %v8914_v54   ;;  %7700 = vmatmul.msk.f32.gmra.mxu3 %vm51_vm5, %v2297_v47  ;;  %v13956_v44 = vld [vmem:[#allocation90_spill] sm:$0xff]  ;;  %v10758_v47 = vpop.f32.mrf.mxu0 }
 0x437   :  { %7797 = vmatmul.msk.f32.gmra.mxu0 %vm51_vm5, %v3364_v53  ;;  %v2298_v21 = vmul.f32 %v13956_v44, %v13815_v5  ;;  %13958 = vst [vmem:[#allocation32_spill] sm:$0xff] %v10758_v47  ;;  %v3365_v53 = vmul.f32 %v10587_v43, %v13921_v39  ;;  %v7769_v43 = vld [vmem:[%s13467_s7 + $0x198] sm:$0xff]  ;;  %v7768_v44 = vld [vmem:[%s13467_s7 + $0x190] sm:$0xff] }
 0x438   :  { %7810 = vmatmul.msk.f32.vlgmr.msra.gmra.mxu1 %vm51_vm5, %v3571_v58  ;;  %3224 = vmatpush.msrb.mxu3 %v7769_v43  ;;  %v13961_v47 = vld [vmem:[#allocation52_spill] sm:$0xff] }
 0x439   :  { %v1547_v42 = vpop.f32.mrf.mxu3 }
 0x43a   :  { %v10751_v61 = vadd.f32 %v1547_v42, %v13954_v55  ;;  %4638 = vperm.xlu0 %8366, %v8825_v34   ;;  %v10766_v42 = vpop.permute.xlu0 %3940  ;;  %v3572_v55 = vmul.f32 %v10677_v41, %v8943_v2  ;;  %v13960_v41 = vld [vmem:[#allocation47_spill] sm:$0xff]  ;;  %3225 = vmatpush.msrb.mxu3 %v7768_v44  ;;  %v10792_v18 = vpop.f32.mrf.mxu1 }
 0x43b   :  { %13959 = vst [vmem:[#allocation26_spill] sm:$0xff] %v10766_v42  ;;  %v2944_v42 = vmul.f32 %v13960_v41, %v9452_v1 }
 0x43c   :  { %13955 = vst [vmem:[#allocation15_spill] sm:$0xff] %v10751_v61  ;;  %7764 = vmatmul.msk.f32.gmra.mxu2 %vm51_vm5, %v2943_v36  ;;  %v10794_v61 = vpop.f32.mrf.mxu2 }
 0x43d   :  { %3976 = vperm.xlu1 %8358, %v9074_v38   ;;  %v3521_v30 = vpop.permute.xlu1 %3520  ;;  %v10764_v58 = vpop.permute.xlu2 %3544  ;;  %13963 = vst [vmem:[#allocation20_spill] sm:$0xff] %v10792_v18 }
 0x43e   :  { %3968 = vperm.xlu2 %8356, %v9002_v33   ;;  %7701 = vmatmul.msk.f32.gmra.mxu3 %vm51_vm5, %v2298_v21  ;;  %v13538_v21 = vmov 20  }
 0x43f   :  { %7798 = vmatmul.msk.f32.gmra.mxu0 %vm51_vm5, %v3365_v53  ;;  %v7767_v53 = vld [vmem:[%s13467_s7 + $0x188] sm:$0xff] }
 0x440   :  { %7811 = vmatmul.msk.f32.gmra.mxu1 %vm51_vm5, %v3572_v55  ;;  %v13962_v55 = vld [vmem:[#allocation85_spill] sm:$0xff]  ;;  %3226 = vmatpush.msrb.mxu3 %v7767_v53  ;;  %v3785_v53 = vmul.f32 %v10580_v17, %v8853_v40 }
 0x441   :  { %v1550_v36 = vpop.f32.mrf.mxu3  ;;  %v2299_v43 = vmul.f32 %v13962_v55, %v13827_v7  ;;  %v3573_v55 = vmul.f32 %v10454_v20, %v9029_v51  ;;  %v13967_v20 = vld [vmem:[#allocation42_spill] sm:$0xff] }
 0x442   :  { %v10783_v59 = vadd.f32 %v1550_v36, %v13961_v47  ;;  %8370 = vset.pattern.permute.xlu0 %v13538_v21  ;;  %v7766_v47 = vld [vmem:[%s13467_s7 + $0x180] sm:$0xff]  ;;  %v3366_v36 = vmul.f32 %v10340_v46, %v9243_v4  ;;  %v10807_v21 = vpop.f32.mrf.mxu0  ;;  %v10831_v17 = vpop.f32.mrf.mxu1 }
 0x443   :  { %4800 = vperm.xlu0 %8370, %v8865_v45   ;;  %13964 = vst [vmem:[#allocation37_spill] sm:$0xff] %v10807_v21  ;;  %3227 = vmatpush.msrb.mxu3 %v7766_v47  ;;  %v3367_v47 = vmul.f32 %v10668_v57, %v13804_v52  ;;  %v13973_v21 = vld [vmem:[#allocation68_spill] sm:$0xff] }
 0x444   :  { %7765 = vmatmul.msk.f32.gmra.mxu2 %vm51_vm5, %v2944_v42  ;;  %v10812_v42 = vpop.permute.xlu0 %3960  ;;  %13969 = vst [vmem:[#allocation105_spill] sm:$0xff] %v10831_v17 }
 0x445   :  { %3988 = vperm.xlu1 %8358, %v9167_v14   ;;  %v3529_v44 = vpop.permute.xlu1 %3528  ;;  %v10803_v41 = vpop.permute.xlu2 %3556  ;;  %13965 = vst [vmem:[#allocation29_spill] sm:$0xff] %v10812_v42 }
 0x446   :  { %3980 = vperm.xlu2 %8356, %v9105_v15   ;;  %7702 = vmatmul.msk.f32.gmra.mxu3 %vm51_vm5, %v2299_v43  ;;  %v2300_v43 = vmul.f32 %v13967_v20, %v13836_v35 }
 0x447   :  { %7799 = vmatmul.msk.f32.gmra.mxu0 %vm51_vm5, %v3366_v36  ;;  %v13968_v36 = vmov 17  }
 0x448   :  { %7812 = vmatmul.msk.f32.gmra.mxu1 %vm51_vm5, %v3573_v55 }
 0x449   :  { %v1553_v46 = vpop.f32.mrf.mxu3 }
 0x44a   :  { %v10818_v18 = vadd.f32 %v1553_v46, %v10349_v60  ;;  %v3574_v60 = vmul.f32 %v3521_v30, %v9041_v9  ;;  %v10836_v46 = vpop.f32.mrf.mxu2  ;;  %v10840_v57 = vpop.f32.mrf.mxu0  ;;  %v13975_v30 = vld [vmem:[#allocation92_spill] sm:$0xff] }
 0x44b   :  { %4820 = vperm.xlu0 %8370, %v8976_v19   ;;  %13970 = vst [vmem:[#allocation28_spill] sm:$0xff] %v10836_v46 }
 0x44c   :  { %13966 = vst [vmem:[#allocation10_spill] sm:$0xff] %v10818_v18  ;;  %7830 = vmatmul.msk.f32.vlgmr.msra.gmra.mxu2 %vm51_vm5, %v3785_v53  ;;  %v10843_v20 = vpop.permute.xlu0 %3972  ;;  %v2301_v18 = vmul.f32 %v13975_v30, %v9406_v11 }
 0x44d   :  { %8359 = vset.pattern.permute.xlu1 %v13968_v36  ;;  %v10827_v55 = vpop.permute.xlu1 %3540  ;;  %v10829_v42 = vpop.permute.xlu2 %3568  ;;  %13971 = vst [vmem:[#allocation78_spill] sm:$0xff] %v10840_v57  ;;  %v13982_v57 = vld [vmem:[#allocation88_spill] sm:$0xff] }
 0x44e   :  { %3992 = vperm.xlu2 %8356, %v8777_v25   ;;  %4150 = vperm.xlu1 %8359, %v8737_v12   ;;  %13972 = vst [vmem:[#allocation79_spill] sm:$0xff] %v10843_v20  ;;  %v13979_v20 = vld [vmem:[#allocation44_spill] sm:$0xff] }
 0x44f   :  { %7703 = vmatmul.msk.f32.gmra.mxu3 %vm51_vm5, %v2300_v43  ;;  %7800 = vmatmul.msk.f32.gmra.mxu0 %vm51_vm5, %v3367_v47  ;;  %v10853_v43 = vpop.f32.mrf.mxu1  ;;  %v3368_v47 = vmul.f32 %v10615_v22, %v13815_v5 }
 0x450   :  { %7813 = vmatmul.msk.f32.gmra.mxu1 %vm51_vm5, %v3574_v60  ;;  %13976 = vst [vmem:[#allocation34_spill] sm:$0xff] %v10853_v43  ;;  %v3575_v60 = vmul.f32 %v10713_v23, %v9070_v24 }
 0x451   :  { %v1556_v53 = vpop.f32.mrf.mxu3 }
 0x452   :  { %v10846_v17 = vadd.f32 %v1556_v53, %v13973_v21  ;;  %v10865_v53 = vpop.f32.mrf.mxu2  ;;  %v10867_v22 = vpop.f32.mrf.mxu0 }
 0x453   :  { %4832 = vperm.xlu0 %8370, %v9074_v38   ;;  %13977 = vst [vmem:[#allocation76_spill] sm:$0xff] %v10865_v53 }
 0x454   :  { %13974 = vst [vmem:[#allocation74_spill] sm:$0xff] %v10846_v17  ;;  %v3576_v17 = vmul.f32 %v3529_v44, %v13894_v0  ;;  %v13540_v44 = vmov 21  }
 0x455   :  { %v10851_v46 = vpop.permute.xlu1 %3552  ;;  %13978 = vst [vmem:[#allocation36_spill] sm:$0xff] %v10867_v22 }
 0x456   :  { %8360 = vset.pattern.permute.xlu2 %v13968_v36  ;;  %4162 = vperm.xlu1 %8359, %v8892_v49   ;;  %v10873_v36 = vpop.permute.xlu0 %3984 }
 0x457   :  { %4154 = vperm.xlu2 %8360, %v8799_v29   ;;  %7704 = vmatmul.msk.f32.gmra.mxu3 %vm51_vm5, %v2301_v18  ;;  %v3731_v21 = vpop.permute.xlu2 %3730  ;;  %13981 = vst [vmem:[#allocation61_spill] sm:$0xff] %v10873_v36  ;;  %v2302_v18 = vmul.f32 %v13982_v57, %v9452_v1  ;;  %v13985_v36 = vld [vmem:[#allocation55_spill] sm:$0xff] }
 0x458   :  { %7801 = vmatmul.msk.f32.gmra.mxu0 %vm51_vm5, %v3368_v47  ;;  %7814 = vmatmul.msk.f32.gmra.mxu1 %vm51_vm5, %v3575_v60  ;;  %v13983_v47 = vld [vmem:[#allocation14_spill] sm:$0xff] }
 0x459   :  { %v1559_v30 = vpop.f32.mrf.mxu3  ;;  %v3369_v60 = vmul.f32 %v13983_v47, %v13827_v7 }
 0x45a   :  { %v10870_v23 = vadd.f32 %v1559_v30, %v13979_v20  ;;  %v10887_v30 = vpop.f32.mrf.mxu1  ;;  %v10894_v47 = vpop.f32.mrf.mxu2 }
 0x45b   :  { %4844 = vperm.xlu0 %8370, %v9167_v14   ;;  %13984 = vst [vmem:[#allocation106_spill] sm:$0xff] %v10887_v30 }
 0x45c   :  { %13980 = vst [vmem:[#allocation80_spill] sm:$0xff] %v10870_v23  ;;  %v10897_v23 = vpop.f32.mrf.mxu0 }
 0x45d   :  { %v10877_v43 = vpop.permute.xlu1 %3564  ;;  %13987 = vst [vmem:[#allocation72_spill] sm:$0xff] %v10894_v47  ;;  %v13996_v47 = vld [vmem:[#allocation51_spill] sm:$0xff] }
 0x45e   :  { %4170 = vperm.xlu1 %8359, %v8914_v54   ;;  %13988 = vst [vmem:[#allocation66_spill] sm:$0xff] %v10897_v23 }
 0x45f   :  { %4166 = vperm.xlu2 %8360, %v8901_v50   ;;  %7705 = vmatmul.msk.f32.gmra.mxu3 %vm51_vm5, %v2302_v18  ;;  %v10885_v20 = vpop.permute.xlu2 %3738  ;;  %v13989_v18 = vld [vmem:[#allocation21_spill] sm:$0xff] }
 0x460   :  { %7802 = vmatmul.msk.f32.gmra.mxu0 %vm51_vm5, %v3369_v60  ;;  %7815 = vmatmul.msk.f32.gmra.mxu1 %vm51_vm5, %v3576_v17  ;;  %v3143_v30 = vmul.f32 %v13989_v18, %v8853_v40  ;;  %v3370_v60 = vmul.f32 %v10708_v26, %v13836_v35  ;;  %v3577_v17 = vmul.f32 %v10739_v27, %v13903_v32  ;;  %v13992_v18 = vld [vmem:[#allocation60_spill] sm:$0xff] }
 0x461   :  { %v1562_v57 = vpop.f32.mrf.mxu3 }
 0x462   :  { %v10892_v22 = vadd.f32 %v1562_v57, %v13985_v36  ;;  %v10906_v36 = vpop.permute.xlu0 %3996  ;;  %v10917_v27 = vpop.f32.mrf.mxu1 }
 0x463   :  { %8371 = vset.pattern.permute.xlu0 %v13540_v44  ;;  %13990 = vst [vmem:[#allocation49_spill] sm:$0xff] %v10906_v36 }
 0x464   :  { %13986 = vst [vmem:[#allocation22_spill] sm:$0xff] %v10892_v22  ;;  %5006 = vperm.xlu0 %8371, %v8737_v12   ;;  %v10931_v53 = vpop.f32.mrf.mxu0 }
 0x465   :  { %13991 = vst [vmem:[#allocation12_spill] sm:$0xff] %v10917_v27 }
 0x466   :  { %4182 = vperm.xlu1 %8359, %v9002_v33   ;;  %v3727_v57 = vpop.permute.xlu1 %3726  ;;  %13997 = vst [vmem:[#allocation89_spill] sm:$0xff] %v10931_v53 }
 0x467   :  { %v3786_v44 = vmul.f32 %v3727_v57, %v8943_v2  ;;  %4174 = vperm.xlu2 %8360, %v8951_v6   ;;  %7770 = vmatmul.msk.f32.vlgmr.msrb.gmra.mxu3 %vm51_vm5, %v3143_v30  ;;  %v10912_v23 = vpop.permute.xlu2 %3750  ;;  %v13994_v57 = vld [vmem:[#allocation62_spill] sm:$0xff]  ;;  %v10925_v30 = vpop.f32.mrf.mxu2 }
 0x468   :  { %7803 = vmatmul.msk.f32.gmra.mxu0 %vm51_vm5, %v3370_v60  ;;  %7816 = vmatmul.msk.f32.gmra.mxu1 %vm51_vm5, %v3577_v17  ;;  %v3144_v22 = vmul.f32 %v13994_v57, %v8943_v2  ;;  %13995 = vst [vmem:[#allocation53_spill] sm:$0xff] %v10925_v30  ;;  %v3578_v60 = vmul.f32 %v13996_v47, %v13913_v56  ;;  %v13998_v47 = vld [vmem:[#allocation57_spill] sm:$0xff] }
 0x469   :  { %v2373_v26 = vpop.f32.mrf.mxu3  ;;  %7831 = vmatmul.msk.f32.gmra.mxu2 %vm51_vm5, %v3786_v44  ;;  %v3371_v17 = vmul.f32 %v10644_v8, %v9406_v11 }
 0x46a   :  { %v10920_v36 = vadd.f32 %v2373_v26, %v13992_v18  ;;  %v3787_v26 = vmul.f32 %v3731_v21, %v9029_v51  ;;  %v10939_v57 = vpop.permute.xlu0 %4158  ;;  %v10947_v27 = vpop.f32.mrf.mxu1  ;;  %v14001_v21 = vld [vmem:[#allocation48_spill] sm:$0xff] }
 0x46b   :  { %14000 = vst [vmem:[#allocation45_spill] sm:$0xff] %v10947_v27 }
 0x46c   :  { %13993 = vst [vmem:[#allocation94_spill] sm:$0xff] %v10920_v36  ;;  %5026 = vperm.xlu0 %8371, %v8914_v54   ;;  %v14002_v36 = vld [vmem:[#allocation96_spill] sm:$0xff] }
 0x46d   :  { %v3372_v30 = vmul.f32 %v14002_v36, %v9452_v1 }
 0x46e   :  { %4194 = vperm.xlu1 %8359, %v9105_v15   ;;  %v3735_v44 = vpop.permute.xlu1 %3734 }
 0x46f   :  { %7771 = vmatmul.msk.f32.gmra.mxu3 %vm51_vm5, %v3144_v22  ;;  %4186 = vperm.xlu2 %8360, %v9045_v10   ;;  %v10937_v18 = vpop.permute.xlu2 %3762  ;;  %v3145_v22 = vmul.f32 %v14001_v21, %v9029_v51  ;;  %v10964_v21 = vpop.f32.mrf.mxu0 }
 0x470   :  { %7804 = vmatmul.msk.f32.gmra.mxu0 %vm51_vm5, %v3371_v17  ;;  %7817 = vmatmul.msk.f32.gmra.mxu1 %vm51_vm5, %v3578_v60  ;;  %v3579_v17 = vmul.f32 %v10827_v55, %v13921_v39  ;;  %14003 = vst [vmem:[#allocation73_spill] sm:$0xff] %v10964_v21  ;;  %v14008_v21 = vmov 18  }
 0x471   :  { %v2376_v8 = vpop.f32.mrf.mxu3  ;;  %7832 = vmatmul.msk.f32.gmra.mxu2 %vm51_vm5, %v3787_v26  ;;  %v10957_v26 = vpop.f32.mrf.mxu2 }
 0x472   :  { %v10945_v53 = vadd.f32 %v2376_v8, %v13998_v47  ;;  %v3788_v8 = vmul.f32 %v3735_v44, %v9041_v9  ;;  %v10969_v36 = vpop.permute.xlu0 %4178  ;;  %v14006_v44 = vld [vmem:[#allocation87_spill] sm:$0xff] }
 0x473   :  { %14004 = vst [vmem:[#allocation64_spill] sm:$0xff] %v10969_v36 }
 0x474   :  { %13999 = vst [vmem:[#allocation16_spill] sm:$0xff] %v10945_v53  ;;  %5038 = vperm.xlu0 %8371, %v9002_v33   ;;  %v10977_v53 = vpop.f32.mrf.mxu1 }
 0x475   :  { %14007 = vst [vmem:[#allocation47_spill] sm:$0xff] %v10977_v53 }
 0x476   :  { %4206 = vperm.xlu1 %8359, %v8777_v25   ;;  %v3747_v60 = vpop.permute.xlu1 %3746 }
 0x477   :  { %4198 = vperm.xlu2 %8360, %v9138_v13   ;;  %7772 = vmatmul.msk.f32.gmra.mxu3 %vm51_vm5, %v3145_v22  ;;  %v10962_v47 = vpop.permute.xlu2 %3774  ;;  %v3146_v22 = vmul.f32 %v14006_v44, %v9041_v9  ;;  %v10998_v53 = vpop.f32.mrf.mxu0 }
 0x478   :  { %7805 = vmatmul.msk.f32.gmra.mxu0 %vm51_vm5, %v3372_v30  ;;  %7818 = vmatmul.msk.f32.gmra.mxu1 %vm51_vm5, %v3579_v17  ;;  %v3580_v30 = vmul.f32 %v10764_v58, %v9243_v4  ;;  %14011 = vst [vmem:[#allocation42_spill] sm:$0xff] %v10998_v53 }
 0x479   :  { %v2379_v55 = vpop.f32.mrf.mxu3  ;;  %7833 = vmatmul.msk.f32.gmra.mxu2 %vm51_vm5, %v3788_v8  ;;  %v3789_v8 = vmul.f32 %v10885_v20, %v9070_v24 }
 0x47a   :  { %v10972_v27 = vadd.f32 %v2379_v55, %v10550_v62  ;;  %v10992_v55 = vpop.f32.mrf.mxu2  ;;  %v11000_v20 = vpop.permute.xlu0 %4190 }
 0x47b   :  { %14010 = vst [vmem:[#allocation85_spill] sm:$0xff] %v10992_v55 }
 0x47c   :  { %14005 = vst [vmem:[#allocation90_spill] sm:$0xff] %v10972_v27  ;;  %5050 = vperm.xlu0 %8371, %v9105_v15  }
 0x47d   :  { %14012 = vst [vmem:[#allocation68_spill] sm:$0xff] %v11000_v20 }
 0x47e   :  { %8363 = vset.pattern.permute.xlu1 %v14008_v21  ;;  %v10982_v17 = vpop.permute.xlu1 %3758 }
 0x47f   :  { %4210 = vperm.xlu2 %8360, %v8825_v34   ;;  %7773 = vmatmul.msk.f32.gmra.mxu3 %vm51_vm5, %v3146_v22  ;;  %v14013_v22 = vld [vmem:[#allocation83_spill] sm:$0xff]  ;;  %v11029_v20 = vpop.f32.mrf.mxu0 }
 0x480   :  { %4368 = vperm.xlu1 %8363, %v8799_v29   ;;  %v10989_v62 = vpop.permute.xlu2 %3936  ;;  %7819 = vmatmul.msk.f32.gmra.mxu1 %vm51_vm5, %v3580_v30  ;;  %v3147_v36 = vmul.f32 %v14013_v22, %v9070_v24  ;;  %v14014_v30 = vld [vmem:[#allocation91_spill] sm:$0xff]  ;;  %14020 = vst [vmem:[#allocation88_spill] sm:$0xff] %v11029_v20 }
 0x481   :  { %14009 = vst [vmem:[#allocation52_spill] sm:$0xff] %v10989_v62  ;;  %v2382_v58 = vpop.f32.mrf.mxu3  ;;  %7834 = vmatmul.msk.f32.gmra.mxu2 %vm51_vm5, %v3789_v8  ;;  %v3581_v55 = vmul.f32 %v14014_v30, %v13804_v52  ;;  %v14015_v62 = vld [vmem:[#allocation103_spill] sm:$0xff]  ;;  %v14018_v30 = vld [vmem:[#allocation8_spill] sm:$0xff] }
 0x482   :  { %v10996_v44 = vadd.f32 %v2382_v58, %v10572_v63  ;;  %v3790_v8 = vmul.f32 %v14015_v62, %v13894_v0  ;;  %v11013_v63 = vpop.f32.mrf.mxu1  ;;  %v11024_v62 = vpop.f32.mrf.mxu2 }
 0x483   :  { %14016 = vst [vmem:[#allocation92_spill] sm:$0xff] %v11013_v63 }
 0x484   :  { %5062 = vperm.xlu0 %8371, %v8777_v25  }
 0x486   :  { %v11005_v27 = vpop.permute.xlu1 %3770 }
 0x487   :  { %8364 = vset.pattern.permute.xlu2 %v14008_v21  ;;  %7774 = vmatmul.msk.f32.gmra.mxu3 %vm51_vm5, %v3147_v36  ;;  %v13542_v21 = vmov 22   ;;  %v14019_v36 = vld [vmem:[#allocation43_spill] sm:$0xff] }
 0x488   :  { %4376 = vperm.xlu1 %8363, %v8892_v49   ;;  %4372 = vperm.xlu2 %8364, %v8865_v45   ;;  %v11017_v58 = vpop.permute.xlu2 %3948  ;;  %v3148_v63 = vmul.f32 %v14019_v36, %v13894_v0 }
 0x489   :  { %14017 = vst [vmem:[#allocation44_spill] sm:$0xff] %v11017_v58  ;;  %7820 = vmatmul.msk.f32.gmra.mxu1 %vm51_vm5, %v3581_v55  ;;  %v2385_v22 = vpop.f32.mrf.mxu3  ;;  %7835 = vmatmul.msk.f32.gmra.mxu2 %vm51_vm5, %v3790_v8  ;;  %v11032_v58 = vpop.permute.xlu0 %4202  ;;  %v3582_v8 = vmul.f32 %v10851_v46, %v13815_v5  ;;  %v7889_v46 = vld [vmem:[%s13467_s7 + $0x258] sm:$0xff] }
 0x48a   :  { %v11022_v53 = vadd.f32 %v2385_v22, %v14018_v30  ;;  %14021 = vst [vmem:[#allocation14_spill] sm:$0xff] %v11032_v58  ;;  %v3791_v22 = vmul.f32 %v3747_v60, %v13903_v32  ;;  %4508 = vmatpush.msrb.mxu1 %v7889_v46  ;;  %v7888_v60 = vld [vmem:[%s13467_s7 + $0x250] sm:$0xff]  ;;  %v11059_v20 = vpop.f32.mrf.mxu2  ;;  %v3792_v46 = vmul.f32 %v10912_v23, %v13913_v56 }
 0x48c   :  { %8375 = vset.pattern.permute.xlu0 %v13542_v21  ;;  %v11046_v21 = vpop.f32.mrf.mxu1  ;;  %4509 = vmatpush.msrb.mxu1 %v7888_v60 }
 0x48d   :  { %5224 = vperm.xlu0 %8375, %v8799_v29   ;;  %14023 = vst [vmem:[#allocation21_spill] sm:$0xff] %v11046_v21 }
 0x48e   :  { %v11034_v55 = vpop.permute.xlu1 %3782 }
 0x48f   :  { %7775 = vmatmul.msk.f32.gmra.mxu3 %vm51_vm5, %v3148_v63  ;;  %v14025_v63 = vld [vmem:[#allocation75_spill] sm:$0xff] }
 0x490   :  { %4388 = vperm.xlu1 %8363, %v8951_v6   ;;  %4380 = vperm.xlu2 %8364, %v8901_v50   ;;  %v11042_v30 = vpop.permute.xlu2 %3956 }
 0x491   :  { %14022 = vst [vmem:[#allocation55_spill] sm:$0xff] %v11042_v30  ;;  %7821 = vmatmul.msk.f32.gmra.mxu1 %vm51_vm5, %v3582_v8  ;;  %v2388_v36 = vpop.f32.mrf.mxu3  ;;  %7836 = vmatmul.msk.f32.gmra.mxu2 %vm51_vm5, %v3791_v22  ;;  %v3149_v8 = vmul.f32 %v14025_v63, %v13903_v32  ;;  %v11065_v22 = vpop.f32.mrf.mxu0 }
 0x492   :  { %v11049_v58 = vadd.f32 %v2388_v36, %v10630_v37  ;;  %v7887_v37 = vld [vmem:[%s13467_s7 + $0x248] sm:$0xff]  ;;  %14026 = vst [vmem:[#allocation62_spill] sm:$0xff] %v11065_v22  ;;  %v3583_v36 = vmul.f32 %v10803_v41, %v13827_v7  ;;  %v11074_v21 = vpop.permute.xlu0 %4364  ;;  %v7886_v41 = vld [vmem:[%s13467_s7 + $0x240] sm:$0xff]  ;;  %v7869_v22 = vld [vmem:[%s13467_s7 + $0x238] sm:$0xff] }
 0x493   :  { %4510 = vmatpush.msrb.mxu1 %v7887_v37  ;;  %4294 = vmatpush.msrb.mxu0 %v7869_v22 }
 0x494   :  { %14024 = vst [vmem:[#allocation60_spill] sm:$0xff] %v11049_v58  ;;  %v11088_v37 = vpop.f32.mrf.mxu1 }
 0x495   :  { %5244 = vperm.xlu0 %8375, %v8951_v6   ;;  %4511 = vmatpush.msrb.mxu1 %v7886_v41  ;;  %14029 = vst [vmem:[#allocation48_spill] sm:$0xff] %v11088_v37  ;;  %v7868_v37 = vld [vmem:[%s13467_s7 + $0x230] sm:$0xff] }
 0x496   :  { %4295 = vmatpush.msrb.mxu0 %v7868_v37  ;;  %v3794_v37 = vmul.f32 %v10982_v17, %v9243_v4 }
 0x497   :  { %7776 = vmatmul.msk.f32.gmra.mxu3 %vm51_vm5, %v3149_v8  ;;  %v11072_v63 = vpop.permute.xlu1 %3944 }
 0x498   :  { %4400 = vperm.xlu1 %8363, %v9045_v10   ;;  %4392 = vperm.xlu2 %8364, %v8976_v19   ;;  %v11078_v60 = vpop.permute.xlu2 %3968 }
 0x499   :  { %14027 = vst [vmem:[#allocation51_spill] sm:$0xff] %v11078_v60  ;;  %7822 = vmatmul.msk.f32.gmra.mxu1 %vm51_vm5, %v3583_v36  ;;  %v2391_v23 = vpop.f32.mrf.mxu3  ;;  %7837 = vmatmul.msk.f32.gmra.mxu2 %vm51_vm5, %v3792_v46  ;;  %v14030_v60 = vld [vmem:[#allocation77_spill] sm:$0xff]  ;;  %v14031_v36 = vld [vmem:[#allocation70_spill] sm:$0xff]  ;;  %v14032_v46 = vld [vmem:[#allocation84_spill] sm:$0xff] }
 0x49a   :  { %v11086_v8 = vadd.f32 %v2391_v23, %v10657_v16  ;;  %v3150_v30 = vmul.f32 %v14030_v60, %v13913_v56  ;;  %v3584_v58 = vmul.f32 %v14031_v36, %v13836_v35  ;;  %v3793_v16 = vmul.f32 %v14032_v46, %v13921_v39  ;;  %v11100_v23 = vpop.f32.mrf.mxu2  ;;  %v11112_v60 = vpop.f32.mrf.mxu0 }
 0x49b   :  { %14035 = vst [vmem:[#allocation83_spill] sm:$0xff] %v11112_v60  ;;  %v11119_v46 = vpop.permute.xlu0 %4384 }
 0x49c   :  { %14028 = vst [vmem:[#allocation57_spill] sm:$0xff] %v11086_v8 }
 0x49d   :  { %5256 = vperm.xlu0 %8375, %v9045_v10   ;;  %14036 = vst [vmem:[#allocation91_spill] sm:$0xff] %v11119_v46 }
 0x49f   :  { %7777 = vmatmul.msk.f32.gmra.mxu3 %vm51_vm5, %v3150_v30  ;;  %v11103_v41 = vpop.permute.xlu1 %3952  ;;  %v7867_v30 = vld [vmem:[%s13467_s7 + $0x228] sm:$0xff] }
 0x4a0   :  { %14033 = vst [vmem:[#allocation96_spill] sm:$0xff] %v11103_v41  ;;  %4412 = vperm.xlu1 %8363, %v9138_v13   ;;  %4404 = vperm.xlu2 %8364, %v9074_v38   ;;  %v11110_v22 = vpop.permute.xlu2 %3980  ;;  %v14039_v41 = vld [vmem:[#allocation99_spill] sm:$0xff] }
 0x4a1   :  { %14034 = vst [vmem:[#allocation87_spill] sm:$0xff] %v11110_v22  ;;  %7823 = vmatmul.msk.f32.gmra.mxu1 %vm51_vm5, %v3584_v58  ;;  %v2394_v36 = vpop.f32.mrf.mxu3  ;;  %7838 = vmatmul.msk.f32.gmra.mxu2 %vm51_vm5, %v3793_v16  ;;  %v7866_v22 = vld [vmem:[%s13467_s7 + $0x220] sm:$0xff]  ;;  %v11130_v16 = vpop.f32.mrf.mxu1  ;;  %v1788_v46 = vadd.f32 %v14039_v41, %v10728_v48 }
 0x4a2   :  { %v11122_v8 = vadd.f32 %v2394_v36, %v10693_v28  ;;  %4296 = vmatpush.msrb.mxu0 %v7867_v30  ;;  %v14037_v58 = vld [vmem:[#allocation27_spill] sm:$0xff]  ;;  %14038 = vst [vmem:[#allocation103_spill] sm:$0xff] %v11130_v16  ;;  %v3585_v28 = vmul.f32 %v10877_v43, %v9406_v11  ;;  %v11152_v17 = vpop.f32.mrf.mxu0  ;;  %v14046_v16 = vld [vmem:[#allocation104_spill] sm:$0xff] }
 0x4a3   :  { %v3151_v60 = vmul.f32 %v14037_v58, %v13921_v39  ;;  %14043 = vst [vmem:[#allocation77_spill] sm:$0xff] %v11152_v17  ;;  %v14044_v41 = vld [vmem:[#allocation11_spill] sm:$0xff]  ;;  %v11155_v58 = vpop.permute.xlu0 %4396 }
 0x4a4   :  { %4297 = vmatpush.msrb.mxu0 %v7866_v22  ;;  %v11145_v22 = vpop.f32.mrf.mxu2  ;;  %14045 = vst [vmem:[#allocation70_spill] sm:$0xff] %v11155_v58 }
 0x4a5   :  { %5268 = vperm.xlu0 %8375, %v9138_v13  }
 0x4a7   :  { %7778 = vmatmul.msk.f32.gmra.mxu3 %vm51_vm5, %v3151_v60  ;;  %v11139_v36 = vpop.permute.xlu1 %3964  ;;  %v2002_v60 = vadd.f32 %v14044_v41, %v1788_v46  ;;  %v3586_v46 = vmul.f32 %v10829_v42, %v9452_v1  ;;  %v3795_v41 = vmul.f32 %v10937_v18, %v13804_v52  ;;  %v14053_v18 = vld [vmem:[#allocation95_spill] sm:$0xff] }
 0x4a8   :  { %14040 = vst [vmem:[#allocation8_spill] sm:$0xff] %v11139_v36  ;;  %4424 = vperm.xlu1 %8363, %v8825_v34   ;;  %4416 = vperm.xlu2 %8364, %v9167_v14   ;;  %v11143_v30 = vpop.permute.xlu2 %3992  ;;  %v3152_v36 = vmul.f32 %v14046_v16, %v9243_v4  ;;  %v14051_v16 = vmov 19  }
 0x4a9   :  { %14041 = vst [vmem:[#allocation43_spill] sm:$0xff] %v11143_v30  ;;  %7824 = vmatmul.msk.f32.gmra.mxu1 %vm51_vm5, %v3585_v28  ;;  %v2397_v48 = vpop.f32.mrf.mxu3  ;;  %7839 = vmatmul.msk.f32.gmra.mxu2 %vm51_vm5, %v3794_v37  ;;  %v2216_v37 = vadd.f32 %v10748_v3, %v2002_v60  ;;  %v14048_v30 = vld [vmem:[#allocation15_spill] sm:$0xff] }
 0x4aa   :  { %v11150_v43 = vadd.f32 %v2397_v48, %v10719_v31  ;;  %v14049_v31 = vld [vmem:[#allocation69_spill] sm:$0xff]  ;;  %v11187_v17 = vpop.f32.mrf.mxu0 }
 0x4ab   :  { %v1789_v48 = vadd.f32 %v14049_v31, %v14048_v30  ;;  %v14054_v31 = vld [vmem:[#allocation58_spill] sm:$0xff]  ;;  %14055 = vst [vmem:[#allocation11_spill] sm:$0xff] %v11187_v17 }
 0x4ac   :  { %14042 = vst [vmem:[#allocation75_spill] sm:$0xff] %v11150_v43  ;;  %v11166_v43 = vpop.f32.mrf.mxu1  ;;  %v11182_v42 = vpop.f32.mrf.mxu2 }
 0x4ad   :  { %5280 = vperm.xlu0 %8375, %v8825_v34   ;;  %14050 = vst [vmem:[#allocation27_spill] sm:$0xff] %v11166_v43  ;;  %v2003_v60 = vadd.f32 %v14053_v18, %v1789_v48  ;;  %v13544_v43 = vmov 23   ;;  %v14059_v48 = vld [vmem:[#allocation93_spill] sm:$0xff]  ;;  %v4427_v18 = vmul.f32 %v11074_v21, %v8853_v40  ;;  %v14063_v21 = vld [vmem:[#allocation82_spill] sm:$0xff] }
 0x4af   :  { %7779 = vmatmul.msk.f32.gmra.mxu3 %vm51_vm5, %v3152_v36  ;;  %v11161_v28 = vpop.permute.xlu1 %3976 }
 0x4b0   :  { %14047 = vst [vmem:[#allocation84_spill] sm:$0xff] %v11161_v28  ;;  %8367 = vset.pattern.permute.xlu1 %v14051_v16  ;;  %8365 = vset.pattern.permute.xlu2 %v14051_v16  ;;  %v3153_v16 = vmul.f32 %v14054_v31, %v13804_v52  ;;  %v11190_v28 = vpop.permute.xlu0 %4408  ;;  %v2217_v31 = vadd.f32 %v10794_v61, %v2003_v60 }
 0x4b1   :  { %4586 = vperm.xlu1 %8367, %v8865_v45   ;;  %4578 = vperm.xlu2 %8365, %v8737_v12   ;;  %v11176_v3 = vpop.permute.xlu2 %4154  ;;  %v2400_v36 = vpop.f32.mrf.mxu3  ;;  %14056 = vst [vmem:[#allocation104_spill] sm:$0xff] %v11190_v28  ;;  %v3154_v61 = vmul.f32 %v14063_v21, %v13815_v5  ;;  %v14068_v21 = vld [vmem:[#allocation28_spill] sm:$0xff] }
 0x4b2   :  { %7825 = vmatmul.msk.f32.gmra.mxu1 %vm51_vm5, %v3586_v46  ;;  %v11179_v30 = vadd.f32 %v2400_v36, %v2216_v37  ;;  %7840 = vmatmul.msk.f32.gmra.mxu2 %vm51_vm5, %v3795_v41  ;;  %v14058_v46 = vld [vmem:[#allocation40_spill] sm:$0xff]  ;;  %v1790_v36 = vadd.f32 %v14059_v48, %v10783_v59  ;;  %v14062_v59 = vld [vmem:[#allocation102_spill] sm:$0xff]  ;;  %v11219_v17 = vpop.f32.mrf.mxu0 }
 0x4b3   :  { %v3796_v41 = vmul.f32 %v14058_v46, %v13815_v5  ;;  %14064 = vst [vmem:[#allocation58_spill] sm:$0xff] %v11219_v17 }
 0x4b4   :  { %14052 = vst [vmem:[#allocation99_spill] sm:$0xff] %v11179_v30  ;;  %v11211_v46 = vpop.f32.mrf.mxu1  ;;  %v2004_v48 = vadd.f32 %v14062_v59, %v1790_v36  ;;  %v11216_v60 = vpop.f32.mrf.mxu2  ;;  %v3797_v36 = vmul.f32 %v11005_v27, %v13827_v7  ;;  %v7848_v27 = vld [vmem:[%s13467_s7 + $0x210] sm:$0xff] }
 0x4b5   :  { %8379 = vset.pattern.permute.xlu0 %v13544_v43  ;;  %14061 = vst [vmem:[#allocation95_spill] sm:$0xff] %v11211_v46 }
 0x4b6   :  { %5442 = vperm.xlu0 %8379, %v8865_v45   ;;  %v2218_v28 = vadd.f32 %v14068_v21, %v2004_v48  ;;  %v14070_v48 = vld [vmem:[#allocation101_spill] sm:$0xff] }
 0x4b7   :  { %7780 = vmatmul.msk.f32.gmra.mxu3 %vm51_vm5, %v3153_v16  ;;  %v11194_v37 = vpop.permute.xlu1 %3988 }
 0x4b8   :  { %14057 = vst [vmem:[#allocation15_spill] sm:$0xff] %v11194_v37  ;;  %v11227_v46 = vpop.permute.xlu0 %4420 }
 0x4b9   :  { %4594 = vperm.xlu1 %8367, %v8901_v50   ;;  %4590 = vperm.xlu2 %8365, %v8892_v49   ;;  %v11205_v43 = vpop.permute.xlu2 %4166  ;;  %v2403_v16 = vpop.f32.mrf.mxu3  ;;  %14067 = vst [vmem:[#allocation40_spill] sm:$0xff] %v11227_v46  ;;  %v4214_v46 = vmul.f32 %v11176_v3, %v8943_v2 }
 0x4ba   :  { %7890 = vmatmul.msk.f32.vlgmr.msrb.gmra.mxu1 %vm51_vm5, %v4427_v18  ;;  %v11208_v37 = vadd.f32 %v2403_v16, %v2217_v31  ;;  %7841 = vmatmul.msk.f32.gmra.mxu2 %vm51_vm5, %v3796_v41  ;;  %v7849_v18 = vld [vmem:[%s13467_s7 + $0x218] sm:$0xff] }
 0x4bb   :  { %v14065_v41 = vld [vmem:[#allocation10_spill] sm:$0xff]  ;;  %v14066_v31 = vld [vmem:[#allocation97_spill] sm:$0xff]  ;;  %4080 = vmatpush.msra.mxu3 %v7849_v18 }
 0x4bc   :  { %14060 = vst [vmem:[#allocation69_spill] sm:$0xff] %v11208_v37  ;;  %v1791_v16 = vadd.f32 %v14066_v31, %v14065_v41  ;;  %v7847_v41 = vld [vmem:[%s13467_s7 + $0x208] sm:$0xff] }
 0x4bd   :  { %4081 = vmatpush.msra.mxu3 %v7848_v27  ;;  %v14071_v31 = vld [vmem:[#allocation100_spill] sm:$0xff] }
 0x4be   :  { %5462 = vperm.xlu0 %8379, %v8976_v19   ;;  %v2005_v18 = vadd.f32 %v14070_v48, %v1791_v16  ;;  %v3798_v16 = vmul.f32 %v10962_v47, %v13836_v35  ;;  %v14074_v48 = vld [vmem:[#allocation74_spill] sm:$0xff]  ;;  %v11273_v47 = vpop.f32.mrf.mxu0 }
 0x4bf   :  { %7781 = vmatmul.msk.f32.gmra.mxu3 %vm51_vm5, %v3154_v61  ;;  %14077 = vst [vmem:[#allocation10_spill] sm:$0xff] %v11273_v47  ;;  %v4215_v47 = vmul.f32 %v10939_v57, %v9029_v51  ;;  %v14087_v57 = vld [vmem:[#allocation86_spill] sm:$0xff] }
 0x4c0   :  { %v4151_v59 = vpop.permute.xlu1 %4150  ;;  %4082 = vmatpush.msra.mxu3 %v7847_v41 }
 0x4c1   :  { %4606 = vperm.xlu1 %8367, %v8976_v19   ;;  %v4213_v61 = vmul.f32 %v4151_v59, %v8853_v40  ;;  %4598 = vperm.xlu2 %8365, %v8914_v54   ;;  %v11235_v17 = vpop.permute.xlu2 %4174  ;;  %v2406_v37 = vpop.f32.mrf.mxu3  ;;  %v3155_v59 = vmul.f32 %v14071_v31, %v13827_v7  ;;  %v14075_v31 = vld [vmem:[#allocation18_spill] sm:$0xff]  ;;  %v13551_v19 = vmov 26  }
 0x4c2   :  { %v11237_v58 = vadd.f32 %v2406_v37, %v2218_v28  ;;  %7842 = vmatmul.msk.f32.gmra.mxu2 %vm51_vm5, %v3797_v36  ;;  %v11250_v28 = vpop.f32.mrf.mxu1  ;;  %v7846_v37 = vld [vmem:[%s13467_s7 + $0x200] sm:$0xff]  ;;  %v11256_v36 = vpop.f32.mrf.mxu2  ;;  %v1792_v41 = vadd.f32 %v14075_v31, %v14074_v48 }
 0x4c3   :  { %7870 = vmatmul.msk.f32.vlgmr.msrb.gmra.mxu0 %vm51_vm5, %v4213_v61  ;;  %14072 = vst [vmem:[#allocation102_spill] sm:$0xff] %v11250_v28  ;;  %v14073_v61 = vld [vmem:[#allocation76_spill] sm:$0xff]  ;;  %4083 = vmatpush.msra.mxu3 %v7846_v37  ;;  %v14078_v37 = vld [vmem:[#allocation17_spill] sm:$0xff] }
 0x4c4   :  { %14069 = vst [vmem:[#allocation93_spill] sm:$0xff] %v11237_v58  ;;  %v2219_v27 = vadd.f32 %v14073_v61, %v2005_v18  ;;  %v11275_v18 = vpop.permute.xlu0 %4582  ;;  %v3156_v3 = vmul.f32 %v14078_v37, %v13836_v35  ;;  %v14079_v61 = vld [vmem:[#allocation98_spill] sm:$0xff] }
 0x4c5   :  { %v2006_v48 = vadd.f32 %v14079_v61, %v1792_v41 }
 0x4c6   :  { %5474 = vperm.xlu0 %8379, %v9074_v38  }
 0x4c7   :  { %7782 = vmatmul.msk.f32.gmra.mxu3 %vm51_vm5, %v3155_v59 }
 0x4c8   :  { %v4163_v21 = vpop.permute.xlu1 %4162 }
 0x4c9   :  { %4618 = vperm.xlu1 %8367, %v9074_v38   ;;  %4610 = vperm.xlu2 %8365, %v9002_v33   ;;  %v11268_v28 = vpop.permute.xlu2 %4186  ;;  %v2409_v59 = vpop.f32.mrf.mxu3 }
 0x4ca   :  { %v11270_v58 = vadd.f32 %v2409_v59, %v2219_v27  ;;  %7843 = vmatmul.msk.f32.gmra.mxu2 %vm51_vm5, %v3798_v16  ;;  %v11282_v31 = vpop.f32.mrf.mxu1  ;;  %v14081_v27 = vld [vmem:[#allocation24_spill] sm:$0xff]  ;;  %v11293_v37 = vpop.f32.mrf.mxu2 }
 0x4cb   :  { %7871 = vmatmul.msk.f32.gmra.mxu0 %vm51_vm5, %v4214_v46  ;;  %14080 = vst [vmem:[#allocation97_spill] sm:$0xff] %v11282_v31  ;;  %v3799_v16 = vmul.f32 %v14081_v27, %v9406_v11  ;;  %v14082_v46 = vld [vmem:[#allocation80_spill] sm:$0xff] }
 0x4cc   :  { %14076 = vst [vmem:[#allocation82_spill] sm:$0xff] %v11270_v58  ;;  %v14083_v58 = vld [vmem:[#allocation56_spill] sm:$0xff]  ;;  %v11308_v35 = vpop.permute.xlu0 %4602 }
 0x4cd   :  { %v1793_v38 = vadd.f32 %v14083_v58, %v14082_v46  ;;  %14084 = vst [vmem:[#allocation28_spill] sm:$0xff] %v11293_v37  ;;  %v3157_v58 = vmul.f32 %v14087_v57, %v9406_v11  ;;  %v11306_v46 = vpop.f32.mrf.mxu0  ;;  %v14090_v37 = vld [vmem:[#allocation31_spill] sm:$0xff]  ;;  %v4216_v57 = vmul.f32 %v4163_v21, %v9041_v9  ;;  %v14098_v21 = vld [vmem:[#allocation81_spill] sm:$0xff] }
 0x4ce   :  { %5486 = vperm.xlu0 %8379, %v9167_v14   ;;  %14088 = vst [vmem:[#allocation100_spill] sm:$0xff] %v11306_v46 }
 0x4cf   :  { %7783 = vmatmul.msk.f32.gmra.mxu3 %vm51_vm5, %v3156_v3  ;;  %v14085_v3 = vld [vmem:[#allocation72_spill] sm:$0xff]  ;;  %14089 = vst [vmem:[#allocation76_spill] sm:$0xff] %v11308_v35  ;;  %v2007_v30 = vadd.f32 %v14090_v37, %v1793_v38  ;;  %v14094_v38 = vmov 20  }
 0x4d0   :  { %v11287_v59 = vpop.permute.xlu1 %4170  ;;  %v2220_v61 = vadd.f32 %v14085_v3, %v2006_v48  ;;  %v3800_v48 = vmul.f32 %v11034_v55, %v9452_v1 }
 0x4d1   :  { %4630 = vperm.xlu1 %8367, %v9167_v14   ;;  %4622 = vperm.xlu2 %8365, %v9105_v15   ;;  %v11297_v41 = vpop.permute.xlu2 %4198 }
 0x4d2   :  { %v2412_v31 = vpop.f32.mrf.mxu3  ;;  %7844 = vmatmul.msk.f32.gmra.mxu2 %vm51_vm5, %v3799_v16  ;;  %v14092_v16 = vld [vmem:[#allocation7_spill] sm:$0xff]  ;;  %v11330_v46 = vpop.f32.mrf.mxu2 }
 0x4d3   :  { %v11301_v27 = vadd.f32 %v2412_v31, %v2220_v61  ;;  %7872 = vmatmul.msk.f32.gmra.mxu0 %vm51_vm5, %v4215_v47  ;;  %v14091_v31 = vld [vmem:[#allocation22_spill] sm:$0xff]  ;;  %v11320_v61 = vpop.f32.mrf.mxu1 }
 0x4d4   :  { %v1794_v3 = vadd.f32 %v14092_v16, %v14091_v31  ;;  %14093 = vst [vmem:[#allocation74_spill] sm:$0xff] %v11320_v61  ;;  %v3158_v16 = vmul.f32 %v14098_v21, %v9452_v1  ;;  %v14099_v61 = vld [vmem:[#allocation71_spill] sm:$0xff] }
 0x4d5   :  { %14086 = vst [vmem:[#allocation101_spill] sm:$0xff] %v11301_v27  ;;  %v11338_v35 = vpop.f32.mrf.mxu0 }
 0x4d6   :  { %8386 = vset.pattern.permute.xlu0 %v13551_v19  ;;  %v2008_v27 = vadd.f32 %v14099_v61, %v1794_v3  ;;  %14100 = vst [vmem:[#allocation98_spill] sm:$0xff] %v11338_v35 }
 0x4d7   :  { %7784 = vmatmul.msk.f32.gmra.mxu3 %vm51_vm5, %v3157_v58  ;;  %6080 = vperm.xlu0 %8386, %v8799_v29   ;;  %v14096_v58 = vld [vmem:[#allocation53_spill] sm:$0xff] }
 0x4d8   :  { %v11316_v47 = vpop.permute.xlu1 %4182  ;;  %v2221_v19 = vadd.f32 %v14096_v58, %v2007_v30  ;;  %v2222_v3 = vadd.f32 %v10957_v26, %v2008_v27  ;;  %v13553_v26 = vmov 27   ;;  %v7909_v27 = vld [vmem:[%s13467_s7 + $0x278] sm:$0xff] }
 0x4d9   :  { %8368 = vset.pattern.permute.xlu1 %v14094_v38  ;;  %4634 = vperm.xlu2 %8365, %v8777_v25   ;;  %v11325_v37 = vpop.permute.xlu2 %4210 }
 0x4da   :  { %14095 = vst [vmem:[#allocation18_spill] sm:$0xff] %v11325_v37  ;;  %4792 = vperm.xlu1 %8368, %v8737_v12   ;;  %v2415_v55 = vpop.f32.mrf.mxu3  ;;  %7845 = vmatmul.msk.f32.gmra.mxu2 %vm51_vm5, %v3800_v48  ;;  %v11340_v37 = vpop.permute.xlu0 %4614  ;;  %v14102_v48 = vld [vmem:[#allocation94_spill] sm:$0xff] }
 0x4db   :  { %v11332_v31 = vadd.f32 %v2415_v55, %v2221_v19  ;;  %7873 = vmatmul.msk.f32.gmra.mxu0 %vm51_vm5, %v4216_v57  ;;  %14101 = vst [vmem:[#allocation24_spill] sm:$0xff] %v11340_v37  ;;  %v14103_v19 = vld [vmem:[#allocation39_spill] sm:$0xff]  ;;  %v11348_v55 = vpop.f32.mrf.mxu1  ;;  %v4217_v57 = vmul.f32 %v11205_v43, %v9070_v24  ;;  %v11363_v35 = vpop.f32.mrf.mxu2  ;;  %v14107_v43 = vld [vmem:[#allocation20_spill] sm:$0xff]  ;;  %4722 = vmatpush.msrb.mxu2 %v7909_v27 }
 0x4dc   :  { %v2635_v58 = vadd.f32 %v14103_v19, %v14102_v48  ;;  %14104 = vst [vmem:[#allocation80_spill] sm:$0xff] %v11348_v55  ;;  %v14106_v48 = vld [vmem:[#allocation52_spill] sm:$0xff] }
 0x4dd   :  { %14097 = vst [vmem:[#allocation17_spill] sm:$0xff] %v11332_v31  ;;  %v3999_v19 = vmul.f32 %v14106_v48, %v8853_v40  ;;  %v11366_v55 = vpop.f32.mrf.mxu0 }
 0x4de   :  { %14108 = vst [vmem:[#allocation72_spill] sm:$0xff] %v11366_v55 }
 0x4df   :  { %7785 = vmatmul.msk.f32.gmra.mxu3 %vm51_vm5, %v3158_v16  ;;  %6092 = vperm.xlu0 %8386, %v8901_v50  }
 0x4e0   :  { %v11344_v30 = vpop.permute.xlu1 %4194 }
 0x4e1   :  { %8369 = vset.pattern.permute.xlu2 %v14094_v38  ;;  %v2849_v38 = vadd.f32 %v14107_v43, %v2635_v58  ;;  %v7908_v58 = vld [vmem:[%s13467_s7 + $0x270] sm:$0xff]  ;;  %v4218_v43 = vmul.f32 %v11287_v59, %v13894_v0  ;;  %v7907_v59 = vld [vmem:[%s13467_s7 + $0x268] sm:$0xff] }
 0x4e2   :  { %4804 = vperm.xlu1 %8368, %v8892_v49   ;;  %v2418_v61 = vpop.f32.mrf.mxu3  ;;  %4796 = vperm.xlu2 %8369, %v8799_v29   ;;  %v11356_v21 = vpop.permute.xlu2 %4372 }
 0x4e3   :  { %v11358_v16 = vadd.f32 %v2418_v61, %v2222_v3  ;;  %7874 = vmatmul.msk.f32.gmra.mxu0 %vm51_vm5, %v4217_v57  ;;  %v14109_v3 = vld [vmem:[#allocation16_spill] sm:$0xff]  ;;  %4723 = vmatpush.msrb.mxu2 %v7908_v58 }
 0x4e4   :  { %v14110_v61 = vld [vmem:[#allocation32_spill] sm:$0xff] }
 0x4e5   :  { %14105 = vst [vmem:[#allocation56_spill] sm:$0xff] %v11358_v16  ;;  %v2636_v48 = vadd.f32 %v14110_v61, %v14109_v3  ;;  %v11390_v16 = vpop.f32.mrf.mxu1  ;;  %v14116_v3 = vld [vmem:[#allocation105_spill] sm:$0xff]  ;;  %4724 = vmatpush.msrb.mxu2 %v7907_v59 }
 0x4e6   :  { %14113 = vst [vmem:[#allocation31_spill] sm:$0xff] %v11390_v16  ;;  %v11404_v16 = vpop.f32.mrf.mxu2 }
 0x4e7   :  { %7850 = vmatmul.msk.f32.vlgmr.msra.gmra.mxu3 %vm51_vm5, %v3999_v19  ;;  %8391 = vset.pattern.permute.xlu0 %v13553_v26  ;;  %v11381_v19 = vpop.permute.xlu0 %4626  ;;  %v14112_v26 = vld [vmem:[#allocation85_spill] sm:$0xff]  ;;  %v2850_v61 = vadd.f32 %v14116_v3, %v2636_v48  ;;  %v4219_v48 = vmul.f32 %v11235_v17, %v13903_v32  ;;  %v4001_v17 = vmul.f32 %v11072_v63, %v9029_v51 }
 0x4e8   :  { %6290 = vperm.xlu0 %8391, %v8737_v12   ;;  %v11374_v57 = vpop.permute.xlu1 %4206  ;;  %14111 = vst [vmem:[#allocation86_spill] sm:$0xff] %v11381_v19  ;;  %v3063_v55 = vadd.f32 %v14112_v26, %v2849_v38  ;;  %v14115_v38 = vld [vmem:[#allocation26_spill] sm:$0xff] }
 0x4e9   :  { %v4000_v26 = vmul.f32 %v14115_v38, %v8943_v2  ;;  %v7906_v19 = vld [vmem:[%s13467_s7 + $0x260] sm:$0xff]  ;;  %v3064_v59 = vadd.f32 %v11024_v62, %v2850_v61 }
 0x4ea   :  { %4812 = vperm.xlu1 %8368, %v8914_v54   ;;  %v3229_v37 = vpop.f32.mrf.mxu3  ;;  %4808 = vperm.xlu2 %8369, %v8901_v50   ;;  %v11388_v27 = vpop.permute.xlu2 %4380  ;;  %v14123_v61 = vld [vmem:[#allocation34_spill] sm:$0xff] }
 0x4eb   :  { %v11392_v31 = vadd.f32 %v3229_v37, %v3063_v55  ;;  %7875 = vmatmul.msk.f32.gmra.mxu0 %vm51_vm5, %v4218_v43  ;;  %4725 = vmatpush.msrb.mxu2 %v7906_v19  ;;  %v14117_v37 = vld [vmem:[#allocation90_spill] sm:$0xff]  ;;  %v14118_v55 = vld [vmem:[#allocation37_spill] sm:$0xff]  ;;  %v11410_v43 = vpop.f32.mrf.mxu0 }
 0x4ec   :  { %v2637_v58 = vadd.f32 %v14118_v55, %v14117_v37  ;;  %14119 = vst [vmem:[#allocation7_spill] sm:$0xff] %v11410_v43 }
 0x4ed   :  { %14114 = vst [vmem:[#allocation22_spill] sm:$0xff] %v11392_v31  ;;  %v11427_v62 = vpop.f32.mrf.mxu1 }
 0x4ee   :  { %14122 = vst [vmem:[#allocation71_spill] sm:$0xff] %v11427_v62  ;;  %v2851_v55 = vadd.f32 %v14123_v61, %v2637_v58 }
 0x4ef   :  { %7851 = vmatmul.msk.f32.gmra.mxu3 %vm51_vm5, %v4000_v26  ;;  %v11417_v26 = vpop.permute.xlu0 %4638 }
 0x4f0   :  { %6314 = vperm.xlu0 %8391, %v8951_v6   ;;  %14120 = vst [vmem:[#allocation53_spill] sm:$0xff] %v11417_v26  ;;  %v3065_v63 = vadd.f32 %v11059_v20, %v2851_v55  ;;  %v14129_v55 = vld [vmem:[#allocation106_spill] sm:$0xff] }
 0x4f2   :  { %4824 = vperm.xlu1 %8368, %v9002_v33   ;;  %v4369_v38 = vpop.permute.xlu1 %4368  ;;  %v3232_v3 = vpop.f32.mrf.mxu3  ;;  %4816 = vperm.xlu2 %8369, %v8951_v6  }
 0x4f3   :  { %v4428_v19 = vmul.f32 %v4369_v38, %v8943_v2  ;;  %v11420_v31 = vadd.f32 %v3232_v3, %v3064_v59  ;;  %v11422_v37 = vpop.permute.xlu2 %4392  ;;  %7876 = vmatmul.msk.f32.gmra.mxu0 %vm51_vm5, %v4219_v48  ;;  %v14124_v59 = vld [vmem:[#allocation64_spill] sm:$0xff]  ;;  %v14125_v3 = vld [vmem:[#allocation78_spill] sm:$0xff]  ;;  %v11437_v48 = vpop.f32.mrf.mxu2 }
 0x4f4   :  { %v4220_v38 = vmul.f32 %v14124_v59, %v13913_v56  ;;  %v2638_v26 = vadd.f32 %v14125_v3, %v10996_v44  ;;  %v14126_v44 = vld [vmem:[#allocation44_spill] sm:$0xff]  ;;  %v11451_v3 = vpop.f32.mrf.mxu0 }
 0x4f5   :  { %14121 = vst [vmem:[#allocation81_spill] sm:$0xff] %v11420_v31  ;;  %7891 = vmatmul.msk.f32.gmra.mxu1 %vm51_vm5, %v4428_v19  ;;  %v4429_v19 = vmul.f32 %v11356_v21, %v9029_v51  ;;  %v4002_v59 = vmul.f32 %v14126_v44, %v9041_v9  ;;  %v11457_v31 = vpop.f32.mrf.mxu1  ;;  %v13555_v21 = vmov 24  }
 0x4f6   :  { %14127 = vst [vmem:[#allocation94_spill] sm:$0xff] %v11451_v3  ;;  %v2852_v62 = vadd.f32 %v14129_v55, %v2638_v26 }
 0x4f7   :  { %7852 = vmatmul.msk.f32.gmra.mxu3 %vm51_vm5, %v4001_v17  ;;  %v11453_v20 = vpop.permute.xlu0 %4800  ;;  %14130 = vst [vmem:[#allocation52_spill] sm:$0xff] %v11457_v31 }
 0x4f8   :  { %6334 = vperm.xlu0 %8391, %v9105_v15   ;;  %14128 = vst [vmem:[#allocation39_spill] sm:$0xff] %v11453_v20  ;;  %v3066_v44 = vadd.f32 %v11100_v23, %v2852_v62  ;;  %v14134_v62 = vld [vmem:[#allocation12_spill] sm:$0xff] }
 0x4fa   :  { %4836 = vperm.xlu1 %8368, %v9105_v15   ;;  %v4377_v43 = vpop.permute.xlu1 %4376  ;;  %4828 = vperm.xlu2 %8369, %v9045_v10   ;;  %v3235_v58 = vpop.f32.mrf.mxu3 }
 0x4fb   :  { %v11444_v17 = vadd.f32 %v3235_v58, %v3065_v63  ;;  %v11446_v61 = vpop.permute.xlu2 %4404  ;;  %7877 = vmatmul.msk.f32.gmra.mxu0 %vm51_vm5, %v4220_v38  ;;  %v14131_v38 = vld [vmem:[#allocation36_spill] sm:$0xff]  ;;  %v4221_v58 = vmul.f32 %v11316_v47, %v13921_v39 }
 0x4fc   :  { %v2639_v63 = vadd.f32 %v14131_v38, %v11022_v53  ;;  %v11477_v53 = vpop.f32.mrf.mxu2  ;;  %v14133_v47 = vld [vmem:[#allocation96_spill] sm:$0xff]  ;;  %v11483_v3 = vpop.f32.mrf.mxu0 }
 0x4fd   :  { %7892 = vmatmul.msk.f32.gmra.mxu1 %vm51_vm5, %v4429_v19  ;;  %v4003_v23 = vmul.f32 %v14133_v47, %v9070_v24  ;;  %14135 = vst [vmem:[#allocation16_spill] sm:$0xff] %v11483_v3  ;;  %v14140_v47 = vmov 21  }
 0x4fe   :  { %v2853_v38 = vadd.f32 %v14134_v62, %v2639_v63 }
 0x4ff   :  { %7853 = vmatmul.msk.f32.gmra.mxu3 %vm51_vm5, %v4002_v59  ;;  %v4430_v59 = vmul.f32 %v4377_v43, %v9041_v9  ;;  %v11485_v31 = vpop.permute.xlu0 %4820  ;;  %v14137_v43 = vld [vmem:[#allocation60_spill] sm:$0xff] }
 0x500   :  { %8412 = vset.pattern.permute.xlu0 %v13555_v21  ;;  %14136 = vst [vmem:[#allocation32_spill] sm:$0xff] %v11485_v31  ;;  %v14143_v31 = vld [vmem:[#allocation45_spill] sm:$0xff] }
 0x501   :  { %5648 = vperm.xlu0 %8412, %v8737_v12  }
 0x502   :  { %4848 = vperm.xlu1 %8368, %v8777_v25   ;;  %v11468_v26 = vpop.permute.xlu1 %4388  ;;  %v3238_v19 = vpop.f32.mrf.mxu3  ;;  %4840 = vperm.xlu2 %8369, %v9138_v13  }
 0x503   :  { %v11472_v55 = vadd.f32 %v3238_v19, %v3066_v44  ;;  %v11474_v21 = vpop.permute.xlu2 %4416  ;;  %7878 = vmatmul.msk.f32.gmra.mxu0 %vm51_vm5, %v4221_v58  ;;  %v14138_v44 = vld [vmem:[#allocation66_spill] sm:$0xff]  ;;  %v4222_v58 = vmul.f32 %v11268_v28, %v9243_v4 }
 0x504   :  { %v2640_v19 = vadd.f32 %v14138_v44, %v14137_v43 }
 0x505   :  { %14132 = vst [vmem:[#allocation20_spill] sm:$0xff] %v11472_v55  ;;  %7893 = vmatmul.msk.f32.gmra.mxu1 %vm51_vm5, %v4430_v59  ;;  %v11492_v55 = vpop.f32.mrf.mxu1  ;;  %v3067_v59 = vadd.f32 %v11145_v22, %v2853_v38  ;;  %v14142_v22 = vld [vmem:[#allocation55_spill] sm:$0xff] }
 0x506   :  { %14139 = vst [vmem:[#allocation85_spill] sm:$0xff] %v11492_v55  ;;  %v4004_v38 = vmul.f32 %v14142_v22, %v13894_v0  ;;  %v2854_v3 = vadd.f32 %v14143_v31, %v2640_v19  ;;  %v11511_v55 = vpop.f32.mrf.mxu2 }
 0x507   :  { %7854 = vmatmul.msk.f32.gmra.mxu3 %vm51_vm5, %v4003_v23  ;;  %v4431_v23 = vmul.f32 %v11388_v27, %v9070_v24  ;;  %v14144_v27 = vld [vmem:[#allocation57_spill] sm:$0xff] }
 0x509   :  { %5680 = vperm.xlu0 %8412, %v9002_v33  }
 0x50a   :  { %8372 = vset.pattern.permute.xlu1 %v14140_v47  ;;  %v11497_v63 = vpop.permute.xlu1 %4400  ;;  %v3241_v62 = vpop.f32.mrf.mxu3  ;;  %4852 = vperm.xlu2 %8369, %v8825_v34  }
 0x50b   :  { %v11502_v43 = vadd.f32 %v3241_v62, %v3067_v59  ;;  %5010 = vperm.xlu1 %8372, %v8799_v29   ;;  %v4579_v28 = vpop.permute.xlu2 %4578  ;;  %7879 = vmatmul.msk.f32.gmra.mxu0 %vm51_vm5, %v4222_v58  ;;  %v14145_v59 = vld [vmem:[#allocation89_spill] sm:$0xff]  ;;  %v11519_v58 = vpop.permute.xlu0 %4832 }
 0x50c   :  { %v4641_v44 = vmul.f32 %v4579_v28, %v8853_v40  ;;  %v2641_v62 = vadd.f32 %v14145_v59, %v14144_v27  ;;  %14147 = vst [vmem:[#allocation90_spill] sm:$0xff] %v11519_v58  ;;  %v3068_v28 = vadd.f32 %v11182_v42, %v2854_v3  ;;  %v4642_v3 = vmul.f32 %v11275_v18, %v8943_v2 }
 0x50d   :  { %14141 = vst [vmem:[#allocation26_spill] sm:$0xff] %v11502_v43  ;;  %7894 = vmatmul.msk.f32.gmra.mxu1 %vm51_vm5, %v4431_v23  ;;  %v11517_v43 = vpop.f32.mrf.mxu0  ;;  %v14148_v23 = vld [vmem:[#allocation68_spill] sm:$0xff]  ;;  %v11530_v27 = vpop.f32.mrf.mxu1 }
 0x50e   :  { %7910 = vmatmul.msk.f32.vlgmr.msrb.gmra.mxu2 %vm51_vm5, %v4641_v44  ;;  %14146 = vst [vmem:[#allocation105_spill] sm:$0xff] %v11517_v43  ;;  %v4223_v31 = vmul.f32 %v14148_v23, %v13804_v52  ;;  %v14149_v44 = vld [vmem:[#allocation91_spill] sm:$0xff] }
 0x50f   :  { %7855 = vmatmul.msk.f32.gmra.mxu3 %vm51_vm5, %v4004_v38  ;;  %v4432_v38 = vmul.f32 %v14149_v44, %v13894_v0  ;;  %14150 = vst [vmem:[#allocation37_spill] sm:$0xff] %v11530_v27  ;;  %v14153_v44 = vld [vmem:[#allocation47_spill] sm:$0xff]  ;;  %v13557_v27 = vmov 25  }
 0x510   :  { %v2855_v58 = vadd.f32 %v14153_v44, %v2641_v62 }
 0x511   :  { %5700 = vperm.xlu0 %8412, %v9167_v14  }
 0x512   :  { %v11525_v19 = vpop.permute.xlu1 %4412  ;;  %v3244_v22 = vpop.f32.mrf.mxu3  ;;  %8373 = vset.pattern.permute.xlu2 %v14140_v47  ;;  %v14152_v47 = vld [vmem:[#allocation29_spill] sm:$0xff]  ;;  %v3069_v18 = vadd.f32 %v11216_v60, %v2855_v58 }
 0x513   :  { %v11532_v59 = vadd.f32 %v3244_v22, %v3068_v28  ;;  %5018 = vperm.xlu1 %8372, %v8892_v49   ;;  %5014 = vperm.xlu2 %8373, %v8865_v45   ;;  %v11536_v42 = vpop.permute.xlu2 %4590  ;;  %v4005_v23 = vmul.f32 %v14152_v47, %v13903_v32  ;;  %v11547_v28 = vpop.f32.mrf.mxu2  ;;  %v14154_v22 = vld [vmem:[#allocation73_spill] sm:$0xff]  ;;  %v4433_v47 = vmul.f32 %v11468_v26, %v13903_v32  ;;  %v14160_v26 = vld [vmem:[#allocation92_spill] sm:$0xff] }
 0x514   :  { %7880 = vmatmul.msk.f32.gmra.mxu0 %vm51_vm5, %v4223_v31  ;;  %v2642_v43 = vadd.f32 %v14154_v22, %v11122_v8  ;;  %v4224_v31 = vmul.f32 %v11344_v30, %v13815_v5  ;;  %v11568_v60 = vpop.permute.xlu0 %4844  ;;  %v14158_v30 = vld [vmem:[#allocation8_spill] sm:$0xff] }
 0x515   :  { %14151 = vst [vmem:[#allocation34_spill] sm:$0xff] %v11532_v59  ;;  %7895 = vmatmul.msk.f32.gmra.mxu1 %vm51_vm5, %v4432_v38  ;;  %v4006_v58 = vmul.f32 %v14158_v30, %v13913_v56  ;;  %v11573_v44 = vpop.f32.mrf.mxu1  ;;  %v14162_v30 = vld [vmem:[#allocation42_spill] sm:$0xff]  ;;  %v14171_v59 = vld [vmem:[#allocation28_spill] sm:$0xff] }
 0x516   :  { %7911 = vmatmul.msk.f32.gmra.mxu2 %vm51_vm5, %v4642_v3  ;;  %v11558_v3 = vpop.f32.mrf.mxu0  ;;  %14157 = vst [vmem:[#allocation44_spill] sm:$0xff] %v11568_v60  ;;  %v2856_v22 = vadd.f32 %v14160_v26, %v2642_v43  ;;  %v7947_v43 = vld [vmem:[%s13467_s7 + $0x2a8] sm:$0xff]  ;;  %v4225_v26 = vmul.f32 %v11297_v41, %v13827_v7  ;;  %v7946_v41 = vld [vmem:[%s13467_s7 + $0x2a0] sm:$0xff] }
 0x517   :  { %7856 = vmatmul.msk.f32.gmra.mxu3 %vm51_vm5, %v4005_v23  ;;  %14155 = vst [vmem:[#allocation64_spill] sm:$0xff] %v11558_v3 }
 0x518   :  { %14159 = vst [vmem:[#allocation106_spill] sm:$0xff] %v11573_v44  ;;  %v3070_v60 = vadd.f32 %v11256_v36, %v2856_v22  ;;  %v14164_v22 = vld [vmem:[#allocation13_spill] sm:$0xff] }
 0x519   :  { %8417 = vset.pattern.permute.xlu0 %v13557_v27 }
 0x51a   :  { %v11555_v38 = vpop.permute.xlu1 %4424  ;;  %v3247_v62 = vpop.f32.mrf.mxu3  ;;  %5874 = vperm.xlu0 %8417, %v8892_v49  }
 0x51b   :  { %v11562_v23 = vadd.f32 %v3247_v62, %v3069_v18  ;;  %5030 = vperm.xlu1 %8372, %v8951_v6   ;;  %5022 = vperm.xlu2 %8373, %v8901_v50   ;;  %v11566_v8 = vpop.permute.xlu2 %4598  ;;  %v7949_v18 = vld [vmem:[%s13467_s7 + $0x2b8] sm:$0xff]  ;;  %v14161_v62 = vld [vmem:[#allocation75_spill] sm:$0xff] }
 0x51c   :  { %7881 = vmatmul.msk.f32.gmra.mxu0 %vm51_vm5, %v4224_v31  ;;  %v7948_v31 = vld [vmem:[%s13467_s7 + $0x2b0] sm:$0xff]  ;;  %v2643_v27 = vadd.f32 %v14162_v30, %v14161_v62  ;;  %v14172_v6 = vld [vmem:[#allocation63_spill] sm:$0xff] }
 0x51d   :  { %14156 = vst [vmem:[#allocation78_spill] sm:$0xff] %v11562_v23  ;;  %7896 = vmatmul.msk.f32.gmra.mxu1 %vm51_vm5, %v4433_v47  ;;  %5150 = vmatpush.msra.mxu0 %v7949_v18  ;;  %v11590_v47 = vpop.f32.mrf.mxu2  ;;  %v4434_v18 = vmul.f32 %v11422_v37, %v13913_v56  ;;  %v11617_v44 = vpop.f32.mrf.mxu1 }
 0x51e   :  { %14168 = vst [vmem:[#allocation12_spill] sm:$0xff] %v11617_v44  ;;  %v14176_v44 = vld [vmem:[#allocation23_spill] sm:$0xff] }
 0x51f   :  { %7857 = vmatmul.msk.f32.gmra.mxu3 %vm51_vm5, %v4006_v58  ;;  %5151 = vmatpush.msra.mxu0 %v7948_v31 }
 0x521   :  { %5152 = vmatpush.msra.mxu0 %v7947_v43  ;;  %v14165_v43 = vld [vmem:[#allocation51_spill] sm:$0xff] }
 0x522   :  { %v3250_v58 = vpop.f32.mrf.mxu3  ;;  %5894 = vperm.xlu0 %8417, %v9002_v33   ;;  %v4007_v37 = vmul.f32 %v14165_v43, %v13921_v39 }
 0x523   :  { %v11597_v31 = vadd.f32 %v3250_v58, %v3070_v60  ;;  %5042 = vperm.xlu1 %8372, %v9045_v10   ;;  %v4587_v36 = vpop.permute.xlu1 %4586  ;;  %5034 = vperm.xlu2 %8373, %v14164_v22   ;;  %v11601_v62 = vpop.permute.xlu2 %4610  ;;  %v14167_v58 = vld [vmem:[#allocation21_spill] sm:$0xff] }
 0x524   :  { %v4643_v30 = vmul.f32 %v4587_v36, %v9029_v51  ;;  %7882 = vmatmul.msk.f32.gmra.mxu0 %vm51_vm5, %v4225_v26  ;;  %v11610_v60 = vpop.f32.mrf.mxu0  ;;  %v2857_v3 = vadd.f32 %v14167_v58, %v2643_v27  ;;  %v14169_v36 = vld [vmem:[#allocation99_spill] sm:$0xff]  ;;  %v14170_v26 = vld [vmem:[#allocation88_spill] sm:$0xff] }
 0x525   :  { %14163 = vst [vmem:[#allocation36_spill] sm:$0xff] %v11597_v31  ;;  %7897 = vmatmul.msk.f32.gmra.mxu1 %vm51_vm5, %v4434_v18  ;;  %5153 = vmatpush.msra.mxu0 %v7946_v41  ;;  %v11614_v31 = vpop.permute.xlu0 %5006  ;;  %v2644_v23 = vadd.f32 %v14170_v26, %v14169_v36  ;;  %v11625_v18 = vpop.f32.mrf.mxu2  ;;  %v14174_v41 = vld [vmem:[#allocation70_spill] sm:$0xff]  ;;  %v14178_v26 = vld [vmem:[#allocation48_spill] sm:$0xff] }
 0x526   :  { %14166 = vst [vmem:[#allocation96_spill] sm:$0xff] %v11610_v60  ;;  %7912 = vmatmul.msk.f32.gmra.mxu2 %vm51_vm5, %v4643_v30  ;;  %v3071_v43 = vadd.f32 %v14171_v59, %v2857_v3  ;;  %v14173_v60 = vld [vmem:[#allocation14_spill] sm:$0xff]  ;;  %v4435_v30 = vmul.f32 %v14174_v41, %v13921_v39  ;;  %v4644_v59 = vmul.f32 %v11536_v42, %v9041_v9  ;;  %v14177_v3 = vld [vmem:[#allocation79_spill] sm:$0xff]  ;;  %v11651_v9 = vpop.f32.mrf.mxu1 }
 0x527   :  { %7858 = vmatmul.msk.f32.gmra.mxu3 %vm51_vm5, %v4007_v37  ;;  %v4226_v20 = vmul.f32 %v14173_v60, %v14172_v6  ;;  %v4008_v60 = vmul.f32 %v14177_v3, %v9243_v4  ;;  %14183 = vst [vmem:[#allocation45_spill] sm:$0xff] %v11651_v9  ;;  %v14192_v9 = vld [vmem:[#allocation18_spill] sm:$0xff] }
 0x52a   :  { %v3253_v27 = vpop.f32.mrf.mxu3  ;;  %5914 = vperm.xlu0 %8417, %v9167_v14  }
 0x52b   :  { %v11630_v58 = vadd.f32 %v3253_v27, %v3071_v43  ;;  %5054 = vperm.xlu1 %8372, %v9138_v13   ;;  %v4595_v37 = vpop.permute.xlu1 %4594  ;;  %5046 = vperm.xlu2 %8373, %v14176_v44   ;;  %v11634_v36 = vpop.permute.xlu2 %4622  ;;  %v2858_v43 = vadd.f32 %v14178_v26, %v2644_v23  ;;  %v14182_v13 = vld [vmem:[#allocation62_spill] sm:$0xff]  ;;  %v14184_v23 = vmov 26  }
 0x52c   :  { %7883 = vmatmul.msk.f32.gmra.mxu0 %vm51_vm5, %v4226_v20  ;;  %v11644_v27 = vpop.f32.mrf.mxu0 }
 0x52d   :  { %14175 = vst [vmem:[#allocation60_spill] sm:$0xff] %v11630_v58  ;;  %7898 = vmatmul.msk.f32.gmra.mxu1 %vm51_vm5, %v4435_v30  ;;  %v11647_v41 = vpop.permute.xlu0 %5026  ;;  %v14181_v58 = vld [vmem:[#allocation69_spill] sm:$0xff]  ;;  %v3072_v20 = vadd.f32 %v11330_v46, %v2858_v43  ;;  %v4227_v30 = vmul.f32 %v11374_v57, %v9406_v11  ;;  %v4645_v46 = vmul.f32 %v4595_v37, %v9070_v24  ;;  %v14186_v57 = vld [vmem:[#allocation84_spill] sm:$0xff]  ;;  %v14187_v43 = vld [vmem:[#allocation103_spill] sm:$0xff] }
 0x52e   :  { %7913 = vmatmul.msk.f32.gmra.mxu2 %vm51_vm5, %v4644_v59  ;;  %14179 = vst [vmem:[#allocation66_spill] sm:$0xff] %v11644_v27  ;;  %v2645_v42 = vadd.f32 %v14182_v13, %v14181_v58  ;;  %v4436_v59 = vmul.f32 %v11497_v63, %v9243_v4  ;;  %v4009_v58 = vmul.f32 %v14186_v57, %v13804_v52  ;;  %v11672_v63 = vpop.f32.mrf.mxu2  ;;  %v14189_v27 = vld [vmem:[#allocation83_spill] sm:$0xff] }
 0x52f   :  { %7859 = vmatmul.msk.f32.gmra.mxu3 %vm51_vm5, %v4008_v60  ;;  %14180 = vst [vmem:[#allocation55_spill] sm:$0xff] %v11647_v41  ;;  %v4228_v41 = vmul.f32 %v14192_v9, %v9452_v1 }
 0x532   :  { %v3256_v3 = vpop.f32.mrf.mxu3  ;;  %8422 = vset.pattern.permute.xlu0 %v14184_v23 }
 0x533   :  { %v11659_v26 = vadd.f32 %v3256_v3, %v3072_v20  ;;  %5066 = vperm.xlu1 %8372, %v8825_v34   ;;  %v11662_v60 = vpop.permute.xlu1 %4606  ;;  %5058 = vperm.xlu2 %8373, %v9167_v14   ;;  %v11665_v13 = vpop.permute.xlu2 %4634  ;;  %v2859_v20 = vadd.f32 %v14187_v43, %v2645_v42  ;;  %v14188_v3 = vld [vmem:[#allocation93_spill] sm:$0xff]  ;;  %v14196_v43 = vld [vmem:[#allocation87_spill] sm:$0xff] }
 0x534   :  { %6112 = vperm.xlu0 %8422, %v9045_v10   ;;  %7884 = vmatmul.msk.f32.gmra.mxu0 %vm51_vm5, %v4227_v30  ;;  %v2646_v37 = vadd.f32 %v14189_v27, %v14188_v3  ;;  %v4437_v27 = vmul.f32 %v11446_v61, %v13804_v52  ;;  %v14197_v3 = vld [vmem:[#allocation27_spill] sm:$0xff] }
 0x535   :  { %14185 = vst [vmem:[#allocation57_spill] sm:$0xff] %v11659_v26  ;;  %7899 = vmatmul.msk.f32.gmra.mxu1 %vm51_vm5, %v4436_v59  ;;  %v11680_v26 = vpop.f32.mrf.mxu0  ;;  %v3073_v30 = vadd.f32 %v11363_v35, %v2859_v20  ;;  %v11683_v23 = vpop.permute.xlu0 %5038  ;;  %v4646_v35 = vmul.f32 %v11566_v8, %v13894_v0  ;;  %v4010_v20 = vmul.f32 %v14196_v43, %v13815_v5  ;;  %v7929_v8 = vld [vmem:[%s13467_s7 + $0x298] sm:$0xff] }
 0x536   :  { %7914 = vmatmul.msk.f32.gmra.mxu2 %vm51_vm5, %v4645_v46  ;;  %14190 = vst [vmem:[#allocation89_spill] sm:$0xff] %v11680_v26  ;;  %v11687_v59 = vpop.f32.mrf.mxu1  ;;  %v14195_v46 = vmov 22   ;;  %v11710_v61 = vpop.f32.mrf.mxu2  ;;  %4936 = vmatpush.msrb.mxu3 %v7929_v8 }
 0x537   :  { %7860 = vmatmul.msk.f32.gmra.mxu3 %vm51_vm5, %v4009_v58  ;;  %14191 = vst [vmem:[#allocation68_spill] sm:$0xff] %v11683_v23 }
 0x538   :  { %14193 = vst [vmem:[#allocation91_spill] sm:$0xff] %v11687_v59 }
 0x53a   :  { %v3259_v57 = vpop.f32.mrf.mxu3 }
 0x53b   :  { %v11689_v42 = vadd.f32 %v3259_v57, %v3073_v30  ;;  %8376 = vset.pattern.permute.xlu1 %v14195_v46  ;;  %v11692_v58 = vpop.permute.xlu1 %4618  ;;  %8374 = vset.pattern.permute.xlu2 %v14195_v46  ;;  %v2860_v30 = vadd.f32 %v14197_v3, %v2646_v37  ;;  %v14198_v57 = vld [vmem:[#allocation82_spill] sm:$0xff]  ;;  %v14199_v46 = vld [vmem:[#allocation77_spill] sm:$0xff] }
 0x53c   :  { %6132 = vperm.xlu0 %8422, %v8777_v25   ;;  %5228 = vperm.xlu1 %8376, %v8865_v45   ;;  %v11701_v9 = vpop.permute.xlu2 %4796  ;;  %v2647_v43 = vadd.f32 %v14199_v46, %v14198_v57  ;;  %v7928_v37 = vld [vmem:[%s13467_s7 + $0x290] sm:$0xff] }
 0x53d   :  { %14194 = vst [vmem:[#allocation29_spill] sm:$0xff] %v11689_v42  ;;  %5220 = vperm.xlu2 %8374, %v8737_v12   ;;  %7885 = vmatmul.msk.f32.gmra.mxu0 %vm51_vm5, %v4228_v41  ;;  %v3074_v26 = vadd.f32 %v11404_v16, %v2860_v30  ;;  %v14202_v57 = vld [vmem:[#allocation104_spill] sm:$0xff]  ;;  %v11732_v16 = vpop.permute.xlu0 %5050  ;;  %v13565_v30 = vmov 30  }
 0x53e   :  { %7900 = vmatmul.msk.f32.gmra.mxu1 %vm51_vm5, %v4437_v27  ;;  %7915 = vmatmul.msk.f32.gmra.mxu2 %vm51_vm5, %v4646_v35  ;;  %v11722_v27 = vpop.f32.mrf.mxu0  ;;  %v5069_v35 = vmul.f32 %v11614_v31, %v8853_v40  ;;  %v4438_v46 = vmul.f32 %v14202_v57, %v13815_v5  ;;  %14203 = vst [vmem:[#allocation8_spill] sm:$0xff] %v11732_v16 }
 0x53f   :  { %7861 = vmatmul.msk.f32.gmra.mxu3 %vm51_vm5, %v4010_v20  ;;  %14200 = vst [vmem:[#allocation47_spill] sm:$0xff] %v11722_v27  ;;  %v14204_v27 = vld [vmem:[#allocation61_spill] sm:$0xff] }
 0x540   :  { %4937 = vmatpush.msrb.mxu3 %v7928_v37  ;;  %v4011_v31 = vmul.f32 %v14204_v27, %v13827_v7  ;;  %v14207_v37 = vld [vmem:[#allocation95_spill] sm:$0xff] }
 0x541   :  { %v2861_v57 = vadd.f32 %v14207_v37, %v2647_v43  ;;  %v7926_v27 = vld [vmem:[%s13467_s7 + $0x280] sm:$0xff]  ;;  %v11759_v37 = vpop.f32.mrf.mxu2 }
 0x542   :  { %v3262_v41 = vpop.f32.mrf.mxu3 }
 0x543   :  { %v11726_v20 = vadd.f32 %v3262_v41, %v3074_v26  ;;  %v11728_v3 = vpop.permute.xlu1 %4630  ;;  %v14205_v26 = vld [vmem:[#allocation76_spill] sm:$0xff] }
 0x544   :  { %8441 = vset.pattern.permute.xlu0 %v13565_v30  ;;  %5236 = vperm.xlu1 %8376, %v8901_v50   ;;  %v11736_v8 = vpop.permute.xlu2 %4808  ;;  %v4647_v41 = vmul.f32 %v14205_v26, %v13903_v32  ;;  %v7927_v30 = vld [vmem:[%s13467_s7 + $0x288] sm:$0xff] }
 0x545   :  { %14201 = vst [vmem:[#allocation73_spill] sm:$0xff] %v11726_v20  ;;  %v11742_v20 = vpop.f32.mrf.mxu1  ;;  %5232 = vperm.xlu2 %8374, %v8892_v49   ;;  %7950 = vmatmul.msk.f32.vlgmr.msra.gmra.mxu0 %vm51_vm5, %v5069_v35  ;;  %v14208_v35 = vld [vmem:[#allocation101_spill] sm:$0xff]  ;;  %v14209_v26 = vld [vmem:[#allocation11_spill] sm:$0xff] }
 0x546   :  { %14206 = vst [vmem:[#allocation92_spill] sm:$0xff] %v11742_v20  ;;  %6944 = vperm.xlu0 %8441, %v8892_v49   ;;  %7901 = vmatmul.msk.f32.gmra.mxu1 %vm51_vm5, %v4438_v46  ;;  %v2648_v43 = vadd.f32 %v14209_v26, %v14208_v35  ;;  %v3075_v20 = vadd.f32 %v11437_v48, %v2861_v57  ;;  %v14212_v48 = vld [vmem:[#allocation102_spill] sm:$0xff] }
 0x547   :  { %7916 = vmatmul.msk.f32.gmra.mxu2 %vm51_vm5, %v4647_v41  ;;  %7862 = vmatmul.msk.f32.gmra.mxu3 %vm51_vm5, %v4011_v31  ;;  %v4439_v46 = vmul.f32 %v11525_v19, %v13827_v7  ;;  %v4648_v35 = vmul.f32 %v11662_v60, %v13913_v56  ;;  %v13567_v19 = vmov 31   ;;  %v14216_v60 = vld [vmem:[#allocation17_spill] sm:$0xff] }
 0x548   :  { %4938 = vmatpush.msrb.mxu3 %v7927_v30  ;;  %v11771_v30 = vpop.f32.mrf.mxu0  ;;  %v2862_v57 = vadd.f32 %v14212_v48, %v2648_v43  ;;  %v14217_v43 = vld [vmem:[#allocation58_spill] sm:$0xff] }
 0x549   :  { %14211 = vst [vmem:[#allocation42_spill] sm:$0xff] %v11771_v30  ;;  %v2649_v48 = vadd.f32 %v14217_v43, %v14216_v60  ;;  %v14221_v60 = vld [vmem:[#allocation43_spill] sm:$0xff] }
 0x54a   :  { %v3265_v42 = vpop.f32.mrf.mxu3  ;;  %4939 = vmatpush.msrb.mxu3 %v7926_v27  ;;  %v11779_v27 = vpop.permute.xlu0 %5062 }
 0x54b   :  { %v11762_v59 = vadd.f32 %v3265_v42, %v3075_v20  ;;  %v14213_v42 = vld [vmem:[#allocation15_spill] sm:$0xff]  ;;  %14214 = vst [vmem:[#allocation51_spill] sm:$0xff] %v11779_v27 }
 0x54c   :  { %5248 = vperm.xlu1 %8376, %v14164_v22   ;;  %v11767_v31 = vpop.permute.xlu1 %4792  ;;  %v11769_v41 = vpop.permute.xlu2 %4816  ;;  %v4012_v20 = vmul.f32 %v14213_v42, %v14172_v6  ;;  %v3076_v42 = vadd.f32 %v11477_v53, %v2862_v57  ;;  %v14220_v53 = vld [vmem:[#allocation97_spill] sm:$0xff] }
 0x54d   :  { %14210 = vst [vmem:[#allocation75_spill] sm:$0xff] %v11762_v59  ;;  %5240 = vperm.xlu2 %8374, %v8914_v54   ;;  %v11783_v26 = vpop.f32.mrf.mxu1  ;;  %v11791_v59 = vpop.f32.mrf.mxu2  ;;  %v2863_v57 = vadd.f32 %v14220_v53, %v2649_v48 }
 0x54e   :  { %8442 = vset.pattern.permute.xlu0 %v13567_v19  ;;  %7902 = vmatmul.msk.f32.gmra.mxu1 %vm51_vm5, %v4439_v46  ;;  %14215 = vst [vmem:[#allocation21_spill] sm:$0xff] %v11783_v26  ;;  %v4440_v46 = vmul.f32 %v11474_v21, %v14172_v6 }
 0x54f   :  { %7146 = vperm.xlu0 %8442, %v8737_v12   ;;  %7917 = vmatmul.msk.f32.gmra.mxu2 %vm51_vm5, %v4648_v35  ;;  %v3077_v48 = vadd.f32 %v11511_v55, %v2863_v57  ;;  %v14231_v55 = vld [vmem:[#allocation49_spill] sm:$0xff] }
 0x550   :  { %7863 = vmatmul.msk.f32.gmra.mxu3 %vm51_vm5, %v4012_v20  ;;  %v4649_v20 = vmul.f32 %v11601_v62, %v13921_v39  ;;  %v11809_v43 = vpop.f32.mrf.mxu0  ;;  %v14223_v62 = vld [vmem:[#allocation56_spill] sm:$0xff]  ;;  %v4014_v57 = vmul.f32 %v14231_v55, %v9452_v1 }
 0x551   :  { %14222 = vst [vmem:[#allocation28_spill] sm:$0xff] %v11809_v43 }
 0x552   :  { %v3268_v30 = vpop.f32.mrf.mxu3  ;;  %v11813_v21 = vpop.permute.xlu0 %5224 }
 0x553   :  { %v11793_v27 = vadd.f32 %v3268_v30, %v3076_v42  ;;  %v4013_v30 = vmul.f32 %v14221_v60, %v9406_v11  ;;  %v14224_v42 = vld [vmem:[#allocation10_spill] sm:$0xff] }
 0x554   :  { %5260 = vperm.xlu1 %8376, %v14176_v44   ;;  %v11798_v19 = vpop.permute.xlu1 %4804  ;;  %v11800_v35 = vpop.permute.xlu2 %4828 }
 0x555   :  { %14218 = vst [vmem:[#allocation99_spill] sm:$0xff] %v11793_v27  ;;  %5252 = vperm.xlu2 %8374, %v9002_v33   ;;  %v2650_v27 = vadd.f32 %v14224_v42, %v14223_v62  ;;  %v11818_v26 = vpop.f32.mrf.mxu1  ;;  %v14230_v62 = vld [vmem:[#allocation74_spill] sm:$0xff] }
 0x556   :  { %14219 = vst [vmem:[#allocation88_spill] sm:$0xff] %v11800_v35  ;;  %7903 = vmatmul.msk.f32.gmra.mxu1 %vm51_vm5, %v4440_v46  ;;  %v14227_v46 = vld [vmem:[#allocation40_spill] sm:$0xff] }
 0x557   :  { %7166 = vperm.xlu0 %8442, %v8914_v54   ;;  %7918 = vmatmul.msk.f32.gmra.mxu2 %vm51_vm5, %v4649_v20  ;;  %14225 = vst [vmem:[#allocation14_spill] sm:$0xff] %v11818_v26  ;;  %v4441_v43 = vmul.f32 %v14227_v46, %v9406_v11  ;;  %v2864_v42 = vadd.f32 %v14230_v62, %v2650_v27  ;;  %v14232_v46 = vld [vmem:[#allocation22_spill] sm:$0xff] }
 0x558   :  { %7864 = vmatmul.msk.f32.gmra.mxu3 %vm51_vm5, %v4013_v30  ;;  %v14229_v30 = vld [vmem:[#allocation24_spill] sm:$0xff]  ;;  %v11845_v27 = vpop.f32.mrf.mxu0 }
 0x559   :  { %v4650_v23 = vmul.f32 %v14229_v30, %v9243_v4  ;;  %v14233_v30 = vld [vmem:[#allocation100_spill] sm:$0xff]  ;;  %14234 = vst [vmem:[#allocation79_spill] sm:$0xff] %v11845_v27  ;;  %v3078_v62 = vadd.f32 %v11547_v28, %v2864_v42 }
 0x55a   :  { %v3271_v53 = vpop.f32.mrf.mxu3  ;;  %v11848_v55 = vpop.permute.xlu0 %5244  ;;  %v14238_v28 = vld [vmem:[#allocation80_spill] sm:$0xff] }
 0x55b   :  { %v11821_v60 = vadd.f32 %v3271_v53, %v3077_v48  ;;  %v11836_v48 = vpop.f32.mrf.mxu2  ;;  %v13569_v53 = vmov 28  }
 0x55c   :  { %5272 = vperm.xlu1 %8376, %v9167_v14   ;;  %v11826_v20 = vpop.permute.xlu1 %4812  ;;  %v11828_v16 = vpop.permute.xlu2 %4840 }
 0x55d   :  { %14226 = vst [vmem:[#allocation70_spill] sm:$0xff] %v11821_v60  ;;  %5264 = vperm.xlu2 %8374, %v9105_v15   ;;  %v3491_v60 = vadd.f32 %v14233_v30, %v14232_v46  ;;  %v4651_v46 = vmul.f32 %v11692_v58, %v13804_v52  ;;  %v14239_v58 = vld [vmem:[#allocation81_spill] sm:$0xff]  ;;  %v14240_v30 = vld [vmem:[#allocation98_spill] sm:$0xff] }
 0x55e   :  { %14228 = vst [vmem:[#allocation23_spill] sm:$0xff] %v11828_v16  ;;  %7904 = vmatmul.msk.f32.gmra.mxu1 %vm51_vm5, %v4441_v43  ;;  %v11850_v43 = vpop.f32.mrf.mxu1 }
 0x55f   :  { %8447 = vset.pattern.permute.xlu0 %v13569_v53  ;;  %7919 = vmatmul.msk.f32.gmra.mxu2 %vm51_vm5, %v4650_v23  ;;  %14235 = vst [vmem:[#allocation48_spill] sm:$0xff] %v11850_v43  ;;  %v4442_v23 = vmul.f32 %v11555_v38, %v9452_v1  ;;  %v14237_v53 = vmov 23   ;;  %v3705_v42 = vadd.f32 %v14238_v28, %v3491_v60 }
 0x560   :  { %6512 = vperm.xlu0 %8447, %v8865_v45   ;;  %7865 = vmatmul.msk.f32.gmra.mxu3 %vm51_vm5, %v4014_v57  ;;  %v11877_v60 = vpop.f32.mrf.mxu0  ;;  %v4652_v43 = vmul.f32 %v11634_v36, %v13815_v5  ;;  %v14245_v36 = vld [vmem:[#allocation72_spill] sm:$0xff] }
 0x561   :  { %14241 = vst [vmem:[#allocation62_spill] sm:$0xff] %v11877_v60 }
 0x562   :  { %v3274_v26 = vpop.f32.mrf.mxu3 }
 0x563   :  { %v11852_v16 = vadd.f32 %v3274_v26, %v3078_v62  ;;  %v4855_v26 = vmul.f32 %v11767_v31, %v8853_v40  ;;  %v11870_v38 = vpop.f32.mrf.mxu2  ;;  %v3492_v62 = vadd.f32 %v14240_v30, %v14239_v58  ;;  %v11881_v31 = vpop.permute.xlu0 %5256 }
 0x564   :  { %8377 = vset.pattern.permute.xlu1 %v14237_v53  ;;  %v11857_v57 = vpop.permute.xlu1 %4824  ;;  %v11859_v35 = vpop.permute.xlu2 %4852 }
 0x565   :  { %14236 = vst [vmem:[#allocation69_spill] sm:$0xff] %v11852_v16  ;;  %5276 = vperm.xlu2 %8374, %v8777_v25   ;;  %5434 = vperm.xlu1 %8377, %v8737_v12   ;;  %v3919_v16 = vadd.f32 %v11590_v47, %v3705_v42  ;;  %v14244_v47 = vld [vmem:[#allocation31_spill] sm:$0xff] }
 0x566   :  { %7905 = vmatmul.msk.f32.gmra.mxu1 %vm51_vm5, %v4442_v23  ;;  %v3706_v42 = vadd.f32 %v14244_v47, %v3492_v62 }
 0x567   :  { %7920 = vmatmul.msk.f32.gmra.mxu2 %vm51_vm5, %v4651_v46  ;;  %v11885_v46 = vpop.f32.mrf.mxu1 }
 0x568   :  { %6532 = vperm.xlu0 %8447, %v14164_v22   ;;  %7930 = vmatmul.msk.f32.vlgmr.msrb.gmra.mxu3 %vm51_vm5, %v4855_v26  ;;  %14243 = vst [vmem:[#allocation103_spill] sm:$0xff] %v11885_v46  ;;  %v3920_v58 = vadd.f32 %v11625_v18, %v3706_v42  ;;  %v11911_v47 = vpop.f32.mrf.mxu0  ;;  %v14248_v18 = vld [vmem:[#allocation86_spill] sm:$0xff] }
 0x569   :  { %14247 = vst [vmem:[#allocation83_spill] sm:$0xff] %v11911_v47  ;;  %v4653_v42 = vmul.f32 %v14248_v18, %v13827_v7 }
 0x56a   :  { %v4085_v27 = vpop.f32.mrf.mxu3 }
 0x56b   :  { %v11879_v28 = vadd.f32 %v4085_v27, %v3919_v16  ;;  %v4856_v16 = vmul.f32 %v11701_v9, %v8943_v2  ;;  %v13571_v27 = vmov 29   ;;  %v11904_v30 = vpop.f32.mrf.mxu2  ;;  %v7969_v9 = vld [vmem:[%s13467_s7 + $0x2d8] sm:$0xff] }
 0x56c   :  { %v11883_v23 = vpop.permute.xlu1 %4836  ;;  %5364 = vmatpush.msra.mxu1 %v7969_v9  ;;  %v11926_v9 = vpop.permute.xlu0 %5268 }
 0x56d   :  { %14242 = vst [vmem:[#allocation84_spill] sm:$0xff] %v11879_v28  ;;  %8378 = vset.pattern.permute.xlu2 %v14237_v53  ;;  %5446 = vperm.xlu1 %8377, %v8892_v49   ;;  %v11891_v26 = vpop.permute.xlu2 %5014  ;;  %v3493_v53 = vadd.f32 %v14245_v36, %v11444_v17  ;;  %v7968_v17 = vld [vmem:[%s13467_s7 + $0x2d0] sm:$0xff] }
 0x56e   :  { %5438 = vperm.xlu2 %8378, %v8799_v29   ;;  %5365 = vmatpush.msra.mxu1 %v7968_v17  ;;  %14251 = vst [vmem:[#allocation18_spill] sm:$0xff] %v11926_v9  ;;  %v14254_v17 = vld [vmem:[#allocation7_spill] sm:$0xff]  ;;  %v14257_v9 = vld [vmem:[#allocation52_spill] sm:$0xff] }
 0x56f   :  { %7921 = vmatmul.msk.f32.gmra.mxu2 %vm51_vm5, %v4652_v43  ;;  %v11932_v47 = vpop.f32.mrf.mxu1 }
 0x570   :  { %8452 = vset.pattern.permute.xlu0 %v13571_v27  ;;  %7931 = vmatmul.msk.f32.gmra.mxu3 %vm51_vm5, %v4856_v16  ;;  %v14249_v27 = vld [vmem:[#allocation71_spill] sm:$0xff]  ;;  %14252 = vst [vmem:[#allocation87_spill] sm:$0xff] %v11932_v47 }
 0x571   :  { %6726 = vperm.xlu0 %8452, %v8865_v45   ;;  %v3707_v28 = vadd.f32 %v14249_v27, %v3493_v53  ;;  %v7966_v27 = vld [vmem:[%s13467_s7 + $0x2c0] sm:$0xff]  ;;  %v14253_v53 = vld [vmem:[#allocation20_spill] sm:$0xff] }
 0x572   :  { %v4088_v62 = vpop.f32.mrf.mxu3  ;;  %v3494_v18 = vadd.f32 %v14254_v17, %v14253_v53  ;;  %v11953_v17 = vpop.f32.mrf.mxu0 }
 0x573   :  { %v11909_v43 = vadd.f32 %v4088_v62, %v3920_v58  ;;  %v14250_v58 = vld [vmem:[#allocation39_spill] sm:$0xff]  ;;  %v11945_v47 = vpop.f32.mrf.mxu2  ;;  %14258 = vst [vmem:[#allocation77_spill] sm:$0xff] %v11953_v17 }
 0x574   :  { %v11913_v16 = vpop.permute.xlu1 %4848  ;;  %v4857_v62 = vmul.f32 %v14250_v58, %v9029_v51  ;;  %v3921_v58 = vadd.f32 %v11672_v63, %v3707_v28  ;;  %14256 = vst [vmem:[#allocation82_spill] sm:$0xff] %v11945_v47  ;;  %v3708_v53 = vadd.f32 %v14257_v9, %v3494_v18  ;;  %v14260_v28 = vld [vmem:[#allocation9_spill] sm:$0xff]  ;;  %v14276_v47 = vld [vmem:[#allocation30_spill] sm:$0xff] }
 0x575   :  { %14246 = vst [vmem:[#allocation93_spill] sm:$0xff] %v11909_v43  ;;  %5454 = vperm.xlu1 %8377, %v8914_v54   ;;  %v11921_v36 = vpop.permute.xlu2 %5022  ;;  %v7967_v43 = vld [vmem:[%s13467_s7 + $0x2c8] sm:$0xff] }
 0x576   :  { %5450 = vperm.xlu2 %8378, %v8901_v50   ;;  %5366 = vmatpush.msra.mxu1 %v7967_v43  ;;  %v4654_v43 = vmul.f32 %v11728_v3, %v14172_v6  ;;  %v14261_v3 = vld [vmem:[#allocation26_spill] sm:$0xff] }
 0x577   :  { %7922 = vmatmul.msk.f32.gmra.mxu2 %vm51_vm5, %v4653_v42  ;;  %v11966_v18 = vpop.f32.mrf.mxu1 }
 0x578   :  { %7932 = vmatmul.msk.f32.gmra.mxu3 %vm51_vm5, %v4857_v62  ;;  %5367 = vmatpush.msra.mxu1 %v7966_v27  ;;  %v11960_v27 = vpop.permute.xlu0 %5280  ;;  %14263 = vst [vmem:[#allocation104_spill] sm:$0xff] %v11966_v18  ;;  %v4859_v18 = vmul.f32 %v11736_v8, %v9070_v24 }
 0x579   :  { %6746 = vperm.xlu0 %8452, %v14164_v22   ;;  %v14259_v22 = vld [vmem:[#allocation19_spill] sm:$0xff] }
 0x57a   :  { %v4091_v60 = vpop.f32.mrf.mxu3  ;;  %v4858_v63 = vmul.f32 %v11798_v19, %v14259_v22  ;;  %v3922_v19 = vadd.f32 %v11710_v61, %v3708_v53  ;;  %v5071_v61 = vmul.f32 %v11891_v26, %v9029_v51 }
 0x57b   :  { %v11943_v46 = vadd.f32 %v4091_v60, %v3921_v58  ;;  %v14262_v58 = vld [vmem:[#allocation94_spill] sm:$0xff]  ;;  %v11984_v53 = vpop.f32.mrf.mxu2 }
 0x57c   :  { %v3495_v9 = vadd.f32 %v14262_v58, %v14261_v3  ;;  %v14266_v3 = vld [vmem:[#allocation85_spill] sm:$0xff]  ;;  %14267 = vst [vmem:[#allocation76_spill] sm:$0xff] %v11984_v53 }
 0x57d   :  { %14255 = vst [vmem:[#allocation27_spill] sm:$0xff] %v11943_v46  ;;  %5466 = vperm.xlu1 %8377, %v9002_v33   ;;  %v5011_v42 = vpop.permute.xlu1 %5010  ;;  %v11950_v62 = vpop.permute.xlu2 %5034  ;;  %v14264_v46 = vmov 30  }
 0x57e   :  { %v5070_v60 = vmul.f32 %v5011_v42, %v8943_v2  ;;  %5458 = vperm.xlu2 %8378, %v14260_v28   ;;  %v3709_v58 = vadd.f32 %v14266_v3, %v3495_v9  ;;  %v14270_v9 = vld [vmem:[#allocation16_spill] sm:$0xff] }
 0x57f   :  { %7923 = vmatmul.msk.f32.gmra.mxu2 %vm51_vm5, %v4654_v43  ;;  %v4655_v43 = vmul.f32 %v11665_v13, %v9406_v11  ;;  %v11987_v13 = vpop.f32.mrf.mxu0  ;;  %v11993_v3 = vpop.f32.mrf.mxu1 }
 0x580   :  { %7933 = vmatmul.msk.f32.gmra.mxu3 %vm51_vm5, %v4858_v63  ;;  %7951 = vmatmul.msk.f32.gmra.mxu0 %vm51_vm5, %v5070_v60  ;;  %14268 = vst [vmem:[#allocation95_spill] sm:$0xff] %v11987_v13  ;;  %v3923_v8 = vadd.f32 %v11759_v37, %v3709_v58  ;;  %v11996_v26 = vpop.permute.xlu0 %5442  ;;  %v4860_v58 = vmul.f32 %v11826_v20, %v13894_v0 }
 0x581   :  { %8461 = vset.pattern.permute.xlu0 %v14264_v46  ;;  %14271 = vst [vmem:[#allocation101_spill] sm:$0xff] %v11993_v3 }
 0x582   :  { %6964 = vperm.xlu0 %8461, %v9002_v33   ;;  %v4094_v42 = vpop.f32.mrf.mxu3 }
 0x583   :  { %v11971_v17 = vadd.f32 %v4094_v42, %v3922_v19  ;;  %v14269_v19 = vld [vmem:[#allocation34_spill] sm:$0xff] }
 0x584   :  { %v3496_v42 = vadd.f32 %v14270_v9, %v14269_v19  ;;  %v14275_v9 = vld [vmem:[#allocation37_spill] sm:$0xff] }
 0x585   :  { %14265 = vst [vmem:[#allocation61_spill] sm:$0xff] %v11971_v17  ;;  %5478 = vperm.xlu1 %8377, %v9105_v15   ;;  %v5019_v63 = vpop.permute.xlu1 %5018  ;;  %v11976_v60 = vpop.permute.xlu2 %5046  ;;  %v14272_v17 = vmov 31  }
 0x586   :  { %5470 = vperm.xlu2 %8378, %v9045_v10   ;;  %v3710_v37 = vadd.f32 %v14275_v9, %v3496_v42  ;;  %v5072_v3 = vmul.f32 %v5019_v63, %v14259_v22  ;;  %v14282_v63 = vmov 28  }
 0x587   :  { %7924 = vmatmul.msk.f32.gmra.mxu2 %vm51_vm5, %v4655_v43  ;;  %v12022_v9 = vpop.f32.mrf.mxu0 }
 0x588   :  { %7934 = vmatmul.msk.f32.gmra.mxu3 %vm51_vm5, %v4859_v18  ;;  %7952 = vmatmul.msk.f32.gmra.mxu0 %vm51_vm5, %v5071_v61  ;;  %v14274_v18 = vld [vmem:[#allocation53_spill] sm:$0xff]  ;;  %v3924_v42 = vadd.f32 %v11791_v59, %v3710_v37  ;;  %14280 = vst [vmem:[#allocation15_spill] sm:$0xff] %v12022_v9  ;;  %v4861_v59 = vmul.f32 %v11769_v41, %v13903_v32  ;;  %v14287_v9 = vld [vmem:[#allocation64_spill] sm:$0xff] }
 0x589   :  { %v4656_v13 = vmul.f32 %v14274_v18, %v9452_v1  ;;  %v5073_v37 = vmul.f32 %v11921_v36, %v9070_v24 }
 0x58a   :  { %8466 = vset.pattern.permute.xlu0 %v14272_v17  ;;  %v4097_v53 = vpop.f32.mrf.mxu3 }
 0x58b   :  { %7186 = vperm.xlu0 %8466, %v14176_v44   ;;  %v12000_v43 = vadd.f32 %v4097_v53, %v3923_v8  ;;  %v14277_v53 = vld [vmem:[#allocation78_spill] sm:$0xff]  ;;  %v14278_v8 = vld [vmem:[#allocation105_spill] sm:$0xff] }
 0x58c   :  { %v3497_v18 = vadd.f32 %v14278_v8, %v14277_v53  ;;  %v14285_v53 = vld [vmem:[#allocation106_spill] sm:$0xff] }
 0x58d   :  { %14273 = vst [vmem:[#allocation11_spill] sm:$0xff] %v12000_v43  ;;  %5490 = vperm.xlu1 %8377, %v8777_v25   ;;  %v12005_v61 = vpop.permute.xlu1 %5030  ;;  %v12007_v19 = vpop.permute.xlu2 %5058 }
 0x58e   :  { %5482 = vperm.xlu2 %8378, %v14276_v47   ;;  %v12019_v43 = vpop.f32.mrf.mxu2  ;;  %v12024_v25 = vpop.f32.mrf.mxu1  ;;  %v3711_v8 = vadd.f32 %v14285_v53, %v3497_v18 }
 0x58f   :  { %7925 = vmatmul.msk.f32.gmra.mxu2 %vm51_vm5, %v4656_v13  ;;  %14279 = vst [vmem:[#allocation102_spill] sm:$0xff] %v12019_v43  ;;  %v12029_v13 = vpop.permute.xlu0 %5462  ;;  %v12053_v43 = vpop.f32.mrf.mxu0 }
 0x590   :  { %7935 = vmatmul.msk.f32.gmra.mxu3 %vm51_vm5, %v4860_v58  ;;  %7953 = vmatmul.msk.f32.gmra.mxu0 %vm51_vm5, %v5072_v3  ;;  %14281 = vst [vmem:[#allocation17_spill] sm:$0xff] %v12024_v25  ;;  %v14284_v3 = vmov 24   ;;  %v3925_v53 = vadd.f32 %v11836_v48, %v3711_v8  ;;  %v14294_v48 = vld [vmem:[#allocation32_spill] sm:$0xff] }
 0x591   :  { %14290 = vst [vmem:[#allocation56_spill] sm:$0xff] %v12053_v43  ;;  %v4862_v8 = vmul.f32 %v14294_v48, %v13913_v56 }
 0x592   :  { %v4100_v20 = vpop.f32.mrf.mxu3 }
 0x593   :  { %8471 = vset.pattern.permute.xlu0 %v14282_v63  ;;  %v12027_v15 = vadd.f32 %v4100_v20, %v3924_v42  ;;  %v14291_v63 = vmov 29  }
 0x594   :  { %6552 = vperm.xlu0 %8471, %v14276_v47  }
 0x595   :  { %14283 = vst [vmem:[#allocation58_spill] sm:$0xff] %v12027_v15  ;;  %8380 = vset.pattern.permute.xlu1 %v14284_v3  ;;  %v12033_v58 = vpop.permute.xlu1 %5042  ;;  %v14286_v15 = vld [vmem:[#allocation36_spill] sm:$0xff] }
 0x596   :  { %5494 = vperm.xlu2 %8378, %v8825_v34   ;;  %5652 = vperm.xlu1 %8380, %v8799_v29   ;;  %v3498_v18 = vadd.f32 %v14287_v9, %v14286_v15  ;;  %v12049_v36 = vpop.f32.mrf.mxu2  ;;  %v14293_v15 = vld [vmem:[#allocation12_spill] sm:$0xff] }
 0x597   :  { %v5221_v42 = vpop.permute.xlu2 %5220  ;;  %14288 = vst [vmem:[#allocation97_spill] sm:$0xff] %v12049_v36 }
 0x598   :  { %v5283_v20 = vmul.f32 %v5221_v42, %v8853_v40  ;;  %7936 = vmatmul.msk.f32.gmra.mxu3 %vm51_vm5, %v4861_v59  ;;  %7954 = vmatmul.msk.f32.gmra.mxu0 %vm51_vm5, %v5073_v37  ;;  %v12056_v42 = vpop.f32.mrf.mxu1  ;;  %v3712_v9 = vadd.f32 %v14293_v15, %v3498_v18  ;;  %v14295_v37 = vld [vmem:[#allocation55_spill] sm:$0xff]  ;;  %v14296_v18 = vld [vmem:[#allocation60_spill] sm:$0xff] }
 0x599   :  { %14292 = vst [vmem:[#allocation10_spill] sm:$0xff] %v12056_v42  ;;  %v14297_v15 = vld [vmem:[#allocation96_spill] sm:$0xff] }
 0x59a   :  { %7970 = vmatmul.msk.f32.vlgmr.msra.gmra.mxu1 %vm51_vm5, %v5283_v20  ;;  %v4103_v41 = vpop.f32.mrf.mxu3  ;;  %v5074_v20 = vmul.f32 %v14295_v37, %v13894_v0  ;;  %v3499_v48 = vadd.f32 %v14297_v15, %v14296_v18  ;;  %v3926_v37 = vadd.f32 %v11870_v38, %v3712_v9  ;;  %v5075_v38 = vmul.f32 %v12005_v61, %v13903_v32 }
 0x59b   :  { %v12051_v25 = vadd.f32 %v4103_v41, %v3925_v53  ;;  %v12066_v53 = vpop.permute.xlu0 %5474 }
 0x59c   :  { %8476 = vset.pattern.permute.xlu0 %v14291_v63 }
 0x59d   :  { %14289 = vst [vmem:[#allocation43_spill] sm:$0xff] %v12051_v25  ;;  %6766 = vperm.xlu0 %8476, %v14276_v47   ;;  %v12059_v59 = vpop.permute.xlu1 %5054  ;;  %v5284_v25 = vmul.f32 %v11813_v21, %v8943_v2  ;;  %v14300_v21 = vld [vmem:[#allocation45_spill] sm:$0xff]  ;;  %v12089_v47 = vpop.f32.mrf.mxu0 }
 0x59e   :  { %8381 = vset.pattern.permute.xlu2 %v14284_v3  ;;  %5660 = vperm.xlu1 %8380, %v8892_v49   ;;  %v12081_v36 = vpop.f32.mrf.mxu2  ;;  %14301 = vst [vmem:[#allocation74_spill] sm:$0xff] %v12089_v47 }
 0x59f   :  { %5656 = vperm.xlu2 %8381, %v8865_v45   ;;  %v5233_v41 = vpop.permute.xlu2 %5232  ;;  %14299 = vst [vmem:[#allocation24_spill] sm:$0xff] %v12081_v36 }
 0x5a0   :  { %7937 = vmatmul.msk.f32.gmra.mxu3 %vm51_vm5, %v4862_v8  ;;  %7955 = vmatmul.msk.f32.gmra.mxu0 %vm51_vm5, %v5074_v20  ;;  %v3713_v8 = vadd.f32 %v14300_v21, %v3499_v48  ;;  %v4863_v20 = vmul.f32 %v11857_v57, %v13921_v39 }
 0x5a2   :  { %7971 = vmatmul.msk.f32.gmra.mxu1 %vm51_vm5, %v5284_v25  ;;  %v4106_v43 = vpop.f32.mrf.mxu3  ;;  %v14302_v25 = vmov 25   ;;  %v3927_v57 = vadd.f32 %v11904_v30, %v3713_v8  ;;  %v5076_v8 = vmul.f32 %v11950_v62, %v13913_v56  ;;  %v7989_v62 = vld [vmem:[%s13467_s7 + $0x2f8] sm:$0xff] }
 0x5a3   :  { %v12079_v42 = vadd.f32 %v4106_v43, %v3926_v37  ;;  %v12095_v43 = vpop.f32.mrf.mxu1  ;;  %v12101_v18 = vpop.permute.xlu0 %5486  ;;  %v14305_v37 = vld [vmem:[#allocation88_spill] sm:$0xff]  ;;  %5578 = vmatpush.msra.mxu2 %v7989_v62  ;;  %v5286_v62 = vmul.f32 %v5233_v41, %v14259_v22  ;;  %v7986_v41 = vld [vmem:[%s13467_s7 + $0x2e0] sm:$0xff] }
 0x5a4   :  { %14303 = vst [vmem:[#allocation49_spill] sm:$0xff] %v12095_v43  ;;  %v4864_v21 = vmul.f32 %v14305_v37, %v9243_v4 }
 0x5a5   :  { %14298 = vst [vmem:[#allocation40_spill] sm:$0xff] %v12079_v42  ;;  %8481 = vset.pattern.permute.xlu0 %v14264_v46  ;;  %v12084_v63 = vpop.permute.xlu1 %5066  ;;  %v12118_v30 = vpop.f32.mrf.mxu0 }
 0x5a6   :  { %6984 = vperm.xlu0 %8481, %v9167_v14   ;;  %8382 = vset.pattern.permute.xlu1 %v14302_v25  ;;  %v12111_v42 = vpop.f32.mrf.mxu2  ;;  %14308 = vst [vmem:[#allocation80_spill] sm:$0xff] %v12118_v30  ;;  %v14311_v30 = vld [vmem:[#allocation90_spill] sm:$0xff] }
 0x5a7   :  { %5664 = vperm.xlu2 %8381, %v8901_v50   ;;  %v12098_v9 = vpop.permute.xlu2 %5240  ;;  %5862 = vperm.xlu1 %8382, %v8737_v12   ;;  %14306 = vst [vmem:[#allocation100_spill] sm:$0xff] %v12111_v42  ;;  %v4865_v43 = vmul.f32 %v14311_v30, %v13804_v52  ;;  %v14312_v42 = vmov 0   ;;  %v7987_v30 = vld [vmem:[%s13467_s7 + $0x2e8] sm:$0xff] }
 0x5a8   :  { %7938 = vmatmul.msk.f32.gmra.mxu3 %vm51_vm5, %v4863_v20  ;;  %7956 = vmatmul.msk.f32.gmra.mxu0 %vm51_vm5, %v5075_v38  ;;  %v14307_v20 = vmov 26  }
 0x5aa   :  { %v4109_v61 = vpop.f32.mrf.mxu3 }
 0x5ab   :  { %v12106_v15 = vadd.f32 %v4109_v61, %v3927_v57  ;;  %v14309_v57 = vmov 27   ;;  %v12124_v61 = vpop.f32.mrf.mxu1 }
 0x5ac   :  { %14310 = vst [vmem:[#allocation81_spill] sm:$0xff] %v12124_v61 }
 0x5ad   :  { %14304 = vst [vmem:[#allocation22_spill] sm:$0xff] %v12106_v15  ;;  %v12154_v15 = vpop.f32.mrf.mxu0 }
 0x5ae   :  { %8486 = vset.pattern.permute.xlu0 %v14272_v17  ;;  %v5229_v48 = vpop.permute.xlu1 %5228  ;;  %v12146_v36 = vpop.f32.mrf.mxu2  ;;  %14315 = vst [vmem:[#allocation31_spill] sm:$0xff] %v12154_v15  ;;  %v4866_v15 = vmul.f32 %v11883_v23, %v13815_v5  ;;  %v8009_v23 = vld [vmem:[%s13467_s7 + $0x318] sm:$0xff] }
 0x5af   :  { %7206 = vperm.xlu0 %8486, %v8825_v34   ;;  %v5285_v47 = vmul.f32 %v5229_v48, %v9029_v51  ;;  %8383 = vset.pattern.permute.xlu2 %v14307_v20  ;;  %v12116_v38 = vpop.permute.xlu2 %5252  ;;  %v12128_v48 = vpop.permute.xlu0 %6080  ;;  %14314 = vst [vmem:[#allocation98_spill] sm:$0xff] %v12146_v36 }
 0x5b0   :  { %8384 = vset.pattern.permute.xlu1 %v14309_v57  ;;  %6076 = vperm.xlu2 %8383, %v8737_v12  }
 0x5b1   :  { %7939 = vmatmul.msk.f32.gmra.mxu3 %vm51_vm5, %v4864_v21  ;;  %6294 = vperm.xlu1 %8384, %v8799_v29   ;;  %v7988_v21 = vld [vmem:[%s13467_s7 + $0x2f0] sm:$0xff] }
 0x5b2   :  { %7957 = vmatmul.msk.f32.gmra.mxu0 %vm51_vm5, %v5076_v8  ;;  %7972 = vmatmul.msk.f32.gmra.mxu1 %vm51_vm5, %v5285_v47  ;;  %v14313_v8 = vld [vmem:[#allocation68_spill] sm:$0xff] }
 0x5b3   :  { %v5077_v47 = vmul.f32 %v14313_v8, %v13921_v39  ;;  %5579 = vmatpush.msra.mxu2 %v7988_v21  ;;  %v12158_v8 = vpop.f32.mrf.mxu1  ;;  %5792 = vmatpush.msra.mxu3 %v8009_v23  ;;  %v5079_v23 = vmul.f32 %v11976_v60, %v13804_v52 }
 0x5b4   :  { %14316 = vst [vmem:[#allocation72_spill] sm:$0xff] %v12158_v8 }
 0x5b5   :  { %5580 = vmatpush.msra.mxu2 %v7987_v30 }
 0x5b6   :  { %v5237_v37 = vpop.permute.xlu1 %5236  ;;  %v12172_v8 = vpop.f32.mrf.mxu2 }
 0x5b7   :  { %v12137_v61 = vpop.permute.xlu2 %5264  ;;  %8488 = vset.pattern.permute.xlu0 %v14312_v42  ;;  %5581 = vmatpush.msra.mxu2 %v7986_v41  ;;  %14317 = vst [vmem:[#allocation86_spill] sm:$0xff] %v12172_v8  ;;  %v5287_v30 = vmul.f32 %v5237_v37, %v9070_v24  ;;  %v8007_v8 = vld [vmem:[%s13467_s7 + $0x308] sm:$0xff] }
 0x5b8   :  { %8385 = vset.pattern.permute.xlu2 %v14302_v25 }
 0x5b9   :  { %7940 = vmatmul.msk.f32.gmra.mxu3 %vm51_vm5, %v4865_v43  ;;  %6298 = vperm.xlu1 %8384, %v8865_v45   ;;  %v12164_v43 = vpop.permute.xlu0 %6092 }
 0x5ba   :  { %5866 = vperm.xlu2 %8385, %v8799_v29   ;;  %7958 = vmatmul.msk.f32.gmra.mxu0 %vm51_vm5, %v5077_v47  ;;  %v5078_v47 = vmul.f32 %v12033_v58, %v9243_v4  ;;  %v12186_v58 = vpop.f32.mrf.mxu0 }
 0x5bb   :  { %7973 = vmatmul.msk.f32.gmra.mxu1 %vm51_vm5, %v5286_v62  ;;  %v12174_v62 = vpop.f32.mrf.mxu3  ;;  %14319 = vst [vmem:[#allocation39_spill] sm:$0xff] %v12186_v58  ;;  %v12191_v37 = vpop.f32.mrf.mxu1 }
 0x5bc   :  { %14318 = vst [vmem:[#allocation71_spill] sm:$0xff] %v12174_v62 }
 0x5bd   :  { %14320 = vst [vmem:[#allocation20_spill] sm:$0xff] %v12191_v37  ;;  %v8006_v37 = vld [vmem:[%s13467_s7 + $0x300] sm:$0xff] }
 0x5be   :  { %v5249_v21 = vpop.permute.xlu1 %5248  ;;  %v12212_v58 = vpop.f32.mrf.mxu2 }
 0x5bf   :  { %v12168_v42 = vpop.permute.xlu2 %5276  ;;  %14322 = vst [vmem:[#allocation7_spill] sm:$0xff] %v12212_v58 }
 0x5c1   :  { %7941 = vmatmul.msk.f32.gmra.mxu3 %vm51_vm5, %v4866_v15  ;;  %8387 = vset.pattern.permute.xlu1 %v14307_v20  ;;  %v8008_v15 = vld [vmem:[%s13467_s7 + $0x310] sm:$0xff]  ;;  %v12193_v41 = vpop.permute.xlu0 %6290 }
 0x5c2   :  { %5870 = vperm.xlu2 %8385, %v8865_v45   ;;  %7959 = vmatmul.msk.f32.gmra.mxu0 %vm51_vm5, %v5078_v47  ;;  %v12219_v60 = vpop.f32.mrf.mxu0 }
 0x5c3   :  { %6084 = vperm.xlu1 %8387, %v8865_v45   ;;  %7974 = vmatmul.msk.f32.gmra.mxu1 %vm51_vm5, %v5287_v30  ;;  %v14321_v30 = vld [vmem:[#allocation23_spill] sm:$0xff]  ;;  %14324 = vst [vmem:[#allocation19_spill] sm:$0xff] %v12219_v60  ;;  %v12225_v45 = vpop.f32.mrf.mxu1 }
 0x5c4   :  { %5793 = vmatpush.msra.mxu3 %v8008_v15  ;;  %v4867_v36 = vmul.f32 %v14321_v30, %v13827_v7  ;;  %v5288_v15 = vmul.f32 %v12098_v9, %v13894_v0  ;;  %v12214_v30 = vpop.f32.mrf.mxu3  ;;  %v14325_v9 = vld [vmem:[#allocation44_spill] sm:$0xff]  ;;  %14326 = vst [vmem:[#allocation9_spill] sm:$0xff] %v12225_v45 }
 0x5c5   :  { %14323 = vst [vmem:[#allocation52_spill] sm:$0xff] %v12214_v30 }
 0x5c6   :  { %v12195_v47 = vpop.permute.xlu1 %5260  ;;  %5794 = vmatpush.msra.mxu3 %v8007_v8  ;;  %v4868_v8 = vmul.f32 %v14325_v9, %v14172_v6 }
 0x5c8   :  { %v5439_v62 = vpop.permute.xlu2 %5438  ;;  %5795 = vmatpush.msra.mxu3 %v8006_v37  ;;  %v5289_v37 = vmul.f32 %v11848_v55, %v13903_v32  ;;  %v5081_v55 = vmul.f32 %v12059_v59, %v13827_v7  ;;  %v4870_v59 = vmul.f32 %v11859_v35, %v9452_v1 }
 0x5c9   :  { %7942 = vmatmul.msk.f32.gmra.mxu3 %vm51_vm5, %v4867_v36  ;;  %v12229_v30 = vpop.permute.xlu0 %6314 }
 0x5ca   :  { %8388 = vset.pattern.permute.xlu2 %v14309_v57  ;;  %7960 = vmatmul.msk.f32.gmra.mxu0 %vm51_vm5, %v5079_v23  ;;  %v14327_v23 = vld [vmem:[#allocation8_spill] sm:$0xff]  ;;  %v12247_v60 = vpop.f32.mrf.mxu0 }
 0x5cb   :  { %6088 = vperm.xlu1 %8387, %v8892_v49   ;;  %6302 = vperm.xlu2 %8388, %v8892_v49   ;;  %v5080_v58 = vmul.f32 %v14327_v23, %v13815_v5  ;;  %v12254_v45 = vpop.f32.mrf.mxu1 }
 0x5cc   :  { %7975 = vmatmul.msk.f32.gmra.mxu1 %vm51_vm5, %v5288_v15  ;;  %v12237_v15 = vpop.f32.mrf.mxu2  ;;  %v12243_v9 = vpop.f32.mrf.mxu3 }
 0x5cd   :  { %14328 = vst [vmem:[#allocation26_spill] sm:$0xff] %v12237_v15 }
 0x5ce   :  { %v12221_v36 = vpop.permute.xlu1 %5272  ;;  %14329 = vst [vmem:[#allocation94_spill] sm:$0xff] %v12243_v9  ;;  %v5290_v9 = vmul.f32 %v5249_v21, %v13913_v56 }
 0x5d0   :  { %v12231_v17 = vpop.permute.xlu2 %5450 }
 0x5d1   :  { %7943 = vmatmul.msk.f32.gmra.mxu3 %vm51_vm5, %v4868_v8  ;;  %v4869_v8 = vmul.f32 %v11913_v16, %v9406_v11 }
 0x5d2   :  { %7961 = vmatmul.msk.f32.gmra.mxu0 %vm51_vm5, %v5080_v58 }
 0x5d3   :  { %8389 = vset.pattern.permute.xlu1 %v14284_v3  ;;  %6306 = vperm.xlu2 %8388, %v8901_v50   ;;  %v12285_v35 = vpop.f32.mrf.mxu1 }
 0x5d4   :  { %7976 = vmatmul.msk.f32.gmra.mxu1 %vm51_vm5, %v5289_v37  ;;  %5668 = vperm.xlu1 %8389, %v8914_v54   ;;  %v12257_v37 = vpop.permute.xlu0 %6334  ;;  %v12265_v16 = vpop.f32.mrf.mxu2  ;;  %14333 = vst [vmem:[#allocation53_spill] sm:$0xff] %v12285_v35  ;;  %v5292_v35 = vmul.f32 %v11881_v31, %v9243_v4  ;;  %v5084_v31 = vmul.f32 %v12084_v63, %v9452_v1  ;;  %v8029_v63 = vld [vmem:[%s13467_s7 + $0x338] sm:$0xff] }
 0x5d5   :  { %14330 = vst [vmem:[#allocation85_spill] sm:$0xff] %v12265_v16  ;;  %v12271_v21 = vpop.f32.mrf.mxu3  ;;  %v5291_v16 = vmul.f32 %v12116_v38, %v13921_v39  ;;  %6006 = vmatpush.msrb.mxu0 %v8029_v63  ;;  %v8049_v63 = vld [vmem:[%s13467_s7 + $0x358] sm:$0xff] }
 0x5d6   :  { %14331 = vst [vmem:[#allocation34_spill] sm:$0xff] %v12271_v21  ;;  %6220 = vmatpush.msrb.mxu1 %v8049_v63 }
 0x5d7   :  { %v5435_v23 = vpop.permute.xlu1 %5434 }
 0x5d8   :  { %v5497_v58 = vmul.f32 %v5435_v23, %v8853_v40  ;;  %v12252_v15 = vpop.permute.xlu2 %5458  ;;  %v5082_v23 = vmul.f32 %v12007_v19, %v14172_v6 }
 0x5d9   :  { %7944 = vmatmul.msk.f32.gmra.mxu3 %vm51_vm5, %v4869_v8 }
 0x5da   :  { %7962 = vmatmul.msk.f32.gmra.mxu0 %vm51_vm5, %v5081_v55  ;;  %7990 = vmatmul.msk.f32.vlgmr.msra.gmra.mxu2 %vm51_vm5, %v5497_v58  ;;  %v5498_v55 = vmul.f32 %v5439_v62, %v8943_v2  ;;  %v12279_v58 = vpop.f32.mrf.mxu0 }
 0x5db   :  { %8390 = vset.pattern.permute.xlu2 %v14302_v25  ;;  %14332 = vst [vmem:[#allocation16_spill] sm:$0xff] %v12279_v58 }
 0x5dc   :  { %7977 = vmatmul.msk.f32.gmra.mxu1 %vm51_vm5, %v5290_v9  ;;  %8392 = vset.pattern.permute.xlu1 %v14309_v57  ;;  %v5649_v21 = vpop.permute.xlu0 %5648  ;;  %v12293_v38 = vpop.f32.mrf.mxu2 }
 0x5dd   :  { %5878 = vperm.xlu2 %8390, %v8901_v50   ;;  %6310 = vperm.xlu1 %8392, %v8914_v54   ;;  %v5711_v19 = vmul.f32 %v5649_v21, %v8853_v40  ;;  %14334 = vst [vmem:[#allocation37_spill] sm:$0xff] %v12293_v38  ;;  %v12301_v58 = vpop.f32.mrf.mxu3  ;;  %v5293_v38 = vmul.f32 %v12195_v47, %v13804_v52 }
 0x5de   :  { %14336 = vst [vmem:[#allocation78_spill] sm:$0xff] %v12301_v58 }
 0x5df   :  { %v5447_v8 = vpop.permute.xlu1 %5446 }
 0x5e0   :  { %v12276_v9 = vpop.permute.xlu2 %5470 }
 0x5e1   :  { %7945 = vmatmul.msk.f32.gmra.mxu3 %vm51_vm5, %v4870_v59  ;;  %v14335_v59 = vld [vmem:[#allocation51_spill] sm:$0xff] }
 0x5e2   :  { %7963 = vmatmul.msk.f32.gmra.mxu0 %vm51_vm5, %v5082_v23  ;;  %7991 = vmatmul.msk.f32.gmra.mxu2 %vm51_vm5, %v5498_v55  ;;  %v5083_v23 = vmul.f32 %v14335_v59, %v9406_v11  ;;  %v5499_v55 = vmul.f32 %v11996_v26, %v9029_v51  ;;  %v12308_v21 = vpop.f32.mrf.mxu0  ;;  %v12311_v59 = vpop.f32.mrf.mxu1  ;;  %v14339_v26 = vld [vmem:[#allocation13_spill] sm:$0xff] }
 0x5e3   :  { %14337 = vst [vmem:[#allocation105_spill] sm:$0xff] %v12308_v21 }
 0x5e4   :  { %7978 = vmatmul.msk.f32.gmra.mxu1 %vm51_vm5, %v5291_v16  ;;  %14338 = vst [vmem:[#allocation106_spill] sm:$0xff] %v12311_v59  ;;  %v5503_v59 = vmul.f32 %v12252_v15, %v13903_v32 }
 0x5e5   :  { %8393 = vset.pattern.permute.xlu2 %v14284_v3  ;;  %8394 = vset.pattern.permute.xlu1 %v14302_v25  ;;  %v12330_v58 = vpop.f32.mrf.mxu3 }
 0x5e6   :  { %5672 = vperm.xlu2 %8393, %v14260_v28   ;;  %5882 = vperm.xlu1 %8394, %v8914_v54   ;;  %14341 = vst [vmem:[#allocation64_spill] sm:$0xff] %v12330_v58 }
 0x5e7   :  { %v5455_v62 = vpop.permute.xlu1 %5454 }
 0x5e8   :  { %v12299_v16 = vpop.permute.xlu2 %5482 }
 0x5e9   :  { %8010 = vmatmul.msk.f32.vlgmr.msra.gmra.mxu3 %vm51_vm5, %v5711_v19 }
 0x5ea   :  { %7964 = vmatmul.msk.f32.gmra.mxu0 %vm51_vm5, %v5083_v23  ;;  %7992 = vmatmul.msk.f32.gmra.mxu2 %vm51_vm5, %v5499_v55  ;;  %v5500_v23 = vmul.f32 %v5447_v8, %v14259_v22  ;;  %v12333_v21 = vpop.f32.mrf.mxu0  ;;  %v12338_v8 = vpop.f32.mrf.mxu1 }
 0x5eb   :  { %14342 = vst [vmem:[#allocation12_spill] sm:$0xff] %v12333_v21 }
 0x5ec   :  { %7979 = vmatmul.msk.f32.gmra.mxu1 %vm51_vm5, %v5292_v35  ;;  %v12324_v35 = vpop.f32.mrf.mxu2  ;;  %14343 = vst [vmem:[#allocation32_spill] sm:$0xff] %v12338_v8 }
 0x5ed   :  { %14340 = vst [vmem:[#allocation36_spill] sm:$0xff] %v12324_v35  ;;  %v5294_v35 = vmul.f32 %v12137_v61, %v13815_v5  ;;  %v12363_v21 = vpop.f32.mrf.mxu3  ;;  %v8026_v61 = vld [vmem:[%s13467_s7 + $0x320] sm:$0xff] }
 0x5ee   :  { %8395 = vset.pattern.permute.xlu2 %v14307_v20  ;;  %8396 = vset.pattern.permute.xlu1 %v14284_v3  ;;  %14345 = vst [vmem:[#allocation60_spill] sm:$0xff] %v12363_v21 }
 0x5ef   :  { %6096 = vperm.xlu2 %8395, %v8914_v54   ;;  %5676 = vperm.xlu1 %8396, %v14339_v26   ;;  %v12317_v19 = vpop.permute.xlu1 %5466 }
 0x5f0   :  { %v12322_v55 = vpop.permute.xlu2 %5494 }
 0x5f2   :  { %7965 = vmatmul.msk.f32.gmra.mxu0 %vm51_vm5, %v5084_v31  ;;  %7993 = vmatmul.msk.f32.gmra.mxu2 %vm51_vm5, %v5500_v23  ;;  %v5501_v31 = vmul.f32 %v12231_v17, %v9070_v24  ;;  %v8028_v23 = vld [vmem:[%s13467_s7 + $0x330] sm:$0xff]  ;;  %v8027_v17 = vld [vmem:[%s13467_s7 + $0x328] sm:$0xff]  ;;  %v12381_v63 = vpop.f32.mrf.mxu1 }
 0x5f3   :  { %6007 = vmatpush.msrb.mxu0 %v8028_v23  ;;  %14347 = vst [vmem:[#allocation45_spill] sm:$0xff] %v12381_v63 }
 0x5f4   :  { %7980 = vmatmul.msk.f32.gmra.mxu1 %vm51_vm5, %v5293_v38  ;;  %v12354_v58 = vpop.f32.mrf.mxu2 }
 0x5f5   :  { %14344 = vst [vmem:[#allocation55_spill] sm:$0xff] %v12354_v58  ;;  %6008 = vmatpush.msrb.mxu0 %v8027_v17  ;;  %v5502_v58 = vmul.f32 %v5455_v62, %v13894_v0  ;;  %v8047_v17 = vld [vmem:[%s13467_s7 + $0x348] sm:$0xff]  ;;  %v8046_v62 = vld [vmem:[%s13467_s7 + $0x340] sm:$0xff]  ;;  %v12396_v63 = vpop.f32.mrf.mxu3 }
 0x5f6   :  { %14350 = vst [vmem:[#allocation90_spill] sm:$0xff] %v12396_v63  ;;  %v5297_v63 = vmul.f32 %v12168_v42, %v9406_v11 }
 0x5f7   :  { %8397 = vset.pattern.permute.xlu2 %v14302_v25  ;;  %8398 = vset.pattern.permute.xlu1 %v14307_v20  ;;  %v12342_v47 = vpop.permute.xlu1 %5478 }
 0x5f8   :  { %5886 = vperm.xlu2 %8397, %v14260_v28   ;;  %6100 = vperm.xlu1 %8398, %v14260_v28  }
 0x5f9   :  { %v5657_v38 = vpop.permute.xlu2 %5656  ;;  %6009 = vmatpush.msrb.mxu0 %v8026_v61 }
 0x5fa   :  { %7994 = vmatmul.msk.f32.gmra.mxu2 %vm51_vm5, %v5501_v31  ;;  %v8048_v31 = vld [vmem:[%s13467_s7 + $0x350] sm:$0xff] }
 0x5fb   :  { %6221 = vmatpush.msrb.mxu1 %v8048_v31  ;;  %v14348_v31 = vld [vmem:[#allocation18_spill] sm:$0xff] }
 0x5fc   :  { %7981 = vmatmul.msk.f32.gmra.mxu1 %vm51_vm5, %v5294_v35  ;;  %v12373_v35 = vpop.f32.mrf.mxu0  ;;  %v5295_v21 = vmul.f32 %v14348_v31, %v13827_v7 }
 0x5fd   :  { %14346 = vst [vmem:[#allocation96_spill] sm:$0xff] %v12373_v35  ;;  %6222 = vmatpush.msrb.mxu1 %v8047_v17  ;;  %v12394_v35 = vpop.f32.mrf.mxu2 }
 0x5fe   :  { %14349 = vst [vmem:[#allocation88_spill] sm:$0xff] %v12394_v35  ;;  %v12416_v35 = vpop.f32.mrf.mxu3 }
 0x5ff   :  { %v12371_v23 = vpop.permute.xlu1 %5490  ;;  %6223 = vmatpush.msrb.mxu1 %v8046_v62  ;;  %v12409_v62 = vpop.f32.mrf.mxu1  ;;  %14353 = vst [vmem:[#allocation44_spill] sm:$0xff] %v12416_v35 }
 0x600   :  { %8399 = vset.pattern.permute.xlu2 %v14309_v57  ;;  %8400 = vset.pattern.permute.xlu1 %v14302_v25  ;;  %14352 = vst [vmem:[#allocation23_spill] sm:$0xff] %v12409_v62 }
 0x601   :  { %6318 = vperm.xlu2 %8399, %v14339_v26   ;;  %5890 = vperm.xlu1 %8400, %v14339_v26   ;;  %v12385_v61 = vpop.permute.xlu2 %5664 }
 0x602   :  { %7995 = vmatmul.msk.f32.gmra.mxu2 %vm51_vm5, %v5502_v58 }
 0x604   :  { %7982 = vmatmul.msk.f32.gmra.mxu1 %vm51_vm5, %v5295_v21  ;;  %v12403_v17 = vpop.f32.mrf.mxu0  ;;  %v5296_v21 = vmul.f32 %v12221_v36, %v14172_v6  ;;  %v5504_v36 = vmul.f32 %v12029_v13, %v13913_v56 }
 0x605   :  { %14351 = vst [vmem:[#allocation68_spill] sm:$0xff] %v12403_v17  ;;  %v12414_v15 = vpop.f32.mrf.mxu2 }
 0x606   :  { %v12441_v62 = vpop.f32.mrf.mxu3 }
 0x607   :  { %14356 = vst [vmem:[#allocation13_spill] sm:$0xff] %v12441_v62 }
 0x608   :  { %v5653_v8 = vpop.permute.xlu1 %5652 }
 0x609   :  { %8401 = vset.pattern.permute.xlu2 %v14307_v20  ;;  %8402 = vset.pattern.permute.xlu1 %v14309_v57  ;;  %v5712_v58 = vmul.f32 %v5653_v8, %v8943_v2 }
 0x60a   :  { %6104 = vperm.xlu2 %8401, %v14339_v26   ;;  %6322 = vperm.xlu1 %8402, %v9002_v33   ;;  %v6077_v31 = vpop.permute.xlu2 %6076 }
 0x60b   :  { %7996 = vmatmul.msk.f32.gmra.mxu2 %vm51_vm5, %v5503_v59  ;;  %8011 = vmatmul.msk.f32.gmra.mxu3 %vm51_vm5, %v5712_v58  ;;  %v5713_v59 = vmul.f32 %v5657_v38, %v9029_v51  ;;  %v5298_v38 = vmul.f32 %v11960_v27, %v9452_v1 }
 0x60c   :  { %7983 = vmatmul.msk.f32.gmra.mxu1 %vm51_vm5, %v5296_v21  ;;  %v12427_v58 = vpop.f32.mrf.mxu0  ;;  %v12431_v21 = vpop.f32.mrf.mxu1 }
 0x60d   :  { %14354 = vst [vmem:[#allocation8_spill] sm:$0xff] %v12427_v58  ;;  %v12434_v42 = vpop.f32.mrf.mxu2  ;;  %v5505_v58 = vmul.f32 %v12317_v19, %v13921_v39  ;;  %v12456_v19 = vpop.permute.xlu0 %5680 }
 0x60e   :  { %14355 = vst [vmem:[#allocation51_spill] sm:$0xff] %v12431_v21 }
 0x610   :  { %v5661_v8 = vpop.permute.xlu1 %5660 }
 0x612   :  { %8403 = vset.pattern.permute.xlu2 %v14284_v3  ;;  %8404 = vset.pattern.permute.xlu1 %v14307_v20 }
 0x613   :  { %5684 = vperm.xlu2 %8403, %v9045_v10   ;;  %6108 = vperm.xlu1 %8404, %v9002_v33  }
 0x614   :  { %7984 = vmatmul.msk.f32.gmra.mxu1 %vm51_vm5, %v5297_v63  ;;  %7997 = vmatmul.msk.f32.gmra.mxu2 %vm51_vm5, %v5504_v36  ;;  %v5867_v13 = vpop.permute.xlu2 %5866  ;;  %v12445_v63 = vpop.f32.mrf.mxu0  ;;  %v5714_v36 = vmul.f32 %v5661_v8, %v14259_v22 }
 0x615   :  { %8012 = vmatmul.msk.f32.gmra.mxu3 %vm51_vm5, %v5713_v59  ;;  %14357 = vst [vmem:[#allocation18_spill] sm:$0xff] %v12445_v63  ;;  %v12459_v8 = vpop.f32.mrf.mxu2 }
 0x617   :  { %v12450_v59 = vpop.f32.mrf.mxu1 }
 0x618   :  { %14358 = vst [vmem:[#allocation107_spill] sm:$0xff] %v12450_v59 }
 0x619   :  { %v5863_v35 = vpop.permute.xlu1 %5862 }
 0x61a   :  { %v5925_v17 = vmul.f32 %v5863_v35, %v8853_v40  ;;  %v6139_v35 = vmul.f32 %v6077_v31, %v8853_v40 }
 0x61b   :  { %8405 = vset.pattern.permute.xlu2 %v14309_v57  ;;  %8406 = vset.pattern.permute.xlu1 %v14284_v3 }
 0x61c   :  { %6326 = vperm.xlu2 %8405, %v9045_v10   ;;  %7985 = vmatmul.msk.f32.gmra.mxu1 %vm51_vm5, %v5298_v38  ;;  %v5871_v27 = vpop.permute.xlu2 %5870  ;;  %v5506_v38 = vmul.f32 %v12276_v9, %v9243_v4  ;;  %v12476_v63 = vpop.f32.mrf.mxu0 }
 0x61d   :  { %5688 = vperm.xlu1 %8406, %v14176_v44   ;;  %7998 = vmatmul.msk.f32.gmra.mxu2 %vm51_vm5, %v5505_v58  ;;  %v5715_v58 = vmul.f32 %v12385_v61, %v9070_v24  ;;  %14360 = vst [vmem:[#allocation109_spill] sm:$0xff] %v12476_v63  ;;  %v12484_v61 = vpop.permute.xlu0 %5700 }
 0x61e   :  { %8013 = vmatmul.msk.f32.gmra.mxu3 %vm51_vm5, %v5714_v36  ;;  %8030 = vmatmul.msk.f32.vlgmr.msrb.gmra.mxu0 %vm51_vm5, %v5925_v17  ;;  %v12469_v36 = vpop.f32.mrf.mxu3  ;;  %v5926_v17 = vmul.f32 %v5867_v13, %v8943_v2  ;;  %v6140_v13 = vmul.f32 %v12128_v48, %v8943_v2 }
 0x61f   :  { %14359 = vst [vmem:[#allocation108_spill] sm:$0xff] %v12469_v36  ;;  %v12480_v9 = vpop.f32.mrf.mxu1  ;;  %v5507_v36 = vmul.f32 %v12066_v53, %v13804_v52 }
 0x620   :  { %14361 = vst [vmem:[#allocation110_spill] sm:$0xff] %v12480_v9 }
 0x623   :  { %v12461_v62 = vpop.permute.xlu1 %6294 }
 0x624   :  { %8407 = vset.pattern.permute.xlu2 %v14302_v25  ;;  %8050 = vmatmul.msk.f32.vlgmr.msrb.gmra.mxu1 %vm51_vm5, %v6139_v35 }
 0x625   :  { %8408 = vset.pattern.permute.xlu1 %v14309_v57  ;;  %5898 = vperm.xlu2 %8407, %v9045_v10   ;;  %v12474_v31 = vpop.permute.xlu2 %6302  ;;  %v5875_v9 = vpop.permute.xlu0 %5874 }
 0x626   :  { %7999 = vmatmul.msk.f32.gmra.mxu2 %vm51_vm5, %v5506_v38  ;;  %6330 = vperm.xlu1 %8408, %v14176_v44   ;;  %v12493_v38 = vpop.f32.mrf.mxu2  ;;  %v12501_v48 = vpop.f32.mrf.mxu3 }
 0x627   :  { %8014 = vmatmul.msk.f32.gmra.mxu3 %vm51_vm5, %v5715_v58  ;;  %8031 = vmatmul.msk.f32.gmra.mxu0 %vm51_vm5, %v5926_v17  ;;  %v5927_v58 = vmul.f32 %v5871_v27, %v9029_v51  ;;  %14362 = vst [vmem:[#allocation111_spill] sm:$0xff] %v12501_v48  ;;  %v14363_v17 = vld [vmem:[#allocation25_spill] sm:$0xff]  ;;  %v5508_v27 = vmul.f32 %v12342_v47, %v13815_v5 }
 0x62b   :  { %v12488_v35 = vpop.permute.xlu1 %6298 }
 0x62c   :  { %8051 = vmatmul.msk.f32.gmra.mxu1 %vm51_vm5, %v6140_v13  ;;  %v12507_v13 = vpop.f32.mrf.mxu0 }
 0x62d   :  { %8409 = vset.pattern.permute.xlu2 %v14284_v3  ;;  %v12496_v63 = vpop.permute.xlu2 %6306  ;;  %14365 = vst [vmem:[#allocation112_spill] sm:$0xff] %v12507_v13 }
 0x62e   :  { %8000 = vmatmul.msk.f32.gmra.mxu2 %vm51_vm5, %v5507_v36  ;;  %8410 = vset.pattern.permute.xlu1 %v14302_v25  ;;  %v5928_v36 = vmul.f32 %v5875_v9, %v14259_v22  ;;  %v12515_v21 = vpop.f32.mrf.mxu2  ;;  %v12526_v9 = vpop.f32.mrf.mxu3 }
 0x62f   :  { %5692 = vperm.xlu2 %8409, %v14363_v17   ;;  %5902 = vperm.xlu1 %8410, %v14176_v44   ;;  %v12505_v53 = vpop.f32.mrf.mxu1  ;;  %14366 = vst [vmem:[#allocation113_spill] sm:$0xff] %v12515_v21  ;;  %v5509_v21 = vmul.f32 %v12299_v16, %v13827_v7  ;;  %v8066_v16 = vld [vmem:[%s13467_s7 + $0x360] sm:$0xff] }
 0x630   :  { %14364 = vst [vmem:[#allocation25_spill] sm:$0xff] %v12505_v53  ;;  %8032 = vmatmul.msk.f32.gmra.mxu0 %vm51_vm5, %v5927_v58  ;;  %v8069_v58 = vld [vmem:[%s13467_s7 + $0x378] sm:$0xff] }
 0x631   :  { %14368 = vst [vmem:[#allocation115_spill] sm:$0xff] %v12526_v9  ;;  %6434 = vmatpush.msrb.mxu2 %v8069_v58 }
 0x634   :  { %v12533_v53 = vpop.f32.mrf.mxu0 }
 0x635   :  { %v6085_v59 = vpop.permute.xlu1 %6084  ;;  %14370 = vst [vmem:[#allocation116_spill] sm:$0xff] %v12533_v53 }
 0x636   :  { %8001 = vmatmul.msk.f32.gmra.mxu2 %vm51_vm5, %v5508_v27  ;;  %v6141_v48 = vmul.f32 %v6085_v59, %v9029_v51  ;;  %v14369_v59 = vld [vmem:[#allocation30_spill] sm:$0xff]  ;;  %v8068_v27 = vld [vmem:[%s13467_s7 + $0x370] sm:$0xff] }
 0x637   :  { %8411 = vset.pattern.permute.xlu2 %v14307_v20  ;;  %8413 = vset.pattern.permute.xlu1 %v14284_v3  ;;  %v5879_v13 = vpop.permute.xlu2 %5878 }
 0x638   :  { %6116 = vperm.xlu2 %8411, %v14176_v44   ;;  %8033 = vmatmul.msk.f32.gmra.mxu0 %vm51_vm5, %v5928_v36  ;;  %v12524_v47 = vpop.f32.mrf.mxu1  ;;  %v8067_v36 = vld [vmem:[%s13467_s7 + $0x368] sm:$0xff] }
 0x639   :  { %14367 = vst [vmem:[#allocation114_spill] sm:$0xff] %v12524_v47  ;;  %5696 = vperm.xlu1 %8413, %v14369_v59   ;;  %8052 = vmatmul.msk.f32.gmra.mxu1 %vm51_vm5, %v6141_v48  ;;  %v5929_v47 = vmul.f32 %v5879_v13, %v9070_v24  ;;  %v12556_v13 = vpop.f32.mrf.mxu3 }
 0x63a   :  { %6435 = vmatpush.msrb.mxu2 %v8068_v27  ;;  %v12548_v27 = vpop.f32.mrf.mxu2  ;;  %14373 = vst [vmem:[#allocation119_spill] sm:$0xff] %v12556_v13 }
 0x63b   :  { %14371 = vst [vmem:[#allocation117_spill] sm:$0xff] %v12548_v27  ;;  %v6143_v27 = vmul.f32 %v12164_v43, %v9070_v24 }
 0x63c   :  { %6436 = vmatpush.msrb.mxu2 %v8067_v36 }
 0x63d   :  { %v6089_v9 = vpop.permute.xlu1 %6088 }
 0x63e   :  { %8002 = vmatmul.msk.f32.gmra.mxu2 %vm51_vm5, %v5509_v21  ;;  %v6142_v48 = vmul.f32 %v6089_v9, %v14259_v22  ;;  %v12560_v9 = vpop.f32.mrf.mxu0 }
 0x63f   :  { %6437 = vmatpush.msrb.mxu2 %v8066_v16  ;;  %14374 = vst [vmem:[#allocation120_spill] sm:$0xff] %v12560_v9 }
 0x640   :  { %8414 = vset.pattern.permute.xlu2 %v14302_v25  ;;  %8034 = vmatmul.msk.f32.gmra.mxu0 %vm51_vm5, %v5929_v47  ;;  %v5673_v58 = vpop.permute.xlu2 %5672  ;;  %v12553_v21 = vpop.f32.mrf.mxu1  ;;  %v5510_v47 = vmul.f32 %v12101_v18, %v14172_v6 }
 0x641   :  { %8415 = vset.pattern.permute.xlu1 %v14307_v20  ;;  %5906 = vperm.xlu2 %8414, %v14363_v17   ;;  %14372 = vst [vmem:[#allocation118_spill] sm:$0xff] %v12553_v21  ;;  %v12578_v43 = vpop.f32.mrf.mxu3 }
 0x642   :  { %6120 = vperm.xlu1 %8415, %v14363_v17   ;;  %8053 = vmatmul.msk.f32.gmra.mxu1 %vm51_vm5, %v6142_v48  ;;  %v12570_v18 = vpop.f32.mrf.mxu2  ;;  %v5511_v48 = vmul.f32 %v12371_v23, %v9406_v11  ;;  %14377 = vst [vmem:[#allocation123_spill] sm:$0xff] %v12578_v43  ;;  %v5512_v23 = vmul.f32 %v12322_v55, %v9452_v1 }
 0x643   :  { %14375 = vst [vmem:[#allocation121_spill] sm:$0xff] %v12570_v18  ;;  %v6353_v55 = vmul.f32 %v12193_v41, %v8853_v40 }
 0x646   :  { %8003 = vmatmul.msk.f32.gmra.mxu2 %vm51_vm5, %v5510_v47  ;;  %v5669_v36 = vpop.permute.xlu1 %5668  ;;  %v12580_v47 = vpop.f32.mrf.mxu0 }
 0x647   :  { %v5716_v53 = vmul.f32 %v5669_v36, %v13894_v0  ;;  %14378 = vst [vmem:[#allocation124_spill] sm:$0xff] %v12580_v47 }
 0x649   :  { %8416 = vset.pattern.permute.xlu2 %v14309_v57  ;;  %v6097_v21 = vpop.permute.xlu2 %6096  ;;  %8015 = vmatmul.msk.f32.gmra.mxu3 %vm51_vm5, %v5716_v53  ;;  %v12576_v16 = vpop.f32.mrf.mxu1  ;;  %v5717_v53 = vmul.f32 %v5673_v58, %v13903_v32 }
 0x64a   :  { %8418 = vset.pattern.permute.xlu1 %v14302_v25  ;;  %6338 = vperm.xlu2 %8416, %v14369_v59   ;;  %14376 = vst [vmem:[#allocation122_spill] sm:$0xff] %v12576_v16  ;;  %v6144_v13 = vmul.f32 %v6097_v21, %v13894_v0  ;;  %v12595_v58 = vpop.f32.mrf.mxu2  ;;  %v12600_v21 = vpop.f32.mrf.mxu3 }
 0x64b   :  { %8054 = vmatmul.msk.f32.gmra.mxu1 %vm51_vm5, %v6143_v27  ;;  %5910 = vperm.xlu1 %8418, %v14369_v59   ;;  %14379 = vst [vmem:[#allocation125_spill] sm:$0xff] %v12595_v58 }
 0x64e   :  { %8004 = vmatmul.msk.f32.gmra.mxu2 %vm51_vm5, %v5511_v48 }
 0x64f   :  { %v12584_v36 = vpop.permute.xlu1 %6310 }
 0x651   :  { %8016 = vmatmul.msk.f32.gmra.mxu3 %vm51_vm5, %v5717_v53  ;;  %v12597_v48 = vpop.f32.mrf.mxu1  ;;  %v12602_v53 = vpop.f32.mrf.mxu0 }
 0x652   :  { %8419 = vset.pattern.permute.xlu2 %v14307_v20  ;;  %v5887_v27 = vpop.permute.xlu2 %5886  ;;  %14380 = vst [vmem:[#allocation126_spill] sm:$0xff] %v12597_v48  ;;  %v14382_v48 = vld [vmem:[#allocation4_spill] sm:$0xff] }
 0x653   :  { %8055 = vmatmul.msk.f32.gmra.mxu1 %vm51_vm5, %v6144_v13  ;;  %8420 = vset.pattern.permute.xlu1 %v14309_v57  ;;  %14381 = vst [vmem:[#allocation127_spill] sm:$0xff] %v12602_v53  ;;  %v12619_v53 = vpop.f32.mrf.mxu3 }
 0x654   :  { %6124 = vperm.xlu2 %8419, %v14369_v59   ;;  %6342 = vperm.xlu1 %8420, %v9167_v14  }
 0x656   :  { %8005 = vmatmul.msk.f32.gmra.mxu2 %vm51_vm5, %v5512_v23 }
 0x658   :  { %v5883_v13 = vpop.permute.xlu1 %5882 }
 0x659   :  { %v5930_v43 = vmul.f32 %v5883_v13, %v13894_v0  ;;  %v12617_v13 = vpop.f32.mrf.mxu1  ;;  %v12622_v41 = vpop.f32.mrf.mxu0 }
 0x65a   :  { %14384 = vst [vmem:[#allocation129_spill] sm:$0xff] %v12617_v13 }
 0x65b   :  { %v12605_v47 = vpop.permute.xlu2 %6318  ;;  %8035 = vmatmul.msk.f32.gmra.mxu0 %vm51_vm5, %v5930_v43  ;;  %v5931_v43 = vmul.f32 %v5887_v27, %v13903_v32 }
 0x65c   :  { %8421 = vset.pattern.permute.xlu2 %v14284_v3  ;;  %8423 = vset.pattern.permute.xlu1 %v14307_v20 }
 0x65d   :  { %5704 = vperm.xlu2 %8421, %v14382_v48   ;;  %6128 = vperm.xlu1 %8423, %v9167_v14   ;;  %v12614_v23 = vpop.f32.mrf.mxu2 }
 0x65e   :  { %14383 = vst [vmem:[#allocation128_spill] sm:$0xff] %v12614_v23  ;;  %8070 = vmatmul.msk.f32.vlgmr.msrb.gmra.mxu2 %vm51_vm5, %v6353_v55  ;;  %v6354_v23 = vmul.f32 %v12461_v62, %v8943_v2 }
 0x661   :  { %v5677_v16 = vpop.permute.xlu1 %5676  ;;  %v12638_v27 = vpop.f32.mrf.mxu1 }
 0x662   :  { %v5718_v9 = vmul.f32 %v5677_v16, %v13913_v56  ;;  %v5719_v16 = vmul.f32 %v12456_v19, %v13921_v39  ;;  %v12643_v13 = vpop.f32.mrf.mxu0 }
 0x663   :  { %8036 = vmatmul.msk.f32.gmra.mxu0 %vm51_vm5, %v5931_v43  ;;  %v12640_v43 = vpop.f32.mrf.mxu3 }
 0x664   :  { %v6105_v58 = vpop.permute.xlu2 %6104  ;;  %8017 = vmatmul.msk.f32.gmra.mxu3 %vm51_vm5, %v5718_v9 }
 0x665   :  { %8424 = vset.pattern.permute.xlu2 %v14309_v57  ;;  %8425 = vset.pattern.permute.xlu1 %v14284_v3  ;;  %v12631_v55 = vpop.f32.mrf.mxu2  ;;  %v6355_v3 = vmul.f32 %v12488_v35, %v9029_v51 }
 0x666   :  { %14385 = vst [vmem:[#allocation130_spill] sm:$0xff] %v12631_v55  ;;  %6346 = vperm.xlu2 %8424, %v14382_v48   ;;  %5708 = vperm.xlu1 %8425, %v8825_v34  }
 0x667   :  { %8071 = vmatmul.msk.f32.gmra.mxu2 %vm51_vm5, %v6354_v23 }
 0x66a   :  { %v6101_v9 = vpop.permute.xlu1 %6100 }
 0x66b   :  { %v6145_v62 = vmul.f32 %v6101_v9, %v13903_v32  ;;  %v12658_v9 = vpop.f32.mrf.mxu1 }
 0x66c   :  { %8018 = vmatmul.msk.f32.gmra.mxu3 %vm51_vm5, %v5719_v16  ;;  %v6146_v16 = vmul.f32 %v6105_v58, %v13913_v56  ;;  %v5895_v58 = vpop.permute.xlu0 %5894 }
 0x66d   :  { %v5685_v55 = vpop.permute.xlu2 %5684  ;;  %8056 = vmatmul.msk.f32.gmra.mxu1 %vm51_vm5, %v6145_v62  ;;  %v12649_v23 = vpop.f32.mrf.mxu2 }
 0x66e   :  { %14386 = vst [vmem:[#allocation131_spill] sm:$0xff] %v12649_v23  ;;  %8426 = vset.pattern.permute.xlu2 %v14302_v25  ;;  %8427 = vset.pattern.permute.xlu1 %v14309_v57  ;;  %v5720_v19 = vmul.f32 %v5685_v55, %v9243_v4  ;;  %v6356_v25 = vmul.f32 %v12474_v31, %v14259_v22  ;;  %v12664_v57 = vpop.f32.mrf.mxu3  ;;  %v12672_v55 = vpop.f32.mrf.mxu0 }
 0x66f   :  { %5918 = vperm.xlu2 %8426, %v14382_v48   ;;  %8072 = vmatmul.msk.f32.gmra.mxu2 %vm51_vm5, %v6355_v3  ;;  %v5933_v31 = vmul.f32 %v5895_v58, %v13921_v39 }
 0x670   :  { %6350 = vperm.xlu1 %8427, %v8825_v34  }
 0x673   :  { %v5891_v35 = vpop.permute.xlu1 %5890 }
 0x674   :  { %v5932_v62 = vmul.f32 %v5891_v35, %v13913_v56  ;;  %8019 = vmatmul.msk.f32.gmra.mxu3 %vm51_vm5, %v5720_v19  ;;  %v14388_v19 = vmov 28   ;;  %v6357_v35 = vmul.f32 %v12496_v63, %v9070_v24  ;;  %v12691_v58 = vpop.permute.xlu0 %5914 }
 0x675   :  { %8057 = vmatmul.msk.f32.gmra.mxu1 %vm51_vm5, %v6146_v16  ;;  %v12667_v3 = vpop.f32.mrf.mxu2 }
 0x676   :  { %14387 = vst [vmem:[#allocation132_spill] sm:$0xff] %v12667_v3  ;;  %v12669_v23 = vpop.permute.xlu2 %6326  ;;  %8037 = vmatmul.msk.f32.gmra.mxu0 %vm51_vm5, %v5932_v62  ;;  %v12683_v62 = vpop.f32.mrf.mxu1 }
 0x677   :  { %5922 = vperm.xlu2 %8426, %v8825_v34   ;;  %8073 = vmatmul.msk.f32.gmra.mxu2 %vm51_vm5, %v6356_v25  ;;  %v12686_v48 = vpop.f32.mrf.mxu3  ;;  %v12693_v18 = vpop.f32.mrf.mxu0 }
 0x678   :  { %8428 = vset.pattern.permute.xlu1 %v14388_v19  ;;  %14390 = vst [vmem:[#allocation134_spill] sm:$0xff] %v12686_v48  ;;  %v14395_v48 = vmov 31  }
 0x679   :  { %6504 = vperm.xlu1 %8428, %v8737_v12  }
 0x67c   :  { %v6323_v16 = vpop.permute.xlu1 %6322 }
 0x67d   :  { %v12681_v3 = vpop.f32.mrf.mxu2 }
 0x67e   :  { %14389 = vst [vmem:[#allocation133_spill] sm:$0xff] %v12681_v3  ;;  %8038 = vmatmul.msk.f32.gmra.mxu0 %vm51_vm5, %v5933_v31  ;;  %v6358_v31 = vmul.f32 %v12584_v36, %v13894_v0 }
 0x67f   :  { %8429 = vset.pattern.permute.xlu2 %v14307_v20  ;;  %8074 = vmatmul.msk.f32.gmra.mxu2 %vm51_vm5, %v6357_v35  ;;  %v5899_v25 = vpop.permute.xlu2 %5898  ;;  %v12704_v35 = vpop.f32.mrf.mxu1 }
 0x680   :  { %6136 = vperm.xlu2 %8429, %v8825_v34   ;;  %v5934_v63 = vmul.f32 %v5899_v25, %v9243_v4  ;;  %v14392_v34 = vmov 29   ;;  %v12708_v59 = vpop.f32.mrf.mxu3  ;;  %v12713_v25 = vpop.f32.mrf.mxu0 }
 0x681   :  { %6508 = vperm.xlu1 %8428, %v8799_v29   ;;  %14393 = vst [vmem:[#allocation136_spill] sm:$0xff] %v12708_v59 }
 0x685   :  { %v6109_v3 = vpop.permute.xlu1 %6108  ;;  %v12699_v14 = vpop.f32.mrf.mxu2 }
 0x686   :  { %14391 = vst [vmem:[#allocation135_spill] sm:$0xff] %v12699_v14  ;;  %v6147_v20 = vmul.f32 %v6109_v3, %v13921_v39  ;;  %8039 = vmatmul.msk.f32.gmra.mxu0 %vm51_vm5, %v5934_v63  ;;  %v6113_v3 = vpop.permute.xlu0 %6112  ;;  %v6359_v63 = vmul.f32 %v12229_v30, %v13903_v32 }
 0x687   :  { %8075 = vmatmul.msk.f32.gmra.mxu2 %vm51_vm5, %v6358_v31  ;;  %v6148_v31 = vmul.f32 %v6113_v3, %v9243_v4  ;;  %v6360_v3 = vmul.f32 %v12605_v47, %v13913_v56  ;;  %v14400_v56 = vld [vmem:[#allocation6_spill] sm:$0xff] }
 0x688   :  { %8430 = vset.pattern.permute.xlu2 %v14392_v34  ;;  %8058 = vmatmul.msk.f32.gmra.mxu1 %vm51_vm5, %v6147_v20  ;;  %v12728_v32 = vpop.f32.mrf.mxu3 }
 0x689   :  { %8431 = vset.pattern.permute.xlu1 %v14264_v46  ;;  %6718 = vperm.xlu2 %8430, %v8737_v12   ;;  %v5693_v36 = vpop.permute.xlu2 %5692  ;;  %14396 = vst [vmem:[#allocation138_spill] sm:$0xff] %v12728_v32 }
 0x68a   :  { %6932 = vperm.xlu1 %8431, %v8737_v12   ;;  %v12724_v12 = vpop.f32.mrf.mxu1  ;;  %v5722_v32 = vmul.f32 %v5693_v36, %v13815_v5 }
 0x68e   :  { %v12718_v14 = vpop.f32.mrf.mxu2 }
 0x68f   :  { %14394 = vst [vmem:[#allocation137_spill] sm:$0xff] %v12718_v14  ;;  %8076 = vmatmul.msk.f32.gmra.mxu2 %vm51_vm5, %v6359_v63  ;;  %v5689_v20 = vpop.permute.xlu1 %5688  ;;  %v12734_v63 = vpop.f32.mrf.mxu0 }
 0x690   :  { %v5721_v59 = vmul.f32 %v5689_v20, %v13804_v52  ;;  %8059 = vmatmul.msk.f32.gmra.mxu1 %vm51_vm5, %v6148_v31  ;;  %14397 = vst [vmem:[#allocation139_spill] sm:$0xff] %v12734_v63 }
 0x691   :  { %8432 = vset.pattern.permute.xlu2 %v14395_v48 }
 0x692   :  { %8433 = vset.pattern.permute.xlu1 %v14392_v34  ;;  %7150 = vperm.xlu2 %8432, %v8799_v29   ;;  %v6117_v30 = vpop.permute.xlu2 %6116  ;;  %v12745_v47 = vpop.f32.mrf.mxu1 }
 0x693   :  { %6722 = vperm.xlu1 %8433, %v8799_v29   ;;  %8020 = vmatmul.msk.f32.gmra.mxu3 %vm51_vm5, %v5721_v59  ;;  %v6149_v31 = vmul.f32 %v6117_v30, %v13804_v52  ;;  %14399 = vst [vmem:[#allocation141_spill] sm:$0xff] %v12745_v47  ;;  %v12749_v30 = vpop.f32.mrf.mxu3 }
 0x694   :  { %14401 = vst [vmem:[#allocation6_spill] sm:$0xff] %v12749_v30  ;;  %v6362_v30 = vmul.f32 %v12669_v23, %v9243_v4 }
 0x697   :  { %8077 = vmatmul.msk.f32.gmra.mxu2 %vm51_vm5, %v6360_v3  ;;  %v12738_v20 = vpop.f32.mrf.mxu2  ;;  %v6361_v3 = vmul.f32 %v6323_v16, %v13921_v39 }
 0x698   :  { %14398 = vst [vmem:[#allocation140_spill] sm:$0xff] %v12738_v20  ;;  %v6331_v14 = vpop.permute.xlu1 %6330  ;;  %8060 = vmatmul.msk.f32.gmra.mxu1 %vm51_vm5, %v6149_v31  ;;  %v12752_v31 = vpop.f32.mrf.mxu0 }
 0x699   :  { %14402 = vst [vmem:[#allocation142_spill] sm:$0xff] %v12752_v31 }
 0x69a   :  { %8434 = vset.pattern.permute.xlu2 %v14264_v46  ;;  %v12765_v16 = vpop.f32.mrf.mxu1 }
 0x69b   :  { %8435 = vset.pattern.permute.xlu1 %v14395_v48  ;;  %6936 = vperm.xlu2 %8434, %v8799_v29   ;;  %v5907_v59 = vpop.permute.xlu2 %5906 }
 0x69c   :  { %7154 = vperm.xlu1 %8435, %v14400_v56   ;;  %8021 = vmatmul.msk.f32.gmra.mxu3 %vm51_vm5, %v5722_v32  ;;  %v5936_v47 = vmul.f32 %v5907_v59, %v13815_v5 }
 0x69f   :  { %8078 = vmatmul.msk.f32.gmra.mxu2 %vm51_vm5, %v6361_v3  ;;  %v12767_v3 = vpop.f32.mrf.mxu3 }
 0x6a0   :  { %v12755_v36 = vpop.f32.mrf.mxu2 }
 0x6a1   :  { %v5903_v20 = vpop.permute.xlu1 %5902 }
 0x6a2   :  { %v5935_v29 = vmul.f32 %v5903_v20, %v13804_v52  ;;  %v12770_v20 = vpop.f32.mrf.mxu0  ;;  %v12786_v59 = vpop.f32.mrf.mxu1 }
 0x6a3   :  { %8436 = vset.pattern.permute.xlu2 %v14388_v19 }
 0x6a4   :  { %8437 = vset.pattern.permute.xlu1 %v14264_v46  ;;  %6516 = vperm.xlu2 %8436, %v8892_v49   ;;  %v6339_v32 = vpop.permute.xlu2 %6338 }
 0x6a5   :  { %6940 = vperm.xlu1 %8437, %v14400_v56   ;;  %8040 = vmatmul.msk.f32.gmra.mxu0 %vm51_vm5, %v5935_v29  ;;  %v6363_v56 = vmul.f32 %v6331_v14, %v13804_v52  ;;  %v5724_v52 = vmul.f32 %v12484_v61, %v14172_v6 }
 0x6a7   :  { %8079 = vmatmul.msk.f32.gmra.mxu2 %vm51_vm5, %v6362_v30  ;;  %v12782_v30 = vpop.f32.mrf.mxu3 }
 0x6a8   :  { %14403 = vst [vmem:[#allocation143_spill] sm:$0xff] %v12782_v30 }
 0x6a9   :  { %v12772_v39 = vpop.f32.mrf.mxu2 }
 0x6ab   :  { %v5697_v31 = vpop.permute.xlu1 %5696 }
 0x6ac   :  { %v5723_v63 = vmul.f32 %v5697_v31, %v13827_v7  ;;  %8438 = vset.pattern.permute.xlu2 %v14395_v48  ;;  %v12788_v31 = vpop.f32.mrf.mxu0 }
 0x6ad   :  { %8439 = vset.pattern.permute.xlu1 %v14388_v19  ;;  %7158 = vperm.xlu2 %8438, %v8892_v49   ;;  %14404 = vst [vmem:[#allocation144_spill] sm:$0xff] %v12788_v31 }
 0x6ae   :  { %6520 = vperm.xlu1 %8439, %v8901_v50   ;;  %8041 = vmatmul.msk.f32.gmra.mxu0 %vm51_vm5, %v5936_v47  ;;  %v6125_v23 = vpop.permute.xlu2 %6124  ;;  %v6364_v47 = vmul.f32 %v12257_v37, %v13815_v5 }
 0x6af   :  { %8022 = vmatmul.msk.f32.gmra.mxu3 %vm51_vm5, %v5723_v63  ;;  %8080 = vmatmul.msk.f32.gmra.mxu2 %vm51_vm5, %v6363_v56  ;;  %v12804_v61 = vpop.f32.mrf.mxu3 }
 0x6b0   :  { %14405 = vst [vmem:[#allocation145_spill] sm:$0xff] %v12804_v61  ;;  %v6151_v61 = vmul.f32 %v6125_v23, %v13827_v7 }
 0x6b1   :  { %v12790_v14 = vpop.f32.mrf.mxu2 }
 0x6b4   :  { %v6121_v29 = vpop.permute.xlu1 %6120  ;;  %v12810_v37 = vpop.f32.mrf.mxu0 }
 0x6b5   :  { %v6150_v4 = vmul.f32 %v6121_v29, %v13815_v5  ;;  %8440 = vset.pattern.permute.xlu2 %v14392_v34  ;;  %v12808_v29 = vpop.f32.mrf.mxu1  ;;  %14407 = vst [vmem:[#allocation147_spill] sm:$0xff] %v12810_v37 }
 0x6b6   :  { %8443 = vset.pattern.permute.xlu1 %v14395_v48  ;;  %6730 = vperm.xlu2 %8440, %v8892_v49   ;;  %14406 = vst [vmem:[#allocation146_spill] sm:$0xff] %v12808_v29  ;;  %v8109_v49 = vld [vmem:[%s13467_s7 + $0x3b8] sm:$0xff] }
 0x6b7   :  { %7162 = vperm.xlu1 %8443, %v8901_v50   ;;  %8023 = vmatmul.msk.f32.gmra.mxu3 %vm51_vm5, %v5724_v52  ;;  %v5705_v63 = vpop.permute.xlu2 %5704  ;;  %v6365_v52 = vmul.f32 %v6339_v32, %v13827_v7  ;;  %v8108_v32 = vld [vmem:[%s13467_s7 + $0x3b0] sm:$0xff]  ;;  %v12832_v23 = vpop.f32.mrf.mxu3 }
 0x6b8   :  { %8081 = vmatmul.msk.f32.gmra.mxu2 %vm51_vm5, %v6364_v47  ;;  %8061 = vmatmul.msk.f32.gmra.mxu1 %vm51_vm5, %v6150_v4  ;;  %v5725_v47 = vmul.f32 %v5705_v63, %v9406_v11  ;;  %14408 = vst [vmem:[#allocation148_spill] sm:$0xff] %v12832_v23  ;;  %v8107_v63 = vld [vmem:[%s13467_s7 + $0x3a8] sm:$0xff]  ;;  %v8148_v23 = vld [vmem:[%s13467_s7 + $0x3f0] sm:$0xff] }
 0x6b9   :  { %v12806_v56 = vpop.f32.mrf.mxu2  ;;  %6862 = vmatpush.msra.mxu0 %v8109_v49 }
 0x6bb   :  { %6863 = vmatpush.msra.mxu0 %v8108_v32 }
 0x6bd   :  { %v5911_v5 = vpop.permute.xlu1 %5910  ;;  %v12837_v49 = vpop.f32.mrf.mxu1  ;;  %6864 = vmatpush.msra.mxu0 %v8107_v63  ;;  %v8089_v63 = vld [vmem:[%s13467_s7 + $0x398] sm:$0xff] }
 0x6be   :  { %v5937_v4 = vmul.f32 %v5911_v5, %v13827_v7  ;;  %8444 = vset.pattern.permute.xlu2 %v14388_v19  ;;  %14409 = vst [vmem:[#allocation149_spill] sm:$0xff] %v12837_v49  ;;  %v5938_v7 = vmul.f32 %v12691_v58, %v14172_v6  ;;  %v8147_v58 = vld [vmem:[%s13467_s7 + $0x3e8] sm:$0xff]  ;;  %6648 = vmatpush.msrb.mxu3 %v8089_v63  ;;  %v6133_v49 = vpop.permute.xlu0 %6132 }
 0x6bf   :  { %8445 = vset.pattern.permute.xlu1 %v14392_v34  ;;  %6524 = vperm.xlu2 %8444, %v8914_v54  }
 0x6c0   :  { %8024 = vmatmul.msk.f32.gmra.mxu3 %vm51_vm5, %v5725_v47  ;;  %8082 = vmatmul.msk.f32.gmra.mxu2 %vm51_vm5, %v6365_v52  ;;  %v6347_v37 = vpop.permute.xlu2 %6346  ;;  %v12839_v52 = vpop.f32.mrf.mxu0 }
 0x6c1   :  { %6734 = vperm.xlu1 %8445, %v8901_v50   ;;  %8062 = vmatmul.msk.f32.gmra.mxu1 %vm51_vm5, %v6151_v61  ;;  %v12829_v5 = vpop.f32.mrf.mxu2  ;;  %14410 = vst [vmem:[#allocation150_spill] sm:$0xff] %v12839_v52  ;;  %v8106_v61 = vld [vmem:[%s13467_s7 + $0x3a0] sm:$0xff]  ;;  %v6367_v63 = vmul.f32 %v6347_v37, %v9406_v11 }
 0x6c2   :  { %8042 = vmatmul.msk.f32.gmra.mxu0 %vm51_vm5, %v5937_v4  ;;  %v8149_v4 = vld [vmem:[%s13467_s7 + $0x3f8] sm:$0xff]  ;;  %v8086_v37 = vld [vmem:[%s13467_s7 + $0x380] sm:$0xff] }
 0x6c3   :  { %6865 = vmatpush.msra.mxu0 %v8106_v61  ;;  %7290 = vmatpush.msra.mxu2 %v8149_v4  ;;  %v8087_v4 = vld [vmem:[%s13467_s7 + $0x388] sm:$0xff] }
 0x6c5   :  { %7291 = vmatpush.msra.mxu2 %v8148_v23  ;;  %v12870_v61 = vpop.f32.mrf.mxu1 }
 0x6c6   :  { %v6343_v47 = vpop.permute.xlu1 %6342  ;;  %14411 = vst [vmem:[#allocation151_spill] sm:$0xff] %v12870_v61 }
 0x6c7   :  { %v6366_v32 = vmul.f32 %v6343_v47, %v14172_v6  ;;  %8446 = vset.pattern.permute.xlu2 %v14264_v46  ;;  %7292 = vmatpush.msra.mxu2 %v8147_v58  ;;  %v8129_v58 = vld [vmem:[%s13467_s7 + $0x3d8] sm:$0xff] }
 0x6c8   :  { %6948 = vperm.xlu2 %8446, %v8901_v50   ;;  %v8088_v50 = vld [vmem:[%s13467_s7 + $0x390] sm:$0xff]  ;;  %v12880_v30 = vpop.f32.mrf.mxu0  ;;  %7076 = vmatpush.msra.mxu1 %v8129_v58  ;;  %v8126_v58 = vld [vmem:[%s13467_s7 + $0x3c0] sm:$0xff] }
 0x6c9   :  { %8448 = vset.pattern.permute.xlu1 %v14388_v19  ;;  %v5919_v47 = vpop.permute.xlu2 %5918  ;;  %v12859_v52 = vpop.f32.mrf.mxu2  ;;  %8083 = vmatmul.msk.f32.gmra.mxu2 %vm51_vm5, %v6366_v32  ;;  %14413 = vst [vmem:[#allocation153_spill] sm:$0xff] %v12880_v30 }
 0x6ca   :  { %6528 = vperm.xlu1 %8448, %v14260_v28   ;;  %8043 = vmatmul.msk.f32.gmra.mxu0 %vm51_vm5, %v5938_v7  ;;  %v8146_v7 = vld [vmem:[%s13467_s7 + $0x3e0] sm:$0xff]  ;;  %v12878_v32 = vpop.f32.mrf.mxu3  ;;  %v5939_v61 = vmul.f32 %v5919_v47, %v9406_v11 }
 0x6cb   :  { %14412 = vst [vmem:[#allocation152_spill] sm:$0xff] %v12878_v32  ;;  %6649 = vmatpush.msrb.mxu3 %v8088_v50  ;;  %7293 = vmatpush.msra.mxu2 %v8146_v7 }
 0x6cd   :  { %6650 = vmatpush.msrb.mxu3 %v8087_v4  ;;  %v12899_v50 = vpop.f32.mrf.mxu1  ;;  %v12904_v4 = vpop.permute.xlu0 %6944 }
 0x6ce   :  { %14415 = vst [vmem:[#allocation155_spill] sm:$0xff] %v12899_v50 }
 0x6cf   :  { %v6129_v23 = vpop.permute.xlu1 %6128  ;;  %6651 = vmatpush.msrb.mxu3 %v8086_v37 }
 0x6d0   :  { %v6152_v29 = vmul.f32 %v6129_v23, %v14172_v6  ;;  %8449 = vset.pattern.permute.xlu2 %v14392_v34 }
 0x6d1   :  { %6738 = vperm.xlu2 %8449, %v8914_v54   ;;  %v5923_v31 = vpop.permute.xlu2 %5922  ;;  %v12887_v32 = vpop.f32.mrf.mxu2  ;;  %8084 = vmatmul.msk.f32.gmra.mxu2 %vm51_vm5, %v6367_v63 }
 0x6d2   :  { %8450 = vset.pattern.permute.xlu1 %v14264_v46  ;;  %8044 = vmatmul.msk.f32.gmra.mxu0 %vm51_vm5, %v5939_v61  ;;  %v12897_v47 = vpop.f32.mrf.mxu3  ;;  %v5940_v7 = vmul.f32 %v5923_v31, %v9452_v1  ;;  %v6153_v61 = vmul.f32 %v6133_v49, %v9406_v11  ;;  %v8128_v31 = vld [vmem:[%s13467_s7 + $0x3d0] sm:$0xff]  ;;  %v8127_v49 = vld [vmem:[%s13467_s7 + $0x3c8] sm:$0xff] }
 0x6d3   :  { %6952 = vperm.xlu1 %8450, %v8914_v54   ;;  %8063 = vmatmul.msk.f32.gmra.mxu1 %vm51_vm5, %v6152_v29  ;;  %14414 = vst [vmem:[#allocation154_spill] sm:$0xff] %v12897_v47  ;;  %v12908_v54 = vpop.f32.mrf.mxu0  ;;  %v14419_v11 = vld [vmem:[#allocation39_spill] sm:$0xff] }
 0x6d4   :  { %14416 = vst [vmem:[#allocation156_spill] sm:$0xff] %v12908_v54  ;;  %7077 = vmatpush.msra.mxu1 %v8128_v31 }
 0x6d5   :  { %v7147_v50 = vpop.permute.xlu0 %7146 }
 0x6d6   :  { %7078 = vmatpush.msra.mxu1 %v8127_v49 }
 0x6d8   :  { %v5709_v63 = vpop.permute.xlu1 %5708  ;;  %7079 = vmatpush.msra.mxu1 %v8126_v58 }
 0x6d9   :  { %v5726_v29 = vmul.f32 %v5709_v63, %v9452_v1  ;;  %8451 = vset.pattern.permute.xlu2 %v14395_v48  ;;  %v12912_v23 = vpop.f32.mrf.mxu2  ;;  %v14418_v63 = vld [vmem:[#allocation22_spill] sm:$0xff] }
 0x6da   :  { %8045 = vmatmul.msk.f32.gmra.mxu0 %vm51_vm5, %v5940_v7  ;;  %7170 = vperm.xlu2 %8451, %v14260_v28   ;;  %v6137_v37 = vpop.permute.xlu2 %6136  ;;  %v12929_v7 = vpop.f32.mrf.mxu3  ;;  %v4355_v47 = vadd.f32 %v14419_v11, %v14418_v63  ;;  %v14422_v11 = vld [vmem:[#allocation57_spill] sm:$0xff]  ;;  %v14423_v63 = vld [vmem:[#allocation66_spill] sm:$0xff] }
 0x6db   :  { %8453 = vset.pattern.permute.xlu1 %v14392_v34  ;;  %8064 = vmatmul.msk.f32.gmra.mxu1 %vm51_vm5, %v6153_v61  ;;  %14417 = vst [vmem:[#allocation157_spill] sm:$0xff] %v12929_v7  ;;  %v12933_v61 = vpop.f32.mrf.mxu1  ;;  %v6154_v54 = vmul.f32 %v6137_v37, %v9452_v1  ;;  %v3500_v7 = vadd.f32 %v14423_v63, %v14422_v11  ;;  %v14424_v37 = vld [vmem:[#allocation9_spill] sm:$0xff] }
 0x6dc   :  { %6742 = vperm.xlu1 %8453, %v14260_v28   ;;  %8025 = vmatmul.msk.f32.gmra.mxu3 %vm51_vm5, %v5726_v29  ;;  %14420 = vst [vmem:[#allocation22_spill] sm:$0xff] %v12933_v61  ;;  %v12936_v29 = vpop.f32.mrf.mxu0  ;;  %v4569_v61 = vadd.f32 %v14424_v37, %v4355_v47 }
 0x6dd   :  { %14421 = vst [vmem:[#allocation39_spill] sm:$0xff] %v12936_v29 }
 0x6e1   :  { %v12938_v6 = vpop.f32.mrf.mxu2 }
 0x6e2   :  { %v6351_v31 = vpop.permute.xlu1 %6350  ;;  %8454 = vset.pattern.permute.xlu2 %v14264_v46 }
 0x6e3   :  { %v6368_v30 = vmul.f32 %v6351_v31, %v9452_v1  ;;  %6956 = vperm.xlu2 %8454, %v14260_v28   ;;  %v6719_v49 = vpop.permute.xlu2 %6718  ;;  %8065 = vmatmul.msk.f32.gmra.mxu1 %vm51_vm5, %v6154_v54  ;;  %v4783_v31 = vadd.f32 %v12414_v15, %v4569_v61  ;;  %v14426_v54 = vld [vmem:[#allocation91_spill] sm:$0xff]  ;;  %v12958_v63 = vpop.f32.mrf.mxu1  ;;  %v14428_v15 = vld [vmem:[#allocation82_spill] sm:$0xff] }
 0x6e4   :  { %8455 = vset.pattern.permute.xlu1 %v14395_v48  ;;  %v6781_v58 = vmul.f32 %v6719_v49, %v8853_v40  ;;  %v3714_v1 = vadd.f32 %v14426_v54, %v3500_v7  ;;  %v7209_v49 = vmul.f32 %v7147_v50, %v8853_v40  ;;  %v12963_v29 = vpop.f32.mrf.mxu0  ;;  %v14429_v50 = vld [vmem:[#allocation71_spill] sm:$0xff] }
 0x6e5   :  { %7174 = vperm.xlu1 %8455, %v14339_v26   ;;  %8085 = vmatmul.msk.f32.gmra.mxu2 %vm51_vm5, %v6368_v30  ;;  %v4997_v11 = vadd.f32 %v12600_v21, %v4783_v31  ;;  %14427 = vst [vmem:[#allocation66_spill] sm:$0xff] %v12963_v29 }
 0x6e6   :  { %8110 = vmatmul.msk.f32.vlgmr.msra.gmra.mxu0 %vm51_vm5, %v6781_v58  ;;  %v3928_v61 = vadd.f32 %v14428_v15, %v3714_v1 }
 0x6e7   :  { %v12953_v28 = vpop.f32.mrf.mxu3  ;;  %v5211_v47 = vadd.f32 %v12622_v41, %v4997_v11  ;;  %v12970_v41 = vpop.permute.xlu0 %7166  ;;  %v14430_v11 = vld [vmem:[#allocation19_spill] sm:$0xff] }
 0x6e8   :  { %14425 = vst [vmem:[#allocation57_spill] sm:$0xff] %v12953_v28  ;;  %v4142_v31 = vadd.f32 %v14429_v50, %v3928_v61 }
 0x6e9   :  { %v5425_v58 = vadd.f32 %v12638_v27, %v5211_v47 }
 0x6ea   :  { %v12960_v37 = vpop.f32.mrf.mxu2  ;;  %v4356_v47 = vadd.f32 %v14430_v11, %v4142_v31 }
 0x6eb   :  { %v6505_v30 = vpop.permute.xlu1 %6504  ;;  %8456 = vset.pattern.permute.xlu2 %v14388_v19  ;;  %v5639_v54 = vadd.f32 %v12755_v36, %v5425_v58 }
 0x6ec   :  { %v6567_v7 = vmul.f32 %v6505_v30, %v8853_v40  ;;  %6536 = vperm.xlu2 %8456, %v9002_v33   ;;  %v7151_v21 = vpop.permute.xlu2 %7150  ;;  %v12979_v30 = vpop.f32.mrf.mxu1  ;;  %v4570_v36 = vadd.f32 %v12254_v45, %v4356_v47 }
 0x6ed   :  { %8457 = vset.pattern.permute.xlu1 %v14264_v46  ;;  %8150 = vmatmul.msk.f32.vlgmr.msra.gmra.mxu2 %vm51_vm5, %v7209_v49  ;;  %v7210_v28 = vmul.f32 %v7151_v21, %v8943_v2 }
 0x6ee   :  { %6960 = vperm.xlu1 %8457, %v14339_v26   ;;  %8090 = vmatmul.msk.f32.vlgmr.msrb.gmra.mxu3 %vm51_vm5, %v6567_v7  ;;  %v4784_v7 = vadd.f32 %v12434_v42, %v4570_v36  ;;  %v14431_v36 = vld [vmem:[#allocation29_spill] sm:$0xff] }
 0x6ef   :  { %v5821_v1 = vpop.f32.mrf.mxu3  ;;  %v6513_v58 = vpop.permute.xlu0 %6512 }
 0x6f0   :  { %v5853_v27 = vadd.f32 %v5821_v1, %v5639_v54  ;;  %v6569_v31 = vmul.f32 %v6513_v58, %v9029_v51 }
 0x6f2   :  { %v12981_v15 = vpop.f32.mrf.mxu2 }
 0x6f3   :  { %v6509_v29 = vpop.permute.xlu1 %6508  ;;  %v12984_v49 = vpop.f32.mrf.mxu0 }
 0x6f4   :  { %v6568_v61 = vmul.f32 %v6509_v29, %v8943_v2  ;;  %8458 = vset.pattern.permute.xlu2 %v14395_v48  ;;  %v4998_v29 = vadd.f32 %v12619_v53, %v4784_v7  ;;  %v13000_v1 = vpop.f32.mrf.mxu1 }
 0x6f5   :  { %7178 = vperm.xlu2 %8458, %v9002_v33   ;;  %8151 = vmatmul.msk.f32.gmra.mxu2 %vm51_vm5, %v7210_v28  ;;  %v6937_v26 = vpop.permute.xlu2 %6936 }
 0x6f6   :  { %8459 = vset.pattern.permute.xlu1 %v14388_v19  ;;  %8091 = vmatmul.msk.f32.gmra.mxu3 %vm51_vm5, %v6568_v61  ;;  %v5212_v28 = vadd.f32 %v12643_v13, %v4998_v29 }
 0x6f7   :  { %6540 = vperm.xlu1 %8459, %v9045_v10   ;;  %v5824_v53 = vpop.f32.mrf.mxu3 }
 0x6f8   :  { %v5426_v47 = vadd.f32 %v12658_v9, %v5212_v28 }
 0x6fa   :  { %v12996_v21 = vpop.f32.mrf.mxu2  ;;  %v5640_v13 = vadd.f32 %v12772_v39, %v5426_v47  ;;  %v14433_v47 = vld [vmem:[#allocation92_spill] sm:$0xff] }
 0x6fb   :  { %v6035_v50 = vpop.f32.mrf.mxu0 }
 0x6fc   :  { %v6933_v54 = vpop.permute.xlu1 %6932  ;;  %v6067_v45 = vadd.f32 %v6035_v50, %v5853_v27  ;;  %v13011_v27 = vpop.permute.xlu0 %6532  ;;  %v6996_v50 = vmul.f32 %v6937_v26, %v8943_v2 }
 0x6fd   :  { %v6995_v11 = vmul.f32 %v6933_v54, %v8853_v40  ;;  %8460 = vset.pattern.permute.xlu2 %v14392_v34  ;;  %v5854_v40 = vadd.f32 %v5824_v53, %v5640_v13  ;;  %v14434_v53 = vld [vmem:[#allocation73_spill] sm:$0xff]  ;;  %v14435_v13 = vld [vmem:[#allocation47_spill] sm:$0xff] }
 0x6fe   :  { %6750 = vperm.xlu2 %8460, %v9002_v33   ;;  %8092 = vmatmul.msk.f32.gmra.mxu3 %vm51_vm5, %v6569_v31  ;;  %v6517_v42 = vpop.permute.xlu2 %6516  ;;  %v14432_v33 = vld [vmem:[#allocation89_spill] sm:$0xff] }
 0x6ff   :  { %8462 = vset.pattern.permute.xlu1 %v14395_v48  ;;  %8130 = vmatmul.msk.f32.vlgmr.msra.gmra.mxu1 %vm51_vm5, %v6995_v11  ;;  %v3501_v58 = vadd.f32 %v14432_v33, %v14431_v36  ;;  %v6570_v7 = vmul.f32 %v6517_v42, %v14259_v22  ;;  %v14437_v33 = vld [vmem:[#allocation52_spill] sm:$0xff] }
 0x700   :  { %7182 = vperm.xlu1 %8462, %v9045_v10  }
 0x701   :  { %v3715_v42 = vadd.f32 %v14433_v47, %v3501_v58 }
 0x702   :  { %v13013_v61 = vpop.f32.mrf.mxu2 }
 0x703   :  { %v6038_v9 = vpop.f32.mrf.mxu0 }
 0x704   :  { %v6068_v29 = vadd.f32 %v6038_v9, %v5854_v40  ;;  %v6727_v26 = vpop.permute.xlu0 %6726  ;;  %v14436_v40 = vld [vmem:[#allocation76_spill] sm:$0xff] }
 0x705   :  { %v6723_v31 = vpop.permute.xlu1 %6722  ;;  %v6249_v28 = vpop.f32.mrf.mxu1  ;;  %v3929_v9 = vadd.f32 %v14436_v40, %v3715_v42  ;;  %v14440_v40 = vld [vmem:[#allocation75_spill] sm:$0xff] }
 0x706   :  { %v6782_v39 = vmul.f32 %v6723_v31, %v8943_v2  ;;  %8463 = vset.pattern.permute.xlu2 %v14388_v19  ;;  %8093 = vmatmul.msk.f32.gmra.mxu3 %vm51_vm5, %v6570_v7  ;;  %v13022_v54 = vadd.f32 %v6249_v28, %v6067_v45  ;;  %v3502_v45 = vadd.f32 %v14435_v13, %v14434_v53 }
 0x707   :  { %6544 = vperm.xlu2 %8463, %v14176_v44   ;;  %v7159_v11 = vpop.permute.xlu2 %7158  ;;  %8131 = vmatmul.msk.f32.gmra.mxu1 %vm51_vm5, %v6996_v50  ;;  %v4143_v7 = vadd.f32 %v14437_v33, %v3929_v9  ;;  %v6783_v50 = vmul.f32 %v6727_v26, %v9029_v51  ;;  %v14439_v26 = vld [vmem:[#allocation102_spill] sm:$0xff] }
 0x708   :  { %8464 = vset.pattern.permute.xlu1 %v14392_v34  ;;  %8111 = vmatmul.msk.f32.gmra.mxu0 %vm51_vm5, %v6782_v39  ;;  %v14438_v39 = vld [vmem:[#allocation21_spill] sm:$0xff]  ;;  %v14441_v9 = vld [vmem:[#allocation42_spill] sm:$0xff] }
 0x709   :  { %6754 = vperm.xlu1 %8464, %v9045_v10   ;;  %v3716_v47 = vadd.f32 %v14438_v39, %v3502_v45  ;;  %v4357_v42 = vadd.f32 %v12247_v60, %v4143_v7  ;;  %v3503_v45 = vadd.f32 %v14441_v9, %v14440_v40  ;;  %v14443_v33 = vld [vmem:[#allocation94_spill] sm:$0xff]  ;;  %v7212_v39 = vmul.f32 %v7159_v11, %v14259_v22  ;;  %v14446_v40 = vld [vmem:[#allocation99_spill] sm:$0xff]  ;;  %v14447_v9 = vld [vmem:[#allocation28_spill] sm:$0xff] }
 0x70a   :  { %v13030_v2 = vpop.f32.mrf.mxu2 }
 0x70b   :  { %v3930_v13 = vadd.f32 %v14439_v26, %v3716_v47  ;;  %v14444_v47 = vld [vmem:[#allocation14_spill] sm:$0xff] }
 0x70c   :  { %v3717_v26 = vadd.f32 %v14444_v47, %v3503_v45  ;;  %v3504_v45 = vadd.f32 %v14447_v9, %v14446_v40  ;;  %v14451_v47 = vld [vmem:[#allocation48_spill] sm:$0xff] }
 0x70d   :  { %v6252_v36 = vpop.f32.mrf.mxu1  ;;  %v14453_v9 = vld [vmem:[#allocation24_spill] sm:$0xff] }
 0x70e   :  { %v7155_v58 = vpop.permute.xlu1 %7154  ;;  %v13037_v31 = vadd.f32 %v6252_v36, %v6068_v29  ;;  %v14442_v36 = vld [vmem:[#allocation53_spill] sm:$0xff] }
 0x70f   :  { %v7211_v28 = vmul.f32 %v7155_v58, %v9029_v51  ;;  %8465 = vset.pattern.permute.xlu2 %v14264_v46 }
 0x710   :  { %6968 = vperm.xlu2 %8465, %v9045_v10   ;;  %8112 = vmatmul.msk.f32.gmra.mxu0 %vm51_vm5, %v6783_v50  ;;  %v6731_v53 = vpop.permute.xlu2 %6730  ;;  %v4571_v10 = vadd.f32 %v14442_v36, %v4357_v42  ;;  %v4144_v50 = vadd.f32 %v14443_v33, %v3930_v13  ;;  %v14445_v13 = vld [vmem:[#allocation16_spill] sm:$0xff]  ;;  %v14448_v36 = vld [vmem:[#allocation97_spill] sm:$0xff] }
 0x711   :  { %8467 = vset.pattern.permute.xlu1 %v14388_v19  ;;  %8152 = vmatmul.msk.f32.gmra.mxu2 %vm51_vm5, %v7211_v28  ;;  %v6784_v58 = vmul.f32 %v6731_v53, %v14259_v22 }
 0x712   :  { %6548 = vperm.xlu1 %8467, %v14363_v17   ;;  %v13048_v29 = vpop.f32.mrf.mxu2  ;;  %v4785_v60 = vadd.f32 %v12459_v8, %v4571_v10  ;;  %v4358_v53 = vadd.f32 %v14445_v13, %v4144_v50  ;;  %v3931_v10 = vadd.f32 %v14448_v36, %v3717_v26  ;;  %v3718_v13 = vadd.f32 %v14451_v47, %v3504_v45 }
 0x714   :  { %v4999_v11 = vadd.f32 %v12640_v43, %v4785_v60  ;;  %v6998_v60 = vmul.f32 %v12904_v4, %v14259_v22  ;;  %v14452_v22 = vld [vmem:[#allocation105_spill] sm:$0xff]  ;;  %v3932_v45 = vadd.f32 %v14453_v9, %v3718_v13 }
 0x715   :  { %v6255_v36 = vpop.f32.mrf.mxu1 }
 0x716   :  { %v5827_v33 = vpop.f32.mrf.mxu3 }
 0x717   :  { %v6941_v28 = vpop.permute.xlu1 %6940 }
 0x718   :  { %v6997_v7 = vmul.f32 %v6941_v28, %v9029_v51  ;;  %8468 = vset.pattern.permute.xlu2 %v14392_v34  ;;  %8113 = vmatmul.msk.f32.gmra.mxu0 %vm51_vm5, %v6784_v58  ;;  %v5213_v51 = vadd.f32 %v12672_v55, %v4999_v11  ;;  %v14449_v58 = vld [vmem:[#allocation106_spill] sm:$0xff] }
 0x719   :  { %6758 = vperm.xlu2 %8468, %v14176_v44   ;;  %8153 = vmatmul.msk.f32.gmra.mxu2 %vm51_vm5, %v7212_v39  ;;  %v6525_v42 = vpop.permute.xlu2 %6524  ;;  %v4572_v50 = vadd.f32 %v14449_v58, %v4358_v53  ;;  %v14450_v39 = vld [vmem:[#allocation34_spill] sm:$0xff] }
 0x71a   :  { %8469 = vset.pattern.permute.xlu1 %v14264_v46  ;;  %v13067_v8 = vpop.f32.mrf.mxu2  ;;  %8132 = vmatmul.msk.f32.gmra.mxu1 %vm51_vm5, %v6997_v7  ;;  %v5427_v43 = vadd.f32 %v12683_v62, %v5213_v51  ;;  %v4145_v28 = vadd.f32 %v14450_v39, %v3931_v10  ;;  %v14454_v10 = vld [vmem:[#allocation70_spill] sm:$0xff]  ;;  %v14456_v39 = vld [vmem:[#allocation32_spill] sm:$0xff]  ;;  %v6572_v13 = vmul.f32 %v6525_v42, %v13894_v0 }
 0x71b   :  { %6972 = vperm.xlu1 %8469, %v14176_v44   ;;  %v4786_v7 = vadd.f32 %v12493_v38, %v4572_v50 }
 0x71c   :  { %v5641_v44 = vadd.f32 %v12790_v14, %v5427_v43  ;;  %v4359_v38 = vadd.f32 %v14452_v22, %v4145_v28  ;;  %v14457_v28 = vld [vmem:[#allocation78_spill] sm:$0xff] }
 0x71d   :  { %v5000_v26 = vadd.f32 %v12664_v57, %v4786_v7 }
 0x71e   :  { %v5855_v53 = vadd.f32 %v5827_v33, %v5641_v44  ;;  %v14455_v33 = vld [vmem:[#allocation79_spill] sm:$0xff] }
 0x71f   :  { %v5214_v40 = vadd.f32 %v12693_v18, %v5000_v26  ;;  %v3505_v58 = vadd.f32 %v14455_v33, %v14454_v10  ;;  %v5830_v7 = vpop.f32.mrf.mxu3  ;;  %v14459_v26 = vld [vmem:[#allocation103_spill] sm:$0xff]  ;;  %v14463_v10 = vld [vmem:[#allocation100_spill] sm:$0xff] }
 0x720   :  { %v6521_v55 = vpop.permute.xlu1 %6520 }
 0x721   :  { %v6571_v11 = vmul.f32 %v6521_v55, %v9070_v24  ;;  %8470 = vset.pattern.permute.xlu2 %v14395_v48  ;;  %v5428_v50 = vadd.f32 %v12704_v35, %v5214_v40  ;;  %v14458_v55 = vld [vmem:[#allocation113_spill] sm:$0xff] }
 0x722   :  { %7190 = vperm.xlu2 %8470, %v14363_v17   ;;  %v6463_v62 = vpop.f32.mrf.mxu2  ;;  %v6949_v51 = vpop.permute.xlu2 %6948  ;;  %8133 = vmatmul.msk.f32.gmra.mxu1 %vm51_vm5, %v6998_v60  ;;  %v4146_v60 = vadd.f32 %v14457_v28, %v3932_v45 }
 0x723   :  { %8472 = vset.pattern.permute.xlu1 %v14392_v34  ;;  %v13091_v14 = vadd.f32 %v6463_v62, %v13022_v54  ;;  %v6041_v4 = vpop.f32.mrf.mxu0  ;;  %8094 = vmatmul.msk.f32.gmra.mxu3 %vm51_vm5, %v6571_v11  ;;  %v4573_v54 = vadd.f32 %v14456_v39, %v4359_v38  ;;  %v5642_v44 = vadd.f32 %v12806_v56, %v5428_v50  ;;  %v14460_v38 = vld [vmem:[#allocation12_spill] sm:$0xff]  ;;  %v14461_v56 = vld [vmem:[#allocation134_spill] sm:$0xff] }
 0x724   :  { %6762 = vperm.xlu1 %8472, %v14363_v17   ;;  %v6069_v57 = vadd.f32 %v6041_v4, %v5855_v53  ;;  %v6999_v18 = vmul.f32 %v6949_v51, %v9070_v24  ;;  %v3719_v53 = vadd.f32 %v14459_v26, %v3505_v58  ;;  %v4360_v4 = vadd.f32 %v14460_v38, %v4146_v60  ;;  %v14464_v58 = vld [vmem:[#allocation45_spill] sm:$0xff] }
 0x725   :  { %v4787_v47 = vadd.f32 %v14458_v55, %v4573_v54  ;;  %v5856_v62 = vadd.f32 %v5830_v7, %v5642_v44  ;;  %v14466_v54 = vld [vmem:[#allocation117_spill] sm:$0xff]  ;;  %v7214_v7 = vmul.f32 %v12970_v41, %v13894_v0  ;;  %v14470_v41 = vld [vmem:[#allocation139_spill] sm:$0xff] }
 0x726   :  { %v6283_v43 = vadd.f32 %v6255_v36, %v6069_v57  ;;  %v14462_v36 = vld [vmem:[#allocation30_spill] sm:$0xff]  ;;  %v3933_v33 = vadd.f32 %v14463_v10, %v3719_v53  ;;  %v14471_v38 = vld [vmem:[#allocation141_spill] sm:$0xff] }
 0x727   :  { %v5001_v40 = vadd.f32 %v14461_v56, %v4787_v47  ;;  %v14472_v56 = vld [vmem:[#allocation23_spill] sm:$0xff]  ;;  %v14474_v10 = vld [vmem:[#allocation33_spill] sm:$0xff] }
 0x729   :  { %v7163_v11 = vpop.permute.xlu1 %7162  ;;  %v5215_v45 = vadd.f32 %v12713_v25, %v5001_v40  ;;  %v14467_v25 = vld [vmem:[#allocation136_spill] sm:$0xff] }
 0x72a   :  { %v7213_v35 = vmul.f32 %v7163_v11, %v9070_v24  ;;  %8473 = vset.pattern.permute.xlu2 %v14264_v46  ;;  %v6466_v22 = vpop.f32.mrf.mxu2  ;;  %8134 = vmatmul.msk.f32.gmra.mxu1 %vm51_vm5, %v6999_v18 }
 0x72b   :  { %v13113_v51 = vadd.f32 %v6466_v22, %v13037_v31  ;;  %6976 = vperm.xlu2 %8473, %v14363_v17   ;;  %v6044_v42 = vpop.f32.mrf.mxu0  ;;  %8095 = vmatmul.msk.f32.gmra.mxu3 %vm51_vm5, %v6572_v13  ;;  %v6739_v57 = vpop.permute.xlu2 %6738  ;;  %v4574_v31 = vadd.f32 %v14464_v58, %v4360_v4  ;;  %v5429_v50 = vadd.f32 %v12724_v12, %v5215_v45  ;;  %v14465_v17 = vld [vmem:[#allocation64_spill] sm:$0xff] }
 0x72c   :  { %8474 = vset.pattern.permute.xlu1 %v14395_v48  ;;  %v6070_v9 = vadd.f32 %v6044_v42, %v5856_v62  ;;  %8154 = vmatmul.msk.f32.gmra.mxu2 %vm51_vm5, %v7213_v35  ;;  %v4147_v39 = vadd.f32 %v14465_v17, %v3933_v33  ;;  %v14468_v12 = vld [vmem:[#allocation96_spill] sm:$0xff]  ;;  %v14469_v62 = vld [vmem:[#allocation35_spill] sm:$0xff]  ;;  %v14473_v42 = vld [vmem:[#allocation121_spill] sm:$0xff] }
 0x72d   :  { %7194 = vperm.xlu1 %8474, %v14462_v36   ;;  %v4788_v28 = vadd.f32 %v14466_v54, %v4574_v31  ;;  %v5643_v60 = vadd.f32 %v12829_v5, %v5429_v50  ;;  %v14475_v17 = vld [vmem:[#allocation138_spill] sm:$0xff] }
 0x72e   :  { %v4361_v26 = vadd.f32 %v14468_v12, %v4147_v39  ;;  %v14479_v12 = vld [vmem:[#allocation62_spill] sm:$0xff] }
 0x72f   :  { %v5002_v55 = vadd.f32 %v14467_v25, %v4788_v28 }
 0x730   :  { %v4575_v40 = vadd.f32 %v14472_v56, %v4361_v26 }
 0x731   :  { %v5216_v35 = vadd.f32 %v14470_v41, %v5002_v55 }
 0x732   :  { %v5833_v44 = vpop.f32.mrf.mxu3  ;;  %v6469_v18 = vpop.f32.mrf.mxu2  ;;  %v4789_v45 = vadd.f32 %v14473_v42, %v4575_v40 }
 0x733   :  { %v6735_v47 = vpop.permute.xlu1 %6734  ;;  %v5857_v13 = vadd.f32 %v5833_v44, %v5643_v60  ;;  %v13130_v11 = vadd.f32 %v6469_v18, %v6283_v43  ;;  %8475 = vset.pattern.permute.xlu2 %v14388_v19  ;;  %v5430_v4 = vadd.f32 %v14471_v38, %v5216_v35  ;;  %v14476_v60 = vld [vmem:[#allocation142_spill] sm:$0xff]  ;;  %v14477_v44 = vld [vmem:[#allocation4_spill] sm:$0xff] }
 0x734   :  { %v6785_v53 = vmul.f32 %v6735_v47, %v9070_v24  ;;  %6556 = vperm.xlu2 %8475, %v14469_v62   ;;  %8155 = vmatmul.msk.f32.gmra.mxu2 %vm51_vm5, %v7214_v7  ;;  %v7171_v5 = vpop.permute.xlu2 %7170  ;;  %v5003_v39 = vadd.f32 %v14475_v17, %v4789_v45  ;;  %v14478_v47 = vld [vmem:[#allocation69_spill] sm:$0xff]  ;;  %v14480_v38 = vld [vmem:[#allocation38_spill] sm:$0xff] }
 0x735   :  { %8477 = vset.pattern.permute.xlu1 %v14264_v46  ;;  %v6258_v22 = vpop.f32.mrf.mxu1  ;;  %v5644_v24 = vadd.f32 %v12859_v52, %v5430_v4  ;;  %v7215_v33 = vmul.f32 %v7171_v5, %v14474_v10  ;;  %v3506_v26 = vadd.f32 %v14479_v12, %v14478_v47  ;;  %v6574_v4 = vmul.f32 %v13011_v27, %v14480_v38  ;;  %v14482_v27 = vld [vmem:[#allocation98_spill] sm:$0xff] }
 0x736   :  { %6980 = vperm.xlu1 %8477, %v14462_v36   ;;  %v6284_v43 = vadd.f32 %v6258_v22, %v6070_v9  ;;  %8114 = vmatmul.msk.f32.gmra.mxu0 %vm51_vm5, %v6785_v53  ;;  %v6786_v36 = vmul.f32 %v6739_v57, %v13894_v0  ;;  %v5217_v7 = vadd.f32 %v14476_v60, %v5003_v39 }
 0x738   :  { %v5431_v18 = vadd.f32 %v12765_v16, %v5217_v7  ;;  %v14481_v16 = vld [vmem:[#allocation87_spill] sm:$0xff] }
 0x73a   :  { %v5836_v58 = vpop.f32.mrf.mxu3  ;;  %v5645_v53 = vadd.f32 %v12887_v32, %v5431_v18 }
 0x73b   :  { %v5858_v31 = vadd.f32 %v5836_v58, %v5644_v24  ;;  %v6472_v50 = vpop.f32.mrf.mxu2 }
 0x73c   :  { %v13148_v9 = vadd.f32 %v6472_v50, %v6284_v43  ;;  %v6529_v54 = vpop.permute.xlu1 %6528  ;;  %8478 = vset.pattern.permute.xlu2 %v14395_v48  ;;  %8156 = vmatmul.msk.f32.gmra.mxu2 %vm51_vm5, %v7215_v33  ;;  %v14483_v33 = vld [vmem:[#allocation60_spill] sm:$0xff]  ;;  %v14484_v50 = vld [vmem:[#allocation41_spill] sm:$0xff] }
 0x73d   :  { %v6573_v52 = vmul.f32 %v6529_v54, %v14474_v10  ;;  %7198 = vperm.xlu2 %8478, %v14469_v62   ;;  %v6957_v28 = vpop.permute.xlu2 %6956  ;;  %v14486_v54 = vld [vmem:[#allocation68_spill] sm:$0xff] }
 0x73e   :  { %8479 = vset.pattern.permute.xlu1 %v14388_v19  ;;  %8115 = vmatmul.msk.f32.gmra.mxu0 %vm51_vm5, %v6786_v36  ;;  %v6261_v55 = vpop.f32.mrf.mxu1 }
 0x73f   :  { %6560 = vperm.xlu1 %8479, %v14477_v44   ;;  %v6047_v57 = vpop.f32.mrf.mxu0  ;;  %8096 = vmatmul.msk.f32.gmra.mxu3 %vm51_vm5, %v6573_v52 }
 0x740   :  { %v6071_v25 = vadd.f32 %v6047_v57, %v5857_v13  ;;  %v3720_v13 = vadd.f32 %v14481_v16, %v3506_v26  ;;  %v14487_v57 = vld [vmem:[#allocation51_spill] sm:$0xff] }
 0x742   :  { %v6285_v5 = vadd.f32 %v6261_v55, %v6071_v25  ;;  %v3934_v45 = vadd.f32 %v14482_v27, %v3720_v13  ;;  %v6747_v25 = vpop.permute.xlu0 %6746  ;;  %v14488_v55 = vld [vmem:[#allocation125_spill] sm:$0xff]  ;;  %v14493_v27 = vld [vmem:[#allocation86_spill] sm:$0xff] }
 0x743   :  { %v5839_v41 = vpop.f32.mrf.mxu3  ;;  %v6475_v35 = vpop.f32.mrf.mxu2  ;;  %v6788_v12 = vmul.f32 %v6747_v25, %v14480_v38 }
 0x744   :  { %v5859_v22 = vadd.f32 %v5839_v41, %v5645_v53  ;;  %v13163_v43 = vadd.f32 %v6475_v35, %v6285_v5  ;;  %v4148_v58 = vadd.f32 %v14483_v33, %v3934_v45  ;;  %v14490_v53 = vld [vmem:[#allocation83_spill] sm:$0xff]  ;;  %v14491_v41 = vld [vmem:[#allocation6_spill] sm:$0xff] }
 0x745   :  { %v6953_v56 = vpop.permute.xlu1 %6952  ;;  %8480 = vset.pattern.permute.xlu2 %v14392_v34 }
 0x746   :  { %v7000_v40 = vmul.f32 %v6953_v56, %v13894_v0  ;;  %6770 = vperm.xlu2 %8480, %v14469_v62   ;;  %v6537_v24 = vpop.permute.xlu2 %6536  ;;  %v7001_v0 = vmul.f32 %v6957_v28, %v14474_v10  ;;  %v4362_v52 = vadd.f32 %v14486_v54, %v4148_v58 }
 0x747   :  { %8482 = vset.pattern.permute.xlu1 %v14395_v48  ;;  %v6050_v32 = vpop.f32.mrf.mxu0  ;;  %8097 = vmatmul.msk.f32.gmra.mxu3 %vm51_vm5, %v6574_v4  ;;  %v6575_v17 = vmul.f32 %v6537_v24, %v14484_v50  ;;  %v14492_v24 = vld [vmem:[#allocation104_spill] sm:$0xff] }
 0x748   :  { %v6072_v42 = vadd.f32 %v6050_v32, %v5858_v31  ;;  %7202 = vperm.xlu1 %8482, %v14477_v44   ;;  %8135 = vmatmul.msk.f32.gmra.mxu1 %vm51_vm5, %v7000_v40  ;;  %v14485_v31 = vld [vmem:[#allocation5_spill] sm:$0xff]  ;;  %v4576_v18 = vadd.f32 %v14487_v57, %v4362_v52  ;;  %v14495_v52 = vmov 0  }
 0x74a   :  { %v4790_v47 = vadd.f32 %v14488_v55, %v4576_v18  ;;  %v14499_v18 = vld [vmem:[#allocation101_spill] sm:$0xff]  ;;  %v14500_v55 = vld [vmem:[#allocation107_spill] sm:$0xff] }
 0x74c   :  { %v6478_v60 = vpop.f32.mrf.mxu2  ;;  %v5004_v35 = vadd.f32 %v14491_v41, %v4790_v47 }
 0x74e   :  { %v6743_v62 = vpop.permute.xlu1 %6742  ;;  %8483 = vset.pattern.permute.xlu2 %v14388_v19  ;;  %v5218_v13 = vadd.f32 %v12770_v20, %v5004_v35 }
 0x74f   :  { %v6787_v48 = vmul.f32 %v6743_v62, %v14474_v10  ;;  %v6053_v39 = vpop.f32.mrf.mxu0  ;;  %8098 = vmatmul.msk.f32.gmra.mxu3 %vm51_vm5, %v6575_v17  ;;  %6564 = vperm.xlu2 %8483, %v14485_v31   ;;  %v7179_v36 = vpop.permute.xlu2 %7178  ;;  %v14494_v17 = vld [vmem:[#allocation90_spill] sm:$0xff] }
 0x750   :  { %v6073_v7 = vadd.f32 %v6053_v39, %v5859_v22  ;;  %8484 = vset.pattern.permute.xlu1 %v14392_v34  ;;  %8136 = vmatmul.msk.f32.gmra.mxu1 %vm51_vm5, %v7001_v0  ;;  %v6264_v28 = vpop.f32.mrf.mxu1  ;;  %v14489_v34 = vld [vmem:[#allocation84_spill] sm:$0xff]  ;;  %v7217_v20 = vmul.f32 %v7179_v36, %v14484_v50 }
 0x751   :  { %6774 = vperm.xlu1 %8484, %v14477_v44   ;;  %v6286_v19 = vadd.f32 %v6264_v28, %v6072_v42  ;;  %8116 = vmatmul.msk.f32.gmra.mxu0 %vm51_vm5, %v6787_v48  ;;  %v4347_v5 = vadd.f32 %v14490_v53, %v14489_v34  ;;  %v5432_v42 = vadd.f32 %v12786_v59, %v5218_v13  ;;  %v14498_v36 = vld [vmem:[#allocation8_spill] sm:$0xff] }
 0x752   :  { %v14502_v34 = vld [vmem:[#allocation128_spill] sm:$0xff] }
 0x753   :  { %v13188_v10 = vadd.f32 %v6478_v60, %v6286_v19  ;;  %v4561_v32 = vadd.f32 %v14492_v24, %v4347_v5  ;;  %v5646_v45 = vadd.f32 %v12912_v23, %v5432_v42  ;;  %v14496_v23 = vld [vmem:[#allocation93_spill] sm:$0xff]  ;;  %v14505_v13 = vld [vmem:[#allocation44_spill] sm:$0xff] }
 0x754   :  { %v6481_v40 = vpop.f32.mrf.mxu2  ;;  %v14497_v60 = vld [vmem:[#allocation77_spill] sm:$0xff] }
 0x757   :  { %v7175_v26 = vpop.permute.xlu1 %7174  ;;  %8485 = vset.pattern.permute.xlu2 %v14264_v46  ;;  %v6056_v39 = vpop.f32.mrf.mxu0 }
 0x758   :  { %v7216_v22 = vmul.f32 %v7175_v26, %v14480_v38  ;;  %6988 = vperm.xlu2 %8485, %v14477_v44   ;;  %v6751_v4 = vpop.permute.xlu2 %6750  ;;  %v6267_v56 = vpop.f32.mrf.mxu1  ;;  %v4775_v44 = vadd.f32 %v14493_v27, %v4561_v32  ;;  %v14506_v32 = vld [vmem:[#allocation46_spill] sm:$0xff] }
 0x759   :  { %6778 = vperm.xlu1 %8484, %v14485_v31   ;;  %8117 = vmatmul.msk.f32.gmra.mxu0 %vm51_vm5, %v6788_v12  ;;  %v6287_v16 = vadd.f32 %v6267_v56, %v6073_v7  ;;  %v6789_v33 = vmul.f32 %v6751_v4, %v14484_v50  ;;  %v4348_v7 = vadd.f32 %v14497_v60, %v14496_v23  ;;  %v14501_v12 = vld [vmem:[#allocation7_spill] sm:$0xff]  ;;  %v14514_v60 = vld [vmem:[#allocation61_spill] sm:$0xff] }
 0x75a   :  { %8157 = vmatmul.msk.f32.gmra.mxu2 %vm51_vm5, %v7216_v22  ;;  %v4989_v0 = vadd.f32 %v14494_v17, %v4775_v44  ;;  %v14503_v4 = vld [vmem:[#allocation27_spill] sm:$0xff]  ;;  %v14507_v44 = vld [vmem:[#allocation18_spill] sm:$0xff] }
 0x75b   :  { %v13203_v46 = vadd.f32 %v6481_v40, %v6287_v16  ;;  %v4562_v25 = vadd.f32 %v14499_v18, %v4348_v7  ;;  %v14504_v56 = vld [vmem:[#allocation95_spill] sm:$0xff] }
 0x75c   :  { %v5203_v57 = vadd.f32 %v14498_v36, %v4989_v0  ;;  %v4349_v16 = vadd.f32 %v14504_v56, %v14503_v4  ;;  %v14510_v0 = vld [vmem:[#allocation110_spill] sm:$0xff]  ;;  %v14515_v7 = vld [vmem:[#allocation15_spill] sm:$0xff] }
 0x75d   :  { %v4776_v26 = vadd.f32 %v14501_v12, %v4562_v25  ;;  %v14517_v18 = vld [vmem:[#allocation143_spill] sm:$0xff]  ;;  %v14521_v56 = vld [vmem:[#allocation10_spill] sm:$0xff] }
 0x75e   :  { %v5417_v47 = vadd.f32 %v14500_v55, %v5203_v57  ;;  %v14516_v57 = vld [vmem:[#allocation13_spill] sm:$0xff] }
 0x75f   :  { %v5842_v58 = vpop.f32.mrf.mxu3  ;;  %v4990_v40 = vadd.f32 %v14505_v13, %v4776_v26 }
 0x760   :  { %v6961_v62 = vpop.permute.xlu1 %6960  ;;  %v5860_v48 = vadd.f32 %v5842_v58, %v5646_v45  ;;  %6992 = vperm.xlu2 %8485, %v14485_v31   ;;  %v6270_v19 = vpop.f32.mrf.mxu1  ;;  %v5631_v53 = vadd.f32 %v14502_v34, %v5417_v47 }
 0x761   :  { %v7002_v54 = vmul.f32 %v6961_v62, %v14480_v38  ;;  %8118 = vmatmul.msk.f32.gmra.mxu0 %vm51_vm5, %v6789_v33  ;;  %v6545_v59 = vpop.permute.xlu2 %6544  ;;  %8487 = vset.pattern.permute.xlu1 %v14495_v52  ;;  %v6965_v38 = vpop.permute.xlu0 %6964  ;;  %v5204_v45 = vadd.f32 %v14507_v44, %v4990_v40  ;;  %v14508_v33 = vld [vmem:[#allocation144_spill] sm:$0xff]  ;;  %v14511_v62 = vld [vmem:[#allocation146_spill] sm:$0xff]  ;;  %v14523_v40 = vld [vmem:[#allocation149_spill] sm:$0xff] }
 0x762   :  { %v6074_v28 = vadd.f32 %v6056_v39, %v5860_v48  ;;  %8158 = vmatmul.msk.f32.gmra.mxu2 %vm51_vm5, %v7217_v20  ;;  %v7003_v41 = vmul.f32 %v6965_v38, %v14484_v50  ;;  %v5845_v24 = vadd.f32 %v12767_v3, %v5631_v53  ;;  %v14509_v50 = vld [vmem:[#allocation17_spill] sm:$0xff]  ;;  %v14512_v39 = vld [vmem:[#allocation26_spill] sm:$0xff] }
 0x763   :  { %8137 = vmatmul.msk.f32.gmra.mxu1 %vm51_vm5, %v7002_v54  ;;  %v4563_v17 = vadd.f32 %v14509_v50, %v4349_v16  ;;  %v5418_v20 = vadd.f32 %v14510_v0, %v5204_v45  ;;  %v14513_v3 = vld [vmem:[#allocation130_spill] sm:$0xff]  ;;  %v6867_v26 = vpop.f32.mrf.mxu0  ;;  %v14519_v53 = vld [vmem:[#allocation109_spill] sm:$0xff]  ;;  %v14525_v45 = vld [vmem:[#allocation131_spill] sm:$0xff] }
 0x764   :  { %v6288_v31 = vadd.f32 %v6270_v19, %v6074_v28  ;;  %v6059_v58 = vadd.f32 %v14508_v33, %v5845_v24  ;;  %v4350_v28 = vadd.f32 %v14515_v7, %v14514_v60  ;;  %v14518_v38 = vld [vmem:[#allocation50_spill] sm:$0xff] }
 0x765   :  { %v4777_v54 = vadd.f32 %v14512_v39, %v4563_v17  ;;  %v5632_v52 = vadd.f32 %v14513_v3, %v5418_v20  ;;  %v6577_v55 = vmul.f32 %v6545_v59, %v14518_v38  ;;  %v14522_v59 = vld [vmem:[#allocation25_spill] sm:$0xff]  ;;  %v14526_v17 = vld [vmem:[#allocation108_spill] sm:$0xff] }
 0x766   :  { %v6273_v48 = vadd.f32 %v14511_v62, %v6059_v58  ;;  %v4564_v16 = vadd.f32 %v14521_v56, %v4350_v28  ;;  %v14527_v20 = vld [vmem:[#allocation145_spill] sm:$0xff]  ;;  %v14528_v3 = vld [vmem:[#allocation112_spill] sm:$0xff] }
 0x767   :  { %v5846_v25 = vadd.f32 %v14517_v18, %v5632_v52 }
 0x768   :  { %v6484_v5 = vpop.f32.mrf.mxu2  ;;  %v6487_v23 = vadd.f32 %v12938_v6, %v6273_v48 }
 0x769   :  { %v6541_v35 = vpop.permute.xlu1 %6540  ;;  %v13226_v22 = vadd.f32 %v6484_v5, %v6288_v31  ;;  %v4991_v31 = vadd.f32 %v14516_v57, %v4777_v54  ;;  %v7187_v44 = vpop.permute.xlu0 %7186 }
 0x76a   :  { %v6576_v42 = vmul.f32 %v6541_v35, %v14506_v32  ;;  %v6969_v27 = vpop.permute.xlu2 %6968  ;;  %v7219_v39 = vmul.f32 %v7187_v44, %v14518_v38 }
 0x76b   :  { %8138 = vmatmul.msk.f32.gmra.mxu1 %vm51_vm5, %v7003_v41  ;;  %v7004_v19 = vmul.f32 %v6969_v27, %v14506_v32  ;;  %v5205_v5 = vadd.f32 %v14519_v53, %v4991_v31  ;;  %v14520_v41 = vld [vmem:[#allocation147_spill] sm:$0xff] }
 0x76c   :  { %8099 = vmatmul.msk.f32.gmra.mxu3 %vm51_vm5, %v6576_v42  ;;  %v6060_v35 = vadd.f32 %v14520_v41, %v5846_v25  ;;  %v14524_v42 = vld [vmem:[#allocation85_spill] sm:$0xff]  ;;  %v14531_v31 = vld [vmem:[#allocation151_spill] sm:$0xff]  ;;  %v14534_v41 = vld [vmem:[#allocation54_spill] sm:$0xff] }
 0x76d   :  { %v5419_v13 = vadd.f32 %v14522_v59, %v5205_v5  ;;  %v4778_v27 = vadd.f32 %v14524_v42, %v4564_v16  ;;  %v14536_v42 = vld [vmem:[#allocation155_spill] sm:$0xff] }
 0x76e   :  { %v6274_v24 = vadd.f32 %v14523_v40, %v6060_v35 }
 0x76f   :  { %v5633_v33 = vadd.f32 %v14525_v45, %v5419_v13  ;;  %v4992_v0 = vadd.f32 %v14526_v17, %v4778_v27 }
 0x770   :  { %v6488_v58 = vadd.f32 %v12960_v37, %v6274_v24  ;;  %v7295_v25 = vpop.f32.mrf.mxu2 }
 0x771   :  { %v6653_v36 = vpop.f32.mrf.mxu3  ;;  %v5847_v62 = vadd.f32 %v14527_v20, %v5633_v33  ;;  %v5206_v52 = vadd.f32 %v14528_v3, %v4992_v0 }
 0x772   :  { %v7183_v47 = vpop.permute.xlu1 %7182  ;;  %v6701_v12 = vadd.f32 %v6653_v36, %v6487_v23  ;;  %v14529_v23 = vld [vmem:[#allocation150_spill] sm:$0xff] }
 0x773   :  { %v7218_v34 = vmul.f32 %v7183_v47, %v14506_v32  ;;  %8139 = vmatmul.msk.f32.gmra.mxu1 %vm51_vm5, %v7004_v19  ;;  %v6759_v6 = vpop.permute.xlu2 %6758  ;;  %v6061_v60 = vadd.f32 %v14529_v23, %v5847_v62  ;;  %v14530_v36 = vld [vmem:[#allocation114_spill] sm:$0xff]  ;;  %v14532_v47 = vld [vmem:[#allocation132_spill] sm:$0xff]  ;;  %v14537_v62 = vld [vmem:[#allocation59_spill] sm:$0xff] }
 0x774   :  { %8100 = vmatmul.msk.f32.gmra.mxu3 %vm51_vm5, %v6577_v55  ;;  %v6915_v4 = vadd.f32 %v6867_v26, %v6701_v12  ;;  %v5420_v57 = vadd.f32 %v14530_v36, %v5206_v52  ;;  %v6791_v16 = vmul.f32 %v6759_v6, %v14518_v38  ;;  %v14542_v36 = vld [vmem:[#allocation74_spill] sm:$0xff] }
 0x775   :  { %8159 = vmatmul.msk.f32.gmra.mxu2 %vm51_vm5, %v7218_v34  ;;  %v6275_v18 = vadd.f32 %v14531_v31, %v6061_v60  ;;  %v14538_v60 = vld [vmem:[#allocation11_spill] sm:$0xff]  ;;  %v14543_v31 = vld [vmem:[#allocation37_spill] sm:$0xff] }
 0x776   :  { %v5634_v12 = vadd.f32 %v14532_v47, %v5420_v57 }
 0x777   :  { %v6489_v26 = vadd.f32 %v12981_v15, %v6275_v18 }
 0x779   :  { %v6656_v50 = vpop.f32.mrf.mxu3 }
 0x77a   :  { %v6702_v48 = vadd.f32 %v6656_v50, %v6488_v58  ;;  %v7298_v58 = vpop.f32.mrf.mxu2  ;;  %v6553_v50 = vpop.permute.xlu0 %6552 }
 0x77b   :  { %v6755_v54 = vpop.permute.xlu1 %6754 }
 0x77c   :  { %v6790_v7 = vmul.f32 %v6755_v54, %v14506_v32  ;;  %v7191_v28 = vpop.permute.xlu2 %7190  ;;  %v7081_v19 = vpop.f32.mrf.mxu1  ;;  %v14533_v32 = vld [vmem:[#allocation148_spill] sm:$0xff] }
 0x77d   :  { %8160 = vmatmul.msk.f32.gmra.mxu2 %vm51_vm5, %v7219_v39  ;;  %v7129_v37 = vadd.f32 %v7081_v19, %v6915_v4  ;;  %v5848_v53 = vadd.f32 %v14533_v32, %v5634_v12  ;;  %v7220_v35 = vmul.f32 %v7191_v28, %v14534_v41  ;;  %v14535_v4 = vld [vmem:[#allocation153_spill] sm:$0xff]  ;;  %v6579_v39 = vmul.f32 %v6553_v50, %v14537_v62 }
 0x77e   :  { %8119 = vmatmul.msk.f32.gmra.mxu0 %vm51_vm5, %v6790_v7  ;;  %v14540_v28 = vld [vmem:[#allocation49_spill] sm:$0xff] }
 0x77f   :  { %v13271_v55 = vadd.f32 %v7295_v25, %v7129_v37  ;;  %v6062_v56 = vadd.f32 %v14535_v4, %v5848_v53  ;;  %v14541_v37 = vld [vmem:[#allocation58_spill] sm:$0xff]  ;;  %v14544_v25 = vld [vmem:[#allocation63_spill] sm:$0xff] }
 0x780   :  { %v4352_v57 = vadd.f32 %v14542_v36, %v14541_v37  ;;  %v14545_v53 = vld [vmem:[#allocation111_spill] sm:$0xff]  ;;  %v14555_v37 = vld [vmem:[#allocation156_spill] sm:$0xff] }
 0x781   :  { %v6659_v34 = vpop.f32.mrf.mxu3  ;;  %v6276_v27 = vadd.f32 %v14536_v42, %v6062_v56 }
 0x782   :  { %v6703_v5 = vadd.f32 %v6659_v34, %v6489_v26 }
 0x783   :  { %v6490_v45 = vadd.f32 %v12996_v21, %v6276_v27  ;;  %v14539_v21 = vld [vmem:[#allocation56_spill] sm:$0xff] }
 0x784   :  { %v6549_v59 = vpop.permute.xlu1 %6548  ;;  %v7084_v44 = vpop.f32.mrf.mxu1  ;;  %v4351_v7 = vadd.f32 %v14539_v21, %v14538_v60  ;;  %v14548_v27 = vld [vmem:[#allocation36_spill] sm:$0xff] }
 0x785   :  { %v6578_v13 = vmul.f32 %v6549_v59, %v14534_v41  ;;  %8161 = vmatmul.msk.f32.gmra.mxu2 %vm51_vm5, %v7220_v35  ;;  %v6870_v40 = vpop.f32.mrf.mxu0  ;;  %v6977_v24 = vpop.permute.xlu2 %6976  ;;  %v14546_v59 = vld [vmem:[#allocation81_spill] sm:$0xff] }
 0x786   :  { %v6916_v15 = vadd.f32 %v6870_v40, %v6702_v48  ;;  %8120 = vmatmul.msk.f32.gmra.mxu0 %vm51_vm5, %v6791_v16  ;;  %v4565_v19 = vadd.f32 %v14540_v28, %v4351_v7  ;;  %v14547_v40 = vld [vmem:[#allocation116_spill] sm:$0xff]  ;;  %v14554_v28 = vld [vmem:[#allocation122_spill] sm:$0xff] }
 0x787   :  { %8101 = vmatmul.msk.f32.gmra.mxu3 %vm51_vm5, %v6578_v13  ;;  %v4566_v13 = vadd.f32 %v14546_v59, %v4352_v57 }
 0x788   :  { %v7130_v33 = vadd.f32 %v7084_v44, %v6916_v15  ;;  %v4779_v18 = vadd.f32 %v14543_v31, %v4565_v19  ;;  %v14549_v44 = vld [vmem:[#allocation118_spill] sm:$0xff] }
 0x789   :  { %v6662_v6 = vpop.f32.mrf.mxu3  ;;  %v4780_v15 = vadd.f32 %v14548_v27, %v4566_v13 }
 0x78a   :  { %v13285_v17 = vadd.f32 %v7298_v58, %v7130_v33  ;;  %v6704_v0 = vadd.f32 %v6662_v6, %v6490_v45  ;;  %v14550_v33 = vld [vmem:[#allocation115_spill] sm:$0xff]  ;;  %v14551_v6 = vld [vmem:[#allocation133_spill] sm:$0xff] }
 0x78b   :  { %v4994_v58 = vadd.f32 %v14550_v33, %v4780_v15  ;;  %v14560_v15 = vld [vmem:[#allocation43_spill] sm:$0xff] }
 0x78c   :  { %v7368_v20 = vpack.c.bf16 %v13285_v17, %v13271_v55  ;;  %v8494_v55 = vld [vmem:[%s13463_s0] sm:$0xff]  ;;  %v7439_v17 = vld [vmem:[%s13473_s11 + $0x18] sm:$0xff] }
 0x78d   :  { %v6973_v48 = vpop.permute.xlu1 %6972  ;;  %v6873_v54 = vpop.f32.mrf.mxu0 }
 0x78e   :  { %v7005_v3 = vmul.f32 %v6973_v48, %v14518_v38  ;;  %v6917_v52 = vadd.f32 %v6873_v54, %v6703_v5  ;;  %v6557_v23 = vpop.permute.xlu2 %6556  ;;  %v7006_v38 = vmul.f32 %v6977_v24, %v14534_v41  ;;  %v4993_v5 = vadd.f32 %v14545_v53, %v4779_v18  ;;  %v14553_v54 = vld [vmem:[#allocation152_spill] sm:$0xff]  ;;  %v14556_v18 = vld [vmem:[#allocation135_spill] sm:$0xff] }
 0x78f   :  { %8102 = vmatmul.msk.f32.gmra.mxu3 %vm51_vm5, %v6579_v39  ;;  %v6580_v47 = vmul.f32 %v6557_v23, %v14544_v25  ;;  %v14552_v39 = vld [vmem:[#allocation120_spill] sm:$0xff] }
 0x790   :  { %8140 = vmatmul.msk.f32.gmra.mxu1 %vm51_vm5, %v7005_v3  ;;  %v5207_v42 = vadd.f32 %v14547_v40, %v4993_v5  ;;  %v5208_v48 = vadd.f32 %v14552_v39, %v4994_v58 }
 0x792   :  { %v5421_v45 = vadd.f32 %v14549_v44, %v5207_v42  ;;  %v5422_v19 = vadd.f32 %v14554_v28, %v5208_v48  ;;  %v14561_v44 = vld [vmem:[#allocation80_spill] sm:$0xff]  ;;  %v14565_v48 = vld [vmem:[#allocation55_spill] sm:$0xff] }
 0x794   :  { %v7301_v26 = vpop.f32.mrf.mxu2  ;;  %v5635_v50 = vadd.f32 %v14551_v6, %v5421_v45  ;;  %v4353_v45 = vadd.f32 %v14561_v44, %v14560_v15  ;;  %v14575_v15 = vld [vmem:[#allocation127_spill] sm:$0xff] }
 0x795   :  { %v6876_v12 = vpop.f32.mrf.mxu0 }
 0x796   :  { %v6763_v34 = vpop.permute.xlu1 %6762  ;;  %v6918_v32 = vadd.f32 %v6876_v12, %v6704_v0  ;;  %v5849_v3 = vadd.f32 %v14553_v54, %v5635_v50  ;;  %v14557_v12 = vld [vmem:[#allocation22_spill] sm:$0xff] }
 0x797   :  { %v6792_v35 = vmul.f32 %v6763_v34, %v14534_v41  ;;  %8103 = vmatmul.msk.f32.gmra.mxu3 %vm51_vm5, %v6580_v47  ;;  %v7199_v4 = vpop.permute.xlu2 %7198  ;;  %v7087_v56 = vpop.f32.mrf.mxu1  ;;  %v5636_v47 = vadd.f32 %v14556_v18, %v5422_v19  ;;  %v14558_v34 = vld [vmem:[#allocation154_spill] sm:$0xff]  ;;  %v14568_v19 = vld [vmem:[#allocation20_spill] sm:$0xff] }
 0x798   :  { %v7131_v16 = vadd.f32 %v7087_v56, %v6917_v52  ;;  %8141 = vmatmul.msk.f32.gmra.mxu1 %vm51_vm5, %v7006_v38  ;;  %v6767_v41 = vpop.permute.xlu0 %6766  ;;  %v6063_v36 = vadd.f32 %v14555_v37, %v5849_v3  ;;  %v7222_v13 = vmul.f32 %v7199_v4, %v14544_v25  ;;  %v14562_v4 = vld [vmem:[#allocation72_spill] sm:$0xff] }
 0x799   :  { %8121 = vmatmul.msk.f32.gmra.mxu0 %vm51_vm5, %v6792_v35  ;;  %v6793_v0 = vmul.f32 %v6767_v41, %v14537_v62  ;;  %v14559_v35 = vld [vmem:[#allocation39_spill] sm:$0xff]  ;;  %v4567_v6 = vadd.f32 %v14562_v4, %v4353_v45  ;;  %v14576_v45 = vld [vmem:[#allocation157_spill] sm:$0xff] }
 0x79a   :  { %v13308_v24 = vadd.f32 %v7301_v26, %v7131_v16  ;;  %v6277_v38 = vadd.f32 %v14557_v12, %v6063_v36  ;;  %v14569_v36 = vld [vmem:[#allocation124_spill] sm:$0xff]  ;;  %v14577_v4 = vld [vmem:[#allocation129_spill] sm:$0xff] }
 0x79b   :  { %v4781_v54 = vadd.f32 %v14565_v48, %v4567_v6  ;;  %v14570_v12 = vld [vmem:[#allocation88_spill] sm:$0xff] }
 0x79c   :  { %v7304_v57 = vpop.f32.mrf.mxu2  ;;  %v6491_v53 = vadd.f32 %v13013_v61, %v6277_v38  ;;  %v14571_v38 = vld [vmem:[#allocation126_spill] sm:$0xff] }
 0x79f   :  { %v7195_v52 = vpop.permute.xlu1 %7194  ;;  %v7090_v23 = vpop.f32.mrf.mxu1 }
 0x7a0   :  { %v7221_v60 = vmul.f32 %v7195_v52, %v14537_v62  ;;  %v7132_v21 = vadd.f32 %v7090_v23, %v6918_v32  ;;  %v6771_v7 = vpop.permute.xlu2 %6770  ;;  %v5850_v32 = vadd.f32 %v14558_v34, %v5636_v47  ;;  %v6985_v33 = vpop.permute.xlu0 %6984  ;;  %v14566_v23 = vld [vmem:[#allocation65_spill] sm:$0xff] }
 0x7a1   :  { %8122 = vmatmul.msk.f32.gmra.mxu0 %vm51_vm5, %v6793_v0  ;;  %v6794_v16 = vmul.f32 %v6771_v7, %v14544_v25  ;;  %v14564_v0 = vld [vmem:[#allocation31_spill] sm:$0xff]  ;;  %v7008_v3 = vmul.f32 %v6985_v33, %v14544_v25 }
 0x7a2   :  { %v13321_v31 = vadd.f32 %v7304_v57, %v7132_v21  ;;  %8162 = vmatmul.msk.f32.gmra.mxu2 %vm51_vm5, %v7221_v60  ;;  %v6064_v56 = vadd.f32 %v14559_v35, %v5850_v32 }
 0x7a4   :  { %v7369_v26 = vpack.c.bf16 %v13321_v31, %v13308_v24  ;;  %v6278_v61 = vadd.f32 %v12958_v63, %v6064_v56  ;;  %v14567_v63 = vld [vmem:[#allocation119_spill] sm:$0xff]  ;;  %v14573_v56 = vld [vmem:[#allocation137_spill] sm:$0xff] }
 0x7a5   :  { %v4995_v21 = vadd.f32 %v14567_v63, %v4781_v54  ;;  %v7403_v24 = vld [vmem:[%s13471_s9 + $0x8] sm:$0xff]  ;;  %v7402_v31 = vld [vmem:[%s13471_s9] sm:$0xff] }
 0x7a6   :  { %v6665_v5 = vpop.f32.mrf.mxu3  ;;  %v6492_v41 = vadd.f32 %v13030_v2, %v6278_v61 }
 0x7a7   :  { %v6705_v59 = vadd.f32 %v6665_v5, %v6491_v53  ;;  %v5209_v57 = vadd.f32 %v14569_v36, %v4995_v21  ;;  %v7093_v18 = vpop.f32.mrf.mxu1  ;;  %v14572_v5 = vld [vmem:[#allocation123_spill] sm:$0xff] }
 0x7a8   :  { %v6981_v40 = vpop.permute.xlu1 %6980 }
 0x7a9   :  { %v7007_v42 = vmul.f32 %v6981_v40, %v14537_v62  ;;  %8123 = vmatmul.msk.f32.gmra.mxu0 %vm51_vm5, %v6794_v16  ;;  %v6565_v27 = vpop.permute.xlu2 %6564  ;;  %v14563_v62 = vld [vmem:[#allocation40_spill] sm:$0xff]  ;;  %v5423_v34 = vadd.f32 %v14571_v38, %v5209_v57 }
 0x7aa   :  { %8163 = vmatmul.msk.f32.gmra.mxu2 %vm51_vm5, %v7222_v13  ;;  %v4354_v39 = vadd.f32 %v14564_v0, %v14563_v62  ;;  %v14574_v13 = vld [vmem:[#allocation67_spill] sm:$0xff]  ;;  %v14578_v62 = vld [vmem:[#allocation66_spill] sm:$0xff] }
 0x7ab   :  { %8142 = vmatmul.msk.f32.gmra.mxu1 %vm51_vm5, %v7007_v42  ;;  %v5637_v16 = vadd.f32 %v14573_v56, %v5423_v34  ;;  %v6582_v40 = vmul.f32 %v6565_v27, %v14574_v13 }
 0x7ac   :  { %v4568_v37 = vadd.f32 %v14568_v19, %v4354_v39  ;;  %v14579_v39 = vld [vmem:[#allocation140_spill] sm:$0xff] }
 0x7ad   :  { %v5851_v61 = vadd.f32 %v14576_v45, %v5637_v16 }
 0x7ae   :  { %v6668_v58 = vpop.f32.mrf.mxu3  ;;  %v4782_v25 = vadd.f32 %v14570_v12, %v4568_v37 }
 0x7af   :  { %v6706_v50 = vadd.f32 %v6668_v58, %v6492_v41  ;;  %v7307_v32 = vpop.f32.mrf.mxu2  ;;  %v6065_v0 = vadd.f32 %v14578_v62, %v5851_v61 }
 0x7b0   :  { %v4996_v35 = vadd.f32 %v14572_v5, %v4782_v25 }
 0x7b1   :  { %v6561_v52 = vpop.permute.xlu1 %6560  ;;  %v6279_v54 = vadd.f32 %v12979_v30, %v6065_v0 }
 0x7b2   :  { %v6581_v60 = vmul.f32 %v6561_v52, %v14566_v23  ;;  %v6989_v28 = vpop.permute.xlu2 %6988  ;;  %v5210_v44 = vadd.f32 %v14575_v15, %v4996_v35  ;;  %v14580_v52 = vld [vmem:[#allocation57_spill] sm:$0xff] }
 0x7b3   :  { %v6879_v7 = vpop.f32.mrf.mxu0  ;;  %8143 = vmatmul.msk.f32.gmra.mxu1 %vm51_vm5, %v7008_v3  ;;  %v7207_v3 = vpop.permute.xlu0 %7206  ;;  %v6493_v63 = vadd.f32 %v13048_v29, %v6279_v54 }
 0x7b4   :  { %v6919_v2 = vadd.f32 %v6879_v7, %v6705_v59  ;;  %8104 = vmatmul.msk.f32.gmra.mxu3 %vm51_vm5, %v6581_v60  ;;  %v7009_v59 = vmul.f32 %v6989_v28, %v14566_v23  ;;  %v5424_v6 = vadd.f32 %v14577_v4, %v5210_v44  ;;  %v7224_v7 = vmul.f32 %v7207_v3, %v14574_v13 }
 0x7b6   :  { %v7133_v47 = vadd.f32 %v7093_v18, %v6919_v2  ;;  %v5638_v48 = vadd.f32 %v14579_v39, %v5424_v6 }
 0x7b7   :  { %v7310_v57 = vpop.f32.mrf.mxu2 }
 0x7b8   :  { %v13354_v53 = vadd.f32 %v7307_v32, %v7133_v47  ;;  %v5852_v60 = vadd.f32 %v14580_v52, %v5638_v48 }
 0x7ba   :  { %v7203_v42 = vpop.permute.xlu1 %7202  ;;  %v6993_v27 = vpop.permute.xlu2 %6992  ;;  %v6066_v2 = vadd.f32 %v12984_v49, %v5852_v60 }
 0x7bb   :  { %v7223_v41 = vmul.f32 %v7203_v42, %v14566_v23  ;;  %v6882_v33 = vpop.f32.mrf.mxu0  ;;  %8144 = vmatmul.msk.f32.gmra.mxu1 %vm51_vm5, %v7009_v59 }
 0x7bc   :  { %v6920_v58 = vadd.f32 %v6882_v33, %v6706_v50  ;;  %8105 = vmatmul.msk.f32.gmra.mxu3 %vm51_vm5, %v6582_v40  ;;  %v7010_v50 = vmul.f32 %v6993_v27, %v14574_v13  ;;  %v6280_v29 = vadd.f32 %v13000_v1, %v6066_v2 }
 0x7bd   :  { %8164 = vmatmul.msk.f32.gmra.mxu2 %vm51_vm5, %v7223_v41 }
 0x7be   :  { %v6494_v47 = vadd.f32 %v13067_v8, %v6280_v29 }
 0x7bf   :  { %v7313_v1 = vpop.f32.mrf.mxu2 }
 0x7c2   :  { %v6671_v21 = vpop.f32.mrf.mxu3 }
 0x7c3   :  { %v6707_v28 = vadd.f32 %v6671_v21, %v6493_v63  ;;  %v6775_v19 = vpop.permute.xlu1 %6774  ;;  %8145 = vmatmul.msk.f32.gmra.mxu1 %vm51_vm5, %v7010_v50 }
 0x7c4   :  { %v6795_v37 = vmul.f32 %v6775_v19, %v14566_v23 }
 0x7c5   :  { %v7096_v36 = vpop.f32.mrf.mxu1  ;;  %8165 = vmatmul.msk.f32.gmra.mxu2 %vm51_vm5, %v7224_v7 }
 0x7c6   :  { %v7134_v30 = vadd.f32 %v7096_v36, %v6920_v58  ;;  %8124 = vmatmul.msk.f32.gmra.mxu0 %vm51_vm5, %v6795_v37 }
 0x7c8   :  { %v13380_v18 = vadd.f32 %v7310_v57, %v7134_v30 }
 0x7ca   :  { %v6674_v49 = vpop.f32.mrf.mxu3  ;;  %v7370_v12 = vpack.c.bf16 %v13380_v18, %v13354_v53  ;;  %v7404_v53 = vld [vmem:[%s13471_s9 + $0x10] sm:$0xff]  ;;  %v8528_v18 = vmov 1.0|1.0  }
 0x7cb   :  { %v6708_v25 = vadd.f32 %v6674_v49, %v6494_v47  ;;  %v6779_v38 = vpop.permute.xlu1 %6778 }
 0x7cc   :  { %v6796_v23 = vmul.f32 %v6779_v38, %v14574_v13 }
 0x7cd   :  { %v7099_v5 = vpop.f32.mrf.mxu1 }
 0x7ce   :  { %v6885_v34 = vpop.f32.mrf.mxu0  ;;  %8125 = vmatmul.msk.f32.gmra.mxu0 %vm51_vm5, %v6796_v23 }
 0x7cf   :  { %v6921_v32 = vadd.f32 %v6885_v34, %v6707_v28 }
 0x7d1   :  { %v7135_v35 = vadd.f32 %v7099_v5, %v6921_v32 }
 0x7d2   :  { %v6677_v56 = vpop.f32.mrf.mxu3 }
 0x7d3   :  { %v13387_v16 = vadd.f32 %v7313_v1, %v7135_v35  ;;  %v6709_v8 = vadd.f32 %v6677_v56, %v13091_v14 }
 0x7d6   :  { %v6888_v59 = vpop.f32.mrf.mxu0 }
 0x7d7   :  { %v6922_v40 = vadd.f32 %v6888_v59, %v6708_v25 }
 0x7dd   :  { %v7316_v44 = vpop.f32.mrf.mxu2 }
 0x7de   :  { %v6891_v42 = vpop.f32.mrf.mxu0 }
 0x7df   :  { %v6923_v15 = vadd.f32 %v6891_v42, %v6709_v8 }
 0x7e0   :  { %v7102_v45 = vpop.f32.mrf.mxu1 }
 0x7e1   :  { %v7136_v61 = vadd.f32 %v7102_v45, %v6922_v40 }
 0x7e3   :  { %v13390_v13 = vadd.f32 %v7316_v44, %v7136_v61 }
 0x7e5   :  { %v7371_v41 = vpack.c.bf16 %v13390_v13, %v13387_v16  ;;  %v7319_v4 = vpop.f32.mrf.mxu2  ;;  %v7405_v16 = vld [vmem:[%s13471_s9 + $0x18] sm:$0xff]  ;;  %v18_v13 = vstv %s13474_s12 }
 0x7e6   :  { %19 = vst [vmem:[#allocation3] sm:$0x1] %v18_v13 }
 0x7e8   :  { %v7105_v33 = vpop.f32.mrf.mxu1 }
 0x7e9   :  { %v7137_v58 = vadd.f32 %v7105_v33, %v6923_v15 }
 0x7eb   :  { %v13394_v6 = vadd.f32 %v7319_v4, %v7137_v58 }
 0x7ef   :  { %v6680_v62 = vpop.f32.mrf.mxu3 }
 0x7f0   :  { %v6710_v14 = vadd.f32 %v6680_v62, %v13113_v51  ;;  %v7108_v39 = vpop.f32.mrf.mxu1 }
 0x7f7   :  { %v6683_v60 = vpop.f32.mrf.mxu3 }
 0x7f8   :  { %v7322_v54 = vpop.f32.mrf.mxu2  ;;  %v6711_v2 = vadd.f32 %v6683_v60, %v13130_v11 }
 0x7fb   :  { %v6894_v0 = vpop.f32.mrf.mxu0 }
 0x7fc   :  { %v6924_v27 = vadd.f32 %v6894_v0, %v6710_v14 }
 0x7fe   :  { %v7138_v48 = vadd.f32 %v7108_v39, %v6924_v27 }
 0x800   :  { %v7352_v3 = vadd.f32 %v7322_v54, %v7138_v48  ;;  %v7325_v21 = vpop.f32.mrf.mxu2 }
 0x802   :  { %v7372_v52 = vpack.c.bf16 %v7352_v3, %v13394_v6 }
 0x803   :  { %v6897_v63 = vpop.f32.mrf.mxu0 }
 0x804   :  { %v6925_v28 = vadd.f32 %v6897_v63, %v6711_v2 }
 0x808   :  { %v7328_v57 = vpop.f32.mrf.mxu2 }
 0x80a   :  { %v6686_v7 = vpop.f32.mrf.mxu3 }
 0x80b   :  { %v6712_v19 = vadd.f32 %v6686_v7, %v13148_v9 }
 0x80d   :  { %v7111_v50 = vpop.f32.mrf.mxu1 }
 0x80e   :  { %v7139_v51 = vadd.f32 %v7111_v50, %v6925_v28 }
 0x810   :  { %v7353_v47 = vadd.f32 %v7325_v21, %v7139_v51  ;;  %v8490_v21 = vld [vmem:[%s13469_s2] ss:$0 sm:$0xff] }
 0x811   :  { %v8491_v51 = vld [vmem:[%s13472_s10] ss:$0 sm:$0xff] }
 0x812   :  { %v6689_v38 = vpop.f32.mrf.mxu3 }
 0x813   :  { %v6713_v35 = vadd.f32 %v6689_v38, %v13163_v43 }
 0x815   :  { %v7114_v30 = vpop.f32.mrf.mxu1 }
 0x816   :  { %v6900_v37 = vpop.f32.mrf.mxu0 }
 0x817   :  { %v6926_v36 = vadd.f32 %v6900_v37, %v6712_v19 }
 0x819   :  { %v7140_v29 = vadd.f32 %v7114_v30, %v6926_v36 }
 0x81a   :  { %v6692_v5 = vpop.f32.mrf.mxu3 }
 0x81b   :  { %v7354_v49 = vadd.f32 %v7328_v57, %v7140_v29  ;;  %v6714_v1 = vadd.f32 %v6692_v5, %v13188_v10 }
 0x81d   :  { %v7373_v25 = vpack.c.bf16 %v7354_v49, %v7353_v47  ;;  %v8492_v47 = vld [vmem:[#allocation3] ss:$0 sm:$0xff] }
 0x81e   :  { %v6903_v23 = vpop.f32.mrf.mxu0 }
 0x81f   :  { %v6927_v9 = vadd.f32 %v6903_v23, %v6713_v35 }
 0x825   :  { %v7331_v34 = vpop.f32.mrf.mxu2 }
 0x826   :  { %v6906_v11 = vpop.f32.mrf.mxu0 }
 0x827   :  { %v6928_v56 = vadd.f32 %v6906_v11, %v6714_v1 }
 0x828   :  { %v7117_v32 = vpop.f32.mrf.mxu1 }
 0x829   :  { %v7141_v8 = vadd.f32 %v7117_v32, %v6927_v9 }
 0x82b   :  { %v7355_v15 = vadd.f32 %v7331_v34, %v7141_v8 }
 0x82d   :  { %v7334_v42 = vpop.f32.mrf.mxu2 }
 0x830   :  { %v7120_v59 = vpop.f32.mrf.mxu1 }
 0x831   :  { %v7142_v40 = vadd.f32 %v7120_v59, %v6928_v56 }
 0x833   :  { %v7356_v44 = vadd.f32 %v7334_v42, %v7142_v40 }
 0x835   :  { %v7374_v45 = vpack.c.bf16 %v7356_v44, %v7355_v15 }
 0x837   :  { %v6695_v61 = vpop.f32.mrf.mxu3 }
 0x838   :  { %v7123_v33 = vpop.f32.mrf.mxu1  ;;  %v6715_v6 = vadd.f32 %v6695_v61, %v13203_v46  ;;  %v7395_v46 = vld [vmem:[%s13470_s4] sm:$0xff] }
 0x839   :  { %7398 = vperm.xlu1 %8487, %v7395_v46  }
 0x83f   :  { %v6698_v62 = vpop.f32.mrf.mxu3 }
 0x840   :  { %v7337_v4 = vpop.f32.mrf.mxu2  ;;  %v6716_v14 = vadd.f32 %v6698_v62, %v13226_v22  ;;  %v7126_v39 = vpop.f32.mrf.mxu1  ;;  %v14581_v22 = vlaneseq }
 0x842   :  { %v7361_v50 = vshrl.u32 %v14581_v22, 7 }
 0x843   :  { %v6909_v58 = vpop.f32.mrf.mxu0 }
 0x844   :  { %v6929_v43 = vadd.f32 %v6909_v58, %v6715_v6  ;;  %vm7363_vm2 = vcmp.eq.s32.totalorder %v7361_v50, %v8490_v21 }
 0x845   :  { %vm8167_vm6 = vmpackc.low %vm7363_vm2, %vm7363_vm2 }
 0x846   :  { %v7143_v0 = vadd.f32 %v7123_v33, %v6929_v43 }
 0x848   :  { %v7340_v54 = vpop.f32.mrf.mxu2  ;;  %v7357_v3 = vadd.f32 %v7337_v4, %v7143_v0 }
 0x84b   :  { %v6912_v10 = vpop.f32.mrf.mxu0 }
 0x84c   :  { %v6930_v27 = vadd.f32 %v6912_v10, %v6716_v14 }
 0x84e   :  { %v7144_v48 = vadd.f32 %v7126_v39, %v6930_v27 }
 0x850   :  { %v7358_v60 = vadd.f32 %v7340_v54, %v7144_v48 }
 0x852   :  { %v7375_v63 = vpack.c.bf16 %v7358_v60, %v7357_v3 }
 0x854   :  { %7376 = vmatpush.bf16.msra.mxu3 %v7375_v63 }
 0x858   :  { %7377 = vmatpush.bf16.msra.mxu3 %v7374_v45 }
 0x85c   :  { %7378 = vmatpush.bf16.msra.mxu3 %v7373_v25 }
 0x860   :  { %7379 = vmatpush.bf16.msra.mxu3 %v7372_v52 }
 0x864   :  { %7380 = vmatpush.bf16.msra.mxu3 %v7371_v41  ;;  %v7367_v41 = vld [vmem:[#allocation2] sm:$0xff] }
 0x868   :  { %7381 = vmatpush.bf16.msra.mxu3 %v7370_v12  ;;  %v7436_v12 = vld [vmem:[%s13473_s11] sm:$0xff] }
 0x86c   :  { %7382 = vmatpush.bf16.msra.mxu3 %v7369_v26  ;;  %v7437_v26 = vld [vmem:[%s13473_s11 + $0x8] sm:$0xff] }
 0x870   :  { %7383 = vmatpush.bf16.msra.mxu3 %v7368_v20  ;;  %v7438_v20 = vld [vmem:[%s13473_s11 + $0x10] sm:$0xff] }
 0x873   :  { %8168 = vmatmul.msk.bf16.vlgmr.msra.gmra.mxu3 %vm8167_vm6, %v8528_v18 }
 0x874   :  { %7421 = vmatpush.msrb.mxu3 %v7405_v16 }
 0x876   :  { %7422 = vmatpush.msrb.mxu3 %v7404_v53 }
 0x878   :  { %7423 = vmatpush.msrb.mxu3 %v7403_v24 }
 0x87a   :  { %7424 = vmatpush.msrb.mxu3 %v7402_v31 }
 0x87c   :  { %7459 = vmatpush.msra.mxu3 %v7439_v17 }
 0x87e   :  { %7460 = vmatpush.msra.mxu3 %v7438_v20 }
 0x880   :  { %7461 = vmatpush.msra.mxu3 %v7437_v26 }
 0x882   :  { %7462 = vmatpush.msra.mxu3 %v7436_v12 }
 0x883   :  { %8169 = vmatmul.msk.f32.vlgmr.msrb.gmra.mxu3 %vm51_vm5, %v8494_v55 }
 0x8ab   :  { %v7399_v28 = vpop.permute.xlu1 %7398 }
 0x8f6   :  { %v7385_v52 = vpop.f32.mrf.mxu3 }
 0x8f7   :  { %v7389_v7 = vadd.f32 %v7385_v52, %v7367_v41 }
 0x8f9   :  { %7390 = vst.msk [vmem:[#allocation2] sm:$0xff] %vm51_vm5, %v7389_v7 }
 0x8fe   :  { %v7387_v2 = vpop.f32.mrf.mxu3 }
 0x900   :  { %v7394_v19 = vld [vmem:[#allocation2] sm:$0xff] }
 0x901   :  { %v7401_v37 = vmul.f32 %v7399_v28, %v7394_v19 }
 0x906   :  { %v7426_v36 = vpop.f32.mrf.mxu3 }
 0x907   :  { %v7429_v30 = vadd.f32 %v7426_v36, %v7401_v37 }
 0x909   :  { %v7434_v29 = vadd.f32 %v8491_v51, %v7429_v30 }
 0x90b   :  { %v7435_v57 = vmax.f32 %v7434_v29, 0.0 }
 0x90d   :  { %8170 = vmatmul.msk.f32.vlgmr.msra.gmra.mxu3 %vm51_vm5, %v7435_v57 }
 0x990   :  { %v7464_v49 = vpop.f32.mrf.mxu3 }
 0x991   :  { %v7465_v25 = vadd.f32 %v8492_v47, %v7464_v49 }
 0x993   :  { %7468 = vst.msk [vmem:[%s13475_s13] sm:$0xff] %vm7467_vm7, %v7465_v25 }

</bundles_post_ra>
